<compile_context>
chip_gen: v5e
topology: v5e:2x2
jax: 0.10.0
libtpu: 0.0.40
codegen_flags: <defaults>
</compile_context>

<pallas_src>
import functools

import jax
import jax.numpy as jnp
from jax.experimental import pallas as pl
from jax.experimental.pallas import tpu as pltpu


# ---------------------------------------------------------------------------
# Pallas kernels
# ---------------------------------------------------------------------------

def _matmul_bias_kernel(a_ref, b_ref, bias_ref, o_ref, *, relu):
    """Tiled bf16 matmul with f32 accumulation held in the resident output tile.

    o_ref is resident across the k grid axis (its index_map ignores k); it is
    initialized with the broadcast bias at k==0 and ReLU'd on the last k step.
    """
    k = pl.program_id(2)

    @pl.when(k == 0)
    def _():
        o_ref[...] = jnp.broadcast_to(bias_ref[...], o_ref.shape)

    o_ref[...] += jnp.dot(a_ref[...], b_ref[...],
                          preferred_element_type=jnp.float32)

    if relu:
        @pl.when(k == pl.num_programs(2) - 1)
        def _():
            o_ref[...] = jnp.maximum(o_ref[...], 0.0)


def _max9_kernel(p0, p1, p2, p3, p4, p5, p6, p7, p8, o_ref):
    """Elementwise max over the 9 (3x3) shifted pooling windows."""
    m = jnp.maximum(p0[...], p1[...])
    m = jnp.maximum(m, p2[...])
    m = jnp.maximum(m, p3[...])
    m = jnp.maximum(m, p4[...])
    m = jnp.maximum(m, p5[...])
    m = jnp.maximum(m, p6[...])
    m = jnp.maximum(m, p7[...])
    m = jnp.maximum(m, p8[...])
    o_ref[...] = m


def _softmax_kernel(x_ref, o_ref):
    x = x_ref[...]
    m = jnp.max(x, axis=1, keepdims=True)
    e = jnp.exp(x - m)
    o_ref[...] = e / jnp.sum(e, axis=1, keepdims=True)


# ---------------------------------------------------------------------------
# Helpers / Pallas wrappers
# ---------------------------------------------------------------------------

def _round_up(x, m):
    return ((x + m - 1) // m) * m


def _pick_tile(padded_dim, candidates):
    """Largest candidate tile that evenly divides the (128-multiple) padded dim."""
    for c in candidates:
        if padded_dim % c == 0:
            return c
    return 128


def matmul_packed(a, w_p, b_p, n_out, *, relu):
    """a: (M, K) -> (M, n_out) f32.

    w_p: (Kp, Np) bf16 pre-packed weight (zero padded),
    b_p: (1, Np) f32 pre-packed bias (zero padded).
    """
    M, K = a.shape
    Kp, Np = w_p.shape
    assert K <= Kp

    if M <= 128:
        tm = _round_up(M, 16)
        Mp = tm
    else:
        tm = 128
        Mp = _round_up(M, 128)
    tn = _pick_tile(Np, (512, 384, 256, 128))
    tk = _pick_tile(Kp, (1024, 512, 384, 256, 128))

    a_p = jnp.pad(a.astype(jnp.bfloat16), ((0, Mp - M), (0, Kp - K)))

    grid = (Mp // tm, Np // tn, Kp // tk)

    out = pl.pallas_call(
        functools.partial(_matmul_bias_kernel, relu=relu),
        out_shape=jax.ShapeDtypeStruct((Mp, Np), jnp.float32),
        grid_spec=pltpu.PrefetchScalarGridSpec(
            num_scalar_prefetch=0,
            grid=grid,
            in_specs=[
                pl.BlockSpec((tm, tk), lambda i, j, k: (i, k)),
                pl.BlockSpec((tk, tn), lambda i, j, k: (k, j)),
                pl.BlockSpec((1, tn), lambda i, j, k: (0, j)),
            ],
            out_specs=pl.BlockSpec((tm, tn), lambda i, j, k: (i, j)),
        ),
        compiler_params=pltpu.CompilerParams(
            dimension_semantics=("parallel", "parallel", "arbitrary")),
    )(a_p, w_p, b_p)

    return out[:M, :n_out]


def _extract_windows(x, kh, kw, stride):
    """x: (N, H, W, C) -> list of kh*kw arrays of shape (N, oh, ow, C)."""
    N, H, W, C = x.shape
    oh = (H - kh) // stride + 1
    ow = (W - kw) // stride + 1
    patches = []
    for i in range(kh):
        for j in range(kw):
            p = jax.lax.slice(
                x,
                (0, i, j, 0),
                (N, i + (oh - 1) * stride + 1, j + (ow - 1) * stride + 1, C),
                (1, stride, stride, 1))
            patches.append(p)
    return patches, oh, ow


def conv2d_packed(x, w_p, b_p, oc, ksz, *, stride, pad):
    """x: (N,H,W,C) bf16; w_p/b_p pre-packed; fused bias+ReLU. Returns bf16 NHWC."""
    N, H, W, C = x.shape
    xp = jnp.pad(x, ((0, 0), (pad, pad), (pad, pad), (0, 0)))
    patches, oh, ow = _extract_windows(xp, ksz, ksz, stride)
    # im2col ordering per row: (kh, kw, c) -- matches packed weight layout.
    cols = jnp.stack(patches, axis=3).reshape(N * oh * ow, ksz * ksz * C)
    out = matmul_packed(cols, w_p, b_p, oc, relu=True)       # (N*oh*ow, oc) f32
    # keep feature maps in bf16 between layers (halves HBM traffic downstream)
    return out.reshape(N, oh, ow, oc).astype(jnp.bfloat16)


def maxpool2d(x, *, k=3, s=2):
    """x: (N,H,W,C) -> (N,oh,ow,C); 9 shifted views reduced in a lane-dense
    (rows, 128) layout by a single Pallas kernel (no 9x stacked HBM tensor)."""
    N, H, W, C = x.shape
    patches, oh, ow = _extract_windows(x, k, k, s)
    T = N * oh * ow * C
    Tp = _round_up(T, 8 * 128)

    def prep(p):
        f = p.reshape(-1)
        f = jnp.pad(f, (0, Tp - T))
        return f.reshape(Tp // 128, 128)

    flat = [prep(p) for p in patches]
    out = pl.pallas_call(
        _max9_kernel,
        out_shape=jax.ShapeDtypeStruct((Tp // 128, 128), x.dtype),
    )(*flat)
    return out.reshape(-1)[:T].reshape(N, oh, ow, C)


def adaptive_avg_pool(x, out_h, out_w):
    """PyTorch AdaptiveAvgPool2d semantics, x: (N,H,W,C). (small glue)"""
    N, H, W, C = x.shape
    rows = []
    for i in range(out_h):
        h0 = (i * H) // out_h
        h1 = -((-(i + 1) * H) // out_h)
        cols = []
        for j in range(out_w):
            w0 = (j * W) // out_w
            w1 = -((-(j + 1) * W) // out_w)
            cols.append(jnp.mean(x[:, h0:h1, w0:w1, :], axis=(1, 2)))
        rows.append(jnp.stack(cols, axis=1))
    return jnp.stack(rows, axis=1)  # (N, out_h, out_w, C)


def softmax_pallas(logits):
    return pl.pallas_call(
        _softmax_kernel,
        out_shape=jax.ShapeDtypeStruct(logits.shape, logits.dtype),
    )(logits)


# ---------------------------------------------------------------------------
# Parameters: PyTorch-layout init + one-time packing (off the hot path)
# ---------------------------------------------------------------------------

def init_params(num_classes, key):
    def w(key, shape, scale=0.05):
        return scale * jax.random.normal(key, shape, jnp.float32)

    ks = jax.random.split(key, 16)
    p = {}
    p["c1_w"] = w(ks[0], (64, 3, 11, 11));   p["c1_b"] = w(ks[1], (64,), 0.01)
    p["c2_w"] = w(ks[2], (192, 64, 5, 5));   p["c2_b"] = w(ks[3], (192,), 0.01)
    p["c3_w"] = w(ks[4], (384, 192, 3, 3));  p["c3_b"] = w(ks[5], (384,), 0.01)
    p["c4_w"] = w(ks[6], (256, 384, 3, 3));  p["c4_b"] = w(ks[7], (256,), 0.01)
    p["c5_w"] = w(ks[8], (256, 256, 3, 3));  p["c5_b"] = w(ks[9], (256,), 0.01)
    p["f1_w"] = w(ks[10], (4096, 256 * 6 * 6), 0.01); p["f1_b"] = w(ks[11], (4096,), 0.01)
    p["f2_w"] = w(ks[12], (4096, 4096), 0.01);        p["f2_b"] = w(ks[13], (4096,), 0.01)
    p["f3_w"] = w(ks[14], (num_classes, 4096), 0.01); p["f3_b"] = w(ks[15], (num_classes,), 0.01)
    return p


def _pack_matmul(w2d, bias):
    """(K, N) f32 weight + (N,) bias -> zero-padded (Kp, Np) bf16 + (1, Np) f32."""
    K, N = w2d.shape
    Kp = _round_up(K, 128)
    Np = _round_up(N, 128)
    w_p = jnp.pad(w2d.astype(jnp.bfloat16), ((0, Kp - K), (0, Np - N)))
    b_p = jnp.pad(bias.astype(jnp.float32).reshape(1, N), ((0, 0), (0, Np - N)))
    return w_p, b_p


def pack_params(params):
    """One-time weight packing (transpose/reshape/pad/bf16-cast) out of the hot path."""
    pk = {}
    for name in ("c1", "c2", "c3", "c4", "c5"):
        w = params[name + "_w"]
        b = params[name + "_b"]
        oc, ic, kh, kw = w.shape
        # (OC,IC,KH,KW) -> (KH,KW,IC,OC) flattened to match im2col (kh,kw,c) order.
        w2 = jnp.transpose(w, (2, 3, 1, 0)).reshape(kh * kw * ic, oc)
        pk[name + "_w"], pk[name + "_b"] = _pack_matmul(w2, b)
    for name in ("f1", "f2", "f3"):
        pk[name + "_w"], pk[name + "_b"] = _pack_matmul(
            params[name + "_w"].T, params[name + "_b"])
    return pk


# ---------------------------------------------------------------------------
# AlexNet forward
# ---------------------------------------------------------------------------

def alexnet_forward(pk, x_nchw, num_classes):
    # convert NCHW input (PyTorch convention) to bf16 NHWC working layout
    x = jnp.transpose(x_nchw, (0, 2, 3, 1)).astype(jnp.bfloat16)

    # features
    x = conv2d_packed(x, pk["c1_w"], pk["c1_b"], 64, 11, stride=4, pad=2)
    x = maxpool2d(x, k=3, s=2)
    x = conv2d_packed(x, pk["c2_w"], pk["c2_b"], 192, 5, stride=1, pad=2)
    x = maxpool2d(x, k=3, s=2)
    x = conv2d_packed(x, pk["c3_w"], pk["c3_b"], 384, 3, stride=1, pad=1)
    x = conv2d_packed(x, pk["c4_w"], pk["c4_b"], 256, 3, stride=1, pad=1)
    x = conv2d_packed(x, pk["c5_w"], pk["c5_b"], 256, 3, stride=1, pad=1)
    x = maxpool2d(x, k=3, s=2)

    # avgpool + flatten (match PyTorch view on NCHW: feature order = (C, H, W))
    x = adaptive_avg_pool(x, 6, 6)                           # (N, 6, 6, 256) NHWC
    x = jnp.transpose(x, (0, 3, 1, 2)).reshape(x.shape[0], 256 * 6 * 6)

    # classifier (Dropout -> identity in eval mode)
    x = matmul_packed(x, pk["f1_w"], pk["f1_b"], 4096, relu=True)
    x = matmul_packed(x, pk["f2_w"], pk["f2_b"], 4096, relu=True)
    logits = matmul_packed(x, pk["f3_w"], pk["f3_b"], num_classes, relu=False)

    probas = softmax_pallas(logits)
    return logits, probas


# ---------------------------------------------------------------------------
# main
# ---------------------------------------------------------------------------

if __name__ == "__main__":
    num_classes = 10
    key = jax.random.PRNGKey(0)
    k_param, k_x = jax.random.split(key)

    params = init_params(num_classes, k_param)
    packed = pack_params(params)   # one-time packing, outside the forward hot path

    # Smallest spatial size that survives the conv/pool chain is 63; use 64.
    x = jax.random.normal(k_x, (2, 3, 64, 64), jnp.float32)   # NCHW like PyTorch

    fwd = jax.jit(alexnet_forward, static_argnums=(2,))
    logits, probas = fwd(packed, x, num_classes)
    logits = jax.block_until_ready(logits)
    probas = jax.block_until_ready(probas)

    assert logits.shape == (2, num_classes)
    assert probas.shape == (2, num_classes)
    assert bool(jnp.allclose(jnp.sum(probas, axis=1), 1.0, atol=1e-5))

    print("KERNEL_OK")
</pallas_src>

<mosaic_0001>
module attributes {stable_mosaic.version = 11 : i64} {
  func.func @_matmul_bias_kernel(%arg0: i32, %arg1: i32, %arg2: i32, %arg3: memref<128x384xbf16, #tpu.memory_space<vmem>>, %arg4: memref<384x128xbf16, #tpu.memory_space<vmem>>, %arg5: memref<1x128xf32, #tpu.memory_space<vmem>>, %arg6: memref<128x128xf32, #tpu.memory_space<vmem>>) attributes {dimension_semantics = [#tpu.dimension_semantics<parallel>, #tpu.dimension_semantics<parallel>, #tpu.dimension_semantics<arbitrary>], iteration_bounds = array<i64: 4, 1, 1>, scalar_prefetch = 0 : i64, scratch_operands = 0 : i64, tpu.core_type = #tpu.core_type<tc>, window_params = [{transform_indices = @transform_0, window_bounds = array<i64: 128, 384>}, {transform_indices = @transform_1, window_bounds = array<i64: 384, 128>}, {transform_indices = @transform_2, window_bounds = array<i64: 1, 128>}, {transform_indices = @transform_3, window_bounds = array<i64: 128, 128>}]} {
    %c0_i32 = arith.constant 0 : i32
    %0 = arith.cmpi eq, %arg2, %c0_i32 : i32
    %1 = arith.extui %0 : i1 to i32
    %c0_i32_0 = arith.constant 0 : i32
    %2 = arith.cmpi ne, %1, %c0_i32_0 : i32
    scf.if %2 {
      %c0_10 = arith.constant 0 : index
      %c0_11 = arith.constant 0 : index
      %12 = vector.load %arg5[%c0_10, %c0_11] : memref<1x128xf32, #tpu.memory_space<vmem>>, vector<1x128xf32>
      %13 = vector.shape_cast %12 : vector<1x128xf32> to vector<1x128xf32>
      %14 = vector.broadcast %13 : vector<1x128xf32> to vector<128x128xf32>
      %c0_12 = arith.constant 0 : index
      %c0_13 = arith.constant 0 : index
      %15 = vector.load %arg6[%c0_12, %c0_13] : memref<128x128xf32, #tpu.memory_space<vmem>>, vector<128x128xf32>
      tpu.vector_store %arg6[%c0_12, %c0_13], %14 {strides = array<i32>} : memref<128x128xf32, #tpu.memory_space<vmem>>, vector<128x128xf32>,
    } else {
    }
    %c0 = arith.constant 0 : index
    %c0_1 = arith.constant 0 : index
    %3 = vector.load %arg6[%c0, %c0_1] : memref<128x128xf32, #tpu.memory_space<vmem>>, vector<128x128xf32>
    %c0_2 = arith.constant 0 : index
    %c0_3 = arith.constant 0 : index
    %4 = vector.load %arg3[%c0_2, %c0_3] : memref<128x384xbf16, #tpu.memory_space<vmem>>, vector<128x384xbf16>
    %c0_4 = arith.constant 0 : index
    %c0_5 = arith.constant 0 : index
    %5 = vector.load %arg4[%c0_4, %c0_5] : memref<384x128xbf16, #tpu.memory_space<vmem>>, vector<384x128xbf16>
    %cst = arith.constant dense<0.000000e+00> : vector<128x128xf32>
    %6 = tpu.matmul %4, %5, %cst {dimension_numbers = #tpu.dot_dimension_numbers<[1], [0], [0], [1], [0, 0, 1, 1], [], []>} : vector<128x384xbf16>, vector<384x128xbf16>, vector<128x128xf32> -> vector<128x128xf32>
    %7 = arith.addf %3, %6 : vector<128x128xf32>
    %c0_6 = arith.constant 0 : index
    %c0_7 = arith.constant 0 : index
    %8 = vector.load %arg6[%c0_6, %c0_7] : memref<128x128xf32, #tpu.memory_space<vmem>>, vector<128x128xf32>
    tpu.vector_store %arg6[%c0_6, %c0_7], %7 {strides = array<i32>} : memref<128x128xf32, #tpu.memory_space<vmem>>, vector<128x128xf32>,
    %c0_i32_8 = arith.constant 0 : i32
    %9 = arith.cmpi eq, %arg2, %c0_i32_8 : i32
    %10 = arith.extui %9 : i1 to i32
    %c0_i32_9 = arith.constant 0 : i32
    %11 = arith.cmpi ne, %10, %c0_i32_9 : i32
    scf.if %11 {
      %c0_10 = arith.constant 0 : index
      %c0_11 = arith.constant 0 : index
      %12 = vector.load %arg6[%c0_10, %c0_11] : memref<128x128xf32, #tpu.memory_space<vmem>>, vector<128x128xf32>
      %cst_12 = arith.constant 0.000000e+00 : f32
      %13 = vector.broadcast %cst_12 : f32 to vector<128x128xf32>
      %14 = arith.maximumf %12, %13 : vector<128x128xf32>
      %c0_13 = arith.constant 0 : index
      %c0_14 = arith.constant 0 : index
      %15 = vector.load %arg6[%c0_13, %c0_14] : memref<128x128xf32, #tpu.memory_space<vmem>>, vector<128x128xf32>
      tpu.vector_store %arg6[%c0_13, %c0_14], %14 {strides = array<i32>} : memref<128x128xf32, #tpu.memory_space<vmem>>, vector<128x128xf32>,
    } else {
    }
    return
  }
  func.func @transform_0(%arg0: i32, %arg1: i32, %arg2: i32) -> (i32, i32) {
    %c0_i32 = arith.constant 0 : i32
    return %arg0, %arg2 : i32, i32
  }
  func.func @transform_1(%arg0: i32, %arg1: i32, %arg2: i32) -> (i32, i32) {
    %c0_i32 = arith.constant 0 : i32
    return %arg2, %arg1 : i32, i32
  }
  func.func @transform_2(%arg0: i32, %arg1: i32, %arg2: i32) -> (i32, i32) {
    %c0_i32 = arith.constant 0 : i32
    %c0_i32_0 = arith.constant 0 : i32
    return %c0_i32, %arg1 : i32, i32
  }
  func.func @transform_3(%arg0: i32, %arg1: i32, %arg2: i32) -> (i32, i32) {
    %c0_i32 = arith.constant 0 : i32
    return %arg0, %arg1 : i32, i32
  }
}

module attributes {stable_mosaic.version = 11 : i64} {
  func.func @_max9_kernel(%arg0: memref<56x128xbf16, #tpu.memory_space<vmem>>, %arg1: memref<56x128xbf16, #tpu.memory_space<vmem>>, %arg2: memref<56x128xbf16, #tpu.memory_space<vmem>>, %arg3: memref<56x128xbf16, #tpu.memory_space<vmem>>, %arg4: memref<56x128xbf16, #tpu.memory_space<vmem>>, %arg5: memref<56x128xbf16, #tpu.memory_space<vmem>>, %arg6: memref<56x128xbf16, #tpu.memory_space<vmem>>, %arg7: memref<56x128xbf16, #tpu.memory_space<vmem>>, %arg8: memref<56x128xbf16, #tpu.memory_space<vmem>>, %arg9: memref<56x128xbf16, #tpu.memory_space<vmem>>) attributes {dimension_semantics = [], scalar_prefetch = 0 : i64, scratch_operands = 0 : i64, tpu.core_type = #tpu.core_type<tc>} {
    %c0 = arith.constant 0 : index
    %c0_0 = arith.constant 0 : index
    %0 = vector.load %arg0[%c0, %c0_0] : memref<56x128xbf16, #tpu.memory_space<vmem>>, vector<56x128xbf16>
    %c0_1 = arith.constant 0 : index
    %c0_2 = arith.constant 0 : index
    %1 = vector.load %arg1[%c0_1, %c0_2] : memref<56x128xbf16, #tpu.memory_space<vmem>>, vector<56x128xbf16>
    %2 = arith.maximumf %0, %1 : vector<56x128xbf16>
    %c0_3 = arith.constant 0 : index
    %c0_4 = arith.constant 0 : index
    %3 = vector.load %arg2[%c0_3, %c0_4] : memref<56x128xbf16, #tpu.memory_space<vmem>>, vector<56x128xbf16>
    %4 = arith.maximumf %2, %3 : vector<56x128xbf16>
    %c0_5 = arith.constant 0 : index
    %c0_6 = arith.constant 0 : index
    %5 = vector.load %arg3[%c0_5, %c0_6] : memref<56x128xbf16, #tpu.memory_space<vmem>>, vector<56x128xbf16>
    %6 = arith.maximumf %4, %5 : vector<56x128xbf16>
    %c0_7 = arith.constant 0 : index
    %c0_8 = arith.constant 0 : index
    %7 = vector.load %arg4[%c0_7, %c0_8] : memref<56x128xbf16, #tpu.memory_space<vmem>>, vector<56x128xbf16>
    %8 = arith.maximumf %6, %7 : vector<56x128xbf16>
    %c0_9 = arith.constant 0 : index
    %c0_10 = arith.constant 0 : index
    %9 = vector.load %arg5[%c0_9, %c0_10] : memref<56x128xbf16, #tpu.memory_space<vmem>>, vector<56x128xbf16>
    %10 = arith.maximumf %8, %9 : vector<56x128xbf16>
    %c0_11 = arith.constant 0 : index
    %c0_12 = arith.constant 0 : index
    %11 = vector.load %arg6[%c0_11, %c0_12] : memref<56x128xbf16, #tpu.memory_space<vmem>>, vector<56x128xbf16>
    %12 = arith.maximumf %10, %11 : vector<56x128xbf16>
    %c0_13 = arith.constant 0 : index
    %c0_14 = arith.constant 0 : index
    %13 = vector.load %arg7[%c0_13, %c0_14] : memref<56x128xbf16, #tpu.memory_space<vmem>>, vector<56x128xbf16>
    %14 = arith.maximumf %12, %13 : vector<56x128xbf16>
    %c0_15 = arith.constant 0 : index
    %c0_16 = arith.constant 0 : index
    %15 = vector.load %arg8[%c0_15, %c0_16] : memref<56x128xbf16, #tpu.memory_space<vmem>>, vector<56x128xbf16>
    %16 = arith.maximumf %14, %15 : vector<56x128xbf16>
    %c0_17 = arith.constant 0 : index
    %c0_18 = arith.constant 0 : index
    %17 = vector.load %arg9[%c0_17, %c0_18] : memref<56x128xbf16, #tpu.memory_space<vmem>>, vector<56x128xbf16>
    tpu.vector_store %arg9[%c0_17, %c0_18], %16 {strides = array<i32>} : memref<56x128xbf16, #tpu.memory_space<vmem>>, vector<56x128xbf16>,
    return
  }
}

module attributes {stable_mosaic.version = 11 : i64} {
  func.func @_matmul_bias_kernel(%arg0: i32, %arg1: i32, %arg2: i32, %arg3: memref<112x128xbf16, #tpu.memory_space<vmem>>, %arg4: memref<128x256xbf16, #tpu.memory_space<vmem>>, %arg5: memref<1x256xf32, #tpu.memory_space<vmem>>, %arg6: memref<112x256xf32, #tpu.memory_space<vmem>>) attributes {dimension_semantics = [#tpu.dimension_semantics<parallel>, #tpu.dimension_semantics<parallel>, #tpu.dimension_semantics<arbitrary>], iteration_bounds = array<i64: 1, 1, 13>, scalar_prefetch = 0 : i64, scratch_operands = 0 : i64, tpu.core_type = #tpu.core_type<tc>, window_params = [{transform_indices = @transform_0, window_bounds = array<i64: 112, 128>}, {transform_indices = @transform_1, window_bounds = array<i64: 128, 256>}, {transform_indices = @transform_2, window_bounds = array<i64: 1, 256>}, {transform_indices = @transform_3, window_bounds = array<i64: 112, 256>}]} {
    %c0_i32 = arith.constant 0 : i32
    %0 = arith.cmpi eq, %arg2, %c0_i32 : i32
    %1 = arith.extui %0 : i1 to i32
    %c0_i32_0 = arith.constant 0 : i32
    %2 = arith.cmpi ne, %1, %c0_i32_0 : i32
    scf.if %2 {
      %c0_9 = arith.constant 0 : index
      %c0_10 = arith.constant 0 : index
      %12 = vector.load %arg5[%c0_9, %c0_10] : memref<1x256xf32, #tpu.memory_space<vmem>>, vector<1x256xf32>
      %13 = vector.shape_cast %12 : vector<1x256xf32> to vector<1x256xf32>
      %14 = vector.broadcast %13 : vector<1x256xf32> to vector<112x256xf32>
      %c0_11 = arith.constant 0 : index
      %c0_12 = arith.constant 0 : index
      %15 = vector.load %arg6[%c0_11, %c0_12] : memref<112x256xf32, #tpu.memory_space<vmem>>, vector<112x256xf32>
      tpu.vector_store %arg6[%c0_11, %c0_12], %14 {strides = array<i32>} : memref<112x256xf32, #tpu.memory_space<vmem>>, vector<112x256xf32>,
    } else {
    }
    %c0 = arith.constant 0 : index
    %c0_1 = arith.constant 0 : index
    %3 = vector.load %arg6[%c0, %c0_1] : memref<112x256xf32, #tpu.memory_space<vmem>>, vector<112x256xf32>
    %c0_2 = arith.constant 0 : index
    %c0_3 = arith.constant 0 : index
    %4 = vector.load %arg3[%c0_2, %c0_3] : memref<112x128xbf16, #tpu.memory_space<vmem>>, vector<112x128xbf16>
    %c0_4 = arith.constant 0 : index
    %c0_5 = arith.constant 0 : index
    %5 = vector.load %arg4[%c0_4, %c0_5] : memref<128x256xbf16, #tpu.memory_space<vmem>>, vector<128x256xbf16>
    %cst = arith.constant dense<0.000000e+00> : vector<112x256xf32>
    %6 = tpu.matmul %4, %5, %cst {dimension_numbers = #tpu.dot_dimension_numbers<[1], [0], [0], [1], [0, 0, 1, 1], [], []>} : vector<112x128xbf16>, vector<128x256xbf16>, vector<112x256xf32> -> vector<112x256xf32>
    %7 = arith.addf %3, %6 : vector<112x256xf32>
    %c0_6 = arith.constant 0 : index
    %c0_7 = arith.constant 0 : index
    %8 = vector.load %arg6[%c0_6, %c0_7] : memref<112x256xf32, #tpu.memory_space<vmem>>, vector<112x256xf32>
    tpu.vector_store %arg6[%c0_6, %c0_7], %7 {strides = array<i32>} : memref<112x256xf32, #tpu.memory_space<vmem>>, vector<112x256xf32>,
    %c12_i32 = arith.constant 12 : i32
    %9 = arith.cmpi eq, %arg2, %c12_i32 : i32
    %10 = arith.extui %9 : i1 to i32
    %c0_i32_8 = arith.constant 0 : i32
    %11 = arith.cmpi ne, %10, %c0_i32_8 : i32
    scf.if %11 {
      %c0_9 = arith.constant 0 : index
      %c0_10 = arith.constant 0 : index
      %12 = vector.load %arg6[%c0_9, %c0_10] : memref<112x256xf32, #tpu.memory_space<vmem>>, vector<112x256xf32>
      %cst_11 = arith.constant 0.000000e+00 : f32
      %13 = vector.broadcast %cst_11 : f32 to vector<112x256xf32>
      %14 = arith.maximumf %12, %13 : vector<112x256xf32>
      %c0_12 = arith.constant 0 : index
      %c0_13 = arith.constant 0 : index
      %15 = vector.load %arg6[%c0_12, %c0_13] : memref<112x256xf32, #tpu.memory_space<vmem>>, vector<112x256xf32>
      tpu.vector_store %arg6[%c0_12, %c0_13], %14 {strides = array<i32>} : memref<112x256xf32, #tpu.memory_space<vmem>>, vector<112x256xf32>,
    } else {
    }
    return
  }
  func.func @transform_0(%arg0: i32, %arg1: i32, %arg2: i32) -> (i32, i32) {
    %c0_i32 = arith.constant 0 : i32
    return %arg0, %arg2 : i32, i32
  }
  func.func @transform_1(%arg0: i32, %arg1: i32, %arg2: i32) -> (i32, i32) {
    %c0_i32 = arith.constant 0 : i32
    return %arg2, %arg1 : i32, i32
  }
  func.func @transform_2(%arg0: i32, %arg1: i32, %arg2: i32) -> (i32, i32) {
    %c0_i32 = arith.constant 0 : i32
    %c0_i32_0 = arith.constant 0 : i32
    return %c0_i32, %arg1 : i32, i32
  }
  func.func @transform_3(%arg0: i32, %arg1: i32, %arg2: i32) -> (i32, i32) {
    %c0_i32 = arith.constant 0 : i32
    return %arg0, %arg1 : i32, i32
  }
}

module attributes {stable_mosaic.version = 11 : i64} {
  func.func @_max9_kernel(%arg0: memref<32x128xbf16, #tpu.memory_space<vmem>>, %arg1: memref<32x128xbf16, #tpu.memory_space<vmem>>, %arg2: memref<32x128xbf16, #tpu.memory_space<vmem>>, %arg3: memref<32x128xbf16, #tpu.memory_space<vmem>>, %arg4: memref<32x128xbf16, #tpu.memory_space<vmem>>, %arg5: memref<32x128xbf16, #tpu.memory_space<vmem>>, %arg6: memref<32x128xbf16, #tpu.memory_space<vmem>>, %arg7: memref<32x128xbf16, #tpu.memory_space<vmem>>, %arg8: memref<32x128xbf16, #tpu.memory_space<vmem>>, %arg9: memref<32x128xbf16, #tpu.memory_space<vmem>>) attributes {dimension_semantics = [], scalar_prefetch = 0 : i64, scratch_operands = 0 : i64, tpu.core_type = #tpu.core_type<tc>} {
    %c0 = arith.constant 0 : index
    %c0_0 = arith.constant 0 : index
    %0 = vector.load %arg0[%c0, %c0_0] : memref<32x128xbf16, #tpu.memory_space<vmem>>, vector<32x128xbf16>
    %c0_1 = arith.constant 0 : index
    %c0_2 = arith.constant 0 : index
    %1 = vector.load %arg1[%c0_1, %c0_2] : memref<32x128xbf16, #tpu.memory_space<vmem>>, vector<32x128xbf16>
    %2 = arith.maximumf %0, %1 : vector<32x128xbf16>
    %c0_3 = arith.constant 0 : index
    %c0_4 = arith.constant 0 : index
    %3 = vector.load %arg2[%c0_3, %c0_4] : memref<32x128xbf16, #tpu.memory_space<vmem>>, vector<32x128xbf16>
    %4 = arith.maximumf %2, %3 : vector<32x128xbf16>
    %c0_5 = arith.constant 0 : index
    %c0_6 = arith.constant 0 : index
    %5 = vector.load %arg3[%c0_5, %c0_6] : memref<32x128xbf16, #tpu.memory_space<vmem>>, vector<32x128xbf16>
    %6 = arith.maximumf %4, %5 : vector<32x128xbf16>
    %c0_7 = arith.constant 0 : index
    %c0_8 = arith.constant 0 : index
    %7 = vector.load %arg4[%c0_7, %c0_8] : memref<32x128xbf16, #tpu.memory_space<vmem>>, vector<32x128xbf16>
    %8 = arith.maximumf %6, %7 : vector<32x128xbf16>
    %c0_9 = arith.constant 0 : index
    %c0_10 = arith.constant 0 : index
    %9 = vector.load %arg5[%c0_9, %c0_10] : memref<32x128xbf16, #tpu.memory_space<vmem>>, vector<32x128xbf16>
    %10 = arith.maximumf %8, %9 : vector<32x128xbf16>
    %c0_11 = arith.constant 0 : index
    %c0_12 = arith.constant 0 : index
    %11 = vector.load %arg6[%c0_11, %c0_12] : memref<32x128xbf16, #tpu.memory_space<vmem>>, vector<32x128xbf16>
    %12 = arith.maximumf %10, %11 : vector<32x128xbf16>
    %c0_13 = arith.constant 0 : index
    %c0_14 = arith.constant 0 : index
    %13 = vector.load %arg7[%c0_13, %c0_14] : memref<32x128xbf16, #tpu.memory_space<vmem>>, vector<32x128xbf16>
    %14 = arith.maximumf %12, %13 : vector<32x128xbf16>
    %c0_15 = arith.constant 0 : index
    %c0_16 = arith.constant 0 : index
    %15 = vector.load %arg8[%c0_15, %c0_16] : memref<32x128xbf16, #tpu.memory_space<vmem>>, vector<32x128xbf16>
    %16 = arith.maximumf %14, %15 : vector<32x128xbf16>
    %c0_17 = arith.constant 0 : index
    %c0_18 = arith.constant 0 : index
    %17 = vector.load %arg9[%c0_17, %c0_18] : memref<32x128xbf16, #tpu.memory_space<vmem>>, vector<32x128xbf16>
    tpu.vector_store %arg9[%c0_17, %c0_18], %16 {strides = array<i32>} : memref<32x128xbf16, #tpu.memory_space<vmem>>, vector<32x128xbf16>,
    return
  }
}

module attributes {stable_mosaic.version = 11 : i64} {
  func.func @_matmul_bias_kernel(%arg0: i32, %arg1: i32, %arg2: i32, %arg3: memref<32x256xbf16, #tpu.memory_space<vmem>>, %arg4: memref<256x384xbf16, #tpu.memory_space<vmem>>, %arg5: memref<1x384xf32, #tpu.memory_space<vmem>>, %arg6: memref<32x384xf32, #tpu.memory_space<vmem>>) attributes {dimension_semantics = [#tpu.dimension_semantics<parallel>, #tpu.dimension_semantics<parallel>, #tpu.dimension_semantics<arbitrary>], iteration_bounds = array<i64: 1, 1, 7>, scalar_prefetch = 0 : i64, scratch_operands = 0 : i64, tpu.core_type = #tpu.core_type<tc>, window_params = [{transform_indices = @transform_0, window_bounds = array<i64: 32, 256>}, {transform_indices = @transform_1, window_bounds = array<i64: 256, 384>}, {transform_indices = @transform_2, window_bounds = array<i64: 1, 384>}, {transform_indices = @transform_3, window_bounds = array<i64: 32, 384>}]} {
    %c0_i32 = arith.constant 0 : i32
    %0 = arith.cmpi eq, %arg2, %c0_i32 : i32
    %1 = arith.extui %0 : i1 to i32
    %c0_i32_0 = arith.constant 0 : i32
    %2 = arith.cmpi ne, %1, %c0_i32_0 : i32
    scf.if %2 {
      %c0_9 = arith.constant 0 : index
      %c0_10 = arith.constant 0 : index
      %12 = vector.load %arg5[%c0_9, %c0_10] : memref<1x384xf32, #tpu.memory_space<vmem>>, vector<1x384xf32>
      %13 = vector.shape_cast %12 : vector<1x384xf32> to vector<1x384xf32>
      %14 = vector.broadcast %13 : vector<1x384xf32> to vector<32x384xf32>
      %c0_11 = arith.constant 0 : index
      %c0_12 = arith.constant 0 : index
      %15 = vector.load %arg6[%c0_11, %c0_12] : memref<32x384xf32, #tpu.memory_space<vmem>>, vector<32x384xf32>
      tpu.vector_store %arg6[%c0_11, %c0_12], %14 {strides = array<i32>} : memref<32x384xf32, #tpu.memory_space<vmem>>, vector<32x384xf32>,
    } else {
    }
    %c0 = arith.constant 0 : index
    %c0_1 = arith.constant 0 : index
    %3 = vector.load %arg6[%c0, %c0_1] : memref<32x384xf32, #tpu.memory_space<vmem>>, vector<32x384xf32>
    %c0_2 = arith.constant 0 : index
    %c0_3 = arith.constant 0 : index
    %4 = vector.load %arg3[%c0_2, %c0_3] : memref<32x256xbf16, #tpu.memory_space<vmem>>, vector<32x256xbf16>
    %c0_4 = arith.constant 0 : index
    %c0_5 = arith.constant 0 : index
    %5 = vector.load %arg4[%c0_4, %c0_5] : memref<256x384xbf16, #tpu.memory_space<vmem>>, vector<256x384xbf16>
    %cst = arith.constant dense<0.000000e+00> : vector<32x384xf32>
    %6 = tpu.matmul %4, %5, %cst {dimension_numbers = #tpu.dot_dimension_numbers<[1], [0], [0], [1], [0, 0, 1, 1], [], []>} : vector<32x256xbf16>, vector<256x384xbf16>, vector<32x384xf32> -> vector<32x384xf32>
    %7 = arith.addf %3, %6 : vector<32x384xf32>
    %c0_6 = arith.constant 0 : index
    %c0_7 = arith.constant 0 : index
    %8 = vector.load %arg6[%c0_6, %c0_7] : memref<32x384xf32, #tpu.memory_space<vmem>>, vector<32x384xf32>
    tpu.vector_store %arg6[%c0_6, %c0_7], %7 {strides = array<i32>} : memref<32x384xf32, #tpu.memory_space<vmem>>, vector<32x384xf32>,
    %c6_i32 = arith.constant 6 : i32
    %9 = arith.cmpi eq, %arg2, %c6_i32 : i32
    %10 = arith.extui %9 : i1 to i32
    %c0_i32_8 = arith.constant 0 : i32
    %11 = arith.cmpi ne, %10, %c0_i32_8 : i32
    scf.if %11 {
      %c0_9 = arith.constant 0 : index
      %c0_10 = arith.constant 0 : index
      %12 = vector.load %arg6[%c0_9, %c0_10] : memref<32x384xf32, #tpu.memory_space<vmem>>, vector<32x384xf32>
      %cst_11 = arith.constant 0.000000e+00 : f32
      %13 = vector.broadcast %cst_11 : f32 to vector<32x384xf32>
      %14 = arith.maximumf %12, %13 : vector<32x384xf32>
      %c0_12 = arith.constant 0 : index
      %c0_13 = arith.constant 0 : index
      %15 = vector.load %arg6[%c0_12, %c0_13] : memref<32x384xf32, #tpu.memory_space<vmem>>, vector<32x384xf32>
      tpu.vector_store %arg6[%c0_12, %c0_13], %14 {strides = array<i32>} : memref<32x384xf32, #tpu.memory_space<vmem>>, vector<32x384xf32>,
    } else {
    }
    return
  }
  func.func @transform_0(%arg0: i32, %arg1: i32, %arg2: i32) -> (i32, i32) {
    %c0_i32 = arith.constant 0 : i32
    return %arg0, %arg2 : i32, i32
  }
  func.func @transform_1(%arg0: i32, %arg1: i32, %arg2: i32) -> (i32, i32) {
    %c0_i32 = arith.constant 0 : i32
    return %arg2, %arg1 : i32, i32
  }
  func.func @transform_2(%arg0: i32, %arg1: i32, %arg2: i32) -> (i32, i32) {
    %c0_i32 = arith.constant 0 : i32
    %c0_i32_0 = arith.constant 0 : i32
    return %c0_i32, %arg1 : i32, i32
  }
  func.func @transform_3(%arg0: i32, %arg1: i32, %arg2: i32) -> (i32, i32) {
    %c0_i32 = arith.constant 0 : i32
    return %arg0, %arg1 : i32, i32
  }
}

module attributes {stable_mosaic.version = 11 : i64} {
  func.func @_matmul_bias_kernel(%arg0: i32, %arg1: i32, %arg2: i32, %arg3: memref<32x384xbf16, #tpu.memory_space<vmem>>, %arg4: memref<384x256xbf16, #tpu.memory_space<vmem>>, %arg5: memref<1x256xf32, #tpu.memory_space<vmem>>, %arg6: memref<32x256xf32, #tpu.memory_space<vmem>>) attributes {dimension_semantics = [#tpu.dimension_semantics<parallel>, #tpu.dimension_semantics<parallel>, #tpu.dimension_semantics<arbitrary>], iteration_bounds = array<i64: 1, 1, 9>, scalar_prefetch = 0 : i64, scratch_operands = 0 : i64, tpu.core_type = #tpu.core_type<tc>, window_params = [{transform_indices = @transform_0, window_bounds = array<i64: 32, 384>}, {transform_indices = @transform_1, window_bounds = array<i64: 384, 256>}, {transform_indices = @transform_2, window_bounds = array<i64: 1, 256>}, {transform_indices = @transform_3, window_bounds = array<i64: 32, 256>}]} {
    %c0_i32 = arith.constant 0 : i32
    %0 = arith.cmpi eq, %arg2, %c0_i32 : i32
    %1 = arith.extui %0 : i1 to i32
    %c0_i32_0 = arith.constant 0 : i32
    %2 = arith.cmpi ne, %1, %c0_i32_0 : i32
    scf.if %2 {
      %c0_9 = arith.constant 0 : index
      %c0_10 = arith.constant 0 : index
      %12 = vector.load %arg5[%c0_9, %c0_10] : memref<1x256xf32, #tpu.memory_space<vmem>>, vector<1x256xf32>
      %13 = vector.shape_cast %12 : vector<1x256xf32> to vector<1x256xf32>
      %14 = vector.broadcast %13 : vector<1x256xf32> to vector<32x256xf32>
      %c0_11 = arith.constant 0 : index
      %c0_12 = arith.constant 0 : index
      %15 = vector.load %arg6[%c0_11, %c0_12] : memref<32x256xf32, #tpu.memory_space<vmem>>, vector<32x256xf32>
      tpu.vector_store %arg6[%c0_11, %c0_12], %14 {strides = array<i32>} : memref<32x256xf32, #tpu.memory_space<vmem>>, vector<32x256xf32>,
    } else {
    }
    %c0 = arith.constant 0 : index
    %c0_1 = arith.constant 0 : index
    %3 = vector.load %arg6[%c0, %c0_1] : memref<32x256xf32, #tpu.memory_space<vmem>>, vector<32x256xf32>
    %c0_2 = arith.constant 0 : index
    %c0_3 = arith.constant 0 : index
    %4 = vector.load %arg3[%c0_2, %c0_3] : memref<32x384xbf16, #tpu.memory_space<vmem>>, vector<32x384xbf16>
    %c0_4 = arith.constant 0 : index
    %c0_5 = arith.constant 0 : index
    %5 = vector.load %arg4[%c0_4, %c0_5] : memref<384x256xbf16, #tpu.memory_space<vmem>>, vector<384x256xbf16>
    %cst = arith.constant dense<0.000000e+00> : vector<32x256xf32>
    %6 = tpu.matmul %4, %5, %cst {dimension_numbers = #tpu.dot_dimension_numbers<[1], [0], [0], [1], [0, 0, 1, 1], [], []>} : vector<32x384xbf16>, vector<384x256xbf16>, vector<32x256xf32> -> vector<32x256xf32>
    %7 = arith.addf %3, %6 : vector<32x256xf32>
    %c0_6 = arith.constant 0 : index
    %c0_7 = arith.constant 0 : index
    %8 = vector.load %arg6[%c0_6, %c0_7] : memref<32x256xf32, #tpu.memory_space<vmem>>, vector<32x256xf32>
    tpu.vector_store %arg6[%c0_6, %c0_7], %7 {strides = array<i32>} : memref<32x256xf32, #tpu.memory_space<vmem>>, vector<32x256xf32>,
    %c8_i32 = arith.constant 8 : i32
    %9 = arith.cmpi eq, %arg2, %c8_i32 : i32
    %10 = arith.extui %9 : i1 to i32
    %c0_i32_8 = arith.constant 0 : i32
    %11 = arith.cmpi ne, %10, %c0_i32_8 : i32
    scf.if %11 {
      %c0_9 = arith.constant 0 : index
      %c0_10 = arith.constant 0 : index
      %12 = vector.load %arg6[%c0_9, %c0_10] : memref<32x256xf32, #tpu.memory_space<vmem>>, vector<32x256xf32>
      %cst_11 = arith.constant 0.000000e+00 : f32
      %13 = vector.broadcast %cst_11 : f32 to vector<32x256xf32>
      %14 = arith.maximumf %12, %13 : vector<32x256xf32>
      %c0_12 = arith.constant 0 : index
      %c0_13 = arith.constant 0 : index
      %15 = vector.load %arg6[%c0_12, %c0_13] : memref<32x256xf32, #tpu.memory_space<vmem>>, vector<32x256xf32>
      tpu.vector_store %arg6[%c0_12, %c0_13], %14 {strides = array<i32>} : memref<32x256xf32, #tpu.memory_space<vmem>>, vector<32x256xf32>,
    } else {
    }
    return
  }
  func.func @transform_0(%arg0: i32, %arg1: i32, %arg2: i32) -> (i32, i32) {
    %c0_i32 = arith.constant 0 : i32
    return %arg0, %arg2 : i32, i32
  }
  func.func @transform_1(%arg0: i32, %arg1: i32, %arg2: i32) -> (i32, i32) {
    %c0_i32 = arith.constant 0 : i32
    return %arg2, %arg1 : i32, i32
  }
  func.func @transform_2(%arg0: i32, %arg1: i32, %arg2: i32) -> (i32, i32) {
    %c0_i32 = arith.constant 0 : i32
    %c0_i32_0 = arith.constant 0 : i32
    return %c0_i32, %arg1 : i32, i32
  }
  func.func @transform_3(%arg0: i32, %arg1: i32, %arg2: i32) -> (i32, i32) {
    %c0_i32 = arith.constant 0 : i32
    return %arg0, %arg1 : i32, i32
  }
}

module attributes {stable_mosaic.version = 11 : i64} {
  func.func @_matmul_bias_kernel(%arg0: i32, %arg1: i32, %arg2: i32, %arg3: memref<32x384xbf16, #tpu.memory_space<vmem>>, %arg4: memref<384x256xbf16, #tpu.memory_space<vmem>>, %arg5: memref<1x256xf32, #tpu.memory_space<vmem>>, %arg6: memref<32x256xf32, #tpu.memory_space<vmem>>) attributes {dimension_semantics = [#tpu.dimension_semantics<parallel>, #tpu.dimension_semantics<parallel>, #tpu.dimension_semantics<arbitrary>], iteration_bounds = array<i64: 1, 1, 6>, scalar_prefetch = 0 : i64, scratch_operands = 0 : i64, tpu.core_type = #tpu.core_type<tc>, window_params = [{transform_indices = @transform_0, window_bounds = array<i64: 32, 384>}, {transform_indices = @transform_1, window_bounds = array<i64: 384, 256>}, {transform_indices = @transform_2, window_bounds = array<i64: 1, 256>}, {transform_indices = @transform_3, window_bounds = array<i64: 32, 256>}]} {
    %c0_i32 = arith.constant 0 : i32
    %0 = arith.cmpi eq, %arg2, %c0_i32 : i32
    %1 = arith.extui %0 : i1 to i32
    %c0_i32_0 = arith.constant 0 : i32
    %2 = arith.cmpi ne, %1, %c0_i32_0 : i32
    scf.if %2 {
      %c0_9 = arith.constant 0 : index
      %c0_10 = arith.constant 0 : index
      %12 = vector.load %arg5[%c0_9, %c0_10] : memref<1x256xf32, #tpu.memory_space<vmem>>, vector<1x256xf32>
      %13 = vector.shape_cast %12 : vector<1x256xf32> to vector<1x256xf32>
      %14 = vector.broadcast %13 : vector<1x256xf32> to vector<32x256xf32>
      %c0_11 = arith.constant 0 : index
      %c0_12 = arith.constant 0 : index
      %15 = vector.load %arg6[%c0_11, %c0_12] : memref<32x256xf32, #tpu.memory_space<vmem>>, vector<32x256xf32>
      tpu.vector_store %arg6[%c0_11, %c0_12], %14 {strides = array<i32>} : memref<32x256xf32, #tpu.memory_space<vmem>>, vector<32x256xf32>,
    } else {
    }
    %c0 = arith.constant 0 : index
    %c0_1 = arith.constant 0 : index
    %3 = vector.load %arg6[%c0, %c0_1] : memref<32x256xf32, #tpu.memory_space<vmem>>, vector<32x256xf32>
    %c0_2 = arith.constant 0 : index
    %c0_3 = arith.constant 0 : index
    %4 = vector.load %arg3[%c0_2, %c0_3] : memref<32x384xbf16, #tpu.memory_space<vmem>>, vector<32x384xbf16>
    %c0_4 = arith.constant 0 : index
    %c0_5 = arith.constant 0 : index
    %5 = vector.load %arg4[%c0_4, %c0_5] : memref<384x256xbf16, #tpu.memory_space<vmem>>, vector<384x256xbf16>
    %cst = arith.constant dense<0.000000e+00> : vector<32x256xf32>
    %6 = tpu.matmul %4, %5, %cst {dimension_numbers = #tpu.dot_dimension_numbers<[1], [0], [0], [1], [0, 0, 1, 1], [], []>} : vector<32x384xbf16>, vector<384x256xbf16>, vector<32x256xf32> -> vector<32x256xf32>
    %7 = arith.addf %3, %6 : vector<32x256xf32>
    %c0_6 = arith.constant 0 : index
    %c0_7 = arith.constant 0 : index
    %8 = vector.load %arg6[%c0_6, %c0_7] : memref<32x256xf32, #tpu.memory_space<vmem>>, vector<32x256xf32>
    tpu.vector_store %arg6[%c0_6, %c0_7], %7 {strides = array<i32>} : memref<32x256xf32, #tpu.memory_space<vmem>>, vector<32x256xf32>,
    %c5_i32 = arith.constant 5 : i32
    %9 = arith.cmpi eq, %arg2, %c5_i32 : i32
    %10 = arith.extui %9 : i1 to i32
    %c0_i32_8 = arith.constant 0 : i32
    %11 = arith.cmpi ne, %10, %c0_i32_8 : i32
    scf.if %11 {
      %c0_9 = arith.constant 0 : index
      %c0_10 = arith.constant 0 : index
      %12 = vector.load %arg6[%c0_9, %c0_10] : memref<32x256xf32, #tpu.memory_space<vmem>>, vector<32x256xf32>
      %cst_11 = arith.constant 0.000000e+00 : f32
      %13 = vector.broadcast %cst_11 : f32 to vector<32x256xf32>
      %14 = arith.maximumf %12, %13 : vector<32x256xf32>
      %c0_12 = arith.constant 0 : index
      %c0_13 = arith.constant 0 : index
      %15 = vector.load %arg6[%c0_12, %c0_13] : memref<32x256xf32, #tpu.memory_space<vmem>>, vector<32x256xf32>
      tpu.vector_store %arg6[%c0_12, %c0_13], %14 {strides = array<i32>} : memref<32x256xf32, #tpu.memory_space<vmem>>, vector<32x256xf32>,
    } else {
    }
    return
  }
  func.func @transform_0(%arg0: i32, %arg1: i32, %arg2: i32) -> (i32, i32) {
    %c0_i32 = arith.constant 0 : i32
    return %arg0, %arg2 : i32, i32
  }
  func.func @transform_1(%arg0: i32, %arg1: i32, %arg2: i32) -> (i32, i32) {
    %c0_i32 = arith.constant 0 : i32
    return %arg2, %arg1 : i32, i32
  }
  func.func @transform_2(%arg0: i32, %arg1: i32, %arg2: i32) -> (i32, i32) {
    %c0_i32 = arith.constant 0 : i32
    %c0_i32_0 = arith.constant 0 : i32
    return %c0_i32, %arg1 : i32, i32
  }
  func.func @transform_3(%arg0: i32, %arg1: i32, %arg2: i32) -> (i32, i32) {
    %c0_i32 = arith.constant 0 : i32
    return %arg0, %arg1 : i32, i32
  }
}

module attributes {stable_mosaic.version = 11 : i64} {
  func.func @_max9_kernel(%arg0: memref<8x128xbf16, #tpu.memory_space<vmem>>, %arg1: memref<8x128xbf16, #tpu.memory_space<vmem>>, %arg2: memref<8x128xbf16, #tpu.memory_space<vmem>>, %arg3: memref<8x128xbf16, #tpu.memory_space<vmem>>, %arg4: memref<8x128xbf16, #tpu.memory_space<vmem>>, %arg5: memref<8x128xbf16, #tpu.memory_space<vmem>>, %arg6: memref<8x128xbf16, #tpu.memory_space<vmem>>, %arg7: memref<8x128xbf16, #tpu.memory_space<vmem>>, %arg8: memref<8x128xbf16, #tpu.memory_space<vmem>>, %arg9: memref<8x128xbf16, #tpu.memory_space<vmem>>) attributes {dimension_semantics = [], scalar_prefetch = 0 : i64, scratch_operands = 0 : i64, tpu.core_type = #tpu.core_type<tc>} {
    %c0 = arith.constant 0 : index
    %c0_0 = arith.constant 0 : index
    %0 = vector.load %arg0[%c0, %c0_0] : memref<8x128xbf16, #tpu.memory_space<vmem>>, vector<8x128xbf16>
    %c0_1 = arith.constant 0 : index
    %c0_2 = arith.constant 0 : index
    %1 = vector.load %arg1[%c0_1, %c0_2] : memref<8x128xbf16, #tpu.memory_space<vmem>>, vector<8x128xbf16>
    %2 = arith.maximumf %0, %1 : vector<8x128xbf16>
    %c0_3 = arith.constant 0 : index
    %c0_4 = arith.constant 0 : index
    %3 = vector.load %arg2[%c0_3, %c0_4] : memref<8x128xbf16, #tpu.memory_space<vmem>>, vector<8x128xbf16>
    %4 = arith.maximumf %2, %3 : vector<8x128xbf16>
    %c0_5 = arith.constant 0 : index
    %c0_6 = arith.constant 0 : index
    %5 = vector.load %arg3[%c0_5, %c0_6] : memref<8x128xbf16, #tpu.memory_space<vmem>>, vector<8x128xbf16>
    %6 = arith.maximumf %4, %5 : vector<8x128xbf16>
    %c0_7 = arith.constant 0 : index
    %c0_8 = arith.constant 0 : index
    %7 = vector.load %arg4[%c0_7, %c0_8] : memref<8x128xbf16, #tpu.memory_space<vmem>>, vector<8x128xbf16>
    %8 = arith.maximumf %6, %7 : vector<8x128xbf16>
    %c0_9 = arith.constant 0 : index
    %c0_10 = arith.constant 0 : index
    %9 = vector.load %arg5[%c0_9, %c0_10] : memref<8x128xbf16, #tpu.memory_space<vmem>>, vector<8x128xbf16>
    %10 = arith.maximumf %8, %9 : vector<8x128xbf16>
    %c0_11 = arith.constant 0 : index
    %c0_12 = arith.constant 0 : index
    %11 = vector.load %arg6[%c0_11, %c0_12] : memref<8x128xbf16, #tpu.memory_space<vmem>>, vector<8x128xbf16>
    %12 = arith.maximumf %10, %11 : vector<8x128xbf16>
    %c0_13 = arith.constant 0 : index
    %c0_14 = arith.constant 0 : index
    %13 = vector.load %arg7[%c0_13, %c0_14] : memref<8x128xbf16, #tpu.memory_space<vmem>>, vector<8x128xbf16>
    %14 = arith.maximumf %12, %13 : vector<8x128xbf16>
    %c0_15 = arith.constant 0 : index
    %c0_16 = arith.constant 0 : index
    %15 = vector.load %arg8[%c0_15, %c0_16] : memref<8x128xbf16, #tpu.memory_space<vmem>>, vector<8x128xbf16>
    %16 = arith.maximumf %14, %15 : vector<8x128xbf16>
    %c0_17 = arith.constant 0 : index
    %c0_18 = arith.constant 0 : index
    %17 = vector.load %arg9[%c0_17, %c0_18] : memref<8x128xbf16, #tpu.memory_space<vmem>>, vector<8x128xbf16>
    tpu.vector_store %arg9[%c0_17, %c0_18], %16 {strides = array<i32>} : memref<8x128xbf16, #tpu.memory_space<vmem>>, vector<8x128xbf16>,
    return
  }
}

module attributes {stable_mosaic.version = 11 : i64} {
  func.func @_matmul_bias_kernel(%arg0: i32, %arg1: i32, %arg2: i32, %arg3: memref<16x1024xbf16, #tpu.memory_space<vmem>>, %arg4: memref<1024x512xbf16, #tpu.memory_space<vmem>>, %arg5: memref<1x512xf32, #tpu.memory_space<vmem>>, %arg6: memref<16x512xf32, #tpu.memory_space<vmem>>) attributes {dimension_semantics = [#tpu.dimension_semantics<parallel>, #tpu.dimension_semantics<parallel>, #tpu.dimension_semantics<arbitrary>], iteration_bounds = array<i64: 1, 8, 9>, scalar_prefetch = 0 : i64, scratch_operands = 0 : i64, tpu.core_type = #tpu.core_type<tc>, window_params = [{transform_indices = @transform_0, window_bounds = array<i64: 16, 1024>}, {transform_indices = @transform_1, window_bounds = array<i64: 1024, 512>}, {transform_indices = @transform_2, window_bounds = array<i64: 1, 512>}, {transform_indices = @transform_3, window_bounds = array<i64: 16, 512>}]} {
    %c0_i32 = arith.constant 0 : i32
    %0 = arith.cmpi eq, %arg2, %c0_i32 : i32
    %1 = arith.extui %0 : i1 to i32
    %c0_i32_0 = arith.constant 0 : i32
    %2 = arith.cmpi ne, %1, %c0_i32_0 : i32
    scf.if %2 {
      %c0_9 = arith.constant 0 : index
      %c0_10 = arith.constant 0 : index
      %12 = vector.load %arg5[%c0_9, %c0_10] : memref<1x512xf32, #tpu.memory_space<vmem>>, vector<1x512xf32>
      %13 = vector.shape_cast %12 : vector<1x512xf32> to vector<1x512xf32>
      %14 = vector.broadcast %13 : vector<1x512xf32> to vector<16x512xf32>
      %c0_11 = arith.constant 0 : index
      %c0_12 = arith.constant 0 : index
      %15 = vector.load %arg6[%c0_11, %c0_12] : memref<16x512xf32, #tpu.memory_space<vmem>>, vector<16x512xf32>
      tpu.vector_store %arg6[%c0_11, %c0_12], %14 {strides = array<i32>} : memref<16x512xf32, #tpu.memory_space<vmem>>, vector<16x512xf32>,
    } else {
    }
    %c0 = arith.constant 0 : index
    %c0_1 = arith.constant 0 : index
    %3 = vector.load %arg6[%c0, %c0_1] : memref<16x512xf32, #tpu.memory_space<vmem>>, vector<16x512xf32>
    %c0_2 = arith.constant 0 : index
    %c0_3 = arith.constant 0 : index
    %4 = vector.load %arg3[%c0_2, %c0_3] : memref<16x1024xbf16, #tpu.memory_space<vmem>>, vector<16x1024xbf16>
    %c0_4 = arith.constant 0 : index
    %c0_5 = arith.constant 0 : index
    %5 = vector.load %arg4[%c0_4, %c0_5] : memref<1024x512xbf16, #tpu.memory_space<vmem>>, vector<1024x512xbf16>
    %cst = arith.constant dense<0.000000e+00> : vector<16x512xf32>
    %6 = tpu.matmul %4, %5, %cst {dimension_numbers = #tpu.dot_dimension_numbers<[1], [0], [0], [1], [0, 0, 1, 1], [], []>} : vector<16x1024xbf16>, vector<1024x512xbf16>, vector<16x512xf32> -> vector<16x512xf32>
    %7 = arith.addf %3, %6 : vector<16x512xf32>
    %c0_6 = arith.constant 0 : index
    %c0_7 = arith.constant 0 : index
    %8 = vector.load %arg6[%c0_6, %c0_7] : memref<16x512xf32, #tpu.memory_space<vmem>>, vector<16x512xf32>
    tpu.vector_store %arg6[%c0_6, %c0_7], %7 {strides = array<i32>} : memref<16x512xf32, #tpu.memory_space<vmem>>, vector<16x512xf32>,
    %c8_i32 = arith.constant 8 : i32
    %9 = arith.cmpi eq, %arg2, %c8_i32 : i32
    %10 = arith.extui %9 : i1 to i32
    %c0_i32_8 = arith.constant 0 : i32
    %11 = arith.cmpi ne, %10, %c0_i32_8 : i32
    scf.if %11 {
      %c0_9 = arith.constant 0 : index
      %c0_10 = arith.constant 0 : index
      %12 = vector.load %arg6[%c0_9, %c0_10] : memref<16x512xf32, #tpu.memory_space<vmem>>, vector<16x512xf32>
      %cst_11 = arith.constant 0.000000e+00 : f32
      %13 = vector.broadcast %cst_11 : f32 to vector<16x512xf32>
      %14 = arith.maximumf %12, %13 : vector<16x512xf32>
      %c0_12 = arith.constant 0 : index
      %c0_13 = arith.constant 0 : index
      %15 = vector.load %arg6[%c0_12, %c0_13] : memref<16x512xf32, #tpu.memory_space<vmem>>, vector<16x512xf32>
      tpu.vector_store %arg6[%c0_12, %c0_13], %14 {strides = array<i32>} : memref<16x512xf32, #tpu.memory_space<vmem>>, vector<16x512xf32>,
    } else {
    }
    return
  }
  func.func @transform_0(%arg0: i32, %arg1: i32, %arg2: i32) -> (i32, i32) {
    %c0_i32 = arith.constant 0 : i32
    return %arg0, %arg2 : i32, i32
  }
  func.func @transform_1(%arg0: i32, %arg1: i32, %arg2: i32) -> (i32, i32) {
    %c0_i32 = arith.constant 0 : i32
    return %arg2, %arg1 : i32, i32
  }
  func.func @transform_2(%arg0: i32, %arg1: i32, %arg2: i32) -> (i32, i32) {
    %c0_i32 = arith.constant 0 : i32
    %c0_i32_0 = arith.constant 0 : i32
    return %c0_i32, %arg1 : i32, i32
  }
  func.func @transform_3(%arg0: i32, %arg1: i32, %arg2: i32) -> (i32, i32) {
    %c0_i32 = arith.constant 0 : i32
    return %arg0, %arg1 : i32, i32
  }
}

module attributes {stable_mosaic.version = 11 : i64} {
  func.func @_matmul_bias_kernel(%arg0: i32, %arg1: i32, %arg2: i32, %arg3: memref<16x1024xbf16, #tpu.memory_space<vmem>>, %arg4: memref<1024x512xbf16, #tpu.memory_space<vmem>>, %arg5: memref<1x512xf32, #tpu.memory_space<vmem>>, %arg6: memref<16x512xf32, #tpu.memory_space<vmem>>) attributes {dimension_semantics = [#tpu.dimension_semantics<parallel>, #tpu.dimension_semantics<parallel>, #tpu.dimension_semantics<arbitrary>], iteration_bounds = array<i64: 1, 8, 4>, scalar_prefetch = 0 : i64, scratch_operands = 0 : i64, tpu.core_type = #tpu.core_type<tc>, window_params = [{transform_indices = @transform_0, window_bounds = array<i64: 16, 1024>}, {transform_indices = @transform_1, window_bounds = array<i64: 1024, 512>}, {transform_indices = @transform_2, window_bounds = array<i64: 1, 512>}, {transform_indices = @transform_3, window_bounds = array<i64: 16, 512>}]} {
    %c0_i32 = arith.constant 0 : i32
    %0 = arith.cmpi eq, %arg2, %c0_i32 : i32
    %1 = arith.extui %0 : i1 to i32
    %c0_i32_0 = arith.constant 0 : i32
    %2 = arith.cmpi ne, %1, %c0_i32_0 : i32
    scf.if %2 {
      %c0_9 = arith.constant 0 : index
      %c0_10 = arith.constant 0 : index
      %12 = vector.load %arg5[%c0_9, %c0_10] : memref<1x512xf32, #tpu.memory_space<vmem>>, vector<1x512xf32>
      %13 = vector.shape_cast %12 : vector<1x512xf32> to vector<1x512xf32>
      %14 = vector.broadcast %13 : vector<1x512xf32> to vector<16x512xf32>
      %c0_11 = arith.constant 0 : index
      %c0_12 = arith.constant 0 : index
      %15 = vector.load %arg6[%c0_11, %c0_12] : memref<16x512xf32, #tpu.memory_space<vmem>>, vector<16x512xf32>
      tpu.vector_store %arg6[%c0_11, %c0_12], %14 {strides = array<i32>} : memref<16x512xf32, #tpu.memory_space<vmem>>, vector<16x512xf32>,
    } else {
    }
    %c0 = arith.constant 0 : index
    %c0_1 = arith.constant 0 : index
    %3 = vector.load %arg6[%c0, %c0_1] : memref<16x512xf32, #tpu.memory_space<vmem>>, vector<16x512xf32>
    %c0_2 = arith.constant 0 : index
    %c0_3 = arith.constant 0 : index
    %4 = vector.load %arg3[%c0_2, %c0_3] : memref<16x1024xbf16, #tpu.memory_space<vmem>>, vector<16x1024xbf16>
    %c0_4 = arith.constant 0 : index
    %c0_5 = arith.constant 0 : index
    %5 = vector.load %arg4[%c0_4, %c0_5] : memref<1024x512xbf16, #tpu.memory_space<vmem>>, vector<1024x512xbf16>
    %cst = arith.constant dense<0.000000e+00> : vector<16x512xf32>
    %6 = tpu.matmul %4, %5, %cst {dimension_numbers = #tpu.dot_dimension_numbers<[1], [0], [0], [1], [0, 0, 1, 1], [], []>} : vector<16x1024xbf16>, vector<1024x512xbf16>, vector<16x512xf32> -> vector<16x512xf32>
    %7 = arith.addf %3, %6 : vector<16x512xf32>
    %c0_6 = arith.constant 0 : index
    %c0_7 = arith.constant 0 : index
    %8 = vector.load %arg6[%c0_6, %c0_7] : memref<16x512xf32, #tpu.memory_space<vmem>>, vector<16x512xf32>
    tpu.vector_store %arg6[%c0_6, %c0_7], %7 {strides = array<i32>} : memref<16x512xf32, #tpu.memory_space<vmem>>, vector<16x512xf32>,
    %c3_i32 = arith.constant 3 : i32
    %9 = arith.cmpi eq, %arg2, %c3_i32 : i32
    %10 = arith.extui %9 : i1 to i32
    %c0_i32_8 = arith.constant 0 : i32
    %11 = arith.cmpi ne, %10, %c0_i32_8 : i32
    scf.if %11 {
      %c0_9 = arith.constant 0 : index
      %c0_10 = arith.constant 0 : index
      %12 = vector.load %arg6[%c0_9, %c0_10] : memref<16x512xf32, #tpu.memory_space<vmem>>, vector<16x512xf32>
      %cst_11 = arith.constant 0.000000e+00 : f32
      %13 = vector.broadcast %cst_11 : f32 to vector<16x512xf32>
      %14 = arith.maximumf %12, %13 : vector<16x512xf32>
      %c0_12 = arith.constant 0 : index
      %c0_13 = arith.constant 0 : index
      %15 = vector.load %arg6[%c0_12, %c0_13] : memref<16x512xf32, #tpu.memory_space<vmem>>, vector<16x512xf32>
      tpu.vector_store %arg6[%c0_12, %c0_13], %14 {strides = array<i32>} : memref<16x512xf32, #tpu.memory_space<vmem>>, vector<16x512xf32>,
    } else {
    }
    return
  }
  func.func @transform_0(%arg0: i32, %arg1: i32, %arg2: i32) -> (i32, i32) {
    %c0_i32 = arith.constant 0 : i32
    return %arg0, %arg2 : i32, i32
  }
  func.func @transform_1(%arg0: i32, %arg1: i32, %arg2: i32) -> (i32, i32) {
    %c0_i32 = arith.constant 0 : i32
    return %arg2, %arg1 : i32, i32
  }
  func.func @transform_2(%arg0: i32, %arg1: i32, %arg2: i32) -> (i32, i32) {
    %c0_i32 = arith.constant 0 : i32
    %c0_i32_0 = arith.constant 0 : i32
    return %c0_i32, %arg1 : i32, i32
  }
  func.func @transform_3(%arg0: i32, %arg1: i32, %arg2: i32) -> (i32, i32) {
    %c0_i32 = arith.constant 0 : i32
    return %arg0, %arg1 : i32, i32
  }
}

module attributes {stable_mosaic.version = 11 : i64} {
  func.func @_matmul_bias_kernel(%arg0: i32, %arg1: i32, %arg2: i32, %arg3: memref<16x1024xbf16, #tpu.memory_space<vmem>>, %arg4: memref<1024x128xbf16, #tpu.memory_space<vmem>>, %arg5: memref<1x128xf32, #tpu.memory_space<vmem>>, %arg6: memref<16x128xf32, #tpu.memory_space<vmem>>) attributes {dimension_semantics = [#tpu.dimension_semantics<parallel>, #tpu.dimension_semantics<parallel>, #tpu.dimension_semantics<arbitrary>], iteration_bounds = array<i64: 1, 1, 4>, scalar_prefetch = 0 : i64, scratch_operands = 0 : i64, tpu.core_type = #tpu.core_type<tc>, window_params = [{transform_indices = @transform_0, window_bounds = array<i64: 16, 1024>}, {transform_indices = @transform_1, window_bounds = array<i64: 1024, 128>}, {transform_indices = @transform_2, window_bounds = array<i64: 1, 128>}, {transform_indices = @transform_3, window_bounds = array<i64: 16, 128>}]} {
    %c0_i32 = arith.constant 0 : i32
    %0 = arith.cmpi eq, %arg2, %c0_i32 : i32
    %1 = arith.extui %0 : i1 to i32
    %c0_i32_0 = arith.constant 0 : i32
    %2 = arith.cmpi ne, %1, %c0_i32_0 : i32
    scf.if %2 {
      %c0_8 = arith.constant 0 : index
      %c0_9 = arith.constant 0 : index
      %9 = vector.load %arg5[%c0_8, %c0_9] : memref<1x128xf32, #tpu.memory_space<vmem>>, vector<1x128xf32>
      %10 = vector.shape_cast %9 : vector<1x128xf32> to vector<1x128xf32>
      %11 = vector.broadcast %10 : vector<1x128xf32> to vector<16x128xf32>
      %c0_10 = arith.constant 0 : index
      %c0_11 = arith.constant 0 : index
      %12 = vector.load %arg6[%c0_10, %c0_11] : memref<16x128xf32, #tpu.memory_space<vmem>>, vector<16x128xf32>
      tpu.vector_store %arg6[%c0_10, %c0_11], %11 {strides = array<i32>} : memref<16x128xf32, #tpu.memory_space<vmem>>, vector<16x128xf32>,
    } else {
    }
    %c0 = arith.constant 0 : index
    %c0_1 = arith.constant 0 : index
    %3 = vector.load %arg6[%c0, %c0_1] : memref<16x128xf32, #tpu.memory_space<vmem>>, vector<16x128xf32>
    %c0_2 = arith.constant 0 : index
    %c0_3 = arith.constant 0 : index
    %4 = vector.load %arg3[%c0_2, %c0_3] : memref<16x1024xbf16, #tpu.memory_space<vmem>>, vector<16x1024xbf16>
    %c0_4 = arith.constant 0 : index
    %c0_5 = arith.constant 0 : index
    %5 = vector.load %arg4[%c0_4, %c0_5] : memref<1024x128xbf16, #tpu.memory_space<vmem>>, vector<1024x128xbf16>
    %cst = arith.constant dense<0.000000e+00> : vector<16x128xf32>
    %6 = tpu.matmul %4, %5, %cst {dimension_numbers = #tpu.dot_dimension_numbers<[1], [0], [0], [1], [0, 0, 1, 1], [], []>} : vector<16x1024xbf16>, vector<1024x128xbf16>, vector<16x128xf32> -> vector<16x128xf32>
    %7 = arith.addf %3, %6 : vector<16x128xf32>
    %c0_6 = arith.constant 0 : index
    %c0_7 = arith.constant 0 : index
    %8 = vector.load %arg6[%c0_6, %c0_7] : memref<16x128xf32, #tpu.memory_space<vmem>>, vector<16x128xf32>
    tpu.vector_store %arg6[%c0_6, %c0_7], %7 {strides = array<i32>} : memref<16x128xf32, #tpu.memory_space<vmem>>, vector<16x128xf32>,
    return
  }
  func.func @transform_0(%arg0: i32, %arg1: i32, %arg2: i32) -> (i32, i32) {
    %c0_i32 = arith.constant 0 : i32
    return %arg0, %arg2 : i32, i32
  }
  func.func @transform_1(%arg0: i32, %arg1: i32, %arg2: i32) -> (i32, i32) {
    %c0_i32 = arith.constant 0 : i32
    return %arg2, %arg1 : i32, i32
  }
  func.func @transform_2(%arg0: i32, %arg1: i32, %arg2: i32) -> (i32, i32) {
    %c0_i32 = arith.constant 0 : i32
    %c0_i32_0 = arith.constant 0 : i32
    return %c0_i32, %arg1 : i32, i32
  }
  func.func @transform_3(%arg0: i32, %arg1: i32, %arg2: i32) -> (i32, i32) {
    %c0_i32 = arith.constant 0 : i32
    return %arg0, %arg1 : i32, i32
  }
}

module attributes {stable_mosaic.version = 11 : i64} {
  func.func @_softmax_kernel(%arg0: memref<2x10xf32, #tpu.memory_space<vmem>>, %arg1: memref<2x10xf32, #tpu.memory_space<vmem>>) attributes {dimension_semantics = [], scalar_prefetch = 0 : i64, scratch_operands = 0 : i64, tpu.core_type = #tpu.core_type<tc>} {
    %c0 = arith.constant 0 : index
    %c0_0 = arith.constant 0 : index
    %0 = vector.load %arg0[%c0, %c0_0] : memref<2x10xf32, #tpu.memory_space<vmem>>, vector<2x10xf32>
    %cst = arith.constant dense<0xFF800000> : vector<2xf32>
    %1 = vector.multi_reduction <maximumf>, %0, %cst [1] : vector<2x10xf32> to vector<2xf32>
    %2 = vector.shape_cast %1 : vector<2xf32> to vector<2x1xf32>
    %3 = vector.broadcast %2 : vector<2x1xf32> to vector<2x10xf32>
    %4 = arith.subf %0, %3 : vector<2x10xf32>
    %5 = math.exp %4 : vector<2x10xf32>
    %cst_1 = arith.constant dense<0.000000e+00> : vector<2xf32>
    %6 = vector.multi_reduction <add>, %5, %cst_1 [1] : vector<2x10xf32> to vector<2xf32>
    %7 = vector.shape_cast %6 : vector<2xf32> to vector<2x1xf32>
    %8 = vector.broadcast %7 : vector<2x1xf32> to vector<2x10xf32>
    %9 = arith.divf %5, %8 : vector<2x10xf32>
    %c0_2 = arith.constant 0 : index
    %c0_3 = arith.constant 0 : index
    %10 = vector.load %arg1[%c0_2, %c0_3] : memref<2x10xf32, #tpu.memory_space<vmem>>, vector<2x10xf32>
    tpu.vector_store %arg1[%c0_2, %c0_3], %9 {strides = array<i32>} : memref<2x10xf32, #tpu.memory_space<vmem>>, vector<2x10xf32>,
    return
  }
}

</mosaic_0001>

<bundles_post_ra>
// kernel: alexnet_forward.12
= control target key start
LH: loop header
LB: loop body
LE: loop exit
PB: predicated region body
PF: predicated region fallthrough
CT: control target
= control target key end

     0   :  { %s1350_s12 = smov 0   ;;  %s1352_s13 = smov 0   ;;  %s1611_s0 = inlined_call_operand.vmem [shape: bf16[512,384], index: 0, kind: input, shape index: {}]   ;;  %s1612_s1 = inlined_call_operand.vmem [shape: bf16[384,128], index: 1, kind: input, shape index: {}]   ;;  %s1613_s2 = inlined_call_operand.vmem [shape: f32[1,128], index: 2, kind: input, shape index: {}]   ;;  %s1614_s3 = inlined_call_operand.vmem [shape: f32[512,128], index: 3, kind: output, shape index: {}]  }
   0x1   :  { %s1354_s14 = smov 0  }
   0x2 LB: > { %s32_s15 = sadd.s32 1, %s1324_s13  ;;  %p1009_p0 = scmp.ge.s32.totalorder %s1328_s14, 1  ;;  %s1328_s14 = sphi %s1354_s14, %s13_s14   ;;  %s1324_s13 = sphi %s1352_s13, %s1616_s13   ;;  %s1320_s12 = sphi %s1350_s12, %s1615_s12  }
   0x3   : > { %p34_p1 = scmp.ge.s32.totalorder %s32_s15, 4  ;;  %p191_p2 = scmp.lt.s32.totalorder %s1328_s14, 5 }
   0x5   : > { %s1618_s15 = smov (%p34_p1, %s32_s15), 0  ;;  %p192_p3 = pnand %p1009_p0, %p191_p2 }
   0x6   : > { %s1010_s7 = sshll.u32 (!%p192_p3), %s1320_s12, 4 }
   0x7   : > { %195 = sbr.rel (%p192_p3) target bundleno = 273 (0x111), region = 32  ;;  %p236_p4 = scmp.lt.s32.totalorder (!%p192_p3), %s1010_s7, 63 }
   0xc   : > { %v1239_v0 = vld [vmem:[%s1612_s1 + $0x38] sm:$0xff]  ;;  %v1238_v3 = vld [vmem:[%s1612_s1 + $0x30] sm:$0xff]  ;;  %v1237_v6 = vld [vmem:[%s1612_s1 + $0x28] sm:$0xff]  ;;  %s1620_s7 = smov (!%p236_p4, %s1010_s7), 63 }
   0xd   : > { %v1376_v1 = vld [vmem:[%s1612_s1 + $0x78] sm:$0xff]  ;;  %659 = vmatpush.bf16.msra.mxu0 %v1239_v0  ;;  %1256 = vmatpush.bf16.msra.mxu3 %v1239_v0  ;;  %v1391_v4 = vld [vmem:[%s1612_s1 + $0x70] sm:$0xff]  ;;  %v1406_v7 = vld [vmem:[%s1612_s1 + $0x68] sm:$0xff]  ;;  %s1280_s25 = smul.u32 12, %s1620_s7  ;;  %s1013_s24 = sshll.u32 %s1620_s7, 3 }
   0xe   : > { %v1381_v2 = vld [vmem:[%s1612_s1 + $0xb8] sm:$0xff]  ;;  %708 = vmatpush.bf16.msra.mxu1 %v1376_v1  ;;  %v1396_v5 = vld [vmem:[%s1612_s1 + $0xb0] sm:$0xff]  ;;  %v1411_v8 = vld [vmem:[%s1612_s1 + $0xa8] sm:$0xff]  ;;  %s1559_s27 = scalar_lea.vmem %s1614_s3, %s1013_s24 }
   0xf   : > { %757 = vmatpush.bf16.msra.mxu2 %v1381_v2  ;;  %v1236_v9 = vld [vmem:[%s1612_s1 + $0x20] sm:$0xff]  ;;  %v1235_v12 = vld [vmem:[%s1612_s1 + $0x18] sm:$0xff]  ;;  %v1234_v15 = vld [vmem:[%s1612_s1 + $0x10] sm:$0xff]  ;;  %s1463_s8 = scalar_lea.vmem %s1611_s0, %s1280_s25 }
  0x10   : > { %v1422_v10 = vld [vmem:[%s1612_s1 + $0x60] sm:$0xff]  ;;  %v1243_v13 = vld [vmem:[%s1612_s1 + $0x58] sm:$0xff]  ;;  %v1242_v16 = vld [vmem:[%s1612_s1 + $0x50] sm:$0xff] }
  0x11   : > { %660 = vmatpush.bf16.msra.mxu0 %v1238_v3  ;;  %1257 = vmatpush.bf16.msra.mxu3 %v1238_v3  ;;  %v1427_v11 = vld [vmem:[%s1612_s1 + $0xa0] sm:$0xff]  ;;  %v1442_v14 = vld [vmem:[%s1612_s1 + $0x98] sm:$0xff]  ;;  %v1455_v17 = vld [vmem:[%s1612_s1 + $0x90] sm:$0xff] }
  0x12   : > { %709 = vmatpush.bf16.msra.mxu1 %v1391_v4  ;;  %v1233_v18 = vld [vmem:[%s1612_s1 + $0x8] sm:$0xff]  ;;  %v1232_v21 = vld [vmem:[%s1612_s1] sm:$0xff]  ;;  %v1088_v26 = vld [vmem:[%s1463_s8 + $0x90] sm:$0xf] }
  0x13   : > { %758 = vmatpush.bf16.msra.mxu2 %v1396_v5  ;;  %v1241_v19 = vld [vmem:[%s1612_s1 + $0x48] sm:$0xff]  ;;  %v1240_v22 = vld [vmem:[%s1612_s1 + $0x40] sm:$0xff]  ;;  %v1227_v27 = vld [vmem:[%s1463_s8 + $0x98] sm:$0xf0] }
  0x14   : > { %v1472_v20 = vld [vmem:[%s1612_s1 + $0x88] sm:$0xff]  ;;  %v1483_v23 = vld [vmem:[%s1612_s1 + $0x80] sm:$0xff]  ;;  %v1018_v29 = vld [vmem:[%s1463_s8 + $0xc] sm:$0xf0]  ;;  %v1089_v33 = vor.u32 %v1227_v27, %v1088_v26 }
  0x15   : > { %661 = vmatpush.bf16.msra.mxu0 %v1237_v6  ;;  %1258 = vmatpush.bf16.msra.mxu3 %v1237_v6  ;;  %v1016_v24 = vld [vmem:[%s1463_s8] sm:$0xf]  ;;  %v1209_v25 = vld [vmem:[%s1463_s8 + $0x8] sm:$0xf0]  ;;  %v1208_v28 = vld [vmem:[%s1463_s8 + $0x4] sm:$0xf] }
  0x16   : > { %710 = vmatpush.bf16.msra.mxu1 %v1406_v7  ;;  %v1024_v30 = vld [vmem:[%s1463_s8 + $0x8] sm:$0xf]  ;;  %v1210_v31 = vld [vmem:[%s1463_s8 + $0x10] sm:$0xf0]  ;;  %v1017_v32 = vor.u32 %v1209_v25, %v1016_v24  ;;  %v1021_v34 = vor.u32 %v1208_v28, %v1018_v29  ;;  %v1028_v36 = vld [vmem:[%s1463_s8 + $0x18] sm:$0xf] }
  0x17   : > { %759 = vmatpush.bf16.msra.mxu2 %v1411_v8  ;;  %v1025_v35 = vor.u32 %v1210_v31, %v1024_v30  ;;  %v1212_v37 = vld [vmem:[%s1463_s8 + $0x20] sm:$0xf0]  ;;  %v1100_v38 = vld [vmem:[%s1463_s8 + $0xa8] sm:$0xf]  ;;  %v1230_v39 = vld [vmem:[%s1463_s8 + $0xb0] sm:$0xf0] }
  0x18   : > { %v1211_v40 = vld [vmem:[%s1463_s8 + $0x1c] sm:$0xf]  ;;  %v1030_v41 = vld [vmem:[%s1463_s8 + $0x24] sm:$0xf0]  ;;  %v1036_v42 = vld [vmem:[%s1463_s8 + $0x20] sm:$0xf]  ;;  %v1029_v44 = vor.u32 %v1212_v37, %v1028_v36  ;;  %v1101_v45 = vor.u32 %v1230_v39, %v1100_v38 }
  0x19   : > { %662 = vmatpush.bf16.msra.mxu0 %v1236_v9  ;;  %1259 = vmatpush.bf16.msra.mxu3 %v1236_v9  ;;  %v1213_v43 = vld [vmem:[%s1463_s8 + $0x28] sm:$0xf0]  ;;  %v1033_v46 = vor.u32 %v1211_v40, %v1030_v41  ;;  %v1040_v48 = vld [vmem:[%s1463_s8 + $0x30] sm:$0xf]  ;;  %v1215_v49 = vld [vmem:[%s1463_s8 + $0x38] sm:$0xf0] }
  0x1a   : > { %711 = vmatpush.bf16.msra.mxu1 %v1422_v10  ;;  %v1037_v47 = vor.u32 %v1213_v43, %v1036_v42  ;;  %v1214_v50 = vld [vmem:[%s1463_s8 + $0x34] sm:$0xf]  ;;  %v1090_v52 = vld [vmem:[%s1463_s8 + $0x9c] sm:$0xf0]  ;;  %v1048_v54 = vld [vmem:[%s1463_s8 + $0x38] sm:$0xf]  ;;  %v1041_v56 = vor.u32 %v1215_v49, %v1040_v48 }
  0x1b   : > { %760 = vmatpush.bf16.msra.mxu2 %v1427_v11  ;;  %v1226_v51 = vld [vmem:[%s1463_s8 + $0x94] sm:$0xf]  ;;  %v1042_v53 = vld [vmem:[%s1463_s8 + $0x3c] sm:$0xf0]  ;;  %v1216_v55 = vld [vmem:[%s1463_s8 + $0x40] sm:$0xf0] }
  0x1c   : > { %v1093_v57 = vor.u32 %v1226_v51, %v1090_v52  ;;  %v1045_v58 = vor.u32 %v1214_v50, %v1042_v53  ;;  %v1049_v59 = vor.u32 %v1216_v55, %v1048_v54  ;;  %v1052_v60 = vld [vmem:[%s1463_s8 + $0x48] sm:$0xf]  ;;  %v1218_v61 = vld [vmem:[%s1463_s8 + $0x50] sm:$0xf0]  ;;  %v1217_v62 = vld [vmem:[%s1463_s8 + $0x4c] sm:$0xf] }
  0x1d   : > { %663 = vmatpush.bf16.msra.mxu0 %v1235_v12  ;;  %1260 = vmatpush.bf16.msra.mxu3 %v1235_v12  ;;  %v1229_v63 = vld [vmem:[%s1463_s8 + $0xac] sm:$0xf]  ;;  %v1102_v0 = vld [vmem:[%s1463_s8 + $0xb4] sm:$0xf0]  ;;  %v1219_v3 = vld [vmem:[%s1463_s8 + $0x58] sm:$0xf0] }
  0x1e   : > { %712 = vmatpush.bf16.msra.mxu1 %v1243_v13  ;;  %v1105_v6 = vor.u32 %v1229_v63, %v1102_v0  ;;  %v1221_v9 = vld [vmem:[%s1463_s8 + $0x68] sm:$0xf0]  ;;  %v1228_v12 = vld [vmem:[%s1463_s8 + $0xa0] sm:$0xf0]  ;;  %v1108_v24 = vld [vmem:[%s1463_s8 + $0xb0] sm:$0xf] }
  0x1f   : > { %761 = vmatpush.bf16.msra.mxu2 %v1442_v14  ;;  %v1078_v25 = vld [vmem:[%s1463_s8 + $0x84] sm:$0xf0]  ;;  %v1084_v26 = vld [vmem:[%s1463_s8 + $0x80] sm:$0xf]  ;;  %v1225_v27 = vld [vmem:[%s1463_s8 + $0x88] sm:$0xf0] }
  0x20   : > { %v1085_v31 = vor.u32 %v1225_v27, %v1084_v26  ;;  %v1552_v36 = vld [vmem:[%s1613_s2] ss:$0 sm:$0xff] }
  0x21   : > { %664 = vmatpush.bf16.msra.mxu0 %v1234_v15  ;;  %1261 = vmatpush.bf16.msra.mxu3 %v1234_v15  ;;  %v1222_v15 = vld [vmem:[%s1463_s8 + $0x70] sm:$0xf0] }
  0x22   : > { %713 = vmatpush.bf16.msra.mxu1 %v1242_v16 }
  0x23   : > { %762 = vmatpush.bf16.msra.mxu2 %v1455_v17 }
  0x25   : > { %665 = vmatpush.bf16.msra.mxu0 %v1233_v18  ;;  %1262 = vmatpush.bf16.msra.mxu3 %v1233_v18 }
  0x26   : > { %714 = vmatpush.bf16.msra.mxu1 %v1241_v19 }
  0x27   : > { %763 = vmatpush.bf16.msra.mxu2 %v1472_v20 }
  0x29   : > { %666 = vmatpush.bf16.msra.mxu0 %v1232_v21  ;;  %1263 = vmatpush.bf16.msra.mxu3 %v1232_v21  ;;  %v1224_v21 = vld [vmem:[%s1463_s8 + $0x80] sm:$0xf0] }
  0x2a   : > { %715 = vmatpush.bf16.msra.mxu1 %v1240_v22 }
  0x2b   : > { %764 = vmatpush.bf16.msra.mxu2 %v1483_v23 }
  0x2c   : > { %667 = vmatmul.bf16.vlgmr.msra.gmra.mxu0 %v1017_v32  ;;  %697 = vmatmul.bf16.vlgmr.msra.gmra.mxu3 %v1089_v33 }
  0x2d   : > { %1264 = vmatpush.bf16.msrb.mxu3 %v1376_v1  ;;  %716 = vmatmul.bf16.vlgmr.msra.gmra.mxu1 %v1021_v34  ;;  %v1054_v1 = vld [vmem:[%s1463_s8 + $0x54] sm:$0xf0] }
  0x2e   : > { %765 = vmatmul.bf16.vlgmr.msra.gmra.mxu2 %v1025_v35 }
  0x31   : > { %1265 = vmatpush.bf16.msrb.mxu3 %v1391_v4  ;;  %v1053_v4 = vor.u32 %v1218_v61, %v1052_v60 }
  0x35   : > { %1266 = vmatpush.bf16.msrb.mxu3 %v1406_v7 }
  0x39   : > { %1267 = vmatpush.bf16.msrb.mxu3 %v1422_v10  ;;  %v1220_v10 = vld [vmem:[%s1463_s8 + $0x64] sm:$0xf] }
  0x3c   : > { %672 = vmatmul.bf16.gmra.mxu0 %v1029_v44  ;;  %702 = vmatmul.bf16.gmra.mxu3 %v1101_v45 }
  0x3d   : > { %1268 = vmatpush.bf16.msrb.mxu3 %v1243_v13  ;;  %721 = vmatmul.bf16.gmra.mxu1 %v1033_v46  ;;  %v1066_v13 = vld [vmem:[%s1463_s8 + $0x6c] sm:$0xf0] }
  0x3e   : > { %770 = vmatmul.bf16.gmra.mxu2 %v1037_v47  ;;  %v1069_v18 = vor.u32 %v1220_v10, %v1066_v13 }
  0x41   : > { %1269 = vmatpush.bf16.msrb.mxu3 %v1242_v16 }
  0x45   : > { %1270 = vmatpush.bf16.msrb.mxu3 %v1241_v19 }
  0x49   : > { %1271 = vmatpush.bf16.msrb.mxu3 %v1240_v22  ;;  %v1223_v22 = vld [vmem:[%s1463_s8 + $0x7c] sm:$0xf] }
  0x4a   : > { %v1081_v30 = vor.u32 %v1223_v22, %v1078_v25 }
  0x4c   : > { %677 = vmatmul.bf16.gmra.mxu0 %v1041_v56  ;;  %746 = vmatmul.bf16.vlgmr.msrb.gmra.mxu3 %v1093_v57 }
  0x4d   : > { %1272 = vmatpush.bf16.msra.mxu3 %v1381_v2  ;;  %726 = vmatmul.bf16.gmra.mxu1 %v1045_v58  ;;  %v1060_v2 = vld [vmem:[%s1463_s8 + $0x50] sm:$0xf] }
  0x4e   : > { %775 = vmatmul.bf16.gmra.mxu2 %v1049_v59  ;;  %v1061_v7 = vor.u32 %v1219_v3, %v1060_v2 }
  0x51   : > { %1273 = vmatpush.bf16.msra.mxu3 %v1396_v5  ;;  %v1057_v5 = vor.u32 %v1217_v62, %v1054_v1 }
  0x55   : > { %1274 = vmatpush.bf16.msra.mxu3 %v1411_v8  ;;  %v1064_v8 = vld [vmem:[%s1463_s8 + $0x60] sm:$0xf] }
  0x56   : > { %v1065_v16 = vor.u32 %v1221_v9, %v1064_v8 }
  0x59   : > { %1275 = vmatpush.bf16.msra.mxu3 %v1427_v11  ;;  %v1096_v11 = vld [vmem:[%s1463_s8 + $0x98] sm:$0xf] }
  0x5c   : > { %682 = vmatmul.bf16.gmra.mxu0 %v1053_v4  ;;  %751 = vmatmul.bf16.gmra.mxu3 %v1105_v6 }
  0x5d   : > { %1276 = vmatpush.bf16.msra.mxu3 %v1442_v14  ;;  %731 = vmatmul.bf16.gmra.mxu1 %v1057_v5  ;;  %v1072_v14 = vld [vmem:[%s1463_s8 + $0x68] sm:$0xf] }
  0x5e   : > { %780 = vmatmul.bf16.gmra.mxu2 %v1061_v7  ;;  %v1073_v19 = vor.u32 %v1222_v15, %v1072_v14 }
  0x61   : > { %1277 = vmatpush.bf16.msra.mxu3 %v1455_v17  ;;  %v1097_v17 = vor.u32 %v1228_v12, %v1096_v11 }
  0x65   : > { %1278 = vmatpush.bf16.msra.mxu3 %v1472_v20  ;;  %v1076_v20 = vld [vmem:[%s1463_s8 + $0x78] sm:$0xf] }
  0x66   : > { %v1077_v28 = vor.u32 %v1224_v21, %v1076_v20 }
  0x69   : > { %1279 = vmatpush.bf16.msra.mxu3 %v1483_v23  ;;  %v1231_v23 = vld [vmem:[%s1463_s8 + $0xb8] sm:$0xf0] }
  0x6a   : > { %v1109_v29 = vor.u32 %v1231_v23, %v1108_v24 }
  0x6c   : > { %687 = vmatmul.bf16.gmra.mxu0 %v1065_v16  ;;  %795 = vmatmul.bf16.vlgmr.msra.gmra.mxu3 %v1097_v17 }
  0x6d   : > { %736 = vmatmul.bf16.gmra.mxu1 %v1069_v18 }
  0x6e   : > { %785 = vmatmul.bf16.gmra.mxu2 %v1073_v19 }
  0x7c   : > { %692 = vmatmul.bf16.gmra.mxu0 %v1077_v28  ;;  %800 = vmatmul.bf16.gmra.mxu3 %v1109_v29 }
  0x7d   : > { %741 = vmatmul.bf16.gmra.mxu1 %v1081_v30 }
  0x7e   : > { %790 = vmatmul.bf16.gmra.mxu2 %v1085_v31 }
  0xa9   : > { %v668_v32 = vpop.f32.mrf.mxu0 }
  0xaa   : > { %v717_v33 = vpop.f32.mrf.mxu1 }
  0xab   : > { %v718_v34 = vadd.f32 %v717_v33, %v668_v32 }
  0xaf   : > { %v1547_v35 = vpop.f32.mrf.mxu3 }
  0xb1   : > { %v766_v37 = vpop.f32.mrf.mxu2  ;;  %v670_v39 = vpop.f32.mrf.mxu0 }
  0xb2   : > { %v767_v38 = vadd.f32 %v766_v37, %v718_v34  ;;  %v719_v40 = vpop.f32.mrf.mxu1 }
  0xb3   : > { %v720_v43 = vadd.f32 %v719_v40, %v670_v39 }
  0xb4   : > { %v806_v41 = vadd.f32 %v1552_v36, %v767_v38 }
  0xb6   : > { %v857_v42 = vmax.f32 %v806_v41, 0.0 }
  0xb7   : > { %v1562_v44 = vpop.f32.mrf.mxu3 }
  0xb8   : > { %873 = vst [vmem:[%s1559_s27] sm:$0xff] %v857_v42 }
  0xb9   : > { %v768_v45 = vpop.f32.mrf.mxu2  ;;  %v673_v47 = vpop.f32.mrf.mxu0 }
  0xba   : > { %v769_v46 = vadd.f32 %v768_v45, %v720_v43  ;;  %v722_v48 = vpop.f32.mrf.mxu1 }
  0xbb   : > { %v723_v51 = vadd.f32 %v722_v48, %v673_v47 }
  0xbc   : > { %v807_v49 = vadd.f32 %v1552_v36, %v769_v46 }
  0xbe   : > { %v858_v50 = vmax.f32 %v807_v49, 0.0 }
  0xbf   : > { %v1566_v52 = vpop.f32.mrf.mxu3 }
  0xc0   : > { %874 = vst [vmem:[%s1559_s27 + $0x8] sm:$0xff] %v858_v50 }
  0xc1   : > { %v771_v53 = vpop.f32.mrf.mxu2  ;;  %v675_v55 = vpop.f32.mrf.mxu0 }
  0xc2   : > { %v772_v54 = vadd.f32 %v771_v53, %v723_v51  ;;  %v724_v56 = vpop.f32.mrf.mxu1 }
  0xc3   : > { %v725_v59 = vadd.f32 %v724_v56, %v675_v55 }
  0xc4   : > { %v808_v57 = vadd.f32 %v1552_v36, %v772_v54 }
  0xc6   : > { %v859_v58 = vmax.f32 %v808_v57, 0.0 }
  0xc7   : > { %v1570_v60 = vpop.f32.mrf.mxu3 }
  0xc8   : > { %875 = vst [vmem:[%s1559_s27 + $0x10] sm:$0xff] %v859_v58 }
  0xc9   : > { %v773_v61 = vpop.f32.mrf.mxu2  ;;  %v678_v63 = vpop.f32.mrf.mxu0 }
  0xca   : > { %v774_v62 = vadd.f32 %v773_v61, %v725_v59  ;;  %v727_v0 = vpop.f32.mrf.mxu1 }
  0xcb   : > { %v728_v3 = vadd.f32 %v727_v0, %v678_v63 }
  0xcc   : > { %v809_v1 = vadd.f32 %v1552_v36, %v774_v62 }
  0xce   : > { %v860_v2 = vmax.f32 %v809_v1, 0.0 }
  0xcf   : > { %v747_v4 = vpop.f32.mrf.mxu3 }
  0xd0   : > { %876 = vst [vmem:[%s1559_s27 + $0x18] sm:$0xff] %v860_v2  ;;  %v748_v38 = vadd.f32 %v747_v4, %v1547_v35 }
  0xd1   : > { %v776_v6 = vpop.f32.mrf.mxu2  ;;  %v680_v7 = vpop.f32.mrf.mxu0 }
  0xd2   : > { %v777_v5 = vadd.f32 %v776_v6, %v728_v3  ;;  %v729_v8 = vpop.f32.mrf.mxu1 }
  0xd3   : > { %v730_v11 = vadd.f32 %v729_v8, %v680_v7 }
  0xd4   : > { %v810_v9 = vadd.f32 %v1552_v36, %v777_v5 }
  0xd6   : > { %v861_v10 = vmax.f32 %v810_v9, 0.0 }
  0xd7   : > { %v749_v12 = vpop.f32.mrf.mxu3 }
  0xd8   : > { %877 = vst [vmem:[%s1559_s27 + $0x20] sm:$0xff] %v861_v10  ;;  %v750_v50 = vadd.f32 %v749_v12, %v1562_v44 }
  0xd9   : > { %v778_v13 = vpop.f32.mrf.mxu2  ;;  %v683_v15 = vpop.f32.mrf.mxu0 }
  0xda   : > { %v779_v14 = vadd.f32 %v778_v13, %v730_v11  ;;  %v732_v16 = vpop.f32.mrf.mxu1 }
  0xdb   : > { %v733_v19 = vadd.f32 %v732_v16, %v683_v15 }
  0xdc   : > { %v811_v17 = vadd.f32 %v1552_v36, %v779_v14 }
  0xde   : > { %v862_v18 = vmax.f32 %v811_v17, 0.0 }
  0xdf   : > { %v752_v20 = vpop.f32.mrf.mxu3 }
  0xe0   : > { %878 = vst [vmem:[%s1559_s27 + $0x28] sm:$0xff] %v862_v18  ;;  %v753_v44 = vadd.f32 %v752_v20, %v1566_v52 }
  0xe1   : > { %v781_v21 = vpop.f32.mrf.mxu2  ;;  %v685_v24 = vpop.f32.mrf.mxu0 }
  0xe2   : > { %v782_v22 = vadd.f32 %v781_v21, %v733_v19  ;;  %v734_v23 = vpop.f32.mrf.mxu1 }
  0xe3   : > { %v735_v27 = vadd.f32 %v734_v23, %v685_v24 }
  0xe4   : > { %v812_v25 = vadd.f32 %v1552_v36, %v782_v22 }
  0xe6   : > { %v863_v26 = vmax.f32 %v812_v25, 0.0 }
  0xe7   : > { %v754_v28 = vpop.f32.mrf.mxu3 }
  0xe8   : > { %879 = vst [vmem:[%s1559_s27 + $0x30] sm:$0xff] %v863_v26  ;;  %v755_v10 = vadd.f32 %v754_v28, %v1570_v60 }
  0xe9   : > { %v783_v29 = vpop.f32.mrf.mxu2  ;;  %v688_v31 = vpop.f32.mrf.mxu0 }
  0xea   : > { %v784_v30 = vadd.f32 %v783_v29, %v735_v27  ;;  %v737_v32 = vpop.f32.mrf.mxu1 }
  0xeb   : > { %v738_v37 = vadd.f32 %v737_v32, %v688_v31 }
  0xec   : > { %v813_v33 = vadd.f32 %v1552_v36, %v784_v30 }
  0xee   : > { %v864_v34 = vmax.f32 %v813_v33, 0.0 }
  0xef   : > { %v796_v39 = vpop.f32.mrf.mxu3 }
  0xf0   : > { %880 = vst [vmem:[%s1559_s27 + $0x38] sm:$0xff] %v864_v34  ;;  %v797_v41 = vadd.f32 %v796_v39, %v748_v38 }
  0xf1   : > { %v786_v40 = vpop.f32.mrf.mxu2  ;;  %v690_v43 = vpop.f32.mrf.mxu0 }
  0xf2   : > { %v787_v42 = vadd.f32 %v786_v40, %v738_v37  ;;  %v818_v45 = vadd.f32 %v1552_v36, %v797_v41  ;;  %v739_v46 = vpop.f32.mrf.mxu1 }
  0xf3   : > { %v740_v35 = vadd.f32 %v739_v46, %v690_v43 }
  0xf4   : > { %v814_v47 = vadd.f32 %v1552_v36, %v787_v42  ;;  %v869_v48 = vmax.f32 %v818_v45, 0.0 }
  0xf6   : > { %v865_v49 = vmax.f32 %v814_v47, 0.0  ;;  %885 = vst [vmem:[%s1559_s27 + $0x60] sm:$0xff] %v869_v48 }
  0xf7   : > { %v798_v51 = vpop.f32.mrf.mxu3 }
  0xf8   : > { %881 = vst [vmem:[%s1559_s27 + $0x40] sm:$0xff] %v865_v49  ;;  %v799_v54 = vadd.f32 %v798_v51, %v750_v50 }
  0xf9   : > { %v788_v53 = vpop.f32.mrf.mxu2  ;;  %v693_v57 = vpop.f32.mrf.mxu0 }
  0xfa   : > { %v789_v55 = vadd.f32 %v788_v53, %v740_v35  ;;  %v819_v56 = vadd.f32 %v1552_v36, %v799_v54  ;;  %v742_v58 = vpop.f32.mrf.mxu1 }
  0xfb   : > { %v743_v63 = vadd.f32 %v742_v58, %v693_v57 }
  0xfc   : > { %v815_v59 = vadd.f32 %v1552_v36, %v789_v55  ;;  %v870_v61 = vmax.f32 %v819_v56, 0.0 }
  0xfe   : > { %v866_v62 = vmax.f32 %v815_v59, 0.0  ;;  %886 = vst [vmem:[%s1559_s27 + $0x68] sm:$0xff] %v870_v61 }
  0xff   : > { %v801_v0 = vpop.f32.mrf.mxu3 }
 0x100   : > { %882 = vst [vmem:[%s1559_s27 + $0x48] sm:$0xff] %v866_v62  ;;  %v802_v2 = vadd.f32 %v801_v0, %v753_v44 }
 0x101   : > { %v791_v1 = vpop.f32.mrf.mxu2  ;;  %v695_v7 = vpop.f32.mrf.mxu0 }
 0x102   : > { %v792_v3 = vadd.f32 %v791_v1, %v743_v63  ;;  %v820_v4 = vadd.f32 %v1552_v36, %v802_v2  ;;  %v744_v8 = vpop.f32.mrf.mxu1 }
 0x103   : > { %v745_v52 = vadd.f32 %v744_v8, %v695_v7 }
 0x104   : > { %v816_v6 = vadd.f32 %v1552_v36, %v792_v3  ;;  %v871_v5 = vmax.f32 %v820_v4, 0.0 }
 0x106   : > { %v867_v9 = vmax.f32 %v816_v6, 0.0  ;;  %887 = vst [vmem:[%s1559_s27 + $0x70] sm:$0xff] %v871_v5 }
 0x107   : > { %v803_v11 = vpop.f32.mrf.mxu3 }
 0x108   : > { %883 = vst [vmem:[%s1559_s27 + $0x50] sm:$0xff] %v867_v9  ;;  %v804_v13 = vadd.f32 %v803_v11, %v755_v10 }
 0x109   : > { %v793_v12 = vpop.f32.mrf.mxu2 }
 0x10a   : > { %v794_v14 = vadd.f32 %v793_v12, %v745_v52  ;;  %v821_v15 = vadd.f32 %v1552_v36, %v804_v13 }
 0x10c   : > { %v817_v16 = vadd.f32 %v1552_v36, %v794_v14  ;;  %v872_v17 = vmax.f32 %v821_v15, 0.0 }
 0x10e   : > { %v868_v18 = vmax.f32 %v817_v16, 0.0  ;;  %888 = vst [vmem:[%s1559_s27 + $0x78] sm:$0xff] %v872_v17 }
 0x110   : > { %884 = vst [vmem:[%s1559_s27 + $0x58] sm:$0xff] %v868_v18 }
 0x111 PF: > { %s13_s14 = sadd.s32 1, %s1328_s14   ;;  %s1615_s12 = smov %s1324_s13 }
 0x112   : > { %p10_p5 = scmp.ge.s32.totalorder %s13_s14, 6   ;;  %s1616_s13 = smov %s1618_s15 }
 0x114   :  { %12 = sbr.rel (!%p10_p5) target bundleno = 2 (0x2), region = 76 }

// kernel: alexnet_forward.13
= control target key start
LH: loop header
LB: loop body
LE: loop exit
PB: predicated region body
PF: predicated region fallthrough
CT: control target
= control target key end

     0   :  { %s651_s0 = inlined_call_operand.vmem [shape: bf16[56,128], index: 0, kind: input, shape index: {}]   ;;  %s652_s1 = inlined_call_operand.vmem [shape: bf16[56,128], index: 1, kind: input, shape index: {}]   ;;  %s653_s2 = inlined_call_operand.vmem [shape: bf16[56,128], index: 2, kind: input, shape index: {}]   ;;  %s654_s3 = inlined_call_operand.vmem [shape: bf16[56,128], index: 3, kind: input, shape index: {}]   ;;  %s655_s4 = inlined_call_operand.vmem [shape: bf16[56,128], index: 4, kind: input, shape index: {}]   ;;  %s656_s5 = inlined_call_operand.vmem [shape: bf16[56,128], index: 5, kind: input, shape index: {}]   ;;  %s657_s6 = inlined_call_operand.vmem [shape: bf16[56,128], index: 6, kind: input, shape index: {}]   ;;  %s658_s7 = inlined_call_operand.vmem [shape: bf16[56,128], index: 7, kind: input, shape index: {}]   ;;  %s659_s8 = inlined_call_operand.vmem [shape: bf16[56,128], index: 8, kind: input, shape index: {}]   ;;  %s660_s9 = inlined_call_operand.vmem [shape: bf16[56,128], index: 9, kind: output, shape index: {}]  }
   0x1   :  { %v331_v0 = vld [vmem:[%s651_s0] sm:$0xff]   ;;  %v453_v20 = vld [vmem:[%s651_s0 + $0x8] sm:$0xff]   ;;  %v454_v61 = vld [vmem:[%s651_s0 + $0x10] sm:$0xff]  }
   0x2   :  { %v343_v1 = vld [vmem:[%s652_s1] sm:$0xff]   ;;  %v332_v3 = vunpack.c.l.bf16 %v331_v0  ;;  %v333_v4 = vunpack.c.h.bf16 %v331_v0  ;;  %v455_v25 = vld [vmem:[%s652_s1 + $0x8] sm:$0xff]   ;;  %v336_v34 = vunpack.c.l.bf16 %v453_v20  ;;  %v337_v35 = vunpack.c.h.bf16 %v453_v20 }
   0x3   :  { %v355_v2 = vld [vmem:[%s653_s2] sm:$0xff]   ;;  %v344_v5 = vunpack.c.l.bf16 %v343_v1  ;;  %v345_v6 = vunpack.c.h.bf16 %v343_v1  ;;  %v457_v30 = vld [vmem:[%s653_s2 + $0x8] sm:$0xff]   ;;  %v348_v38 = vunpack.c.l.bf16 %v455_v25  ;;  %v349_v39 = vunpack.c.h.bf16 %v455_v25  ;;  %v462_v25 = vld [vmem:[%s655_s4 + $0x10] sm:$0xff]  }
   0x4   :  { %v367_v7 = vld [vmem:[%s654_s3] sm:$0xff]   ;;  %v356_v10 = vunpack.c.l.bf16 %v355_v2  ;;  %v357_v11 = vunpack.c.h.bf16 %v355_v2  ;;  %v459_v31 = vld [vmem:[%s654_s3 + $0x8] sm:$0xff]   ;;  %v360_v42 = vunpack.c.l.bf16 %v457_v30  ;;  %v361_v43 = vunpack.c.h.bf16 %v457_v30 }
   0x5   :  { %v379_v8 = vld [vmem:[%s655_s4] sm:$0xff]   ;;  %v368_v12 = vunpack.c.l.bf16 %v367_v7  ;;  %v60_v15 = vmax.f32 %v332_v3, %v344_v5  ;;  %v61_v16 = vmax.f32 %v333_v4, %v345_v6  ;;  %v369_v17 = vunpack.c.h.bf16 %v367_v7  ;;  %v461_v40 = vld [vmem:[%s655_s4 + $0x8] sm:$0xff]   ;;  %v456_v6 = vld [vmem:[%s652_s1 + $0x10] sm:$0xff]  }
   0x6   :  { %v391_v9 = vld [vmem:[%s656_s5] sm:$0xff]   ;;  %v380_v18 = vunpack.c.l.bf16 %v379_v8  ;;  %v381_v21 = vunpack.c.h.bf16 %v379_v8  ;;  %v463_v41 = vld [vmem:[%s656_s5 + $0x8] sm:$0xff]   ;;  %v372_v44 = vunpack.c.l.bf16 %v459_v31  ;;  %v373_v45 = vunpack.c.h.bf16 %v459_v31  ;;  %v458_v7 = vld [vmem:[%s653_s2 + $0x10] sm:$0xff]  }
   0x7   :  { %v403_v13 = vld [vmem:[%s657_s6] sm:$0xff]   ;;  %v392_v22 = vunpack.c.l.bf16 %v391_v9  ;;  %v393_v23 = vunpack.c.h.bf16 %v391_v9  ;;  %v95_v26 = vmax.f32 %v60_v15, %v356_v10  ;;  %v96_v27 = vmax.f32 %v61_v16, %v357_v11  ;;  %v465_v50 = vld [vmem:[%s657_s6 + $0x8] sm:$0xff]   ;;  %v460_v16 = vld [vmem:[%s654_s3 + $0x10] sm:$0xff]  }
   0x8   :  { %v547_v14 = vld [vmem:[%s658_s7] sm:$0xff]   ;;  %v404_v24 = vunpack.c.l.bf16 %v403_v13  ;;  %v405_v28 = vunpack.c.h.bf16 %v403_v13  ;;  %v62_v48 = vmax.f32 %v336_v34, %v348_v38  ;;  %v63_v49 = vmax.f32 %v337_v35, %v349_v39  ;;  %v467_v51 = vld [vmem:[%s658_s7 + $0x8] sm:$0xff]   ;;  %v464_v35 = vld [vmem:[%s656_s5 + $0x10] sm:$0xff]  }
   0x9   :  { %v552_v19 = vld [vmem:[%s659_s8] sm:$0xff]   ;;  %v416_v29 = vunpack.c.l.bf16 %v547_v14  ;;  %v417_v32 = vunpack.c.h.bf16 %v547_v14  ;;  %v130_v36 = vmax.f32 %v95_v26, %v368_v12  ;;  %v131_v37 = vmax.f32 %v96_v27, %v369_v17  ;;  %v469_v60 = vld [vmem:[%s659_s8 + $0x8] sm:$0xff]   ;;  %v466_v39 = vld [vmem:[%s657_s6 + $0x10] sm:$0xff]  }
   0xa   :  { %v428_v33 = vunpack.c.l.bf16 %v552_v19  ;;  %v429_v52 = vunpack.c.h.bf16 %v552_v19  ;;  %v384_v53 = vunpack.c.l.bf16 %v461_v40  ;;  %v385_v54 = vunpack.c.h.bf16 %v461_v40 }
   0xb   :  { %v165_v46 = vmax.f32 %v130_v36, %v380_v18  ;;  %v166_v47 = vmax.f32 %v131_v37, %v381_v21  ;;  %v396_v55 = vunpack.c.l.bf16 %v463_v41  ;;  %v97_v58 = vmax.f32 %v62_v48, %v360_v42  ;;  %v38_v42 = vld [vmem:[%s651_s0 + $0x18] sm:$0xf] }
   0xc   :  { %v98_v59 = vmax.f32 %v63_v49, %v361_v43  ;;  %v397_v62 = vunpack.c.h.bf16 %v463_v41  ;;  %v408_v63 = vunpack.c.l.bf16 %v465_v50  ;;  %v409_v0 = vunpack.c.h.bf16 %v465_v50  ;;  %v80_v48 = vld [vmem:[%s653_s2 + $0x18] sm:$0xf] }
   0xd   :  { %v200_v56 = vmax.f32 %v165_v46, %v392_v22  ;;  %v201_v57 = vmax.f32 %v166_v47, %v393_v23  ;;  %v420_v1 = vunpack.c.l.bf16 %v467_v51  ;;  %v132_v4 = vmax.f32 %v97_v58, %v372_v44  ;;  %v45_v47 = vld [vmem:[%s652_s1 + $0x18] sm:$0xf] }
   0xe   :  { %v133_v5 = vmax.f32 %v98_v59, %v373_v45  ;;  %v421_v8 = vunpack.c.h.bf16 %v467_v51  ;;  %v432_v9 = vunpack.c.l.bf16 %v469_v60  ;;  %v340_v10 = vunpack.c.l.bf16 %v454_v61  ;;  %v470_v59 = vld [vmem:[%s659_s8 + $0x10] sm:$0xff]  }
   0xf   :  { %v235_v2 = vmax.f32 %v200_v56, %v404_v24  ;;  %v236_v3 = vmax.f32 %v201_v57, %v405_v28  ;;  %v341_v11 = vunpack.c.h.bf16 %v454_v61  ;;  %v167_v14 = vmax.f32 %v132_v4, %v384_v53  ;;  %v115_v57 = vld [vmem:[%s654_s3 + $0x18] sm:$0xf] }
  0x10   :  { %v168_v15 = vmax.f32 %v133_v5, %v385_v54  ;;  %v352_v17 = vunpack.c.l.bf16 %v456_v6  ;;  %v353_v18 = vunpack.c.h.bf16 %v456_v6  ;;  %v364_v19 = vunpack.c.l.bf16 %v458_v7 }
  0x11   :  { %v270_v12 = vmax.f32 %v235_v2, %v416_v29  ;;  %v271_v13 = vmax.f32 %v236_v3, %v417_v32  ;;  %v365_v20 = vunpack.c.h.bf16 %v458_v7  ;;  %v202_v23 = vmax.f32 %v167_v14, %v396_v55  ;;  %v150_v2 = vld [vmem:[%s655_s4 + $0x18] sm:$0xf] }
  0x12   :  { %v203_v24 = vmax.f32 %v168_v15, %v397_v62  ;;  %v64_v26 = vmax.f32 %v340_v10, %v352_v17  ;;  %v65_v27 = vmax.f32 %v341_v11, %v353_v18  ;;  %v376_v28 = vunpack.c.l.bf16 %v460_v16  ;;  %v220_v14 = vld [vmem:[%s657_s6 + $0x18] sm:$0xf] }
  0x13   :  { %v305_v21 = vmax.f32 %v270_v12, %v428_v33  ;;  %v306_v22 = vmax.f32 %v271_v13, %v429_v52  ;;  %v377_v29 = vunpack.c.h.bf16 %v460_v16  ;;  %v237_v31 = vmax.f32 %v202_v23, %v408_v63  ;;  %v468_v52 = vld [vmem:[%s658_s7 + $0x10] sm:$0xff]   ;;  %v290_v23 = vld [vmem:[%s659_s8 + $0x18] sm:$0xf] }
  0x14   :  { %v238_v32 = vmax.f32 %v203_v24, %v409_v0  ;;  %v433_v34 = vunpack.c.h.bf16 %v469_v60  ;;  %v99_v33 = vmax.f32 %v64_v26, %v364_v19  ;;  %v100_v36 = vmax.f32 %v65_v27, %v365_v20  ;;  %v255_v19 = vld [vmem:[%s658_s7 + $0x18] sm:$0xf] }
  0x15   :  { %v441_v30 = vpack.c.bf16 %v306_v22, %v305_v21  ;;  %v388_v37 = vunpack.c.l.bf16 %v462_v25  ;;  %v389_v38 = vunpack.c.h.bf16 %v462_v25  ;;  %v272_v40 = vmax.f32 %v237_v31, %v420_v1 }
  0x16   :  { %v273_v41 = vmax.f32 %v238_v32, %v421_v8  ;;  %v134_v43 = vmax.f32 %v99_v33, %v376_v28  ;;  %v135_v44 = vmax.f32 %v100_v36, %v377_v29  ;;  %v400_v45 = vunpack.c.l.bf16 %v464_v35 }
  0x17   :  { %442 = vst [vmem:[%s660_s9] sm:$0xff] %v441_v30   ;;  %v401_v46 = vunpack.c.h.bf16 %v464_v35  ;;  %v307_v49 = vmax.f32 %v272_v40, %v432_v9  ;;  %v412_v51 = vunpack.c.l.bf16 %v466_v39  ;;  %v413_v55 = vunpack.c.h.bf16 %v466_v39  ;;  %v185_v9 = vld [vmem:[%s656_s5 + $0x18] sm:$0xf] }
  0x18   :  { %v308_v50 = vmax.f32 %v273_v41, %v433_v34  ;;  %v169_v53 = vmax.f32 %v134_v43, %v388_v37  ;;  %v170_v54 = vmax.f32 %v135_v44, %v389_v38  ;;  %v52_v56 = vunpack.c.l.bf16 %v38_v42 }
  0x19   :  { %v59_v60 = vunpack.c.l.bf16 %v45_v47  ;;  %v94_v61 = vunpack.c.l.bf16 %v80_v48  ;;  %v424_v0 = vunpack.c.l.bf16 %v468_v52  ;;  %v425_v1 = vunpack.c.h.bf16 %v468_v52 }
  0x1a   :  { %v446_v58 = vpack.c.bf16 %v308_v50, %v307_v49  ;;  %v204_v62 = vmax.f32 %v169_v53, %v400_v45  ;;  %v205_v63 = vmax.f32 %v170_v54, %v401_v46  ;;  %v129_v4 = vunpack.c.l.bf16 %v115_v57 }
  0x1b   :  { %v66_v3 = vmax.f32 %v52_v56, %v59_v60  ;;  %v436_v7 = vunpack.c.l.bf16 %v470_v59  ;;  %v437_v8 = vunpack.c.h.bf16 %v470_v59  ;;  %v164_v11 = vunpack.c.l.bf16 %v150_v2 }
  0x1c   :  { %471 = vst [vmem:[%s660_s9 + $0x8] sm:$0xff] %v446_v58   ;;  %v239_v5 = vmax.f32 %v204_v62, %v412_v51  ;;  %v240_v6 = vmax.f32 %v205_v63, %v413_v55  ;;  %v199_v16 = vunpack.c.l.bf16 %v185_v9  ;;  %v234_v21 = vunpack.c.l.bf16 %v220_v14 }
  0x1d   :  { %v101_v10 = vmax.f32 %v66_v3, %v94_v61  ;;  %v269_v25 = vunpack.c.l.bf16 %v255_v19  ;;  %v304_v27 = vunpack.c.l.bf16 %v290_v23 }
  0x1e   :  { %v274_v12 = vmax.f32 %v239_v5, %v424_v0  ;;  %v275_v13 = vmax.f32 %v240_v6, %v425_v1 }
  0x1f   :  { %v136_v15 = vmax.f32 %v101_v10, %v129_v4 }
  0x20   :  { %v309_v17 = vmax.f32 %v274_v12, %v436_v7  ;;  %v310_v18 = vmax.f32 %v275_v13, %v437_v8 }
  0x21   :  { %v171_v20 = vmax.f32 %v136_v15, %v164_v11 }
  0x22   :  { %v451_v22 = vpack.c.bf16 %v310_v18, %v309_v17 }
  0x23   :  { %v206_v24 = vmax.f32 %v171_v20, %v199_v16 }
  0x24   :  { %472 = vst [vmem:[%s660_s9 + $0x10] sm:$0xff] %v451_v22  }
  0x25   :  { %v241_v26 = vmax.f32 %v206_v24, %v234_v21 }
  0x27   :  { %v276_v28 = vmax.f32 %v241_v26, %v269_v25 }
  0x29   :  { %v311_v29 = vmax.f32 %v276_v28, %v304_v27 }
  0x2b   :  { %v318_v30 = vpack.c.bf16 %v311_v29, %v311_v29 }
  0x2d   :  { %325 = vst [vmem:[%s660_s9 + $0x18] sm:$0xf] %v318_v30 }

// kernel: alexnet_forward.14
= control target key start
LH: loop header
LB: loop body
LE: loop exit
PB: predicated region body
PF: predicated region fallthrough
CT: control target
= control target key end

     0   :  { %8 = vsyncpa [#allocation4], 0  ;;  %s1817_s0 = inlined_call_operand.vmem [shape: bf16[112,1664], index: 0, kind: input, shape index: {}]   ;;  %s1818_s1 = inlined_call_operand.hbm [shape: bf16[1664,256], index: 1, kind: input, shape index: {}]   ;;  %s1819_s2 = inlined_call_operand.vmem [shape: f32[1,256], index: 2, kind: input, shape index: {}]   ;;  %s1820_s3 = inlined_call_operand.vmem [shape: f32[112,256], index: 3, kind: output, shape index: {}]  }
   0x1   :  { %10 = vsyncpa [#allocation4 + $0x1], 0  ;;  %s1259_s12 = smov 0   ;;  %s1261_s13 = smov 0  }
   0x2   :  { %s1263_s14 = smov 0   ;;  %s1265_s15 = smov 0  }
   0x3   :  { %s1267_s16 = smov 0   ;;  %s1269_s17 = smov 0  }
   0x4 LB: > { %s953_s18 = sadd.s32 4294967295, %s1235_s17   ;;  %s28_s19 = sadd.s32 1, %s1231_s16  ;;  %s1235_s17 = sphi %s1269_s17, %s16_s17   ;;  %s1231_s16 = sphi %s1267_s16, %s1827_s16   ;;  %s1227_s15 = sphi %s1265_s15, %s1826_s15   ;;  %s1223_s14 = sphi %s1263_s14, %s1825_s14   ;;  %s1219_s13 = sphi %s1261_s13, %s1824_s13   ;;  %s1215_s12 = sphi %s1259_s12, %s1823_s12  }
   0x5   : > { %p29_p0 = scmp.ge.s32.totalorder %s28_s19, 13  ;;  %s44_s20 = sadd.s32 1, %s1223_s14 }
   0x6   : > { %p51_p1 = scmp.ne.s32.totalorder %s1223_s14, %s1219_s13  ;;  %p52_p2 = scmp.eq.s32.totalorder %s1235_s17, 0 }
   0x7   : > { %s1829_s19 = smov (%p29_p0, %s28_s19), 0  ;;  %p85_p4 = scmp.ne.s32.totalorder %s1219_s13, %s1215_s12 }
   0x8   : > { %p1295_p3 = por %p52_p2, %p51_p1  ;;  %s40_s22 = ssub.s32 %s1231_s16, %s1829_s19 }
   0x9   : > { %p86_p5 = scmp.eq.s32.totalorder %s953_s18, 0  ;;  %p42_p6 = scmp.eq.s32.totalorder %s40_s22, 0 }
   0xa   : > { %p956_p8 = scmp.ge.s32.totalorder %s1235_s17, 13 }
   0xb   : > { %p1302_p7 = por %p86_p5, %p85_p4 }
   0xc   : > { %s1307_s24 = scalar_select %p42_p6, %s1223_s14, %s44_s20  }
   0xd   : > { %167 = sbr.rel (%p956_p8) target bundleno = 43 (0x2b), region = 20 }
  0x12   : > { %170 = sbr.rel (!%p1295_p3) target bundleno = 37 (0x25), region = 24  ;;  %s172_s25 = sand.u32 (%p1295_p3), 1, %s1223_s14  }
  0x13   : > { %s957_s26 = sshll.u32 (%p1295_p3), %s1231_s16, 2  ;;  %s1103_s27 = smul.u32 (%p1295_p3), 56, %s172_s25 }
  0x14   : > { %s179_s30 = scalar_lea.vmem (%p1295_p3), %s1817_s0, %s957_s26 }
  0x15   : > { %v196_v0 = vld [vmem:[%s179_s30] sm:$0xf] (%p1295_p3)  ;;  %v198_v1 = vld [vmem:[%s179_s30 + $0x34] sm:$0xf] (%p1295_p3)  ;;  %v200_v2 = vld [vmem:[%s179_s30 + $0x68] sm:$0xf] (%p1295_p3) }
  0x16   : > { %s174_s4 = scalar_lea.vmem (%p1295_p3), [#allocation2], %s1103_s27  ;;  %v202_v3 = vld [vmem:[%s179_s30 + $0x9c] sm:$0xf] (%p1295_p3)  ;;  %v204_v4 = vld [vmem:[%s179_s30 + $0xd0] sm:$0xf] (%p1295_p3) }
  0x17   : > { %197 = vst [vmem:[%s174_s4] sm:$0xf] %v196_v0  ;;  %v206_v5 = vld [vmem:[%s179_s30 + $0x104] sm:$0xf]  ;;  %v208_v6 = vld [vmem:[%s179_s30 + $0x138] sm:$0xf] }
  0x18   : > { %199 = vst [vmem:[%s174_s4 + $0x4] sm:$0xf] %v198_v1  ;;  %v210_v7 = vld [vmem:[%s179_s30 + $0x16c] sm:$0xf]  ;;  %v212_v8 = vld [vmem:[%s179_s30 + $0x1a0] sm:$0xf] }
  0x19   : > { %201 = vst [vmem:[%s174_s4 + $0x8] sm:$0xf] %v200_v2  ;;  %v214_v9 = vld [vmem:[%s179_s30 + $0x1d4] sm:$0xf]  ;;  %v216_v10 = vld [vmem:[%s179_s30 + $0x208] sm:$0xf] }
  0x1a   : > { %203 = vst [vmem:[%s174_s4 + $0xc] sm:$0xf] %v202_v3  ;;  %v218_v11 = vld [vmem:[%s179_s30 + $0x23c] sm:$0xf]  ;;  %v220_v12 = vld [vmem:[%s179_s30 + $0x270] sm:$0xf] }
  0x1b   : > { %205 = vst [vmem:[%s174_s4 + $0x10] sm:$0xf] %v204_v4  ;;  %v222_v13 = vld [vmem:[%s179_s30 + $0x2a4] sm:$0xf] }
  0x1c   : > { %207 = vst [vmem:[%s174_s4 + $0x14] sm:$0xf] %v206_v5 }
  0x1d   : > { %209 = vst [vmem:[%s174_s4 + $0x18] sm:$0xf] %v208_v6 }
  0x1e   : > { %211 = vst [vmem:[%s174_s4 + $0x1c] sm:$0xf] %v210_v7 }
  0x1f   : > { %213 = vst [vmem:[%s174_s4 + $0x20] sm:$0xf] %v212_v8 }
  0x20   : > { %215 = vst [vmem:[%s174_s4 + $0x24] sm:$0xf] %v214_v9 }
  0x21   : > { %217 = vst [vmem:[%s174_s4 + $0x28] sm:$0xf] %v216_v10 }
  0x22   : > { %219 = vst [vmem:[%s174_s4 + $0x2c] sm:$0xf] %v218_v11 }
  0x23   : > { %221 = vst [vmem:[%s174_s4 + $0x30] sm:$0xf] %v220_v12 }
  0x24   : > { %223 = vst [vmem:[%s174_s4 + $0x34] sm:$0xf] %v222_v13 }
  0x25 PF: > { %s276_s5 = sand.u32 1, %s1223_s14   ;;  %s1063_s6 = sshll.u32 %s1231_s16, 7 }
  0x26   : > { %s958_s7 = sshll.u32 %s276_s5, 7  ;;  %s288_s10 = scalar_lea.hbm %s1818_s1, %s1063_s6 }
  0x27   : > { %s289_s11 = sshll.u32 %s288_s10, 4  ;;  %s280_s12 = scalar_lea.vmem [#allocation3], %s958_s7  ;;  %s290_s11 = int_to_ptr.hbm [resolvable:$true] %s289_s11 }
  0x28   : > { %s291_s18 = sshll.u32 %s280_s12, 4  ;;  %s277_s20 = scalar_lea.sflag [#allocation4], %s276_s5  ;;  %s292_s18 = int_to_ptr.vmem [resolvable:$true] %s291_s18 }
  0x29   : > { %s1237_s22 = smov 128   ;;  %s1238_s25 = smov 8  }
  0x2a   : > { %1105 = dma.hbm_to_vmem [thread:$0]  (%p1295_p3), %s290_s11, 2048, %s292_s18, %s277_s20, %s1237_s22, %s1237_s22, %s1238_s25  }
  0x2b PF: > { %p962_p9 = scmp.ge.s32.totalorder %s1235_s17, 1  ;;  %p299_p10 = scmp.lt.s32.totalorder %s1235_s17, 14 }
  0x2d   : > { %p300_p11 = pnand %p962_p9, %p299_p10 }
  0x2e   : > { %s306_s26 = sand.u32 (!%p300_p11), 1, %s1219_s13  }
  0x2f   : > { %303 = sbr.rel (%p300_p11) target bundleno = 347 (0x15b), region = 69  ;;  %s963_s28 = sshll.u32 (!%p300_p11), %s306_s26, 7 }
  0x30   : > { %s1104_s27 = smul.u32 (!%p300_p11), 56, %s306_s26  ;;  %s313_s30 = scalar_lea.sflag (!%p300_p11), [#allocation4], %s306_s26 }
  0x31   : > { %s1329_s4 = scalar_lea.vmem (!%p300_p11), [#allocation3], %s963_s28 }
  0x32   : > { %s1327_s29 = scalar_lea.vmem (!%p300_p11), [#allocation2], %s1104_s27 }
  0x34   : > { %1210 = dma.done.wait (%p1302_p7), %s313_s30, 2048  }
  0x35   : > { %1212 = vsyncadd (%p1302_p7), %s313_s30, 4294965248  ;;  %p964_p12 = scmp.ne.s32.totalorder %s1227_s15, 0 }
  0x37   : > { %376 = sbr.rel (%p964_p12) target bundleno = 91 (0x5b), region = 81 }
  0x3c   : > { %v377_v14 = vld [vmem:[%s1819_s2] sm:$0x3] }
  0x3d   : > { %v379_v15 = vperm.slane %v377_v14, 0  ;;  %v380_v16 = vperm.slane %v377_v14, 1 }
  0x3f   : > { %383 = vst [vmem:[%s1820_s3] sm:$0xff] %v379_v15 }
  0x40   : > { %385 = vst [vmem:[%s1820_s3 + $0x10] sm:$0xff] %v379_v15 }
  0x41   : > { %387 = vst [vmem:[%s1820_s3 + $0x20] sm:$0xff] %v379_v15 }
  0x42   : > { %389 = vst [vmem:[%s1820_s3 + $0x30] sm:$0xff] %v379_v15 }
  0x43   : > { %391 = vst [vmem:[%s1820_s3 + $0x40] sm:$0xff] %v379_v15 }
  0x44   : > { %393 = vst [vmem:[%s1820_s3 + $0x50] sm:$0xff] %v379_v15 }
  0x45   : > { %395 = vst [vmem:[%s1820_s3 + $0x60] sm:$0xff] %v379_v15 }
  0x46   : > { %397 = vst [vmem:[%s1820_s3 + $0x70] sm:$0xff] %v379_v15 }
  0x47   : > { %399 = vst [vmem:[%s1820_s3 + $0x80] sm:$0xff] %v379_v15 }
  0x48   : > { %401 = vst [vmem:[%s1820_s3 + $0x90] sm:$0xff] %v379_v15 }
  0x49   : > { %403 = vst [vmem:[%s1820_s3 + $0xa0] sm:$0xff] %v379_v15 }
  0x4a   : > { %405 = vst [vmem:[%s1820_s3 + $0xb0] sm:$0xff] %v379_v15 }
  0x4b   : > { %407 = vst [vmem:[%s1820_s3 + $0xc0] sm:$0xff] %v379_v15 }
  0x4c   : > { %409 = vst [vmem:[%s1820_s3 + $0xd0] sm:$0xff] %v379_v15 }
  0x4d   : > { %384 = vst [vmem:[%s1820_s3 + $0x8] sm:$0xff] %v380_v16 }
  0x4e   : > { %386 = vst [vmem:[%s1820_s3 + $0x18] sm:$0xff] %v380_v16 }
  0x4f   : > { %388 = vst [vmem:[%s1820_s3 + $0x28] sm:$0xff] %v380_v16 }
  0x50   : > { %390 = vst [vmem:[%s1820_s3 + $0x38] sm:$0xff] %v380_v16 }
  0x51   : > { %392 = vst [vmem:[%s1820_s3 + $0x48] sm:$0xff] %v380_v16 }
  0x52   : > { %394 = vst [vmem:[%s1820_s3 + $0x58] sm:$0xff] %v380_v16 }
  0x53   : > { %396 = vst [vmem:[%s1820_s3 + $0x68] sm:$0xff] %v380_v16 }
  0x54   : > { %398 = vst [vmem:[%s1820_s3 + $0x78] sm:$0xff] %v380_v16 }
  0x55   : > { %400 = vst [vmem:[%s1820_s3 + $0x88] sm:$0xff] %v380_v16 }
  0x56   : > { %402 = vst [vmem:[%s1820_s3 + $0x98] sm:$0xff] %v380_v16 }
  0x57   : > { %404 = vst [vmem:[%s1820_s3 + $0xa8] sm:$0xff] %v380_v16 }
  0x58   : > { %406 = vst [vmem:[%s1820_s3 + $0xb8] sm:$0xff] %v380_v16 }
  0x59   : > { %408 = vst [vmem:[%s1820_s3 + $0xc8] sm:$0xff] %v380_v16 }
  0x5a   : > { %410 = vst [vmem:[%s1820_s3 + $0xd8] sm:$0xff] %v380_v16 }
  0x5b PF: > { %v1051_v17 = vld [vmem:[%s1329_s4 + $0x70] sm:$0xf]  ;;  %v1086_v18 = vld [vmem:[%s1329_s4 + $0x74] sm:$0xf0]  ;;  %v1085_v19 = vld [vmem:[%s1329_s4 + $0x74] sm:$0xf] }
  0x5c   : > { %v1052_v20 = vor.u32 %v1086_v18, %v1051_v17  ;;  %v1053_v21 = vld [vmem:[%s1329_s4 + $0x78] sm:$0xf0]  ;;  %v1043_v22 = vld [vmem:[%s1329_s4 + $0x60] sm:$0xf]  ;;  %v1084_v23 = vld [vmem:[%s1329_s4 + $0x64] sm:$0xf0] }
  0x5d   : > { %v1056_v24 = vor.u32 %v1085_v19, %v1053_v21  ;;  %v1083_v25 = vld [vmem:[%s1329_s4 + $0x64] sm:$0xf]  ;;  %v1045_v26 = vld [vmem:[%s1329_s4 + $0x68] sm:$0xf0]  ;;  %v1044_v27 = vor.u32 %v1084_v23, %v1043_v22  ;;  %v1035_v29 = vld [vmem:[%s1329_s4 + $0x50] sm:$0xf] }
  0x5e   : > { %1087 = vmatpush.bf16.msra.mxu2 %v1052_v20  ;;  %591 = vmatpush.bf16.msra.mxu0 %v1052_v20  ;;  %v1048_v28 = vor.u32 %v1083_v25, %v1045_v26  ;;  %v1082_v30 = vld [vmem:[%s1329_s4 + $0x54] sm:$0xf0]  ;;  %v1081_v31 = vld [vmem:[%s1329_s4 + $0x54] sm:$0xf]  ;;  %v1037_v32 = vld [vmem:[%s1329_s4 + $0x58] sm:$0xf0] }
  0x5f   : > { %635 = vmatpush.bf16.msra.mxu1 %v1056_v24  ;;  %1095 = vmatpush.bf16.msra.mxu3 %v1056_v24  ;;  %v1036_v33 = vor.u32 %v1082_v30, %v1035_v29  ;;  %v1040_v34 = vor.u32 %v1081_v31, %v1037_v32  ;;  %v1027_v35 = vld [vmem:[%s1329_s4 + $0x40] sm:$0xf]  ;;  %v1080_v36 = vld [vmem:[%s1329_s4 + $0x44] sm:$0xf0]  ;;  %v1079_v37 = vld [vmem:[%s1329_s4 + $0x44] sm:$0xf] }
  0x60   : > { %v1029_v38 = vld [vmem:[%s1329_s4 + $0x48] sm:$0xf0]  ;;  %v1028_v39 = vor.u32 %v1080_v36, %v1027_v35  ;;  %v1019_v41 = vld [vmem:[%s1329_s4 + $0x30] sm:$0xf]  ;;  %v1078_v42 = vld [vmem:[%s1329_s4 + $0x34] sm:$0xf0] }
  0x61   : > { %v1032_v40 = vor.u32 %v1079_v37, %v1029_v38  ;;  %v1077_v43 = vld [vmem:[%s1329_s4 + $0x34] sm:$0xf]  ;;  %v1021_v44 = vld [vmem:[%s1329_s4 + $0x38] sm:$0xf0]  ;;  %v1020_v45 = vor.u32 %v1078_v42, %v1019_v41  ;;  %v1011_v47 = vld [vmem:[%s1329_s4 + $0x20] sm:$0xf] }
  0x62   : > { %1088 = vmatpush.bf16.msra.mxu2 %v1044_v27  ;;  %592 = vmatpush.bf16.msra.mxu0 %v1044_v27  ;;  %v1024_v46 = vor.u32 %v1077_v43, %v1021_v44  ;;  %v1076_v48 = vld [vmem:[%s1329_s4 + $0x24] sm:$0xf0]  ;;  %v1075_v49 = vld [vmem:[%s1329_s4 + $0x24] sm:$0xf]  ;;  %v1013_v50 = vld [vmem:[%s1329_s4 + $0x28] sm:$0xf0] }
  0x63   : > { %636 = vmatpush.bf16.msra.mxu1 %v1048_v28  ;;  %1096 = vmatpush.bf16.msra.mxu3 %v1048_v28  ;;  %v1012_v51 = vor.u32 %v1076_v48, %v1011_v47  ;;  %v1016_v52 = vor.u32 %v1075_v49, %v1013_v50  ;;  %v1003_v53 = vld [vmem:[%s1329_s4 + $0x10] sm:$0xf]  ;;  %v1074_v54 = vld [vmem:[%s1329_s4 + $0x14] sm:$0xf0]  ;;  %v1073_v55 = vld [vmem:[%s1329_s4 + $0x14] sm:$0xf] }
  0x64   : > { %v1005_v56 = vld [vmem:[%s1329_s4 + $0x18] sm:$0xf0]  ;;  %v1004_v57 = vor.u32 %v1074_v54, %v1003_v53  ;;  %v995_v59 = vld [vmem:[%s1329_s4] sm:$0xf]  ;;  %v1072_v60 = vld [vmem:[%s1329_s4 + $0x4] sm:$0xf0] }
  0x65   : > { %v1008_v58 = vor.u32 %v1073_v55, %v1005_v56  ;;  %v1071_v61 = vld [vmem:[%s1329_s4 + $0x4] sm:$0xf]  ;;  %v997_v62 = vld [vmem:[%s1329_s4 + $0x8] sm:$0xf0]  ;;  %v996_v63 = vor.u32 %v1072_v60, %v995_v59  ;;  %v1065_v4 = vld [vmem:[%s1327_s29 + $0x8] sm:$0xff]  ;;  %p1057_p13 = scmp.ne.s32.totalorder %s1227_s15, 12 }
  0x66   : > { %1089 = vmatpush.bf16.msra.mxu2 %v1036_v33  ;;  %593 = vmatpush.bf16.msra.mxu0 %v1036_v33  ;;  %v1000_v0 = vor.u32 %v1071_v61, %v997_v62  ;;  %v1067_v1 = vld [vmem:[%s1327_s29 + $0x18] sm:$0xff]  ;;  %v1064_v2 = vld [vmem:[%s1327_s29] sm:$0xff]  ;;  %v1069_v5 = vld [vmem:[%s1327_s29 + $0x28] sm:$0xff] }
  0x67   : > { %637 = vmatpush.bf16.msra.mxu1 %v1040_v34  ;;  %1097 = vmatpush.bf16.msra.mxu3 %v1040_v34  ;;  %v1068_v3 = vld [vmem:[%s1327_s29 + $0x20] sm:$0xff]  ;;  %v1066_v6 = vld [vmem:[%s1327_s29 + $0x10] sm:$0xff] }
  0x68   : > { %v1070_v7 = vld [vmem:[%s1327_s29 + $0x30] sm:$0xff]  ;;  %v411_v8 = vld [vmem:[%s1820_s3] sm:$0xff]  ;;  %v414_v19 = vld [vmem:[%s1820_s3 + $0x18] sm:$0xff] }
  0x69   : > { %v412_v9 = vld [vmem:[%s1820_s3 + $0x8] sm:$0xff]  ;;  %v423_v14 = vld [vmem:[%s1820_s3 + $0x60] sm:$0xff]  ;;  %v413_v17 = vld [vmem:[%s1820_s3 + $0x10] sm:$0xff] }
  0x6a   : > { %1090 = vmatpush.bf16.msra.mxu2 %v1028_v39  ;;  %594 = vmatpush.bf16.msra.mxu0 %v1028_v39  ;;  %v428_v15 = vld [vmem:[%s1820_s3 + $0x88] sm:$0xff]  ;;  %v425_v26 = vld [vmem:[%s1820_s3 + $0x70] sm:$0xff]  ;;  %v430_v27 = vld [vmem:[%s1820_s3 + $0x98] sm:$0xff] }
  0x6b   : > { %638 = vmatpush.bf16.msra.mxu1 %v1032_v40  ;;  %1098 = vmatpush.bf16.msra.mxu3 %v1032_v40  ;;  %v415_v29 = vld [vmem:[%s1820_s3 + $0x20] sm:$0xff]  ;;  %v416_v31 = vld [vmem:[%s1820_s3 + $0x28] sm:$0xff]  ;;  %v417_v41 = vld [vmem:[%s1820_s3 + $0x30] sm:$0xff] }
  0x6c   : > { %v427_v38 = vld [vmem:[%s1820_s3 + $0x80] sm:$0xff]  ;;  %v432_v39 = vld [vmem:[%s1820_s3 + $0xa8] sm:$0xff]  ;;  %v418_v43 = vld [vmem:[%s1820_s3 + $0x38] sm:$0xff] }
  0x6d   : > { %v429_v50 = vld [vmem:[%s1820_s3 + $0x90] sm:$0xff]  ;;  %v419_v53 = vld [vmem:[%s1820_s3 + $0x40] sm:$0xff]  ;;  %v420_v55 = vld [vmem:[%s1820_s3 + $0x48] sm:$0xff] }
  0x6e   : > { %1091 = vmatpush.bf16.msra.mxu2 %v1020_v45  ;;  %595 = vmatpush.bf16.msra.mxu0 %v1020_v45  ;;  %v431_v62 = vld [vmem:[%s1820_s3 + $0xa0] sm:$0xff] }
  0x6f   : > { %639 = vmatpush.bf16.msra.mxu1 %v1024_v46  ;;  %1099 = vmatpush.bf16.msra.mxu3 %v1024_v46 }
  0x72   : > { %1092 = vmatpush.bf16.msra.mxu2 %v1012_v51  ;;  %596 = vmatpush.bf16.msra.mxu0 %v1012_v51  ;;  %v434_v51 = vld [vmem:[%s1820_s3 + $0xb8] sm:$0xff] }
  0x73   : > { %640 = vmatpush.bf16.msra.mxu1 %v1016_v52  ;;  %1100 = vmatpush.bf16.msra.mxu3 %v1016_v52 }
  0x76   : > { %1093 = vmatpush.bf16.msra.mxu2 %v1004_v57  ;;  %597 = vmatpush.bf16.msra.mxu0 %v1004_v57 }
  0x77   : > { %641 = vmatpush.bf16.msra.mxu1 %v1008_v58  ;;  %1101 = vmatpush.bf16.msra.mxu3 %v1008_v58 }
  0x7a   : > { %1094 = vmatpush.bf16.msra.mxu2 %v996_v63  ;;  %598 = vmatpush.bf16.msra.mxu0 %v996_v63  ;;  %v436_v63 = vld [vmem:[%s1820_s3 + $0xc8] sm:$0xff] }
  0x7b   : > { %642 = vmatpush.bf16.msra.mxu1 %v1000_v0  ;;  %1102 = vmatpush.bf16.msra.mxu3 %v1000_v0 }
  0x7d   : > { %614 = vmatmul.bf16.vlgmr.msra.gmra.mxu2 %v1067_v1  ;;  %599 = vmatmul.bf16.vlgmr.msra.gmra.mxu0 %v1064_v2 }
  0x7e   : > { %643 = vmatmul.bf16.vlgmr.msra.gmra.mxu1 %v1064_v2  ;;  %663 = vmatmul.bf16.vlgmr.msra.gmra.mxu3 %v1068_v3 }
  0x8d   : > { %619 = vmatmul.bf16.gmra.mxu2 %v1068_v3  ;;  %604 = vmatmul.bf16.gmra.mxu0 %v1065_v4  ;;  %v422_v3 = vld [vmem:[%s1820_s3 + $0x58] sm:$0xff] }
  0x8e   : > { %648 = vmatmul.bf16.gmra.mxu1 %v1065_v4  ;;  %668 = vmatmul.bf16.gmra.mxu3 %v1069_v5 }
  0x9d   : > { %624 = vmatmul.bf16.gmra.mxu2 %v1069_v5  ;;  %609 = vmatmul.bf16.gmra.mxu0 %v1066_v6 }
  0x9e   : > { %653 = vmatmul.bf16.gmra.mxu1 %v1066_v6  ;;  %673 = vmatmul.bf16.gmra.mxu3 %v1070_v7 }
  0xad   : > { %629 = vmatmul.bf16.gmra.mxu2 %v1070_v7 }
  0xae   : > { %658 = vmatmul.bf16.gmra.mxu1 %v1067_v1  ;;  %v421_v1 = vld [vmem:[%s1820_s3 + $0x50] sm:$0xff] }
  0xfa   : > { %v600_v10 = vpop.f32.mrf.mxu0 }
  0xfb   : > { %v644_v11 = vpop.f32.mrf.mxu1  ;;  %v679_v12 = vadd.f32 %v600_v10, %v411_v8  ;;  %v433_v10 = vld [vmem:[%s1820_s3 + $0xb0] sm:$0xff] }
  0xfc   : > { %v680_v13 = vadd.f32 %v644_v11, %v412_v9  ;;  %v438_v11 = vld [vmem:[%s1820_s3 + $0xd8] sm:$0xff] }
  0xfd   : > { %707 = vst [vmem:[%s1820_s3] sm:$0xff] %v679_v12 }
  0xfe   : > { %708 = vst [vmem:[%s1820_s3 + $0x8] sm:$0xff] %v680_v13 }
 0x100   : > { %v615_v16 = vpop.f32.mrf.mxu2 }
 0x101   : > { %v691_v18 = vadd.f32 %v615_v16, %v423_v14  ;;  %v664_v20 = vpop.f32.mrf.mxu3  ;;  %v424_v14 = vld [vmem:[%s1820_s3 + $0x68] sm:$0xff] }
 0x102   : > { %v696_v21 = vadd.f32 %v664_v20, %v428_v15  ;;  %v602_v22 = vpop.f32.mrf.mxu0 }
 0x103   : > { %719 = vst [vmem:[%s1820_s3 + $0x60] sm:$0xff] %v691_v18  ;;  %v646_v23 = vpop.f32.mrf.mxu1  ;;  %v681_v24 = vadd.f32 %v602_v22, %v413_v17  ;;  %v426_v22 = vld [vmem:[%s1820_s3 + $0x78] sm:$0xff] }
 0x104   : > { %v682_v25 = vadd.f32 %v646_v23, %v414_v19  ;;  %724 = vst [vmem:[%s1820_s3 + $0x88] sm:$0xff] %v696_v21  ;;  %v435_v19 = vld [vmem:[%s1820_s3 + $0xc0] sm:$0xff] }
 0x105   : > { %709 = vst [vmem:[%s1820_s3 + $0x10] sm:$0xff] %v681_v24 }
 0x106   : > { %710 = vst [vmem:[%s1820_s3 + $0x18] sm:$0xff] %v682_v25  ;;  %v437_v25 = vld [vmem:[%s1820_s3 + $0xd0] sm:$0xff] }
 0x108   : > { %v617_v28 = vpop.f32.mrf.mxu2 }
 0x109   : > { %v693_v30 = vadd.f32 %v617_v28, %v425_v26  ;;  %v666_v32 = vpop.f32.mrf.mxu3 }
 0x10a   : > { %v698_v33 = vadd.f32 %v666_v32, %v430_v27  ;;  %v605_v34 = vpop.f32.mrf.mxu0 }
 0x10b   : > { %721 = vst [vmem:[%s1820_s3 + $0x70] sm:$0xff] %v693_v30  ;;  %v649_v35 = vpop.f32.mrf.mxu1  ;;  %v683_v36 = vadd.f32 %v605_v34, %v415_v29 }
 0x10c   : > { %v684_v37 = vadd.f32 %v649_v35, %v416_v31  ;;  %726 = vst [vmem:[%s1820_s3 + $0x98] sm:$0xff] %v698_v33 }
 0x10d   : > { %711 = vst [vmem:[%s1820_s3 + $0x20] sm:$0xff] %v683_v36 }
 0x10e   : > { %712 = vst [vmem:[%s1820_s3 + $0x28] sm:$0xff] %v684_v37 }
 0x110   : > { %v620_v40 = vpop.f32.mrf.mxu2 }
 0x111   : > { %v695_v42 = vadd.f32 %v620_v40, %v427_v38  ;;  %v669_v44 = vpop.f32.mrf.mxu3 }
 0x112   : > { %v700_v45 = vadd.f32 %v669_v44, %v432_v39  ;;  %v607_v46 = vpop.f32.mrf.mxu0 }
 0x113   : > { %723 = vst [vmem:[%s1820_s3 + $0x80] sm:$0xff] %v695_v42  ;;  %v651_v47 = vpop.f32.mrf.mxu1  ;;  %v685_v48 = vadd.f32 %v607_v46, %v417_v41 }
 0x114   : > { %v686_v49 = vadd.f32 %v651_v47, %v418_v43  ;;  %728 = vst [vmem:[%s1820_s3 + $0xa8] sm:$0xff] %v700_v45 }
 0x115   : > { %713 = vst [vmem:[%s1820_s3 + $0x30] sm:$0xff] %v685_v48 }
 0x116   : > { %714 = vst [vmem:[%s1820_s3 + $0x38] sm:$0xff] %v686_v49 }
 0x118   : > { %v622_v52 = vpop.f32.mrf.mxu2 }
 0x119   : > { %v697_v54 = vadd.f32 %v622_v52, %v429_v50  ;;  %v671_v56 = vpop.f32.mrf.mxu3 }
 0x11a   : > { %v702_v57 = vadd.f32 %v671_v56, %v434_v51  ;;  %v610_v58 = vpop.f32.mrf.mxu0 }
 0x11b   : > { %725 = vst [vmem:[%s1820_s3 + $0x90] sm:$0xff] %v697_v54  ;;  %v654_v59 = vpop.f32.mrf.mxu1  ;;  %v687_v60 = vadd.f32 %v610_v58, %v419_v53 }
 0x11c   : > { %v688_v61 = vadd.f32 %v654_v59, %v420_v55  ;;  %730 = vst [vmem:[%s1820_s3 + $0xb8] sm:$0xff] %v702_v57 }
 0x11d   : > { %715 = vst [vmem:[%s1820_s3 + $0x40] sm:$0xff] %v687_v60 }
 0x11e   : > { %716 = vst [vmem:[%s1820_s3 + $0x48] sm:$0xff] %v688_v61 }
 0x120   : > { %v625_v0 = vpop.f32.mrf.mxu2 }
 0x121   : > { %v699_v2 = vadd.f32 %v625_v0, %v431_v62  ;;  %v674_v4 = vpop.f32.mrf.mxu3 }
 0x122   : > { %v704_v5 = vadd.f32 %v674_v4, %v436_v63  ;;  %v612_v6 = vpop.f32.mrf.mxu0 }
 0x123   : > { %727 = vst [vmem:[%s1820_s3 + $0xa0] sm:$0xff] %v699_v2  ;;  %v656_v7 = vpop.f32.mrf.mxu1  ;;  %v689_v8 = vadd.f32 %v612_v6, %v421_v1 }
 0x124   : > { %v690_v9 = vadd.f32 %v656_v7, %v422_v3  ;;  %732 = vst [vmem:[%s1820_s3 + $0xc8] sm:$0xff] %v704_v5 }
 0x125   : > { %717 = vst [vmem:[%s1820_s3 + $0x50] sm:$0xff] %v689_v8 }
 0x126   : > { %718 = vst [vmem:[%s1820_s3 + $0x58] sm:$0xff] %v690_v9 }
 0x128   : > { %v627_v12 = vpop.f32.mrf.mxu2 }
 0x129   : > { %v701_v13 = vadd.f32 %v627_v12, %v433_v10  ;;  %v676_v15 = vpop.f32.mrf.mxu3 }
 0x12a   : > { %v706_v16 = vadd.f32 %v676_v15, %v438_v11 }
 0x12b   : > { %729 = vst [vmem:[%s1820_s3 + $0xb0] sm:$0xff] %v701_v13  ;;  %v659_v17 = vpop.f32.mrf.mxu1 }
 0x12c   : > { %v692_v18 = vadd.f32 %v659_v17, %v424_v14  ;;  %734 = vst [vmem:[%s1820_s3 + $0xd8] sm:$0xff] %v706_v16 }
 0x12e   : > { %720 = vst [vmem:[%s1820_s3 + $0x68] sm:$0xff] %v692_v18 }
 0x130   : > { %v630_v20 = vpop.f32.mrf.mxu2 }
 0x131   : > { %v703_v21 = vadd.f32 %v630_v20, %v435_v19 }
 0x133   : > { %731 = vst [vmem:[%s1820_s3 + $0xc0] sm:$0xff] %v703_v21  ;;  %v661_v23 = vpop.f32.mrf.mxu1 }
 0x134   : > { %v694_v24 = vadd.f32 %v661_v23, %v426_v22 }
 0x136   : > { %722 = vst [vmem:[%s1820_s3 + $0x78] sm:$0xff] %v694_v24 }
 0x137   : > { %738 = sbr.rel (%p1057_p13) target bundleno = 347 (0x15b), region = 85 }
 0x138   : > { %v632_v26 = vpop.f32.mrf.mxu2 }
 0x139   : > { %v705_v27 = vadd.f32 %v632_v26, %v437_v25 }
 0x13b   : > { %733 = vst [vmem:[%s1820_s3 + $0xd0] sm:$0xff] %v705_v27 }
 0x13c   : > { %v739_v28 = vld [vmem:[%s1820_s3] sm:$0xff]  ;;  %v740_v29 = vld [vmem:[%s1820_s3 + $0x8] sm:$0xff]  ;;  %v741_v30 = vld [vmem:[%s1820_s3 + $0x10] sm:$0xff] }
 0x13d   : > { %v767_v31 = vmax.f32 %v739_v28, 0.0  ;;  %v768_v32 = vmax.f32 %v740_v29, 0.0  ;;  %v769_v33 = vmax.f32 %v741_v30, 0.0  ;;  %v742_v34 = vld [vmem:[%s1820_s3 + $0x18] sm:$0xff]  ;;  %v743_v35 = vld [vmem:[%s1820_s3 + $0x20] sm:$0xff]  ;;  %v744_v36 = vld [vmem:[%s1820_s3 + $0x28] sm:$0xff] }
 0x13e   : > { %v770_v37 = vmax.f32 %v742_v34, 0.0  ;;  %v745_v38 = vld [vmem:[%s1820_s3 + $0x30] sm:$0xff]  ;;  %v771_v39 = vmax.f32 %v743_v35, 0.0  ;;  %v746_v40 = vld [vmem:[%s1820_s3 + $0x38] sm:$0xff]  ;;  %v772_v41 = vmax.f32 %v744_v36, 0.0  ;;  %v747_v42 = vld [vmem:[%s1820_s3 + $0x40] sm:$0xff] }
 0x13f   : > { %795 = vst [vmem:[%s1820_s3] sm:$0xff] %v767_v31  ;;  %v773_v43 = vmax.f32 %v745_v38, 0.0  ;;  %v748_v44 = vld [vmem:[%s1820_s3 + $0x48] sm:$0xff]  ;;  %v774_v45 = vmax.f32 %v746_v40, 0.0  ;;  %v749_v46 = vld [vmem:[%s1820_s3 + $0x50] sm:$0xff]  ;;  %v775_v47 = vmax.f32 %v747_v42, 0.0  ;;  %v750_v48 = vld [vmem:[%s1820_s3 + $0x58] sm:$0xff] }
 0x140   : > { %796 = vst [vmem:[%s1820_s3 + $0x8] sm:$0xff] %v768_v32  ;;  %v776_v49 = vmax.f32 %v748_v44, 0.0  ;;  %v751_v50 = vld [vmem:[%s1820_s3 + $0x60] sm:$0xff]  ;;  %v777_v51 = vmax.f32 %v749_v46, 0.0  ;;  %v752_v52 = vld [vmem:[%s1820_s3 + $0x68] sm:$0xff]  ;;  %v778_v53 = vmax.f32 %v750_v48, 0.0 }
 0x141   : > { %797 = vst [vmem:[%s1820_s3 + $0x10] sm:$0xff] %v769_v33  ;;  %v753_v54 = vld [vmem:[%s1820_s3 + $0x70] sm:$0xff]  ;;  %v779_v55 = vmax.f32 %v751_v50, 0.0  ;;  %v754_v56 = vld [vmem:[%s1820_s3 + $0x78] sm:$0xff]  ;;  %v780_v57 = vmax.f32 %v752_v52, 0.0  ;;  %v755_v58 = vld [vmem:[%s1820_s3 + $0x80] sm:$0xff] }
 0x142   : > { %798 = vst [vmem:[%s1820_s3 + $0x18] sm:$0xff] %v770_v37  ;;  %v781_v59 = vmax.f32 %v753_v54, 0.0  ;;  %v756_v60 = vld [vmem:[%s1820_s3 + $0x88] sm:$0xff]  ;;  %v782_v61 = vmax.f32 %v754_v56, 0.0  ;;  %v757_v62 = vld [vmem:[%s1820_s3 + $0x90] sm:$0xff]  ;;  %v783_v63 = vmax.f32 %v755_v58, 0.0 }
 0x143   : > { %799 = vst [vmem:[%s1820_s3 + $0x20] sm:$0xff] %v771_v39  ;;  %v758_v0 = vld [vmem:[%s1820_s3 + $0x98] sm:$0xff]  ;;  %v784_v1 = vmax.f32 %v756_v60, 0.0  ;;  %v759_v2 = vld [vmem:[%s1820_s3 + $0xa0] sm:$0xff]  ;;  %v785_v3 = vmax.f32 %v757_v62, 0.0  ;;  %v760_v4 = vld [vmem:[%s1820_s3 + $0xa8] sm:$0xff] }
 0x144   : > { %800 = vst [vmem:[%s1820_s3 + $0x28] sm:$0xff] %v772_v41  ;;  %v786_v5 = vmax.f32 %v758_v0, 0.0  ;;  %v761_v6 = vld [vmem:[%s1820_s3 + $0xb0] sm:$0xff]  ;;  %v787_v7 = vmax.f32 %v759_v2, 0.0  ;;  %v762_v8 = vld [vmem:[%s1820_s3 + $0xb8] sm:$0xff]  ;;  %v788_v9 = vmax.f32 %v760_v4, 0.0 }
 0x145   : > { %801 = vst [vmem:[%s1820_s3 + $0x30] sm:$0xff] %v773_v43  ;;  %v763_v10 = vld [vmem:[%s1820_s3 + $0xc0] sm:$0xff]  ;;  %v789_v11 = vmax.f32 %v761_v6, 0.0  ;;  %v764_v12 = vld [vmem:[%s1820_s3 + $0xc8] sm:$0xff]  ;;  %v790_v13 = vmax.f32 %v762_v8, 0.0  ;;  %v765_v14 = vld [vmem:[%s1820_s3 + $0xd0] sm:$0xff] }
 0x146   : > { %802 = vst [vmem:[%s1820_s3 + $0x38] sm:$0xff] %v774_v45  ;;  %v791_v15 = vmax.f32 %v763_v10, 0.0  ;;  %v766_v16 = vld [vmem:[%s1820_s3 + $0xd8] sm:$0xff]  ;;  %v792_v17 = vmax.f32 %v764_v12, 0.0  ;;  %v793_v18 = vmax.f32 %v765_v14, 0.0 }
 0x147   : > { %803 = vst [vmem:[%s1820_s3 + $0x40] sm:$0xff] %v775_v47  ;;  %v794_v19 = vmax.f32 %v766_v16, 0.0 }
 0x148   : > { %804 = vst [vmem:[%s1820_s3 + $0x48] sm:$0xff] %v776_v49 }
 0x149   : > { %805 = vst [vmem:[%s1820_s3 + $0x50] sm:$0xff] %v777_v51 }
 0x14a   : > { %806 = vst [vmem:[%s1820_s3 + $0x58] sm:$0xff] %v778_v53 }
 0x14b   : > { %807 = vst [vmem:[%s1820_s3 + $0x60] sm:$0xff] %v779_v55 }
 0x14c   : > { %808 = vst [vmem:[%s1820_s3 + $0x68] sm:$0xff] %v780_v57 }
 0x14d   : > { %809 = vst [vmem:[%s1820_s3 + $0x70] sm:$0xff] %v781_v59 }
 0x14e   : > { %810 = vst [vmem:[%s1820_s3 + $0x78] sm:$0xff] %v782_v61 }
 0x14f   : > { %811 = vst [vmem:[%s1820_s3 + $0x80] sm:$0xff] %v783_v63 }
 0x150   : > { %812 = vst [vmem:[%s1820_s3 + $0x88] sm:$0xff] %v784_v1 }
 0x151   : > { %813 = vst [vmem:[%s1820_s3 + $0x90] sm:$0xff] %v785_v3 }
 0x152   : > { %814 = vst [vmem:[%s1820_s3 + $0x98] sm:$0xff] %v786_v5 }
 0x153   : > { %815 = vst [vmem:[%s1820_s3 + $0xa0] sm:$0xff] %v787_v7 }
 0x154   : > { %816 = vst [vmem:[%s1820_s3 + $0xa8] sm:$0xff] %v788_v9 }
 0x155   : > { %817 = vst [vmem:[%s1820_s3 + $0xb0] sm:$0xff] %v789_v11 }
 0x156   : > { %818 = vst [vmem:[%s1820_s3 + $0xb8] sm:$0xff] %v790_v13 }
 0x157   : > { %819 = vst [vmem:[%s1820_s3 + $0xc0] sm:$0xff] %v791_v15 }
 0x158   : > { %820 = vst [vmem:[%s1820_s3 + $0xc8] sm:$0xff] %v792_v17 }
 0x159   : > { %821 = vst [vmem:[%s1820_s3 + $0xd0] sm:$0xff] %v793_v18 }
 0x15a   : > { %822 = vst [vmem:[%s1820_s3 + $0xd8] sm:$0xff] %v794_v19 }
 0x15b PF: > { %s16_s17 = sadd.s32 1, %s1235_s17   ;;  %s1823_s12 = smov %s1219_s13 }
 0x15c   : > { %p13_p0 = scmp.ge.s32.totalorder %s16_s17, 15   ;;  %s1824_s13 = smov %s1223_s14 }
 0x15d   : > { %s1825_s14 = smov %s1307_s24  ;;  %s1826_s15 = smov %s1231_s16 }
 0x15e   : > { %s1827_s16 = smov %s1829_s19  ;;  %15 = sbr.rel (!%p13_p0) target bundleno = 4 (0x4), region = 132 }
 0x163   :  { %856 = vsyncpa [#allocation4], 1 }
 0x164   :  { %858 = vsyncpa [#allocation4 + $0x1], 1 }

// kernel: alexnet_forward.15
= control target key start
LH: loop header
LB: loop body
LE: loop exit
PB: predicated region body
PF: predicated region fallthrough
CT: control target
= control target key end

     0   :  { %s406_s0 = inlined_call_operand.vmem [shape: bf16[32,128], index: 0, kind: input, shape index: {}]   ;;  %s407_s1 = inlined_call_operand.vmem [shape: bf16[32,128], index: 1, kind: input, shape index: {}]   ;;  %s408_s2 = inlined_call_operand.vmem [shape: bf16[32,128], index: 2, kind: input, shape index: {}]   ;;  %s409_s3 = inlined_call_operand.vmem [shape: bf16[32,128], index: 3, kind: input, shape index: {}]   ;;  %s410_s4 = inlined_call_operand.vmem [shape: bf16[32,128], index: 4, kind: input, shape index: {}]   ;;  %s411_s5 = inlined_call_operand.vmem [shape: bf16[32,128], index: 5, kind: input, shape index: {}]   ;;  %s412_s6 = inlined_call_operand.vmem [shape: bf16[32,128], index: 6, kind: input, shape index: {}]   ;;  %s413_s7 = inlined_call_operand.vmem [shape: bf16[32,128], index: 7, kind: input, shape index: {}]   ;;  %s414_s8 = inlined_call_operand.vmem [shape: bf16[32,128], index: 8, kind: input, shape index: {}]   ;;  %s415_s9 = inlined_call_operand.vmem [shape: bf16[32,128], index: 9, kind: output, shape index: {}]  }
   0x1   :  { %v205_v0 = vld [vmem:[%s406_s0] sm:$0xff]   ;;  %v286_v17 = vld [vmem:[%s406_s0 + $0x8] sm:$0xff]  }
   0x2   :  { %v213_v1 = vld [vmem:[%s407_s1] sm:$0xff]   ;;  %v206_v3 = vunpack.c.l.bf16 %v205_v0  ;;  %v207_v4 = vunpack.c.h.bf16 %v205_v0  ;;  %v287_v20 = vld [vmem:[%s407_s1 + $0x8] sm:$0xff]   ;;  %v210_v29 = vunpack.c.l.bf16 %v286_v17  ;;  %v211_v30 = vunpack.c.h.bf16 %v286_v17 }
   0x3   :  { %v221_v2 = vld [vmem:[%s408_s2] sm:$0xff]   ;;  %v214_v5 = vunpack.c.l.bf16 %v213_v1  ;;  %v215_v6 = vunpack.c.h.bf16 %v213_v1  ;;  %v288_v25 = vld [vmem:[%s408_s2 + $0x8] sm:$0xff]   ;;  %v218_v34 = vunpack.c.l.bf16 %v287_v20  ;;  %v219_v35 = vunpack.c.h.bf16 %v287_v20 }
   0x4   :  { %v229_v7 = vld [vmem:[%s409_s3] sm:$0xff]   ;;  %v222_v9 = vunpack.c.l.bf16 %v221_v2  ;;  %v223_v10 = vunpack.c.h.bf16 %v221_v2  ;;  %v289_v26 = vld [vmem:[%s409_s3 + $0x8] sm:$0xff]   ;;  %v226_v37 = vunpack.c.l.bf16 %v288_v25  ;;  %v227_v38 = vunpack.c.h.bf16 %v288_v25 }
   0x5   :  { %v237_v8 = vld [vmem:[%s410_s4] sm:$0xff]   ;;  %v48_v12 = vmax.f32 %v206_v3, %v214_v5  ;;  %v49_v13 = vmax.f32 %v207_v4, %v215_v6  ;;  %v230_v14 = vunpack.c.l.bf16 %v229_v7  ;;  %v231_v15 = vunpack.c.h.bf16 %v229_v7  ;;  %v290_v36 = vld [vmem:[%s410_s4 + $0x8] sm:$0xff]  }
   0x6   :  { %v245_v11 = vld [vmem:[%s411_s5] sm:$0xff]   ;;  %v238_v18 = vunpack.c.l.bf16 %v237_v8  ;;  %v239_v19 = vunpack.c.h.bf16 %v237_v8  ;;  %v234_v39 = vunpack.c.l.bf16 %v289_v26  ;;  %v235_v40 = vunpack.c.h.bf16 %v289_v26  ;;  %v291_v46 = vld [vmem:[%s411_s5 + $0x8] sm:$0xff]  }
   0x7   :  { %v253_v16 = vld [vmem:[%s412_s6] sm:$0xff]   ;;  %v68_v21 = vmax.f32 %v48_v12, %v222_v9  ;;  %v69_v22 = vmax.f32 %v49_v13, %v223_v10  ;;  %v246_v23 = vunpack.c.l.bf16 %v245_v11  ;;  %v247_v24 = vunpack.c.h.bf16 %v245_v11  ;;  %v292_v55 = vld [vmem:[%s412_s6 + $0x8] sm:$0xff]  }
   0x8   :  { %v254_v27 = vunpack.c.l.bf16 %v253_v16  ;;  %v255_v28 = vunpack.c.h.bf16 %v253_v16  ;;  %v261_v33 = vld [vmem:[%s413_s7] sm:$0xff]   ;;  %v50_v44 = vmax.f32 %v210_v29, %v218_v34  ;;  %v51_v45 = vmax.f32 %v211_v30, %v219_v35  ;;  %v293_v0 = vld [vmem:[%s413_s7 + $0x8] sm:$0xff]  }
   0x9   :  { %v88_v31 = vmax.f32 %v68_v21, %v230_v14  ;;  %v89_v32 = vmax.f32 %v69_v22, %v231_v15  ;;  %v269_v43 = vld [vmem:[%s414_s8] sm:$0xff]   ;;  %v262_v47 = vunpack.c.l.bf16 %v261_v33  ;;  %v263_v48 = vunpack.c.h.bf16 %v261_v33  ;;  %v294_v7 = vld [vmem:[%s414_s8 + $0x8] sm:$0xff]  }
   0xa   :  { %v242_v49 = vunpack.c.l.bf16 %v290_v36  ;;  %v243_v50 = vunpack.c.h.bf16 %v290_v36  ;;  %v70_v53 = vmax.f32 %v50_v44, %v226_v37  ;;  %v71_v54 = vmax.f32 %v51_v45, %v227_v38 }
   0xb   :  { %v108_v41 = vmax.f32 %v88_v31, %v238_v18  ;;  %v109_v42 = vmax.f32 %v89_v32, %v239_v19  ;;  %v270_v56 = vunpack.c.l.bf16 %v269_v43  ;;  %v271_v57 = vunpack.c.h.bf16 %v269_v43 }
   0xc   :  { %v250_v58 = vunpack.c.l.bf16 %v291_v46  ;;  %v251_v59 = vunpack.c.h.bf16 %v291_v46  ;;  %v90_v62 = vmax.f32 %v70_v53, %v234_v39  ;;  %v91_v63 = vmax.f32 %v71_v54, %v235_v40 }
   0xd   :  { %v128_v51 = vmax.f32 %v108_v41, %v246_v23  ;;  %v129_v52 = vmax.f32 %v109_v42, %v247_v24  ;;  %v258_v1 = vunpack.c.l.bf16 %v292_v55  ;;  %v259_v2 = vunpack.c.h.bf16 %v292_v55 }
   0xe   :  { %v110_v5 = vmax.f32 %v90_v62, %v242_v49  ;;  %v111_v6 = vmax.f32 %v91_v63, %v243_v50  ;;  %v266_v8 = vunpack.c.l.bf16 %v293_v0  ;;  %v267_v9 = vunpack.c.h.bf16 %v293_v0 }
   0xf   :  { %v148_v60 = vmax.f32 %v128_v51, %v254_v27  ;;  %v149_v61 = vmax.f32 %v129_v52, %v255_v28  ;;  %v274_v14 = vunpack.c.l.bf16 %v294_v7  ;;  %v275_v18 = vunpack.c.h.bf16 %v294_v7 }
  0x10   :  { %v130_v12 = vmax.f32 %v110_v5, %v250_v58  ;;  %v131_v13 = vmax.f32 %v111_v6, %v251_v59 }
  0x11   :  { %v168_v3 = vmax.f32 %v148_v60, %v262_v47  ;;  %v169_v4 = vmax.f32 %v149_v61, %v263_v48 }
  0x12   :  { %v150_v16 = vmax.f32 %v130_v12, %v258_v1  ;;  %v151_v17 = vmax.f32 %v131_v13, %v259_v2 }
  0x13   :  { %v188_v10 = vmax.f32 %v168_v3, %v270_v56  ;;  %v189_v11 = vmax.f32 %v169_v4, %v271_v57 }
  0x14   :  { %v170_v19 = vmax.f32 %v150_v16, %v266_v8  ;;  %v171_v20 = vmax.f32 %v151_v17, %v267_v9 }
  0x15   :  { %v279_v15 = vpack.c.bf16 %v189_v11, %v188_v10 }
  0x16   :  { %v190_v21 = vmax.f32 %v170_v19, %v274_v14  ;;  %v191_v22 = vmax.f32 %v171_v20, %v275_v18 }
  0x17   :  { %280 = vst [vmem:[%s415_s9] sm:$0xff] %v279_v15  }
  0x18   :  { %v284_v23 = vpack.c.bf16 %v191_v22, %v190_v21 }
  0x1a   :  { %295 = vst [vmem:[%s415_s9 + $0x8] sm:$0xff] %v284_v23  }

// kernel: alexnet_forward.16
= control target key start
LH: loop header
LB: loop body
LE: loop exit
PB: predicated region body
PF: predicated region fallthrough
CT: control target
= control target key end

     0   :  { %s1395_s12 = smov 0   ;;  %s1397_s13 = smov 0   ;;  %s1763_s0 = inlined_call_operand.vmem [shape: bf16[32,1792], index: 0, kind: input, shape index: {}]   ;;  %s1764_s1 = inlined_call_operand.vmem [shape: bf16[1792,384], index: 1, kind: input, shape index: {}]   ;;  %s1765_s2 = inlined_call_operand.vmem [shape: f32[1,384], index: 2, kind: input, shape index: {}]   ;;  %s1766_s3 = inlined_call_operand.vmem [shape: f32[32,384], index: 3, kind: output, shape index: {}]  }
   0x1   :  { %s1399_s14 = smov 0   ;;  %s1401_s15 = smov 0  }
   0x2   :  { %s1403_s16 = smov 0  }
   0x3 LB: > { %s25_s17 = sadd.s32 1, %s1369_s15  ;;  %p48_p1 = scmp.ne.s32.totalorder %s1361_s13, %s1357_s12  ;;  %s1373_s16 = sphi %s1403_s16, %s13_s16   ;;  %s1369_s15 = sphi %s1401_s15, %s1770_s15   ;;  %s1365_s14 = sphi %s1399_s14, %s1769_s14   ;;  %s1361_s13 = sphi %s1397_s13, %s1768_s13   ;;  %s1357_s12 = sphi %s1395_s12, %s1767_s12  }
   0x4   : > { %p26_p0 = scmp.ge.s32.totalorder %s25_s17, 7  ;;  %p49_p2 = scmp.eq.s32.totalorder %s1373_s16, 0 }
   0x5   : > { %s41_s19 = sadd.s32 1, %s1361_s13  ;;  %p1003_p5 = scmp.ge.s32.totalorder %s1373_s16, 7 }
   0x6   : > { %s1772_s17 = smov (%p26_p0, %s25_s17), 0  ;;  %p50_p3 = por %p49_p2, %p48_p1 }
   0x7   : > { %s37_s18 = ssub.s32 %s1369_s15, %s1772_s17  ;;  %164 = sbr.rel (%p1003_p5) target bundleno = 20 (0x14), region = 20 }
   0x8   : > { %p39_p4 = scmp.eq.s32.totalorder %s37_s18, 0 }
   0xa   : > { %s1430_s20 = scalar_select %p39_p4, %s1361_s13, %s41_s19  }
   0xc   : > { %167 = sbr.rel (!%p50_p3) target bundleno = 20 (0x14), region = 24  ;;  %s169_s21 = sand.u32 (%p50_p3), 1, %s1361_s13  }
   0xd   : > { %s1225_s22 = sshll.u32 (%p50_p3), %s1369_s15, 3  ;;  %s1004_s23 = sshll.u32 (%p50_p3), %s169_s21, 5 }
   0xe   : > { %s177_s26 = scalar_lea.vmem (%p50_p3), %s1763_s0, %s1225_s22  ;;  %s171_s27 = scalar_lea.vmem (%p50_p3), [#allocation2], %s1004_s23 }
   0xf   : > { %v212_v0 = vld [vmem:[%s177_s26] sm:$0xff] (%p50_p3)  ;;  %v214_v1 = vld [vmem:[%s177_s26 + $0x38] sm:$0xff] (%p50_p3)  ;;  %v216_v2 = vld [vmem:[%s177_s26 + $0x70] sm:$0xff] (%p50_p3) }
  0x10   : > { %213 = vst [vmem:[%s171_s27] sm:$0xff] (%p50_p3), %v212_v0  ;;  %v218_v3 = vld [vmem:[%s177_s26 + $0xa8] sm:$0xff] (%p50_p3) }
  0x11   : > { %215 = vst [vmem:[%s171_s27 + $0x8] sm:$0xff] %v214_v1 }
  0x12   : > { %217 = vst [vmem:[%s171_s27 + $0x10] sm:$0xff] %v216_v2 }
  0x13   : > { %219 = vst [vmem:[%s171_s27 + $0x18] sm:$0xff] %v218_v3 }
  0x14 PF: > { %p1007_p6 = scmp.ge.s32.totalorder %s1373_s16, 1  ;;  %p239_p7 = scmp.lt.s32.totalorder %s1373_s16, 8 }
  0x16   : > { %p240_p8 = pnand %p1007_p6, %p239_p7 }
  0x17   : > { %s246_s28 = sand.u32 (!%p240_p8), 1, %s1357_s12   ;;  %s1009_s29 = sshll.u32 (!%p240_p8), %s1365_s14, 5 }
  0x18   : > { %243 = sbr.rel (%p240_p8) target bundleno = 277 (0x115), region = 66  ;;  %s1008_s30 = sshll.u32 (!%p240_p8), %s246_s28, 5 }
  0x19   : > { %p292_p9 = scmp.lt.s32.totalorder (!%p240_p8), %s1009_s29, 223  ;;  %s1447_s8 = scalar_lea.vmem (!%p240_p8), [#allocation2], %s1008_s30 }
  0x1a   : > { %p1011_p10 = scmp.ne.s32.totalorder (!%p240_p8), %s1365_s14, 0 }
  0x1d   : > { %s1774_s29 = smov (!%p292_p9, %s1009_s29), 223  ;;  %322 = sbr.rel (%p1011_p10) target bundleno = 49 (0x31), region = 74 }
  0x1e   : > { %s1294_s4 = smul.u32 12, %s1774_s29 }
  0x20   : > { %s1445_s7 = scalar_lea.vmem %s1764_s1, %s1294_s4 }
  0x22   : > { %v323_v4 = vld [vmem:[%s1765_s2] sm:$0x7] }
  0x23   : > { %v325_v5 = vperm.slane %v323_v4, 0  ;;  %v326_v6 = vperm.slane %v323_v4, 1  ;;  %v327_v7 = vperm.slane %v323_v4, 2 }
  0x25   : > { %331 = vst [vmem:[%s1766_s3] sm:$0xff] %v325_v5 }
  0x26   : > { %334 = vst [vmem:[%s1766_s3 + $0x18] sm:$0xff] %v325_v5 }
  0x27   : > { %337 = vst [vmem:[%s1766_s3 + $0x30] sm:$0xff] %v325_v5 }
  0x28   : > { %340 = vst [vmem:[%s1766_s3 + $0x48] sm:$0xff] %v325_v5 }
  0x29   : > { %332 = vst [vmem:[%s1766_s3 + $0x8] sm:$0xff] %v326_v6 }
  0x2a   : > { %335 = vst [vmem:[%s1766_s3 + $0x20] sm:$0xff] %v326_v6 }
  0x2b   : > { %338 = vst [vmem:[%s1766_s3 + $0x38] sm:$0xff] %v326_v6 }
  0x2c   : > { %341 = vst [vmem:[%s1766_s3 + $0x50] sm:$0xff] %v326_v6 }
  0x2d   : > { %333 = vst [vmem:[%s1766_s3 + $0x10] sm:$0xff] %v327_v7 }
  0x2e   : > { %336 = vst [vmem:[%s1766_s3 + $0x28] sm:$0xff] %v327_v7 }
  0x2f   : > { %339 = vst [vmem:[%s1766_s3 + $0x40] sm:$0xff] %v327_v7 }
  0x30   : > { %342 = vst [vmem:[%s1766_s3 + $0x58] sm:$0xff] %v327_v7 }
  0x31 PF: > { %v1114_v8 = vld [vmem:[%s1445_s7 + $0xa8] sm:$0xf]  ;;  %v1252_v9 = vld [vmem:[%s1445_s7 + $0xb0] sm:$0xf0]  ;;  %v1251_v13 = vld [vmem:[%s1445_s7 + $0xac] sm:$0xf] }
  0x32   : > { %v1210_v10 = vld [vmem:[%s1445_s7 + $0x168] sm:$0xf]  ;;  %v1115_v11 = vor.u32 %v1252_v9, %v1114_v8  ;;  %v1276_v12 = vld [vmem:[%s1445_s7 + $0x170] sm:$0xf0]  ;;  %v1116_v14 = vld [vmem:[%s1445_s7 + $0xb4] sm:$0xf0] }
  0x33   : > { %v1211_v15 = vor.u32 %v1276_v12, %v1210_v10  ;;  %v1119_v16 = vor.u32 %v1251_v13, %v1116_v14  ;;  %v1275_v17 = vld [vmem:[%s1445_s7 + $0x16c] sm:$0xf]  ;;  %v1212_v18 = vld [vmem:[%s1445_s7 + $0x174] sm:$0xf0]  ;;  %v1102_v19 = vld [vmem:[%s1445_s7 + $0x90] sm:$0xf] }
  0x34   : > { %699 = vmatpush.bf16.msra.mxu0 %v1115_v11  ;;  %v1215_v20 = vor.u32 %v1275_v17, %v1212_v18  ;;  %v1249_v21 = vld [vmem:[%s1445_s7 + $0x98] sm:$0xf0]  ;;  %v1198_v22 = vld [vmem:[%s1445_s7 + $0x150] sm:$0xf]  ;;  %v1248_v26 = vld [vmem:[%s1445_s7 + $0x94] sm:$0xf] }
  0x35   : > { %v1273_v23 = vld [vmem:[%s1445_s7 + $0x158] sm:$0xf0]  ;;  %718 = vmatpush.bf16.msra.mxu1 %v1211_v15  ;;  %737 = vmatpush.bf16.msra.mxu2 %v1119_v16  ;;  %v1103_v24 = vor.u32 %v1249_v21, %v1102_v19  ;;  %v1104_v27 = vld [vmem:[%s1445_s7 + $0x9c] sm:$0xf0]  ;;  %v1272_v28 = vld [vmem:[%s1445_s7 + $0x154] sm:$0xf] }
  0x36   : > { %v1199_v25 = vor.u32 %v1273_v23, %v1198_v22  ;;  %756 = vmatpush.bf16.msra.mxu3 %v1215_v20  ;;  %v1107_v29 = vor.u32 %v1248_v26, %v1104_v27  ;;  %v1200_v30 = vld [vmem:[%s1445_s7 + $0x15c] sm:$0xf0]  ;;  %v1090_v31 = vld [vmem:[%s1445_s7 + $0x78] sm:$0xf]  ;;  %v1246_v32 = vld [vmem:[%s1445_s7 + $0x80] sm:$0xf0] }
  0x37   : > { %v1203_v33 = vor.u32 %v1272_v28, %v1200_v30  ;;  %v1186_v34 = vld [vmem:[%s1445_s7 + $0x138] sm:$0xf]  ;;  %v1270_v35 = vld [vmem:[%s1445_s7 + $0x140] sm:$0xf0]  ;;  %v1245_v36 = vld [vmem:[%s1445_s7 + $0x7c] sm:$0xf]  ;;  %v1091_v37 = vor.u32 %v1246_v32, %v1090_v31 }
  0x38   : > { %700 = vmatpush.bf16.msra.mxu0 %v1103_v24  ;;  %v1092_v38 = vld [vmem:[%s1445_s7 + $0x84] sm:$0xf0]  ;;  %v1269_v39 = vld [vmem:[%s1445_s7 + $0x13c] sm:$0xf]  ;;  %v1187_v41 = vor.u32 %v1270_v35, %v1186_v34  ;;  %v1078_v43 = vld [vmem:[%s1445_s7 + $0x60] sm:$0xf] }
  0x39   : > { %v1188_v40 = vld [vmem:[%s1445_s7 + $0x144] sm:$0xf0]  ;;  %719 = vmatpush.bf16.msra.mxu1 %v1199_v25  ;;  %738 = vmatpush.bf16.msra.mxu2 %v1107_v29  ;;  %v1095_v42 = vor.u32 %v1245_v36, %v1092_v38  ;;  %v1243_v44 = vld [vmem:[%s1445_s7 + $0x68] sm:$0xf0]  ;;  %v1174_v45 = vld [vmem:[%s1445_s7 + $0x120] sm:$0xf] }
  0x3a   : > { %757 = vmatpush.bf16.msra.mxu3 %v1203_v33  ;;  %v1191_v46 = vor.u32 %v1269_v39, %v1188_v40  ;;  %v1267_v47 = vld [vmem:[%s1445_s7 + $0x128] sm:$0xf0]  ;;  %v1242_v48 = vld [vmem:[%s1445_s7 + $0x64] sm:$0xf]  ;;  %v1080_v49 = vld [vmem:[%s1445_s7 + $0x6c] sm:$0xf0]  ;;  %v1079_v52 = vor.u32 %v1243_v44, %v1078_v43 }
  0x3b   : > { %v1266_v50 = vld [vmem:[%s1445_s7 + $0x124] sm:$0xf]  ;;  %v1176_v51 = vld [vmem:[%s1445_s7 + $0x12c] sm:$0xf0]  ;;  %v1175_v53 = vor.u32 %v1267_v47, %v1174_v45  ;;  %v1083_v54 = vor.u32 %v1242_v48, %v1080_v49  ;;  %v1066_v55 = vld [vmem:[%s1445_s7 + $0x48] sm:$0xf] }
  0x3c   : > { %701 = vmatpush.bf16.msra.mxu0 %v1091_v37  ;;  %v1240_v56 = vld [vmem:[%s1445_s7 + $0x50] sm:$0xf0]  ;;  %v1162_v57 = vld [vmem:[%s1445_s7 + $0x108] sm:$0xf]  ;;  %v1179_v58 = vor.u32 %v1266_v50, %v1176_v51  ;;  %v1239_v60 = vld [vmem:[%s1445_s7 + $0x4c] sm:$0xf] }
  0x3d   : > { %720 = vmatpush.bf16.msra.mxu1 %v1187_v41  ;;  %739 = vmatpush.bf16.msra.mxu2 %v1095_v42  ;;  %v1264_v59 = vld [vmem:[%s1445_s7 + $0x110] sm:$0xf0]  ;;  %v1068_v61 = vld [vmem:[%s1445_s7 + $0x54] sm:$0xf0]  ;;  %v1263_v62 = vld [vmem:[%s1445_s7 + $0x10c] sm:$0xf]  ;;  %v1067_v0 = vor.u32 %v1240_v56, %v1066_v55 }
  0x3e   : > { %758 = vmatpush.bf16.msra.mxu3 %v1191_v46  ;;  %v1164_v63 = vld [vmem:[%s1445_s7 + $0x114] sm:$0xf0]  ;;  %v1163_v1 = vor.u32 %v1264_v59, %v1162_v57  ;;  %v1071_v2 = vor.u32 %v1239_v60, %v1068_v61  ;;  %v1054_v3 = vld [vmem:[%s1445_s7 + $0x30] sm:$0xf]  ;;  %v1237_v4 = vld [vmem:[%s1445_s7 + $0x38] sm:$0xf0] }
  0x3f   : > { %v1150_v5 = vld [vmem:[%s1445_s7 + $0xf0] sm:$0xf]  ;;  %v1167_v6 = vor.u32 %v1263_v62, %v1164_v63  ;;  %v1261_v7 = vld [vmem:[%s1445_s7 + $0xf8] sm:$0xf0]  ;;  %v1236_v8 = vld [vmem:[%s1445_s7 + $0x34] sm:$0xf]  ;;  %v1055_v12 = vor.u32 %v1237_v4, %v1054_v3 }
  0x40   : > { %702 = vmatpush.bf16.msra.mxu0 %v1079_v52  ;;  %v1056_v9 = vld [vmem:[%s1445_s7 + $0x3c] sm:$0xf0]  ;;  %v1260_v10 = vld [vmem:[%s1445_s7 + $0xf4] sm:$0xf]  ;;  %v1151_v13 = vor.u32 %v1261_v7, %v1150_v5  ;;  %v1042_v15 = vld [vmem:[%s1445_s7 + $0x18] sm:$0xf] }
  0x41   : > { %721 = vmatpush.bf16.msra.mxu1 %v1175_v53  ;;  %740 = vmatpush.bf16.msra.mxu2 %v1083_v54  ;;  %v1152_v11 = vld [vmem:[%s1445_s7 + $0xfc] sm:$0xf0]  ;;  %v1059_v14 = vor.u32 %v1236_v8, %v1056_v9  ;;  %v1234_v16 = vld [vmem:[%s1445_s7 + $0x20] sm:$0xf0]  ;;  %v1138_v17 = vld [vmem:[%s1445_s7 + $0xd8] sm:$0xf] }
  0x42   : > { %759 = vmatpush.bf16.msra.mxu3 %v1179_v58  ;;  %v1155_v18 = vor.u32 %v1260_v10, %v1152_v11  ;;  %v1258_v19 = vld [vmem:[%s1445_s7 + $0xe0] sm:$0xf0]  ;;  %v1233_v20 = vld [vmem:[%s1445_s7 + $0x1c] sm:$0xf]  ;;  %v1044_v21 = vld [vmem:[%s1445_s7 + $0x24] sm:$0xf0]  ;;  %v1043_v24 = vor.u32 %v1234_v16, %v1042_v15 }
  0x43   : > { %v1257_v22 = vld [vmem:[%s1445_s7 + $0xdc] sm:$0xf]  ;;  %v1140_v23 = vld [vmem:[%s1445_s7 + $0xe4] sm:$0xf0]  ;;  %v1030_v25 = vld [vmem:[%s1445_s7] sm:$0xf]  ;;  %v1139_v27 = vor.u32 %v1258_v19, %v1138_v17  ;;  %v1047_v28 = vor.u32 %v1233_v20, %v1044_v21 }
  0x44   : > { %703 = vmatpush.bf16.msra.mxu0 %v1067_v0  ;;  %v1231_v26 = vld [vmem:[%s1445_s7 + $0x8] sm:$0xf0]  ;;  %v1126_v29 = vld [vmem:[%s1445_s7 + $0xc0] sm:$0xf]  ;;  %v1230_v31 = vld [vmem:[%s1445_s7 + $0x4] sm:$0xf]  ;;  %v1143_v32 = vor.u32 %v1257_v22, %v1140_v23 }
  0x45   : > { %722 = vmatpush.bf16.msra.mxu1 %v1163_v1  ;;  %741 = vmatpush.bf16.msra.mxu2 %v1071_v2  ;;  %v1255_v30 = vld [vmem:[%s1445_s7 + $0xc8] sm:$0xf0]  ;;  %v1032_v33 = vld [vmem:[%s1445_s7 + $0xc] sm:$0xf0]  ;;  %v1254_v34 = vld [vmem:[%s1445_s7 + $0xc4] sm:$0xf]  ;;  %v1031_v39 = vor.u32 %v1231_v26, %v1030_v25 }
  0x46   : > { %760 = vmatpush.bf16.msra.mxu3 %v1167_v6  ;;  %v1128_v35 = vld [vmem:[%s1445_s7 + $0xcc] sm:$0xf0]  ;;  %v1014_v36 = vld [vmem:[%s1447_s8] sm:$0xf]  ;;  %v1253_v38 = vld [vmem:[%s1445_s7 + $0xb8] sm:$0xf0]  ;;  %v1127_v43 = vor.u32 %v1255_v30, %v1126_v29  ;;  %v1035_v44 = vor.u32 %v1230_v31, %v1032_v33 }
  0x47   : > { %v1122_v37 = vld [vmem:[%s1445_s7 + $0xb0] sm:$0xf]  ;;  %v1227_v40 = vld [vmem:[%s1447_s8 + $0x4] sm:$0xf0]  ;;  %v1277_v42 = vld [vmem:[%s1445_s7 + $0x178] sm:$0xf0]  ;;  %v1131_v47 = vor.u32 %v1254_v34, %v1128_v35 }
  0x48   : > { %704 = vmatpush.bf16.msra.mxu0 %v1055_v12  ;;  %v1218_v41 = vld [vmem:[%s1445_s7 + $0x170] sm:$0xf]  ;;  %v1226_v45 = vld [vmem:[%s1447_s8 + $0x4] sm:$0xf]  ;;  %v1016_v46 = vld [vmem:[%s1447_s8 + $0x8] sm:$0xf0]  ;;  %v1123_v48 = vor.u32 %v1253_v38, %v1122_v37  ;;  %v1561_v49 = vor.u32 %v1227_v40, %v1014_v36 }
  0x49   : > { %723 = vmatpush.bf16.msra.mxu1 %v1151_v13  ;;  %742 = vmatpush.bf16.msra.mxu2 %v1059_v14  ;;  %v1219_v50 = vor.u32 %v1277_v42, %v1218_v41  ;;  %v1110_v51 = vld [vmem:[%s1445_s7 + $0x98] sm:$0xf]  ;;  %v1250_v52 = vld [vmem:[%s1445_s7 + $0xa0] sm:$0xf0]  ;;  %v1565_v53 = vor.u32 %v1226_v45, %v1016_v46  ;;  %v1098_v58 = vld [vmem:[%s1445_s7 + $0x80] sm:$0xf] }
  0x4a   : > { %761 = vmatpush.bf16.msra.mxu3 %v1155_v18  ;;  %v1206_v54 = vld [vmem:[%s1445_s7 + $0x158] sm:$0xf]  ;;  %v1274_v55 = vld [vmem:[%s1445_s7 + $0x160] sm:$0xf0]  ;;  %v1111_v56 = vor.u32 %v1250_v52, %v1110_v51  ;;  %v1247_v59 = vld [vmem:[%s1445_s7 + $0x88] sm:$0xf0] }
  0x4b   : > { %v1207_v57 = vor.u32 %v1274_v55, %v1206_v54  ;;  %v1194_v60 = vld [vmem:[%s1445_s7 + $0x140] sm:$0xf]  ;;  %v1271_v61 = vld [vmem:[%s1445_s7 + $0x148] sm:$0xf0]  ;;  %v1099_v62 = vor.u32 %v1247_v59, %v1098_v58  ;;  %v1086_v0 = vld [vmem:[%s1445_s7 + $0x68] sm:$0xf] }
  0x4c   : > { %705 = vmatpush.bf16.msra.mxu0 %v1043_v24  ;;  %v1195_v63 = vor.u32 %v1271_v61, %v1194_v60  ;;  %v1244_v1 = vld [vmem:[%s1445_s7 + $0x70] sm:$0xf0]  ;;  %v1182_v2 = vld [vmem:[%s1445_s7 + $0x128] sm:$0xf]  ;;  %v1022_v6 = vld [vmem:[%s1447_s8 + $0x10] sm:$0xf] }
  0x4d   : > { %724 = vmatpush.bf16.msra.mxu1 %v1139_v27  ;;  %743 = vmatpush.bf16.msra.mxu2 %v1047_v28  ;;  %v1268_v3 = vld [vmem:[%s1445_s7 + $0x130] sm:$0xf0]  ;;  %v1087_v4 = vor.u32 %v1244_v1, %v1086_v0  ;;  %v1074_v7 = vld [vmem:[%s1445_s7 + $0x50] sm:$0xf]  ;;  %v1241_v8 = vld [vmem:[%s1445_s7 + $0x58] sm:$0xf0] }
  0x4e   : > { %762 = vmatpush.bf16.msra.mxu3 %v1143_v32  ;;  %v1183_v5 = vor.u32 %v1268_v3, %v1182_v2  ;;  %v1229_v9 = vld [vmem:[%s1447_s8 + $0x14] sm:$0xf0]  ;;  %v1170_v10 = vld [vmem:[%s1445_s7 + $0x110] sm:$0xf]  ;;  %v1265_v11 = vld [vmem:[%s1445_s7 + $0x118] sm:$0xf0]  ;;  %v1075_v14 = vor.u32 %v1241_v8, %v1074_v7 }
  0x4f   : > { %v1228_v12 = vld [vmem:[%s1447_s8 + $0x14] sm:$0xf]  ;;  %v1024_v13 = vld [vmem:[%s1447_s8 + $0x18] sm:$0xf0]  ;;  %v1023_v15 = vor.u32 %v1229_v9, %v1022_v6  ;;  %v1171_v16 = vor.u32 %v1265_v11, %v1170_v10  ;;  %v1062_v17 = vld [vmem:[%s1445_s7 + $0x38] sm:$0xf] }
  0x50   : > { %706 = vmatpush.bf16.msra.mxu0 %v1031_v39  ;;  %v1238_v18 = vld [vmem:[%s1445_s7 + $0x40] sm:$0xf0]  ;;  %v1027_v19 = vor.u32 %v1228_v12, %v1024_v13  ;;  %v1158_v20 = vld [vmem:[%s1445_s7 + $0xf8] sm:$0xf]  ;;  %v1050_v24 = vld [vmem:[%s1445_s7 + $0x20] sm:$0xf] }
  0x51   : > { %725 = vmatpush.bf16.msra.mxu1 %v1127_v43  ;;  %744 = vmatpush.bf16.msra.mxu2 %v1035_v44  ;;  %v1262_v21 = vld [vmem:[%s1445_s7 + $0x100] sm:$0xf0]  ;;  %v1063_v22 = vor.u32 %v1238_v18, %v1062_v17  ;;  %v1235_v25 = vld [vmem:[%s1445_s7 + $0x28] sm:$0xf0]  ;;  %v1146_v26 = vld [vmem:[%s1445_s7 + $0xe0] sm:$0xf] }
  0x52   : > { %763 = vmatpush.bf16.msra.mxu3 %v1131_v47  ;;  %v1159_v23 = vor.u32 %v1262_v21, %v1158_v20  ;;  %v1259_v27 = vld [vmem:[%s1445_s7 + $0xe8] sm:$0xf0]  ;;  %v1051_v28 = vor.u32 %v1235_v25, %v1050_v24  ;;  %v1038_v30 = vld [vmem:[%s1445_s7 + $0x8] sm:$0xf]  ;;  %v1232_v31 = vld [vmem:[%s1445_s7 + $0x10] sm:$0xf0] }
  0x53   : > { %707 = vmatmul.bf16.vlgmr.msra.gmra.mxu0 %v1561_v49  ;;  %v1147_v29 = vor.u32 %v1259_v27, %v1146_v26  ;;  %v1134_v32 = vld [vmem:[%s1445_s7 + $0xc8] sm:$0xf]  ;;  %v1256_v33 = vld [vmem:[%s1445_s7 + $0xd0] sm:$0xf0]  ;;  %v1039_v34 = vor.u32 %v1232_v31, %v1038_v30  ;;  %v343_v37 = vld [vmem:[%s1766_s3] sm:$0xff]  ;;  %p1220_p11 = scmp.ne.s32.totalorder %s1365_s14, 6 }
  0x54   : > { %726 = vmatmul.bf16.vlgmr.msra.gmra.mxu1 %v1565_v53  ;;  %745 = vmatmul.bf16.vlgmr.msra.gmra.mxu2 %v1561_v49  ;;  %v1135_v35 = vor.u32 %v1256_v33, %v1134_v32  ;;  %v344_v42 = vld [vmem:[%s1766_s3 + $0x8] sm:$0xff]  ;;  %v346_v46 = vld [vmem:[%s1766_s3 + $0x18] sm:$0xff]  ;;  %v347_v52 = vld [vmem:[%s1766_s3 + $0x20] sm:$0xff] }
  0x55   : > { %1278 = vmatpush.bf16.msrb.mxu2 %v1123_v48  ;;  %764 = vmatmul.bf16.vlgmr.msra.gmra.mxu3 %v1565_v53  ;;  %v352_v2 = vld [vmem:[%s1766_s3 + $0x48] sm:$0xff]  ;;  %v353_v8 = vld [vmem:[%s1766_s3 + $0x50] sm:$0xff]  ;;  %v351_v18 = vld [vmem:[%s1766_s3 + $0x40] sm:$0xff] }
  0x56   : > { %1286 = vmatpush.bf16.msrb.mxu3 %v1219_v50  ;;  %775 = vmatpush.bf16.msrb.mxu0 %v1123_v48  ;;  %v345_v12 = vld [vmem:[%s1766_s3 + $0x10] sm:$0xff] }
  0x57   : > { %794 = vmatpush.bf16.msrb.mxu1 %v1219_v50 }
  0x59   : > { %1279 = vmatpush.bf16.msrb.mxu2 %v1111_v56 }
  0x5a   : > { %1287 = vmatpush.bf16.msrb.mxu3 %v1207_v57  ;;  %776 = vmatpush.bf16.msrb.mxu0 %v1111_v56  ;;  %v349_v56 = vld [vmem:[%s1766_s3 + $0x30] sm:$0xff] }
  0x5b   : > { %795 = vmatpush.bf16.msrb.mxu1 %v1207_v57 }
  0x5d   : > { %1280 = vmatpush.bf16.msrb.mxu2 %v1099_v62 }
  0x5e   : > { %1288 = vmatpush.bf16.msrb.mxu3 %v1195_v63  ;;  %777 = vmatpush.bf16.msrb.mxu0 %v1099_v62  ;;  %v350_v62 = vld [vmem:[%s1766_s3 + $0x38] sm:$0xff] }
  0x5f   : > { %796 = vmatpush.bf16.msrb.mxu1 %v1195_v63 }
  0x61   : > { %1281 = vmatpush.bf16.msrb.mxu2 %v1087_v4 }
  0x62   : > { %1289 = vmatpush.bf16.msrb.mxu3 %v1183_v5  ;;  %778 = vmatpush.bf16.msrb.mxu0 %v1087_v4 }
  0x63   : > { %797 = vmatpush.bf16.msrb.mxu1 %v1183_v5  ;;  %712 = vmatmul.bf16.gmra.mxu0 %v1023_v15 }
  0x64   : > { %731 = vmatmul.bf16.gmra.mxu1 %v1027_v19  ;;  %750 = vmatmul.bf16.gmra.mxu2 %v1023_v15 }
  0x65   : > { %1282 = vmatpush.bf16.msrb.mxu2 %v1075_v14  ;;  %769 = vmatmul.bf16.gmra.mxu3 %v1027_v19 }
  0x66   : > { %1290 = vmatpush.bf16.msrb.mxu3 %v1171_v16  ;;  %779 = vmatpush.bf16.msrb.mxu0 %v1075_v14 }
  0x67   : > { %798 = vmatpush.bf16.msrb.mxu1 %v1171_v16 }
  0x69   : > { %1283 = vmatpush.bf16.msrb.mxu2 %v1063_v22 }
  0x6a   : > { %1291 = vmatpush.bf16.msrb.mxu3 %v1159_v23  ;;  %780 = vmatpush.bf16.msrb.mxu0 %v1063_v22  ;;  %v348_v22 = vld [vmem:[%s1766_s3 + $0x28] sm:$0xff] }
  0x6b   : > { %799 = vmatpush.bf16.msrb.mxu1 %v1159_v23 }
  0x6d   : > { %1284 = vmatpush.bf16.msrb.mxu2 %v1051_v28 }
  0x6e   : > { %1292 = vmatpush.bf16.msrb.mxu3 %v1147_v29  ;;  %781 = vmatpush.bf16.msrb.mxu0 %v1051_v28  ;;  %v354_v28 = vld [vmem:[%s1766_s3 + $0x58] sm:$0xff] }
  0x6f   : > { %800 = vmatpush.bf16.msrb.mxu1 %v1147_v29 }
  0x71   : > { %1285 = vmatpush.bf16.msrb.mxu2 %v1039_v34 }
  0x72   : > { %1293 = vmatpush.bf16.msrb.mxu3 %v1135_v35  ;;  %782 = vmatpush.bf16.msrb.mxu0 %v1039_v34 }
  0x73   : > { %801 = vmatpush.bf16.msrb.mxu1 %v1135_v35 }
  0x74   : > { %788 = vmatmul.bf16.vlgmr.msrb.gmra.mxu2 %v1023_v15 }
  0x75   : > { %783 = vmatmul.bf16.vlgmr.msrb.gmra.mxu0 %v1561_v49  ;;  %807 = vmatmul.bf16.vlgmr.msrb.gmra.mxu3 %v1027_v19 }
  0x76   : > { %802 = vmatmul.bf16.vlgmr.msrb.gmra.mxu1 %v1565_v53 }
  0xd0   : > { %v708_v36 = vpop.f32.mrf.mxu0 }
  0xd1   : > { %v727_v38 = vpop.f32.mrf.mxu1 }
  0xd2   : > { %v728_v39 = vadd.f32 %v727_v38, %v708_v36 }
  0xd4   : > { %v813_v40 = vadd.f32 %v728_v39, %v343_v37 }
  0xd6   : > { %825 = vst [vmem:[%s1766_s3] sm:$0xff] %v813_v40 }
  0xd7   : > { %v746_v41 = vpop.f32.mrf.mxu2 }
  0xd8   : > { %v765_v43 = vpop.f32.mrf.mxu3  ;;  %v710_v44 = vpop.f32.mrf.mxu0 }
  0xd9   : > { %v766_v45 = vadd.f32 %v765_v43, %v746_v41  ;;  %v729_v47 = vpop.f32.mrf.mxu1 }
  0xda   : > { %v730_v48 = vadd.f32 %v729_v47, %v710_v44 }
  0xdb   : > { %v814_v49 = vadd.f32 %v766_v45, %v344_v42 }
  0xdc   : > { %v816_v50 = vadd.f32 %v730_v48, %v346_v46 }
  0xdd   : > { %826 = vst [vmem:[%s1766_s3 + $0x8] sm:$0xff] %v814_v49 }
  0xde   : > { %828 = vst [vmem:[%s1766_s3 + $0x18] sm:$0xff] %v816_v50 }
  0xdf   : > { %v748_v51 = vpop.f32.mrf.mxu2 }
  0xe0   : > { %v767_v53 = vpop.f32.mrf.mxu3  ;;  %v713_v54 = vpop.f32.mrf.mxu0 }
  0xe1   : > { %v768_v55 = vadd.f32 %v767_v53, %v748_v51  ;;  %v732_v57 = vpop.f32.mrf.mxu1 }
  0xe2   : > { %v733_v58 = vadd.f32 %v732_v57, %v713_v54 }
  0xe3   : > { %v817_v59 = vadd.f32 %v768_v55, %v347_v52 }
  0xe4   : > { %v819_v60 = vadd.f32 %v733_v58, %v349_v56 }
  0xe5   : > { %829 = vst [vmem:[%s1766_s3 + $0x20] sm:$0xff] %v817_v59 }
  0xe6   : > { %831 = vst [vmem:[%s1766_s3 + $0x30] sm:$0xff] %v819_v60 }
  0xe7   : > { %v751_v61 = vpop.f32.mrf.mxu2 }
  0xe8   : > { %v770_v63 = vpop.f32.mrf.mxu3  ;;  %v715_v0 = vpop.f32.mrf.mxu0 }
  0xe9   : > { %v771_v1 = vadd.f32 %v770_v63, %v751_v61  ;;  %v734_v3 = vpop.f32.mrf.mxu1 }
  0xea   : > { %v735_v4 = vadd.f32 %v734_v3, %v715_v0 }
  0xeb   : > { %v820_v5 = vadd.f32 %v771_v1, %v350_v62 }
  0xec   : > { %v822_v6 = vadd.f32 %v735_v4, %v352_v2 }
  0xed   : > { %832 = vst [vmem:[%s1766_s3 + $0x38] sm:$0xff] %v820_v5 }
  0xee   : > { %834 = vst [vmem:[%s1766_s3 + $0x48] sm:$0xff] %v822_v6 }
  0xef   : > { %v753_v7 = vpop.f32.mrf.mxu2 }
  0xf0   : > { %v772_v9 = vpop.f32.mrf.mxu3 }
  0xf1   : > { %v773_v10 = vadd.f32 %v772_v9, %v753_v7 }
  0xf2   : > { %v784_v11 = vpop.f32.mrf.mxu0 }
  0xf3   : > { %v803_v13 = vpop.f32.mrf.mxu1  ;;  %v823_v14 = vadd.f32 %v773_v10, %v353_v8 }
  0xf4   : > { %v804_v15 = vadd.f32 %v803_v13, %v784_v11 }
  0xf5   : > { %835 = vst [vmem:[%s1766_s3 + $0x50] sm:$0xff] %v823_v14 }
  0xf6   : > { %v815_v16 = vadd.f32 %v804_v15, %v345_v12 }
  0xf7   : > { %v789_v17 = vpop.f32.mrf.mxu2 }
  0xf8   : > { %827 = vst [vmem:[%s1766_s3 + $0x10] sm:$0xff] %v815_v16  ;;  %v808_v19 = vpop.f32.mrf.mxu3 }
  0xf9   : > { %v809_v20 = vadd.f32 %v808_v19, %v789_v17 }
  0xfa   : > { %v786_v21 = vpop.f32.mrf.mxu0 }
  0xfb   : > { %v805_v23 = vpop.f32.mrf.mxu1  ;;  %v821_v24 = vadd.f32 %v809_v20, %v351_v18 }
  0xfc   : > { %v806_v25 = vadd.f32 %v805_v23, %v786_v21 }
  0xfd   : > { %833 = vst [vmem:[%s1766_s3 + $0x40] sm:$0xff] %v821_v24 }
  0xfe   : > { %v818_v26 = vadd.f32 %v806_v25, %v348_v22 }
  0xff   : > { %v791_v27 = vpop.f32.mrf.mxu2 }
 0x100   : > { %830 = vst [vmem:[%s1766_s3 + $0x28] sm:$0xff] %v818_v26  ;;  %v810_v29 = vpop.f32.mrf.mxu3 }
 0x101   : > { %v811_v30 = vadd.f32 %v810_v29, %v791_v27  ;;  %840 = sbr.rel (%p1220_p11) target bundleno = 277 (0x115), region = 78 }
 0x103   : > { %v824_v31 = vadd.f32 %v811_v30, %v354_v28 }
 0x105   : > { %836 = vst [vmem:[%s1766_s3 + $0x58] sm:$0xff] %v824_v31 }
 0x106   : > { %v841_v32 = vld [vmem:[%s1766_s3] sm:$0xff]  ;;  %v842_v33 = vld [vmem:[%s1766_s3 + $0x8] sm:$0xff]  ;;  %v843_v34 = vld [vmem:[%s1766_s3 + $0x10] sm:$0xff] }
 0x107   : > { %v853_v35 = vmax.f32 %v841_v32, 0.0  ;;  %v854_v36 = vmax.f32 %v842_v33, 0.0  ;;  %v855_v37 = vmax.f32 %v843_v34, 0.0  ;;  %v844_v38 = vld [vmem:[%s1766_s3 + $0x18] sm:$0xff]  ;;  %v845_v39 = vld [vmem:[%s1766_s3 + $0x20] sm:$0xff]  ;;  %v846_v40 = vld [vmem:[%s1766_s3 + $0x28] sm:$0xff] }
 0x108   : > { %v856_v41 = vmax.f32 %v844_v38, 0.0  ;;  %v847_v42 = vld [vmem:[%s1766_s3 + $0x30] sm:$0xff]  ;;  %v857_v43 = vmax.f32 %v845_v39, 0.0  ;;  %v848_v44 = vld [vmem:[%s1766_s3 + $0x38] sm:$0xff]  ;;  %v858_v45 = vmax.f32 %v846_v40, 0.0  ;;  %v849_v46 = vld [vmem:[%s1766_s3 + $0x40] sm:$0xff] }
 0x109   : > { %865 = vst [vmem:[%s1766_s3] sm:$0xff] %v853_v35  ;;  %v859_v47 = vmax.f32 %v847_v42, 0.0  ;;  %v850_v48 = vld [vmem:[%s1766_s3 + $0x48] sm:$0xff]  ;;  %v860_v49 = vmax.f32 %v848_v44, 0.0  ;;  %v851_v50 = vld [vmem:[%s1766_s3 + $0x50] sm:$0xff]  ;;  %v861_v51 = vmax.f32 %v849_v46, 0.0 }
 0x10a   : > { %866 = vst [vmem:[%s1766_s3 + $0x8] sm:$0xff] %v854_v36  ;;  %v862_v53 = vmax.f32 %v850_v48, 0.0  ;;  %v863_v54 = vmax.f32 %v851_v50, 0.0 }
 0x10b   : > { %867 = vst [vmem:[%s1766_s3 + $0x10] sm:$0xff] %v855_v37 }
 0x10c   : > { %868 = vst [vmem:[%s1766_s3 + $0x18] sm:$0xff] %v856_v41  ;;  %v852_v52 = vld [vmem:[%s1766_s3 + $0x58] sm:$0xff] }
 0x10d   : > { %869 = vst [vmem:[%s1766_s3 + $0x20] sm:$0xff] %v857_v43  ;;  %v864_v55 = vmax.f32 %v852_v52, 0.0 }
 0x10e   : > { %870 = vst [vmem:[%s1766_s3 + $0x28] sm:$0xff] %v858_v45 }
 0x10f   : > { %871 = vst [vmem:[%s1766_s3 + $0x30] sm:$0xff] %v859_v47 }
 0x110   : > { %872 = vst [vmem:[%s1766_s3 + $0x38] sm:$0xff] %v860_v49 }
 0x111   : > { %873 = vst [vmem:[%s1766_s3 + $0x40] sm:$0xff] %v861_v51 }
 0x112   : > { %874 = vst [vmem:[%s1766_s3 + $0x48] sm:$0xff] %v862_v53 }
 0x113   : > { %875 = vst [vmem:[%s1766_s3 + $0x50] sm:$0xff] %v863_v54 }
 0x114   : > { %876 = vst [vmem:[%s1766_s3 + $0x58] sm:$0xff] %v864_v55 }
 0x115 PF: > { %s13_s16 = sadd.s32 1, %s1373_s16   ;;  %s1767_s12 = smov %s1361_s13 }
 0x116   : > { %p10_p12 = scmp.ge.s32.totalorder %s13_s16, 9   ;;  %s1768_s13 = smov %s1430_s20 }
 0x117   : > { %s1769_s14 = smov %s1369_s15  ;;  %s1770_s15 = smov %s1772_s17 }
 0x118   :  { %12 = sbr.rel (!%p10_p12) target bundleno = 3 (0x3), region = 119 }

// kernel: alexnet_forward.17
= control target key start
LH: loop header
LB: loop body
LE: loop exit
PB: predicated region body
PF: predicated region fallthrough
CT: control target
= control target key end

     0   :  { %s1366_s12 = smov 0   ;;  %s1368_s13 = smov 0   ;;  %s1676_s0 = inlined_call_operand.vmem [shape: bf16[32,3456], index: 0, kind: input, shape index: {}]   ;;  %s1677_s1 = inlined_call_operand.vmem [shape: bf16[3456,256], index: 1, kind: input, shape index: {}]   ;;  %s1678_s2 = inlined_call_operand.vmem [shape: f32[1,256], index: 2, kind: input, shape index: {}]   ;;  %s1679_s3 = inlined_call_operand.vmem [shape: f32[32,256], index: 3, kind: output, shape index: {}]  }
   0x1   :  { %s1370_s14 = smov 0   ;;  %s1372_s15 = smov 0  }
   0x2   :  { %s1374_s16 = smov 0  }
   0x3 LB: > { %s25_s17 = sadd.s32 1, %s1340_s15  ;;  %p48_p1 = scmp.ne.s32.totalorder %s1332_s13, %s1328_s12  ;;  %s1344_s16 = sphi %s1374_s16, %s13_s16   ;;  %s1340_s15 = sphi %s1372_s15, %s1683_s15   ;;  %s1336_s14 = sphi %s1370_s14, %s1682_s14   ;;  %s1332_s13 = sphi %s1368_s13, %s1681_s13   ;;  %s1328_s12 = sphi %s1366_s12, %s1680_s12  }
   0x4   : > { %p26_p0 = scmp.ge.s32.totalorder %s25_s17, 9  ;;  %p49_p2 = scmp.eq.s32.totalorder %s1344_s16, 0 }
   0x5   : > { %s41_s19 = sadd.s32 1, %s1332_s13  ;;  %p957_p5 = scmp.ge.s32.totalorder %s1344_s16, 9 }
   0x6   : > { %s1685_s17 = smov (%p26_p0, %s25_s17), 0  ;;  %p50_p3 = por %p49_p2, %p48_p1 }
   0x7   : > { %s37_s18 = ssub.s32 %s1340_s15, %s1685_s17  ;;  %164 = sbr.rel (%p957_p5) target bundleno = 25 (0x19), region = 20 }
   0x8   : > { %p39_p4 = scmp.eq.s32.totalorder %s37_s18, 0 }
   0xa   : > { %s1401_s20 = scalar_select %p39_p4, %s1332_s13, %s41_s19  }
   0xc   : > { %167 = sbr.rel (!%p50_p3) target bundleno = 25 (0x19), region = 24  ;;  %s169_s21 = sand.u32 (%p50_p3), 1, %s1332_s13  }
   0xd   : > { %s1192_s22 = smul.u32 (%p50_p3), 12, %s1340_s15 }
   0xe   : > { %s1264_s23 = smul.u32 (%p50_p3), 48, %s169_s21 }
   0xf   : > { %s177_s26 = scalar_lea.vmem (%p50_p3), %s1676_s0, %s1192_s22 }
  0x10   : > { %v192_v0 = vld [vmem:[%s177_s26] sm:$0xff] (%p50_p3)  ;;  %v194_v1 = vld [vmem:[%s177_s26 + $0x6c] sm:$0xff] (%p50_p3)  ;;  %v196_v2 = vld [vmem:[%s177_s26 + $0xd8] sm:$0xff] (%p50_p3)  ;;  %s171_s27 = scalar_lea.vmem (%p50_p3), [#allocation2], %s1264_s23 }
  0x11   : > { %193 = vst [vmem:[%s171_s27] sm:$0xff] %v192_v0  ;;  %v198_v3 = vld [vmem:[%s177_s26 + $0x144] sm:$0xff]  ;;  %v961_v5 = vld [vmem:[%s177_s26 + $0x74] sm:$0xf]  ;;  %v963_v6 = vld [vmem:[%s177_s26 + $0xe0] sm:$0xf] }
  0x12   : > { %195 = vst [vmem:[%s171_s27 + $0xc] sm:$0xff] %v194_v1  ;;  %v959_v4 = vld [vmem:[%s177_s26 + $0x8] sm:$0xf]  ;;  %v965_v7 = vld [vmem:[%s177_s26 + $0x14c] sm:$0xf] }
  0x13   : > { %197 = vst [vmem:[%s171_s27 + $0x18] sm:$0xff] %v196_v2 }
  0x14   : > { %199 = vst [vmem:[%s171_s27 + $0x24] sm:$0xff] %v198_v3 }
  0x15   : > { %960 = vst [vmem:[%s171_s27 + $0x8] sm:$0xf] %v959_v4 }
  0x16   : > { %962 = vst [vmem:[%s171_s27 + $0x14] sm:$0xf] %v961_v5 }
  0x17   : > { %964 = vst [vmem:[%s171_s27 + $0x20] sm:$0xf] %v963_v6 }
  0x18   : > { %966 = vst [vmem:[%s171_s27 + $0x2c] sm:$0xf] %v965_v7 }
  0x19 PF: > { %p967_p6 = scmp.ge.s32.totalorder %s1344_s16, 1  ;;  %p235_p7 = scmp.lt.s32.totalorder %s1344_s16, 10 }
  0x1b   : > { %p236_p8 = pnand %p967_p6, %p235_p7 }
  0x1c   : > { %s242_s28 = sand.u32 (!%p236_p8), 1, %s1328_s12   ;;  %s286_s29 = smul.u32 (!%p236_p8), 48, %s1336_s14 }
  0x1d   : > { %239 = sbr.rel (%p236_p8) target bundleno = 276 (0x114), region = 54  ;;  %p970_p10 = scmp.ne.s32.totalorder (!%p236_p8), %s1336_s14, 0 }
  0x1e   : > { %s1265_s30 = smul.u32 (!%p236_p8), 48, %s242_s28  ;;  %p288_p9 = scmp.lt.s32.totalorder (!%p236_p8), %s286_s29, 431 }
  0x20   : > { %s1418_s8 = scalar_lea.vmem (!%p236_p8), [#allocation2], %s1265_s30 }
  0x22   : > { %s1687_s29 = smov (!%p288_p9, %s286_s29), 431  ;;  %318 = sbr.rel (%p970_p10) target bundleno = 50 (0x32), region = 62 }
  0x23   : > { %s1193_s4 = sshll.u32 %s1687_s29, 3 }
  0x24   : > { %s1416_s7 = scalar_lea.vmem %s1677_s1, %s1193_s4 }
  0x27   : > { %v319_v8 = vld [vmem:[%s1678_s2] sm:$0x3] }
  0x28   : > { %v321_v9 = vperm.slane %v319_v8, 0  ;;  %v322_v10 = vperm.slane %v319_v8, 1 }
  0x2a   : > { %325 = vst [vmem:[%s1679_s3] sm:$0xff] %v321_v9 }
  0x2b   : > { %327 = vst [vmem:[%s1679_s3 + $0x10] sm:$0xff] %v321_v9 }
  0x2c   : > { %329 = vst [vmem:[%s1679_s3 + $0x20] sm:$0xff] %v321_v9 }
  0x2d   : > { %331 = vst [vmem:[%s1679_s3 + $0x30] sm:$0xff] %v321_v9 }
  0x2e   : > { %326 = vst [vmem:[%s1679_s3 + $0x8] sm:$0xff] %v322_v10 }
  0x2f   : > { %328 = vst [vmem:[%s1679_s3 + $0x18] sm:$0xff] %v322_v10 }
  0x30   : > { %330 = vst [vmem:[%s1679_s3 + $0x28] sm:$0xff] %v322_v10 }
  0x31   : > { %332 = vst [vmem:[%s1679_s3 + $0x38] sm:$0xff] %v322_v10 }
  0x32 PF: > { %v1053_v11 = vld [vmem:[%s1416_s7 + $0x70] sm:$0xf]  ;;  %v1215_v12 = vld [vmem:[%s1416_s7 + $0x74] sm:$0xf0]  ;;  %v1214_v20 = vld [vmem:[%s1416_s7 + $0x74] sm:$0xf] }
  0x33   : > { %v1117_v13 = vld [vmem:[%s1416_s7 + $0xf0] sm:$0xf]  ;;  %v1054_v14 = vor.u32 %v1215_v12, %v1053_v11  ;;  %v1231_v15 = vld [vmem:[%s1416_s7 + $0xf4] sm:$0xf0]  ;;  %v1055_v21 = vld [vmem:[%s1416_s7 + $0x78] sm:$0xf0] }
  0x34   : > { %v1181_v16 = vld [vmem:[%s1416_s7 + $0x170] sm:$0xf]  ;;  %v1247_v17 = vld [vmem:[%s1416_s7 + $0x174] sm:$0xf0]  ;;  %v1118_v18 = vor.u32 %v1231_v15, %v1117_v13  ;;  %v1045_v22 = vld [vmem:[%s1416_s7 + $0x60] sm:$0xf]  ;;  %v1058_v23 = vor.u32 %v1214_v20, %v1055_v21 }
  0x35   : > { %v1182_v19 = vor.u32 %v1247_v17, %v1181_v16  ;;  %669 = vmatpush.bf16.msra.mxu0 %v1054_v14  ;;  %v1213_v24 = vld [vmem:[%s1416_s7 + $0x64] sm:$0xf0]  ;;  %v1109_v25 = vld [vmem:[%s1416_s7 + $0xe0] sm:$0xf]  ;;  %v1212_v31 = vld [vmem:[%s1416_s7 + $0x64] sm:$0xf] }
  0x36   : > { %v1229_v26 = vld [vmem:[%s1416_s7 + $0xe4] sm:$0xf0]  ;;  %688 = vmatpush.bf16.msra.mxu1 %v1118_v18  ;;  %v1046_v27 = vor.u32 %v1213_v24, %v1045_v22  ;;  %v1173_v29 = vld [vmem:[%s1416_s7 + $0x160] sm:$0xf]  ;;  %726 = vmatpush.bf16.msra.mxu3 %v1058_v23  ;;  %v1047_v33 = vld [vmem:[%s1416_s7 + $0x68] sm:$0xf0] }
  0x37   : > { %707 = vmatpush.bf16.msra.mxu2 %v1182_v19  ;;  %v1110_v28 = vor.u32 %v1229_v26, %v1109_v25  ;;  %v1245_v30 = vld [vmem:[%s1416_s7 + $0x164] sm:$0xf0]  ;;  %v1037_v34 = vld [vmem:[%s1416_s7 + $0x50] sm:$0xf]  ;;  %v1211_v35 = vld [vmem:[%s1416_s7 + $0x54] sm:$0xf0]  ;;  %v1050_v36 = vor.u32 %v1212_v31, %v1047_v33 }
  0x38   : > { %v1174_v32 = vor.u32 %v1245_v30, %v1173_v29  ;;  %v1101_v37 = vld [vmem:[%s1416_s7 + $0xd0] sm:$0xf]  ;;  %v1227_v38 = vld [vmem:[%s1416_s7 + $0xd4] sm:$0xf0]  ;;  %v1038_v40 = vor.u32 %v1211_v35, %v1037_v34  ;;  %v1210_v42 = vld [vmem:[%s1416_s7 + $0x54] sm:$0xf] }
  0x39   : > { %v1165_v39 = vld [vmem:[%s1416_s7 + $0x150] sm:$0xf]  ;;  %670 = vmatpush.bf16.msra.mxu0 %v1046_v27  ;;  %v1243_v41 = vld [vmem:[%s1416_s7 + $0x154] sm:$0xf0]  ;;  %v1039_v43 = vld [vmem:[%s1416_s7 + $0x58] sm:$0xf0]  ;;  %v1102_v44 = vor.u32 %v1227_v38, %v1101_v37 }
  0x3a   : > { %689 = vmatpush.bf16.msra.mxu1 %v1110_v28  ;;  %v1166_v45 = vor.u32 %v1243_v41, %v1165_v39  ;;  %v1029_v46 = vld [vmem:[%s1416_s7 + $0x40] sm:$0xf]  ;;  %v1209_v47 = vld [vmem:[%s1416_s7 + $0x44] sm:$0xf0]  ;;  %727 = vmatpush.bf16.msra.mxu3 %v1050_v36  ;;  %v1042_v49 = vor.u32 %v1210_v42, %v1039_v43  ;;  %v1208_v53 = vld [vmem:[%s1416_s7 + $0x44] sm:$0xf] }
  0x3b   : > { %708 = vmatpush.bf16.msra.mxu2 %v1174_v32  ;;  %v1093_v48 = vld [vmem:[%s1416_s7 + $0xc0] sm:$0xf]  ;;  %v1225_v50 = vld [vmem:[%s1416_s7 + $0xc4] sm:$0xf0]  ;;  %v1031_v54 = vld [vmem:[%s1416_s7 + $0x48] sm:$0xf0]  ;;  %v1030_v55 = vor.u32 %v1209_v47, %v1029_v46 }
  0x3c   : > { %v1157_v51 = vld [vmem:[%s1416_s7 + $0x140] sm:$0xf]  ;;  %v1241_v52 = vld [vmem:[%s1416_s7 + $0x144] sm:$0xf0]  ;;  %v1094_v56 = vor.u32 %v1225_v50, %v1093_v48  ;;  %v1021_v58 = vld [vmem:[%s1416_s7 + $0x30] sm:$0xf]  ;;  %v1034_v61 = vor.u32 %v1208_v53, %v1031_v54 }
  0x3d   : > { %671 = vmatpush.bf16.msra.mxu0 %v1038_v40  ;;  %v1158_v57 = vor.u32 %v1241_v52, %v1157_v51  ;;  %v1207_v59 = vld [vmem:[%s1416_s7 + $0x34] sm:$0xf0]  ;;  %v1085_v60 = vld [vmem:[%s1416_s7 + $0xb0] sm:$0xf]  ;;  %v1206_v1 = vld [vmem:[%s1416_s7 + $0x34] sm:$0xf] }
  0x3e   : > { %690 = vmatpush.bf16.msra.mxu1 %v1102_v44  ;;  %728 = vmatpush.bf16.msra.mxu3 %v1042_v49  ;;  %v1223_v62 = vld [vmem:[%s1416_s7 + $0xb4] sm:$0xf0]  ;;  %v1149_v63 = vld [vmem:[%s1416_s7 + $0x130] sm:$0xf]  ;;  %v1023_v2 = vld [vmem:[%s1416_s7 + $0x38] sm:$0xf0]  ;;  %v1022_v3 = vor.u32 %v1207_v59, %v1021_v58 }
  0x3f   : > { %709 = vmatpush.bf16.msra.mxu2 %v1166_v45  ;;  %v1239_v0 = vld [vmem:[%s1416_s7 + $0x134] sm:$0xf0]  ;;  %v1086_v4 = vor.u32 %v1223_v62, %v1085_v60  ;;  %v1013_v6 = vld [vmem:[%s1416_s7 + $0x20] sm:$0xf]  ;;  %v1205_v7 = vld [vmem:[%s1416_s7 + $0x24] sm:$0xf0]  ;;  %v1026_v9 = vor.u32 %v1206_v1, %v1023_v2 }
  0x40   : > { %v1150_v5 = vor.u32 %v1239_v0, %v1149_v63  ;;  %v1077_v8 = vld [vmem:[%s1416_s7 + $0xa0] sm:$0xf]  ;;  %v1221_v10 = vld [vmem:[%s1416_s7 + $0xa4] sm:$0xf0]  ;;  %v1204_v13 = vld [vmem:[%s1416_s7 + $0x24] sm:$0xf]  ;;  %v1014_v15 = vor.u32 %v1205_v7, %v1013_v6 }
  0x41   : > { %672 = vmatpush.bf16.msra.mxu0 %v1030_v55  ;;  %v1141_v11 = vld [vmem:[%s1416_s7 + $0x120] sm:$0xf]  ;;  %v1237_v12 = vld [vmem:[%s1416_s7 + $0x124] sm:$0xf0]  ;;  %v1015_v14 = vld [vmem:[%s1416_s7 + $0x28] sm:$0xf0]  ;;  %v1078_v16 = vor.u32 %v1221_v10, %v1077_v8 }
  0x42   : > { %691 = vmatpush.bf16.msra.mxu1 %v1094_v56  ;;  %729 = vmatpush.bf16.msra.mxu3 %v1034_v61  ;;  %v1142_v17 = vor.u32 %v1237_v12, %v1141_v11  ;;  %v1005_v18 = vld [vmem:[%s1416_s7 + $0x10] sm:$0xf]  ;;  %v1203_v19 = vld [vmem:[%s1416_s7 + $0x14] sm:$0xf0]  ;;  %v1018_v21 = vor.u32 %v1204_v13, %v1015_v14  ;;  %v1202_v25 = vld [vmem:[%s1416_s7 + $0x14] sm:$0xf] }
  0x43   : > { %710 = vmatpush.bf16.msra.mxu2 %v1158_v57  ;;  %v1069_v20 = vld [vmem:[%s1416_s7 + $0x90] sm:$0xf]  ;;  %v1219_v22 = vld [vmem:[%s1416_s7 + $0x94] sm:$0xf0]  ;;  %v1007_v26 = vld [vmem:[%s1416_s7 + $0x18] sm:$0xf0]  ;;  %v1006_v27 = vor.u32 %v1203_v19, %v1005_v18 }
  0x44   : > { %v1133_v23 = vld [vmem:[%s1416_s7 + $0x110] sm:$0xf]  ;;  %v1235_v24 = vld [vmem:[%s1416_s7 + $0x114] sm:$0xf0]  ;;  %v997_v28 = vld [vmem:[%s1416_s7] sm:$0xf]  ;;  %v1070_v31 = vor.u32 %v1219_v22, %v1069_v20  ;;  %v1010_v36 = vor.u32 %v1202_v25, %v1007_v26 }
  0x45   : > { %673 = vmatpush.bf16.msra.mxu0 %v1022_v3  ;;  %v1201_v29 = vld [vmem:[%s1416_s7 + $0x4] sm:$0xf0]  ;;  %v1061_v30 = vld [vmem:[%s1416_s7 + $0x80] sm:$0xf]  ;;  %v1134_v32 = vor.u32 %v1235_v24, %v1133_v23  ;;  %v1200_v37 = vld [vmem:[%s1416_s7 + $0x4] sm:$0xf] }
  0x46   : > { %692 = vmatpush.bf16.msra.mxu1 %v1086_v4  ;;  %730 = vmatpush.bf16.msra.mxu3 %v1026_v9  ;;  %v1217_v33 = vld [vmem:[%s1416_s7 + $0x84] sm:$0xf0]  ;;  %v1125_v34 = vld [vmem:[%s1416_s7 + $0x100] sm:$0xf]  ;;  %v999_v38 = vld [vmem:[%s1416_s7 + $0x8] sm:$0xf0]  ;;  %v998_v43 = vor.u32 %v1201_v29, %v997_v28 }
  0x47   : > { %711 = vmatpush.bf16.msra.mxu2 %v1150_v5  ;;  %v1233_v35 = vld [vmem:[%s1416_s7 + $0x104] sm:$0xf0]  ;;  %v973_v39 = vld [vmem:[%s1418_s8] sm:$0xf]  ;;  %v1195_v40 = vld [vmem:[%s1418_s8 + $0x8] sm:$0xf0]  ;;  %v1062_v47 = vor.u32 %v1217_v33, %v1061_v30  ;;  %v1002_v52 = vor.u32 %v1200_v37, %v999_v38 }
  0x48   : > { %v1230_v41 = vld [vmem:[%s1416_s7 + $0xf4] sm:$0xf]  ;;  %v1119_v42 = vld [vmem:[%s1416_s7 + $0xf8] sm:$0xf0]  ;;  %v1126_v48 = vor.u32 %v1233_v35, %v1125_v34  ;;  %v975_v49 = vld [vmem:[%s1418_s8 + $0xc] sm:$0xf0]  ;;  %v974_v54 = vor.u32 %v1195_v40, %v973_v39 }
  0x49   : > { %674 = vmatpush.bf16.msra.mxu0 %v1014_v15  ;;  %v1194_v44 = vld [vmem:[%s1418_s8 + $0x4] sm:$0xf]  ;;  %v1183_v46 = vld [vmem:[%s1416_s7 + $0x178] sm:$0xf0]  ;;  %v981_v50 = vld [vmem:[%s1418_s8 + $0x8] sm:$0xf]  ;;  %v1122_v53 = vor.u32 %v1230_v41, %v1119_v42 }
  0x4a   : > { %693 = vmatpush.bf16.msra.mxu1 %v1078_v16  ;;  %731 = vmatpush.bf16.msra.mxu3 %v1018_v21  ;;  %v1246_v45 = vld [vmem:[%s1416_s7 + $0x174] sm:$0xf]  ;;  %v1228_v56 = vld [vmem:[%s1416_s7 + $0xe4] sm:$0xf]  ;;  %v1111_v57 = vld [vmem:[%s1416_s7 + $0xe8] sm:$0xf0]  ;;  %v1524_v58 = vor.u32 %v1194_v44, %v975_v49 }
  0x4b   : > { %712 = vmatpush.bf16.msra.mxu2 %v1142_v17  ;;  %v1196_v51 = vld [vmem:[%s1418_s8 + $0x10] sm:$0xf0]  ;;  %v1186_v55 = vor.u32 %v1246_v45, %v1183_v46  ;;  %v1175_v61 = vld [vmem:[%s1416_s7 + $0x168] sm:$0xf0]  ;;  %v1114_v62 = vor.u32 %v1228_v56, %v1111_v57  ;;  %v1103_v1 = vld [vmem:[%s1416_s7 + $0xd8] sm:$0xf0] }
  0x4c   : > { %v1526_v59 = vor.u32 %v1196_v51, %v981_v50  ;;  %v1244_v60 = vld [vmem:[%s1416_s7 + $0x164] sm:$0xf]  ;;  %v1226_v0 = vld [vmem:[%s1416_s7 + $0xd4] sm:$0xf]  ;;  %v1167_v3 = vld [vmem:[%s1416_s7 + $0x158] sm:$0xf0] }
  0x4d   : > { %675 = vmatpush.bf16.msra.mxu0 %v1006_v27  ;;  %v1178_v63 = vor.u32 %v1244_v60, %v1175_v61  ;;  %v1242_v2 = vld [vmem:[%s1416_s7 + $0x154] sm:$0xf]  ;;  %v1106_v4 = vor.u32 %v1226_v0, %v1103_v1  ;;  %v1224_v6 = vld [vmem:[%s1416_s7 + $0xc4] sm:$0xf]  ;;  %v1095_v7 = vld [vmem:[%s1416_s7 + $0xc8] sm:$0xf0] }
  0x4e   : > { %694 = vmatpush.bf16.msra.mxu1 %v1070_v31  ;;  %732 = vmatpush.bf16.msra.mxu3 %v1010_v36  ;;  %v1170_v5 = vor.u32 %v1242_v2, %v1167_v3  ;;  %v1240_v8 = vld [vmem:[%s1416_s7 + $0x144] sm:$0xf]  ;;  %v1159_v9 = vld [vmem:[%s1416_s7 + $0x148] sm:$0xf0]  ;;  %v1098_v10 = vor.u32 %v1224_v6, %v1095_v7  ;;  %v985_v11 = vld [vmem:[%s1418_s8 + $0x18] sm:$0xf] }
  0x4f   : > { %713 = vmatpush.bf16.msra.mxu2 %v1134_v32  ;;  %v1162_v12 = vor.u32 %v1240_v8, %v1159_v9  ;;  %v1198_v13 = vld [vmem:[%s1418_s8 + $0x20] sm:$0xf0]  ;;  %v1087_v15 = vld [vmem:[%s1416_s7 + $0xb8] sm:$0xf0]  ;;  %v987_v19 = vld [vmem:[%s1418_s8 + $0x24] sm:$0xf0] }
  0x50   : > { %v1222_v14 = vld [vmem:[%s1416_s7 + $0xb4] sm:$0xf]  ;;  %v1197_v16 = vld [vmem:[%s1418_s8 + $0x1c] sm:$0xf]  ;;  %v993_v20 = vld [vmem:[%s1418_s8 + $0x20] sm:$0xf]  ;;  %v986_v23 = vor.u32 %v1198_v13, %v985_v11 }
  0x51   : > { %676 = vmatpush.bf16.msra.mxu0 %v998_v43  ;;  %v1238_v17 = vld [vmem:[%s1416_s7 + $0x134] sm:$0xf]  ;;  %v1151_v18 = vld [vmem:[%s1416_s7 + $0x138] sm:$0xf0]  ;;  %v1090_v22 = vor.u32 %v1222_v14, %v1087_v15  ;;  %v1220_v25 = vld [vmem:[%s1416_s7 + $0xa4] sm:$0xf]  ;;  %v990_v27 = vor.u32 %v1197_v16, %v987_v19 }
  0x52   : > { %695 = vmatpush.bf16.msra.mxu1 %v1062_v47  ;;  %733 = vmatpush.bf16.msra.mxu3 %v1002_v52  ;;  %v1199_v21 = vld [vmem:[%s1418_s8 + $0x28] sm:$0xf0]  ;;  %v1154_v24 = vor.u32 %v1238_v17, %v1151_v18  ;;  %v1236_v29 = vld [vmem:[%s1416_s7 + $0x124] sm:$0xf]  ;;  %v1218_v33 = vld [vmem:[%s1416_s7 + $0x94] sm:$0xf] }
  0x53   : > { %714 = vmatpush.bf16.msra.mxu2 %v1126_v48  ;;  %v1079_v26 = vld [vmem:[%s1416_s7 + $0xa8] sm:$0xf0]  ;;  %v994_v28 = vor.u32 %v1199_v21, %v993_v20  ;;  %v1071_v34 = vld [vmem:[%s1416_s7 + $0x98] sm:$0xf0]  ;;  %v1234_v35 = vld [vmem:[%s1416_s7 + $0x114] sm:$0xf] }
  0x54   : > { %677 = vmatmul.bf16.vlgmr.msra.gmra.mxu0 %v974_v54  ;;  %v1143_v30 = vld [vmem:[%s1416_s7 + $0x128] sm:$0xf0]  ;;  %v1082_v31 = vor.u32 %v1220_v25, %v1079_v26  ;;  %v1135_v36 = vld [vmem:[%s1416_s7 + $0x118] sm:$0xf0]  ;;  %v1074_v37 = vor.u32 %v1218_v33, %v1071_v34  ;;  %v1216_v39 = vld [vmem:[%s1416_s7 + $0x84] sm:$0xf] }
  0x55   : > { %696 = vmatmul.bf16.vlgmr.msra.gmra.mxu1 %v1524_v58  ;;  %734 = vmatmul.bf16.vlgmr.msra.gmra.mxu3 %v974_v54  ;;  %v1146_v32 = vor.u32 %v1236_v29, %v1143_v30  ;;  %v1138_v38 = vor.u32 %v1234_v35, %v1135_v36  ;;  %v1063_v40 = vld [vmem:[%s1416_s7 + $0x88] sm:$0xf0]  ;;  %v1232_v41 = vld [vmem:[%s1416_s7 + $0x104] sm:$0xf]  ;;  %v335_v56 = vld [vmem:[%s1679_s3 + $0x10] sm:$0xff]  ;;  %p1187_p11 = scmp.ne.s32.totalorder %s1336_s14, 8 }
  0x56   : > { %764 = vmatpush.bf16.msrb.mxu1 %v1186_v55  ;;  %715 = vmatmul.bf16.vlgmr.msra.gmra.mxu2 %v1526_v59  ;;  %v1127_v42 = vld [vmem:[%s1416_s7 + $0x108] sm:$0xf0]  ;;  %v1066_v43 = vor.u32 %v1216_v39, %v1063_v40  ;;  %v333_v48 = vld [vmem:[%s1679_s3] sm:$0xff]  ;;  %v339_v8 = vld [vmem:[%s1679_s3 + $0x30] sm:$0xff] }
  0x57   : > { %1248 = vmatpush.bf16.msrb.mxu2 %v1122_v53  ;;  %745 = vmatpush.bf16.msrb.mxu0 %v1122_v53  ;;  %v1130_v44 = vor.u32 %v1232_v41, %v1127_v42  ;;  %v337_v0 = vld [vmem:[%s1679_s3 + $0x20] sm:$0xff]  ;;  %v334_v16 = vld [vmem:[%s1679_s3 + $0x8] sm:$0xff]  ;;  %v336_v26 = vld [vmem:[%s1679_s3 + $0x18] sm:$0xff] }
  0x58   : > { %1256 = vmatpush.bf16.msrb.mxu3 %v1186_v55  ;;  %v340_v33 = vld [vmem:[%s1679_s3 + $0x38] sm:$0xff] }
  0x5a   : > { %765 = vmatpush.bf16.msrb.mxu1 %v1178_v63 }
  0x5b   : > { %1249 = vmatpush.bf16.msrb.mxu2 %v1114_v62  ;;  %746 = vmatpush.bf16.msrb.mxu0 %v1114_v62 }
  0x5c   : > { %1257 = vmatpush.bf16.msrb.mxu3 %v1178_v63 }
  0x5e   : > { %766 = vmatpush.bf16.msrb.mxu1 %v1170_v5 }
  0x5f   : > { %1250 = vmatpush.bf16.msrb.mxu2 %v1106_v4  ;;  %747 = vmatpush.bf16.msrb.mxu0 %v1106_v4 }
  0x60   : > { %1258 = vmatpush.bf16.msrb.mxu3 %v1170_v5 }
  0x62   : > { %767 = vmatpush.bf16.msrb.mxu1 %v1162_v12 }
  0x63   : > { %1251 = vmatpush.bf16.msrb.mxu2 %v1098_v10  ;;  %748 = vmatpush.bf16.msrb.mxu0 %v1098_v10 }
  0x64   : > { %1259 = vmatpush.bf16.msrb.mxu3 %v1162_v12  ;;  %682 = vmatmul.bf16.gmra.mxu0 %v986_v23 }
  0x65   : > { %701 = vmatmul.bf16.gmra.mxu1 %v990_v27  ;;  %739 = vmatmul.bf16.gmra.mxu3 %v986_v23 }
  0x66   : > { %768 = vmatpush.bf16.msrb.mxu1 %v1154_v24  ;;  %720 = vmatmul.bf16.gmra.mxu2 %v994_v28 }
  0x67   : > { %1252 = vmatpush.bf16.msrb.mxu2 %v1090_v22  ;;  %749 = vmatpush.bf16.msrb.mxu0 %v1090_v22  ;;  %v338_v22 = vld [vmem:[%s1679_s3 + $0x28] sm:$0xff] }
  0x68   : > { %1260 = vmatpush.bf16.msrb.mxu3 %v1154_v24 }
  0x6a   : > { %769 = vmatpush.bf16.msrb.mxu1 %v1146_v32 }
  0x6b   : > { %1253 = vmatpush.bf16.msrb.mxu2 %v1082_v31  ;;  %750 = vmatpush.bf16.msrb.mxu0 %v1082_v31 }
  0x6c   : > { %1261 = vmatpush.bf16.msrb.mxu3 %v1146_v32 }
  0x6e   : > { %770 = vmatpush.bf16.msrb.mxu1 %v1138_v38 }
  0x6f   : > { %1254 = vmatpush.bf16.msrb.mxu2 %v1074_v37  ;;  %751 = vmatpush.bf16.msrb.mxu0 %v1074_v37 }
  0x70   : > { %1262 = vmatpush.bf16.msrb.mxu3 %v1138_v38 }
  0x72   : > { %771 = vmatpush.bf16.msrb.mxu1 %v1130_v44 }
  0x73   : > { %1255 = vmatpush.bf16.msrb.mxu2 %v1066_v43  ;;  %752 = vmatpush.bf16.msrb.mxu0 %v1066_v43 }
  0x74   : > { %1263 = vmatpush.bf16.msrb.mxu3 %v1130_v44 }
  0x75   : > { %772 = vmatmul.bf16.vlgmr.msrb.gmra.mxu1 %v1526_v59 }
  0x76   : > { %753 = vmatmul.bf16.vlgmr.msrb.gmra.mxu0 %v1524_v58  ;;  %758 = vmatmul.bf16.vlgmr.msrb.gmra.mxu2 %v990_v27 }
  0x77   : > { %777 = vmatmul.bf16.vlgmr.msrb.gmra.mxu3 %v994_v28 }
  0xd1   : > { %v678_v45 = vpop.f32.mrf.mxu0 }
  0xd2   : > { %v697_v46 = vpop.f32.mrf.mxu1 }
  0xd3   : > { %v698_v47 = vadd.f32 %v697_v46, %v678_v45 }
  0xd8   : > { %v735_v51 = vpop.f32.mrf.mxu3 }
  0xd9   : > { %v716_v49 = vpop.f32.mrf.mxu2  ;;  %v680_v52 = vpop.f32.mrf.mxu0 }
  0xda   : > { %v717_v50 = vadd.f32 %v716_v49, %v698_v47  ;;  %v699_v53 = vpop.f32.mrf.mxu1 }
  0xdb   : > { %v700_v55 = vadd.f32 %v699_v53, %v680_v52 }
  0xdc   : > { %v783_v54 = vadd.f32 %v717_v50, %v333_v48 }
  0xde   : > { %791 = vst [vmem:[%s1679_s3] sm:$0xff] %v783_v54 }
  0xe0   : > { %v737_v59 = vpop.f32.mrf.mxu3 }
  0xe1   : > { %v718_v57 = vpop.f32.mrf.mxu2  ;;  %v683_v60 = vpop.f32.mrf.mxu0 }
  0xe2   : > { %v719_v58 = vadd.f32 %v718_v57, %v700_v55  ;;  %v702_v61 = vpop.f32.mrf.mxu1 }
  0xe3   : > { %v703_v63 = vadd.f32 %v702_v61, %v683_v60 }
  0xe4   : > { %v785_v62 = vadd.f32 %v719_v58, %v335_v56 }
  0xe6   : > { %793 = vst [vmem:[%s1679_s3 + $0x10] sm:$0xff] %v785_v62 }
  0xe8   : > { %v740_v3 = vpop.f32.mrf.mxu3 }
  0xe9   : > { %v721_v1 = vpop.f32.mrf.mxu2  ;;  %v685_v4 = vpop.f32.mrf.mxu0 }
  0xea   : > { %v722_v2 = vadd.f32 %v721_v1, %v703_v63  ;;  %v704_v5 = vpop.f32.mrf.mxu1 }
  0xeb   : > { %v705_v7 = vadd.f32 %v704_v5, %v685_v4 }
  0xec   : > { %v787_v6 = vadd.f32 %v722_v2, %v337_v0 }
  0xee   : > { %795 = vst [vmem:[%s1679_s3 + $0x20] sm:$0xff] %v787_v6 }
  0xf0   : > { %v742_v11 = vpop.f32.mrf.mxu3 }
  0xf1   : > { %v723_v9 = vpop.f32.mrf.mxu2 }
  0xf2   : > { %v724_v10 = vadd.f32 %v723_v9, %v705_v7  ;;  %v773_v15 = vpop.f32.mrf.mxu1 }
  0xf3   : > { %v754_v12 = vpop.f32.mrf.mxu0 }
  0xf4   : > { %v789_v13 = vadd.f32 %v724_v10, %v339_v8  ;;  %v755_v14 = vadd.f32 %v754_v12, %v735_v51 }
  0xf6   : > { %797 = vst [vmem:[%s1679_s3 + $0x30] sm:$0xff] %v789_v13  ;;  %v774_v17 = vadd.f32 %v773_v15, %v755_v14 }
  0xf8   : > { %v784_v18 = vadd.f32 %v774_v17, %v334_v16 }
  0xf9   : > { %v759_v19 = vpop.f32.mrf.mxu2 }
  0xfa   : > { %792 = vst [vmem:[%s1679_s3 + $0x8] sm:$0xff] %v784_v18  ;;  %v760_v20 = vadd.f32 %v759_v19, %v740_v3  ;;  %v778_v21 = vpop.f32.mrf.mxu3  ;;  %v775_v27 = vpop.f32.mrf.mxu1 }
  0xfb   : > { %v756_v23 = vpop.f32.mrf.mxu0 }
  0xfc   : > { %v779_v24 = vadd.f32 %v778_v21, %v760_v20  ;;  %v757_v25 = vadd.f32 %v756_v23, %v737_v59 }
  0xfe   : > { %v788_v28 = vadd.f32 %v779_v24, %v338_v22  ;;  %v776_v29 = vadd.f32 %v775_v27, %v757_v25 }
 0x100   : > { %796 = vst [vmem:[%s1679_s3 + $0x28] sm:$0xff] %v788_v28  ;;  %v786_v30 = vadd.f32 %v776_v29, %v336_v26 }
 0x101   : > { %v761_v31 = vpop.f32.mrf.mxu2 }
 0x102   : > { %794 = vst [vmem:[%s1679_s3 + $0x18] sm:$0xff] %v786_v30  ;;  %v762_v32 = vadd.f32 %v761_v31, %v742_v11  ;;  %v780_v34 = vpop.f32.mrf.mxu3 }
 0x104   : > { %v781_v35 = vadd.f32 %v780_v34, %v762_v32  ;;  %802 = sbr.rel (%p1187_p11) target bundleno = 276 (0x114), region = 66 }
 0x106   : > { %v790_v36 = vadd.f32 %v781_v35, %v340_v33 }
 0x108   : > { %798 = vst [vmem:[%s1679_s3 + $0x38] sm:$0xff] %v790_v36 }
 0x109   : > { %v803_v37 = vld [vmem:[%s1679_s3] sm:$0xff]  ;;  %v804_v38 = vld [vmem:[%s1679_s3 + $0x8] sm:$0xff]  ;;  %v805_v39 = vld [vmem:[%s1679_s3 + $0x10] sm:$0xff] }
 0x10a   : > { %v811_v40 = vmax.f32 %v803_v37, 0.0  ;;  %v812_v41 = vmax.f32 %v804_v38, 0.0  ;;  %v813_v42 = vmax.f32 %v805_v39, 0.0  ;;  %v806_v43 = vld [vmem:[%s1679_s3 + $0x18] sm:$0xff]  ;;  %v807_v44 = vld [vmem:[%s1679_s3 + $0x20] sm:$0xff]  ;;  %v808_v45 = vld [vmem:[%s1679_s3 + $0x28] sm:$0xff] }
 0x10b   : > { %v814_v46 = vmax.f32 %v806_v43, 0.0  ;;  %v809_v47 = vld [vmem:[%s1679_s3 + $0x30] sm:$0xff]  ;;  %v815_v48 = vmax.f32 %v807_v44, 0.0  ;;  %v816_v50 = vmax.f32 %v808_v45, 0.0 }
 0x10c   : > { %819 = vst [vmem:[%s1679_s3] sm:$0xff] %v811_v40  ;;  %v817_v51 = vmax.f32 %v809_v47, 0.0 }
 0x10d   : > { %820 = vst [vmem:[%s1679_s3 + $0x8] sm:$0xff] %v812_v41 }
 0x10e   : > { %821 = vst [vmem:[%s1679_s3 + $0x10] sm:$0xff] %v813_v42 }
 0x10f   : > { %v810_v49 = vld [vmem:[%s1679_s3 + $0x38] sm:$0xff]  ;;  %822 = vst [vmem:[%s1679_s3 + $0x18] sm:$0xff] %v814_v46 }
 0x110   : > { %v818_v52 = vmax.f32 %v810_v49, 0.0  ;;  %823 = vst [vmem:[%s1679_s3 + $0x20] sm:$0xff] %v815_v48 }
 0x111   : > { %824 = vst [vmem:[%s1679_s3 + $0x28] sm:$0xff] %v816_v50 }
 0x112   : > { %825 = vst [vmem:[%s1679_s3 + $0x30] sm:$0xff] %v817_v51 }
 0x113   : > { %826 = vst [vmem:[%s1679_s3 + $0x38] sm:$0xff] %v818_v52 }
 0x114 PF: > { %s13_s16 = sadd.s32 1, %s1344_s16   ;;  %s1680_s12 = smov %s1332_s13 }
 0x115   : > { %p10_p12 = scmp.ge.s32.totalorder %s13_s16, 11   ;;  %s1681_s13 = smov %s1401_s20 }
 0x116   : > { %s1682_s14 = smov %s1340_s15  ;;  %s1683_s15 = smov %s1685_s17 }
 0x117   :  { %12 = sbr.rel (!%p10_p12) target bundleno = 3 (0x3), region = 113 }

// kernel: alexnet_forward.18
= control target key start
LH: loop header
LB: loop body
LE: loop exit
PB: predicated region body
PF: predicated region fallthrough
CT: control target
= control target key end

     0   :  { %s1366_s12 = smov 0   ;;  %s1368_s13 = smov 0   ;;  %s1676_s0 = inlined_call_operand.vmem [shape: bf16[32,2304], index: 0, kind: input, shape index: {}]   ;;  %s1677_s1 = inlined_call_operand.vmem [shape: bf16[2304,256], index: 1, kind: input, shape index: {}]   ;;  %s1678_s2 = inlined_call_operand.vmem [shape: f32[1,256], index: 2, kind: input, shape index: {}]   ;;  %s1679_s3 = inlined_call_operand.vmem [shape: f32[32,256], index: 3, kind: output, shape index: {}]  }
   0x1   :  { %s1370_s14 = smov 0   ;;  %s1372_s15 = smov 0  }
   0x2   :  { %s1374_s16 = smov 0  }
   0x3 LB: > { %s25_s17 = sadd.s32 1, %s1340_s15  ;;  %p48_p1 = scmp.ne.s32.totalorder %s1332_s13, %s1328_s12  ;;  %s1344_s16 = sphi %s1374_s16, %s13_s16   ;;  %s1340_s15 = sphi %s1372_s15, %s1683_s15   ;;  %s1336_s14 = sphi %s1370_s14, %s1682_s14   ;;  %s1332_s13 = sphi %s1368_s13, %s1681_s13   ;;  %s1328_s12 = sphi %s1366_s12, %s1680_s12  }
   0x4   : > { %p26_p0 = scmp.ge.s32.totalorder %s25_s17, 6  ;;  %p49_p2 = scmp.eq.s32.totalorder %s1344_s16, 0 }
   0x5   : > { %s41_s19 = sadd.s32 1, %s1332_s13  ;;  %p957_p5 = scmp.ge.s32.totalorder %s1344_s16, 6 }
   0x6   : > { %s1685_s17 = smov (%p26_p0, %s25_s17), 0  ;;  %p50_p3 = por %p49_p2, %p48_p1 }
   0x7   : > { %s37_s18 = ssub.s32 %s1340_s15, %s1685_s17  ;;  %164 = sbr.rel (%p957_p5) target bundleno = 25 (0x19), region = 20 }
   0x8   : > { %p39_p4 = scmp.eq.s32.totalorder %s37_s18, 0 }
   0xa   : > { %s1401_s20 = scalar_select %p39_p4, %s1332_s13, %s41_s19  }
   0xc   : > { %167 = sbr.rel (!%p50_p3) target bundleno = 25 (0x19), region = 24  ;;  %s169_s21 = sand.u32 (%p50_p3), 1, %s1332_s13  }
   0xd   : > { %s1192_s22 = smul.u32 (%p50_p3), 12, %s1340_s15 }
   0xe   : > { %s1264_s23 = smul.u32 (%p50_p3), 48, %s169_s21 }
   0xf   : > { %s177_s26 = scalar_lea.vmem (%p50_p3), %s1676_s0, %s1192_s22 }
  0x10   : > { %v192_v0 = vld [vmem:[%s177_s26] sm:$0xff] (%p50_p3)  ;;  %v194_v1 = vld [vmem:[%s177_s26 + $0x48] sm:$0xff] (%p50_p3)  ;;  %v196_v2 = vld [vmem:[%s177_s26 + $0x90] sm:$0xff] (%p50_p3)  ;;  %s171_s27 = scalar_lea.vmem (%p50_p3), [#allocation2], %s1264_s23 }
  0x11   : > { %193 = vst [vmem:[%s171_s27] sm:$0xff] %v192_v0  ;;  %v198_v3 = vld [vmem:[%s177_s26 + $0xd8] sm:$0xff]  ;;  %v959_v4 = vld [vmem:[%s177_s26 + $0x8] sm:$0xf]  ;;  %v961_v5 = vld [vmem:[%s177_s26 + $0x50] sm:$0xf] }
  0x12   : > { %195 = vst [vmem:[%s171_s27 + $0xc] sm:$0xff] %v194_v1  ;;  %v963_v6 = vld [vmem:[%s177_s26 + $0x98] sm:$0xf]  ;;  %v965_v7 = vld [vmem:[%s177_s26 + $0xe0] sm:$0xf] }
  0x13   : > { %197 = vst [vmem:[%s171_s27 + $0x18] sm:$0xff] %v196_v2 }
  0x14   : > { %199 = vst [vmem:[%s171_s27 + $0x24] sm:$0xff] %v198_v3 }
  0x15   : > { %960 = vst [vmem:[%s171_s27 + $0x8] sm:$0xf] %v959_v4 }
  0x16   : > { %962 = vst [vmem:[%s171_s27 + $0x14] sm:$0xf] %v961_v5 }
  0x17   : > { %964 = vst [vmem:[%s171_s27 + $0x20] sm:$0xf] %v963_v6 }
  0x18   : > { %966 = vst [vmem:[%s171_s27 + $0x2c] sm:$0xf] %v965_v7 }
  0x19 PF: > { %p967_p6 = scmp.ge.s32.totalorder %s1344_s16, 1  ;;  %p235_p7 = scmp.lt.s32.totalorder %s1344_s16, 7 }
  0x1b   : > { %p236_p8 = pnand %p967_p6, %p235_p7 }
  0x1c   : > { %s242_s28 = sand.u32 (!%p236_p8), 1, %s1328_s12   ;;  %s286_s29 = smul.u32 (!%p236_p8), 48, %s1336_s14 }
  0x1d   : > { %239 = sbr.rel (%p236_p8) target bundleno = 276 (0x114), region = 54  ;;  %p970_p10 = scmp.ne.s32.totalorder (!%p236_p8), %s1336_s14, 0 }
  0x1e   : > { %s1265_s30 = smul.u32 (!%p236_p8), 48, %s242_s28  ;;  %p288_p9 = scmp.lt.s32.totalorder (!%p236_p8), %s286_s29, 287 }
  0x20   : > { %s1418_s8 = scalar_lea.vmem (!%p236_p8), [#allocation2], %s1265_s30 }
  0x22   : > { %s1687_s29 = smov (!%p288_p9, %s286_s29), 287  ;;  %318 = sbr.rel (%p970_p10) target bundleno = 50 (0x32), region = 62 }
  0x23   : > { %s1193_s4 = sshll.u32 %s1687_s29, 3 }
  0x24   : > { %s1416_s7 = scalar_lea.vmem %s1677_s1, %s1193_s4 }
  0x27   : > { %v319_v8 = vld [vmem:[%s1678_s2] sm:$0x3] }
  0x28   : > { %v321_v9 = vperm.slane %v319_v8, 0  ;;  %v322_v10 = vperm.slane %v319_v8, 1 }
  0x2a   : > { %325 = vst [vmem:[%s1679_s3] sm:$0xff] %v321_v9 }
  0x2b   : > { %327 = vst [vmem:[%s1679_s3 + $0x10] sm:$0xff] %v321_v9 }
  0x2c   : > { %329 = vst [vmem:[%s1679_s3 + $0x20] sm:$0xff] %v321_v9 }
  0x2d   : > { %331 = vst [vmem:[%s1679_s3 + $0x30] sm:$0xff] %v321_v9 }
  0x2e   : > { %326 = vst [vmem:[%s1679_s3 + $0x8] sm:$0xff] %v322_v10 }
  0x2f   : > { %328 = vst [vmem:[%s1679_s3 + $0x18] sm:$0xff] %v322_v10 }
  0x30   : > { %330 = vst [vmem:[%s1679_s3 + $0x28] sm:$0xff] %v322_v10 }
  0x31   : > { %332 = vst [vmem:[%s1679_s3 + $0x38] sm:$0xff] %v322_v10 }
  0x32 PF: > { %v1053_v11 = vld [vmem:[%s1416_s7 + $0x70] sm:$0xf]  ;;  %v1215_v12 = vld [vmem:[%s1416_s7 + $0x74] sm:$0xf0]  ;;  %v1214_v20 = vld [vmem:[%s1416_s7 + $0x74] sm:$0xf] }
  0x33   : > { %v1117_v13 = vld [vmem:[%s1416_s7 + $0xf0] sm:$0xf]  ;;  %v1054_v14 = vor.u32 %v1215_v12, %v1053_v11  ;;  %v1231_v15 = vld [vmem:[%s1416_s7 + $0xf4] sm:$0xf0]  ;;  %v1055_v21 = vld [vmem:[%s1416_s7 + $0x78] sm:$0xf0] }
  0x34   : > { %v1181_v16 = vld [vmem:[%s1416_s7 + $0x170] sm:$0xf]  ;;  %v1247_v17 = vld [vmem:[%s1416_s7 + $0x174] sm:$0xf0]  ;;  %v1118_v18 = vor.u32 %v1231_v15, %v1117_v13  ;;  %v1045_v22 = vld [vmem:[%s1416_s7 + $0x60] sm:$0xf]  ;;  %v1058_v23 = vor.u32 %v1214_v20, %v1055_v21 }
  0x35   : > { %v1182_v19 = vor.u32 %v1247_v17, %v1181_v16  ;;  %669 = vmatpush.bf16.msra.mxu0 %v1054_v14  ;;  %v1213_v24 = vld [vmem:[%s1416_s7 + $0x64] sm:$0xf0]  ;;  %v1109_v25 = vld [vmem:[%s1416_s7 + $0xe0] sm:$0xf]  ;;  %v1212_v31 = vld [vmem:[%s1416_s7 + $0x64] sm:$0xf] }
  0x36   : > { %v1229_v26 = vld [vmem:[%s1416_s7 + $0xe4] sm:$0xf0]  ;;  %688 = vmatpush.bf16.msra.mxu1 %v1118_v18  ;;  %v1046_v27 = vor.u32 %v1213_v24, %v1045_v22  ;;  %v1173_v29 = vld [vmem:[%s1416_s7 + $0x160] sm:$0xf]  ;;  %726 = vmatpush.bf16.msra.mxu3 %v1058_v23  ;;  %v1047_v33 = vld [vmem:[%s1416_s7 + $0x68] sm:$0xf0] }
  0x37   : > { %707 = vmatpush.bf16.msra.mxu2 %v1182_v19  ;;  %v1110_v28 = vor.u32 %v1229_v26, %v1109_v25  ;;  %v1245_v30 = vld [vmem:[%s1416_s7 + $0x164] sm:$0xf0]  ;;  %v1037_v34 = vld [vmem:[%s1416_s7 + $0x50] sm:$0xf]  ;;  %v1211_v35 = vld [vmem:[%s1416_s7 + $0x54] sm:$0xf0]  ;;  %v1050_v36 = vor.u32 %v1212_v31, %v1047_v33 }
  0x38   : > { %v1174_v32 = vor.u32 %v1245_v30, %v1173_v29  ;;  %v1101_v37 = vld [vmem:[%s1416_s7 + $0xd0] sm:$0xf]  ;;  %v1227_v38 = vld [vmem:[%s1416_s7 + $0xd4] sm:$0xf0]  ;;  %v1038_v40 = vor.u32 %v1211_v35, %v1037_v34  ;;  %v1210_v42 = vld [vmem:[%s1416_s7 + $0x54] sm:$0xf] }
  0x39   : > { %v1165_v39 = vld [vmem:[%s1416_s7 + $0x150] sm:$0xf]  ;;  %670 = vmatpush.bf16.msra.mxu0 %v1046_v27  ;;  %v1243_v41 = vld [vmem:[%s1416_s7 + $0x154] sm:$0xf0]  ;;  %v1039_v43 = vld [vmem:[%s1416_s7 + $0x58] sm:$0xf0]  ;;  %v1102_v44 = vor.u32 %v1227_v38, %v1101_v37 }
  0x3a   : > { %689 = vmatpush.bf16.msra.mxu1 %v1110_v28  ;;  %v1166_v45 = vor.u32 %v1243_v41, %v1165_v39  ;;  %v1029_v46 = vld [vmem:[%s1416_s7 + $0x40] sm:$0xf]  ;;  %v1209_v47 = vld [vmem:[%s1416_s7 + $0x44] sm:$0xf0]  ;;  %727 = vmatpush.bf16.msra.mxu3 %v1050_v36  ;;  %v1042_v49 = vor.u32 %v1210_v42, %v1039_v43  ;;  %v1208_v53 = vld [vmem:[%s1416_s7 + $0x44] sm:$0xf] }
  0x3b   : > { %708 = vmatpush.bf16.msra.mxu2 %v1174_v32  ;;  %v1093_v48 = vld [vmem:[%s1416_s7 + $0xc0] sm:$0xf]  ;;  %v1225_v50 = vld [vmem:[%s1416_s7 + $0xc4] sm:$0xf0]  ;;  %v1031_v54 = vld [vmem:[%s1416_s7 + $0x48] sm:$0xf0]  ;;  %v1030_v55 = vor.u32 %v1209_v47, %v1029_v46 }
  0x3c   : > { %v1157_v51 = vld [vmem:[%s1416_s7 + $0x140] sm:$0xf]  ;;  %v1241_v52 = vld [vmem:[%s1416_s7 + $0x144] sm:$0xf0]  ;;  %v1094_v56 = vor.u32 %v1225_v50, %v1093_v48  ;;  %v1021_v58 = vld [vmem:[%s1416_s7 + $0x30] sm:$0xf]  ;;  %v1034_v61 = vor.u32 %v1208_v53, %v1031_v54 }
  0x3d   : > { %671 = vmatpush.bf16.msra.mxu0 %v1038_v40  ;;  %v1158_v57 = vor.u32 %v1241_v52, %v1157_v51  ;;  %v1207_v59 = vld [vmem:[%s1416_s7 + $0x34] sm:$0xf0]  ;;  %v1085_v60 = vld [vmem:[%s1416_s7 + $0xb0] sm:$0xf]  ;;  %v1206_v1 = vld [vmem:[%s1416_s7 + $0x34] sm:$0xf] }
  0x3e   : > { %690 = vmatpush.bf16.msra.mxu1 %v1102_v44  ;;  %728 = vmatpush.bf16.msra.mxu3 %v1042_v49  ;;  %v1223_v62 = vld [vmem:[%s1416_s7 + $0xb4] sm:$0xf0]  ;;  %v1149_v63 = vld [vmem:[%s1416_s7 + $0x130] sm:$0xf]  ;;  %v1023_v2 = vld [vmem:[%s1416_s7 + $0x38] sm:$0xf0]  ;;  %v1022_v3 = vor.u32 %v1207_v59, %v1021_v58 }
  0x3f   : > { %709 = vmatpush.bf16.msra.mxu2 %v1166_v45  ;;  %v1239_v0 = vld [vmem:[%s1416_s7 + $0x134] sm:$0xf0]  ;;  %v1086_v4 = vor.u32 %v1223_v62, %v1085_v60  ;;  %v1013_v6 = vld [vmem:[%s1416_s7 + $0x20] sm:$0xf]  ;;  %v1205_v7 = vld [vmem:[%s1416_s7 + $0x24] sm:$0xf0]  ;;  %v1026_v9 = vor.u32 %v1206_v1, %v1023_v2 }
  0x40   : > { %v1150_v5 = vor.u32 %v1239_v0, %v1149_v63  ;;  %v1077_v8 = vld [vmem:[%s1416_s7 + $0xa0] sm:$0xf]  ;;  %v1221_v10 = vld [vmem:[%s1416_s7 + $0xa4] sm:$0xf0]  ;;  %v1204_v13 = vld [vmem:[%s1416_s7 + $0x24] sm:$0xf]  ;;  %v1014_v15 = vor.u32 %v1205_v7, %v1013_v6 }
  0x41   : > { %672 = vmatpush.bf16.msra.mxu0 %v1030_v55  ;;  %v1141_v11 = vld [vmem:[%s1416_s7 + $0x120] sm:$0xf]  ;;  %v1237_v12 = vld [vmem:[%s1416_s7 + $0x124] sm:$0xf0]  ;;  %v1015_v14 = vld [vmem:[%s1416_s7 + $0x28] sm:$0xf0]  ;;  %v1078_v16 = vor.u32 %v1221_v10, %v1077_v8 }
  0x42   : > { %691 = vmatpush.bf16.msra.mxu1 %v1094_v56  ;;  %729 = vmatpush.bf16.msra.mxu3 %v1034_v61  ;;  %v1142_v17 = vor.u32 %v1237_v12, %v1141_v11  ;;  %v1005_v18 = vld [vmem:[%s1416_s7 + $0x10] sm:$0xf]  ;;  %v1203_v19 = vld [vmem:[%s1416_s7 + $0x14] sm:$0xf0]  ;;  %v1018_v21 = vor.u32 %v1204_v13, %v1015_v14  ;;  %v1202_v25 = vld [vmem:[%s1416_s7 + $0x14] sm:$0xf] }
  0x43   : > { %710 = vmatpush.bf16.msra.mxu2 %v1158_v57  ;;  %v1069_v20 = vld [vmem:[%s1416_s7 + $0x90] sm:$0xf]  ;;  %v1219_v22 = vld [vmem:[%s1416_s7 + $0x94] sm:$0xf0]  ;;  %v1007_v26 = vld [vmem:[%s1416_s7 + $0x18] sm:$0xf0]  ;;  %v1006_v27 = vor.u32 %v1203_v19, %v1005_v18 }
  0x44   : > { %v1133_v23 = vld [vmem:[%s1416_s7 + $0x110] sm:$0xf]  ;;  %v1235_v24 = vld [vmem:[%s1416_s7 + $0x114] sm:$0xf0]  ;;  %v997_v28 = vld [vmem:[%s1416_s7] sm:$0xf]  ;;  %v1070_v31 = vor.u32 %v1219_v22, %v1069_v20  ;;  %v1010_v36 = vor.u32 %v1202_v25, %v1007_v26 }
  0x45   : > { %673 = vmatpush.bf16.msra.mxu0 %v1022_v3  ;;  %v1201_v29 = vld [vmem:[%s1416_s7 + $0x4] sm:$0xf0]  ;;  %v1061_v30 = vld [vmem:[%s1416_s7 + $0x80] sm:$0xf]  ;;  %v1134_v32 = vor.u32 %v1235_v24, %v1133_v23  ;;  %v1200_v37 = vld [vmem:[%s1416_s7 + $0x4] sm:$0xf] }
  0x46   : > { %692 = vmatpush.bf16.msra.mxu1 %v1086_v4  ;;  %730 = vmatpush.bf16.msra.mxu3 %v1026_v9  ;;  %v1217_v33 = vld [vmem:[%s1416_s7 + $0x84] sm:$0xf0]  ;;  %v1125_v34 = vld [vmem:[%s1416_s7 + $0x100] sm:$0xf]  ;;  %v999_v38 = vld [vmem:[%s1416_s7 + $0x8] sm:$0xf0]  ;;  %v998_v43 = vor.u32 %v1201_v29, %v997_v28 }
  0x47   : > { %711 = vmatpush.bf16.msra.mxu2 %v1150_v5  ;;  %v1233_v35 = vld [vmem:[%s1416_s7 + $0x104] sm:$0xf0]  ;;  %v973_v39 = vld [vmem:[%s1418_s8] sm:$0xf]  ;;  %v1195_v40 = vld [vmem:[%s1418_s8 + $0x8] sm:$0xf0]  ;;  %v1062_v47 = vor.u32 %v1217_v33, %v1061_v30  ;;  %v1002_v52 = vor.u32 %v1200_v37, %v999_v38 }
  0x48   : > { %v1230_v41 = vld [vmem:[%s1416_s7 + $0xf4] sm:$0xf]  ;;  %v1119_v42 = vld [vmem:[%s1416_s7 + $0xf8] sm:$0xf0]  ;;  %v1126_v48 = vor.u32 %v1233_v35, %v1125_v34  ;;  %v975_v49 = vld [vmem:[%s1418_s8 + $0xc] sm:$0xf0]  ;;  %v974_v54 = vor.u32 %v1195_v40, %v973_v39 }
  0x49   : > { %674 = vmatpush.bf16.msra.mxu0 %v1014_v15  ;;  %v1194_v44 = vld [vmem:[%s1418_s8 + $0x4] sm:$0xf]  ;;  %v1183_v46 = vld [vmem:[%s1416_s7 + $0x178] sm:$0xf0]  ;;  %v981_v50 = vld [vmem:[%s1418_s8 + $0x8] sm:$0xf]  ;;  %v1122_v53 = vor.u32 %v1230_v41, %v1119_v42 }
  0x4a   : > { %693 = vmatpush.bf16.msra.mxu1 %v1078_v16  ;;  %731 = vmatpush.bf16.msra.mxu3 %v1018_v21  ;;  %v1246_v45 = vld [vmem:[%s1416_s7 + $0x174] sm:$0xf]  ;;  %v1228_v56 = vld [vmem:[%s1416_s7 + $0xe4] sm:$0xf]  ;;  %v1111_v57 = vld [vmem:[%s1416_s7 + $0xe8] sm:$0xf0]  ;;  %v1524_v58 = vor.u32 %v1194_v44, %v975_v49 }
  0x4b   : > { %712 = vmatpush.bf16.msra.mxu2 %v1142_v17  ;;  %v1196_v51 = vld [vmem:[%s1418_s8 + $0x10] sm:$0xf0]  ;;  %v1186_v55 = vor.u32 %v1246_v45, %v1183_v46  ;;  %v1175_v61 = vld [vmem:[%s1416_s7 + $0x168] sm:$0xf0]  ;;  %v1114_v62 = vor.u32 %v1228_v56, %v1111_v57  ;;  %v1103_v1 = vld [vmem:[%s1416_s7 + $0xd8] sm:$0xf0] }
  0x4c   : > { %v1526_v59 = vor.u32 %v1196_v51, %v981_v50  ;;  %v1244_v60 = vld [vmem:[%s1416_s7 + $0x164] sm:$0xf]  ;;  %v1226_v0 = vld [vmem:[%s1416_s7 + $0xd4] sm:$0xf]  ;;  %v1167_v3 = vld [vmem:[%s1416_s7 + $0x158] sm:$0xf0] }
  0x4d   : > { %675 = vmatpush.bf16.msra.mxu0 %v1006_v27  ;;  %v1178_v63 = vor.u32 %v1244_v60, %v1175_v61  ;;  %v1242_v2 = vld [vmem:[%s1416_s7 + $0x154] sm:$0xf]  ;;  %v1106_v4 = vor.u32 %v1226_v0, %v1103_v1  ;;  %v1224_v6 = vld [vmem:[%s1416_s7 + $0xc4] sm:$0xf]  ;;  %v1095_v7 = vld [vmem:[%s1416_s7 + $0xc8] sm:$0xf0] }
  0x4e   : > { %694 = vmatpush.bf16.msra.mxu1 %v1070_v31  ;;  %732 = vmatpush.bf16.msra.mxu3 %v1010_v36  ;;  %v1170_v5 = vor.u32 %v1242_v2, %v1167_v3  ;;  %v1240_v8 = vld [vmem:[%s1416_s7 + $0x144] sm:$0xf]  ;;  %v1159_v9 = vld [vmem:[%s1416_s7 + $0x148] sm:$0xf0]  ;;  %v1098_v10 = vor.u32 %v1224_v6, %v1095_v7  ;;  %v985_v11 = vld [vmem:[%s1418_s8 + $0x18] sm:$0xf] }
  0x4f   : > { %713 = vmatpush.bf16.msra.mxu2 %v1134_v32  ;;  %v1162_v12 = vor.u32 %v1240_v8, %v1159_v9  ;;  %v1198_v13 = vld [vmem:[%s1418_s8 + $0x20] sm:$0xf0]  ;;  %v1087_v15 = vld [vmem:[%s1416_s7 + $0xb8] sm:$0xf0]  ;;  %v987_v19 = vld [vmem:[%s1418_s8 + $0x24] sm:$0xf0] }
  0x50   : > { %v1222_v14 = vld [vmem:[%s1416_s7 + $0xb4] sm:$0xf]  ;;  %v1197_v16 = vld [vmem:[%s1418_s8 + $0x1c] sm:$0xf]  ;;  %v993_v20 = vld [vmem:[%s1418_s8 + $0x20] sm:$0xf]  ;;  %v986_v23 = vor.u32 %v1198_v13, %v985_v11 }
  0x51   : > { %676 = vmatpush.bf16.msra.mxu0 %v998_v43  ;;  %v1238_v17 = vld [vmem:[%s1416_s7 + $0x134] sm:$0xf]  ;;  %v1151_v18 = vld [vmem:[%s1416_s7 + $0x138] sm:$0xf0]  ;;  %v1090_v22 = vor.u32 %v1222_v14, %v1087_v15  ;;  %v1220_v25 = vld [vmem:[%s1416_s7 + $0xa4] sm:$0xf]  ;;  %v990_v27 = vor.u32 %v1197_v16, %v987_v19 }
  0x52   : > { %695 = vmatpush.bf16.msra.mxu1 %v1062_v47  ;;  %733 = vmatpush.bf16.msra.mxu3 %v1002_v52  ;;  %v1199_v21 = vld [vmem:[%s1418_s8 + $0x28] sm:$0xf0]  ;;  %v1154_v24 = vor.u32 %v1238_v17, %v1151_v18  ;;  %v1236_v29 = vld [vmem:[%s1416_s7 + $0x124] sm:$0xf]  ;;  %v1218_v33 = vld [vmem:[%s1416_s7 + $0x94] sm:$0xf] }
  0x53   : > { %714 = vmatpush.bf16.msra.mxu2 %v1126_v48  ;;  %v1079_v26 = vld [vmem:[%s1416_s7 + $0xa8] sm:$0xf0]  ;;  %v994_v28 = vor.u32 %v1199_v21, %v993_v20  ;;  %v1071_v34 = vld [vmem:[%s1416_s7 + $0x98] sm:$0xf0]  ;;  %v1234_v35 = vld [vmem:[%s1416_s7 + $0x114] sm:$0xf] }
  0x54   : > { %677 = vmatmul.bf16.vlgmr.msra.gmra.mxu0 %v974_v54  ;;  %v1143_v30 = vld [vmem:[%s1416_s7 + $0x128] sm:$0xf0]  ;;  %v1082_v31 = vor.u32 %v1220_v25, %v1079_v26  ;;  %v1135_v36 = vld [vmem:[%s1416_s7 + $0x118] sm:$0xf0]  ;;  %v1074_v37 = vor.u32 %v1218_v33, %v1071_v34  ;;  %v1216_v39 = vld [vmem:[%s1416_s7 + $0x84] sm:$0xf] }
  0x55   : > { %696 = vmatmul.bf16.vlgmr.msra.gmra.mxu1 %v1524_v58  ;;  %734 = vmatmul.bf16.vlgmr.msra.gmra.mxu3 %v974_v54  ;;  %v1146_v32 = vor.u32 %v1236_v29, %v1143_v30  ;;  %v1138_v38 = vor.u32 %v1234_v35, %v1135_v36  ;;  %v1063_v40 = vld [vmem:[%s1416_s7 + $0x88] sm:$0xf0]  ;;  %v1232_v41 = vld [vmem:[%s1416_s7 + $0x104] sm:$0xf]  ;;  %v335_v56 = vld [vmem:[%s1679_s3 + $0x10] sm:$0xff]  ;;  %p1187_p11 = scmp.ne.s32.totalorder %s1336_s14, 5 }
  0x56   : > { %764 = vmatpush.bf16.msrb.mxu1 %v1186_v55  ;;  %715 = vmatmul.bf16.vlgmr.msra.gmra.mxu2 %v1526_v59  ;;  %v1127_v42 = vld [vmem:[%s1416_s7 + $0x108] sm:$0xf0]  ;;  %v1066_v43 = vor.u32 %v1216_v39, %v1063_v40  ;;  %v333_v48 = vld [vmem:[%s1679_s3] sm:$0xff]  ;;  %v339_v8 = vld [vmem:[%s1679_s3 + $0x30] sm:$0xff] }
  0x57   : > { %1248 = vmatpush.bf16.msrb.mxu2 %v1122_v53  ;;  %745 = vmatpush.bf16.msrb.mxu0 %v1122_v53  ;;  %v1130_v44 = vor.u32 %v1232_v41, %v1127_v42  ;;  %v337_v0 = vld [vmem:[%s1679_s3 + $0x20] sm:$0xff]  ;;  %v334_v16 = vld [vmem:[%s1679_s3 + $0x8] sm:$0xff]  ;;  %v336_v26 = vld [vmem:[%s1679_s3 + $0x18] sm:$0xff] }
  0x58   : > { %1256 = vmatpush.bf16.msrb.mxu3 %v1186_v55  ;;  %v340_v33 = vld [vmem:[%s1679_s3 + $0x38] sm:$0xff] }
  0x5a   : > { %765 = vmatpush.bf16.msrb.mxu1 %v1178_v63 }
  0x5b   : > { %1249 = vmatpush.bf16.msrb.mxu2 %v1114_v62  ;;  %746 = vmatpush.bf16.msrb.mxu0 %v1114_v62 }
  0x5c   : > { %1257 = vmatpush.bf16.msrb.mxu3 %v1178_v63 }
  0x5e   : > { %766 = vmatpush.bf16.msrb.mxu1 %v1170_v5 }
  0x5f   : > { %1250 = vmatpush.bf16.msrb.mxu2 %v1106_v4  ;;  %747 = vmatpush.bf16.msrb.mxu0 %v1106_v4 }
  0x60   : > { %1258 = vmatpush.bf16.msrb.mxu3 %v1170_v5 }
  0x62   : > { %767 = vmatpush.bf16.msrb.mxu1 %v1162_v12 }
  0x63   : > { %1251 = vmatpush.bf16.msrb.mxu2 %v1098_v10  ;;  %748 = vmatpush.bf16.msrb.mxu0 %v1098_v10 }
  0x64   : > { %1259 = vmatpush.bf16.msrb.mxu3 %v1162_v12  ;;  %682 = vmatmul.bf16.gmra.mxu0 %v986_v23 }
  0x65   : > { %701 = vmatmul.bf16.gmra.mxu1 %v990_v27  ;;  %739 = vmatmul.bf16.gmra.mxu3 %v986_v23 }
  0x66   : > { %768 = vmatpush.bf16.msrb.mxu1 %v1154_v24  ;;  %720 = vmatmul.bf16.gmra.mxu2 %v994_v28 }
  0x67   : > { %1252 = vmatpush.bf16.msrb.mxu2 %v1090_v22  ;;  %749 = vmatpush.bf16.msrb.mxu0 %v1090_v22  ;;  %v338_v22 = vld [vmem:[%s1679_s3 + $0x28] sm:$0xff] }
  0x68   : > { %1260 = vmatpush.bf16.msrb.mxu3 %v1154_v24 }
  0x6a   : > { %769 = vmatpush.bf16.msrb.mxu1 %v1146_v32 }
  0x6b   : > { %1253 = vmatpush.bf16.msrb.mxu2 %v1082_v31  ;;  %750 = vmatpush.bf16.msrb.mxu0 %v1082_v31 }
  0x6c   : > { %1261 = vmatpush.bf16.msrb.mxu3 %v1146_v32 }
  0x6e   : > { %770 = vmatpush.bf16.msrb.mxu1 %v1138_v38 }
  0x6f   : > { %1254 = vmatpush.bf16.msrb.mxu2 %v1074_v37  ;;  %751 = vmatpush.bf16.msrb.mxu0 %v1074_v37 }
  0x70   : > { %1262 = vmatpush.bf16.msrb.mxu3 %v1138_v38 }
  0x72   : > { %771 = vmatpush.bf16.msrb.mxu1 %v1130_v44 }
  0x73   : > { %1255 = vmatpush.bf16.msrb.mxu2 %v1066_v43  ;;  %752 = vmatpush.bf16.msrb.mxu0 %v1066_v43 }
  0x74   : > { %1263 = vmatpush.bf16.msrb.mxu3 %v1130_v44 }
  0x75   : > { %772 = vmatmul.bf16.vlgmr.msrb.gmra.mxu1 %v1526_v59 }
  0x76   : > { %753 = vmatmul.bf16.vlgmr.msrb.gmra.mxu0 %v1524_v58  ;;  %758 = vmatmul.bf16.vlgmr.msrb.gmra.mxu2 %v990_v27 }
  0x77   : > { %777 = vmatmul.bf16.vlgmr.msrb.gmra.mxu3 %v994_v28 }
  0xd1   : > { %v678_v45 = vpop.f32.mrf.mxu0 }
  0xd2   : > { %v697_v46 = vpop.f32.mrf.mxu1 }
  0xd3   : > { %v698_v47 = vadd.f32 %v697_v46, %v678_v45 }
  0xd8   : > { %v735_v51 = vpop.f32.mrf.mxu3 }
  0xd9   : > { %v716_v49 = vpop.f32.mrf.mxu2  ;;  %v680_v52 = vpop.f32.mrf.mxu0 }
  0xda   : > { %v717_v50 = vadd.f32 %v716_v49, %v698_v47  ;;  %v699_v53 = vpop.f32.mrf.mxu1 }
  0xdb   : > { %v700_v55 = vadd.f32 %v699_v53, %v680_v52 }
  0xdc   : > { %v783_v54 = vadd.f32 %v717_v50, %v333_v48 }
  0xde   : > { %791 = vst [vmem:[%s1679_s3] sm:$0xff] %v783_v54 }
  0xe0   : > { %v737_v59 = vpop.f32.mrf.mxu3 }
  0xe1   : > { %v718_v57 = vpop.f32.mrf.mxu2  ;;  %v683_v60 = vpop.f32.mrf.mxu0 }
  0xe2   : > { %v719_v58 = vadd.f32 %v718_v57, %v700_v55  ;;  %v702_v61 = vpop.f32.mrf.mxu1 }
  0xe3   : > { %v703_v63 = vadd.f32 %v702_v61, %v683_v60 }
  0xe4   : > { %v785_v62 = vadd.f32 %v719_v58, %v335_v56 }
  0xe6   : > { %793 = vst [vmem:[%s1679_s3 + $0x10] sm:$0xff] %v785_v62 }
  0xe8   : > { %v740_v3 = vpop.f32.mrf.mxu3 }
  0xe9   : > { %v721_v1 = vpop.f32.mrf.mxu2  ;;  %v685_v4 = vpop.f32.mrf.mxu0 }
  0xea   : > { %v722_v2 = vadd.f32 %v721_v1, %v703_v63  ;;  %v704_v5 = vpop.f32.mrf.mxu1 }
  0xeb   : > { %v705_v7 = vadd.f32 %v704_v5, %v685_v4 }
  0xec   : > { %v787_v6 = vadd.f32 %v722_v2, %v337_v0 }
  0xee   : > { %795 = vst [vmem:[%s1679_s3 + $0x20] sm:$0xff] %v787_v6 }
  0xf0   : > { %v742_v11 = vpop.f32.mrf.mxu3 }
  0xf1   : > { %v723_v9 = vpop.f32.mrf.mxu2 }
  0xf2   : > { %v724_v10 = vadd.f32 %v723_v9, %v705_v7  ;;  %v773_v15 = vpop.f32.mrf.mxu1 }
  0xf3   : > { %v754_v12 = vpop.f32.mrf.mxu0 }
  0xf4   : > { %v789_v13 = vadd.f32 %v724_v10, %v339_v8  ;;  %v755_v14 = vadd.f32 %v754_v12, %v735_v51 }
  0xf6   : > { %797 = vst [vmem:[%s1679_s3 + $0x30] sm:$0xff] %v789_v13  ;;  %v774_v17 = vadd.f32 %v773_v15, %v755_v14 }
  0xf8   : > { %v784_v18 = vadd.f32 %v774_v17, %v334_v16 }
  0xf9   : > { %v759_v19 = vpop.f32.mrf.mxu2 }
  0xfa   : > { %792 = vst [vmem:[%s1679_s3 + $0x8] sm:$0xff] %v784_v18  ;;  %v760_v20 = vadd.f32 %v759_v19, %v740_v3  ;;  %v778_v21 = vpop.f32.mrf.mxu3  ;;  %v775_v27 = vpop.f32.mrf.mxu1 }
  0xfb   : > { %v756_v23 = vpop.f32.mrf.mxu0 }
  0xfc   : > { %v779_v24 = vadd.f32 %v778_v21, %v760_v20  ;;  %v757_v25 = vadd.f32 %v756_v23, %v737_v59 }
  0xfe   : > { %v788_v28 = vadd.f32 %v779_v24, %v338_v22  ;;  %v776_v29 = vadd.f32 %v775_v27, %v757_v25 }
 0x100   : > { %796 = vst [vmem:[%s1679_s3 + $0x28] sm:$0xff] %v788_v28  ;;  %v786_v30 = vadd.f32 %v776_v29, %v336_v26 }
 0x101   : > { %v761_v31 = vpop.f32.mrf.mxu2 }
 0x102   : > { %794 = vst [vmem:[%s1679_s3 + $0x18] sm:$0xff] %v786_v30  ;;  %v762_v32 = vadd.f32 %v761_v31, %v742_v11  ;;  %v780_v34 = vpop.f32.mrf.mxu3 }
 0x104   : > { %v781_v35 = vadd.f32 %v780_v34, %v762_v32  ;;  %802 = sbr.rel (%p1187_p11) target bundleno = 276 (0x114), region = 66 }
 0x106   : > { %v790_v36 = vadd.f32 %v781_v35, %v340_v33 }
 0x108   : > { %798 = vst [vmem:[%s1679_s3 + $0x38] sm:$0xff] %v790_v36 }
 0x109   : > { %v803_v37 = vld [vmem:[%s1679_s3] sm:$0xff]  ;;  %v804_v38 = vld [vmem:[%s1679_s3 + $0x8] sm:$0xff]  ;;  %v805_v39 = vld [vmem:[%s1679_s3 + $0x10] sm:$0xff] }
 0x10a   : > { %v811_v40 = vmax.f32 %v803_v37, 0.0  ;;  %v812_v41 = vmax.f32 %v804_v38, 0.0  ;;  %v813_v42 = vmax.f32 %v805_v39, 0.0  ;;  %v806_v43 = vld [vmem:[%s1679_s3 + $0x18] sm:$0xff]  ;;  %v807_v44 = vld [vmem:[%s1679_s3 + $0x20] sm:$0xff]  ;;  %v808_v45 = vld [vmem:[%s1679_s3 + $0x28] sm:$0xff] }
 0x10b   : > { %v814_v46 = vmax.f32 %v806_v43, 0.0  ;;  %v809_v47 = vld [vmem:[%s1679_s3 + $0x30] sm:$0xff]  ;;  %v815_v48 = vmax.f32 %v807_v44, 0.0  ;;  %v816_v50 = vmax.f32 %v808_v45, 0.0 }
 0x10c   : > { %819 = vst [vmem:[%s1679_s3] sm:$0xff] %v811_v40  ;;  %v817_v51 = vmax.f32 %v809_v47, 0.0 }
 0x10d   : > { %820 = vst [vmem:[%s1679_s3 + $0x8] sm:$0xff] %v812_v41 }
 0x10e   : > { %821 = vst [vmem:[%s1679_s3 + $0x10] sm:$0xff] %v813_v42 }
 0x10f   : > { %v810_v49 = vld [vmem:[%s1679_s3 + $0x38] sm:$0xff]  ;;  %822 = vst [vmem:[%s1679_s3 + $0x18] sm:$0xff] %v814_v46 }
 0x110   : > { %v818_v52 = vmax.f32 %v810_v49, 0.0  ;;  %823 = vst [vmem:[%s1679_s3 + $0x20] sm:$0xff] %v815_v48 }
 0x111   : > { %824 = vst [vmem:[%s1679_s3 + $0x28] sm:$0xff] %v816_v50 }
 0x112   : > { %825 = vst [vmem:[%s1679_s3 + $0x30] sm:$0xff] %v817_v51 }
 0x113   : > { %826 = vst [vmem:[%s1679_s3 + $0x38] sm:$0xff] %v818_v52 }
 0x114 PF: > { %s13_s16 = sadd.s32 1, %s1344_s16   ;;  %s1680_s12 = smov %s1332_s13 }
 0x115   : > { %p10_p12 = scmp.ge.s32.totalorder %s13_s16, 8   ;;  %s1681_s13 = smov %s1401_s20 }
 0x116   : > { %s1682_s14 = smov %s1340_s15  ;;  %s1683_s15 = smov %s1685_s17 }
 0x117   :  { %12 = sbr.rel (!%p10_p12) target bundleno = 3 (0x3), region = 113 }

// kernel: alexnet_forward.19
= control target key start
LH: loop header
LB: loop body
LE: loop exit
PB: predicated region body
PF: predicated region fallthrough
CT: control target
= control target key end

     0   :  { %s158_s0 = inlined_call_operand.vmem [shape: bf16[8,128], index: 0, kind: input, shape index: {}]   ;;  %s159_s1 = inlined_call_operand.vmem [shape: bf16[8,128], index: 1, kind: input, shape index: {}]   ;;  %s160_s2 = inlined_call_operand.vmem [shape: bf16[8,128], index: 2, kind: input, shape index: {}]   ;;  %s161_s3 = inlined_call_operand.vmem [shape: bf16[8,128], index: 3, kind: input, shape index: {}]   ;;  %s162_s4 = inlined_call_operand.vmem [shape: bf16[8,128], index: 4, kind: input, shape index: {}]   ;;  %s163_s5 = inlined_call_operand.vmem [shape: bf16[8,128], index: 5, kind: input, shape index: {}]   ;;  %s164_s6 = inlined_call_operand.vmem [shape: bf16[8,128], index: 6, kind: input, shape index: {}]   ;;  %s165_s7 = inlined_call_operand.vmem [shape: bf16[8,128], index: 7, kind: input, shape index: {}]   ;;  %s166_s8 = inlined_call_operand.vmem [shape: bf16[8,128], index: 8, kind: input, shape index: {}]   ;;  %s167_s9 = inlined_call_operand.vmem [shape: bf16[8,128], index: 9, kind: output, shape index: {}]  }
   0x1   :  { %v32_v0 = vld [vmem:[%s158_s0] sm:$0xf] }
   0x2   :  { %v33_v1 = vld [vmem:[%s159_s1] sm:$0xf]  ;;  %v34_v3 = vunpack.c.l.bf16 %v32_v0 }
   0x3   :  { %v38_v2 = vld [vmem:[%s160_s2] sm:$0xf]  ;;  %v35_v4 = vunpack.c.l.bf16 %v33_v1 }
   0x4   :  { %v40_v5 = vunpack.c.l.bf16 %v38_v2  ;;  %v43_v6 = vld [vmem:[%s161_s3] sm:$0xf] }
   0x5   :  { %v48_v7 = vld [vmem:[%s162_s4] sm:$0xf]  ;;  %v36_v8 = vmax.f32 %v34_v3, %v35_v4  ;;  %v45_v9 = vunpack.c.l.bf16 %v43_v6 }
   0x6   :  { %v53_v10 = vld [vmem:[%s163_s5] sm:$0xf]  ;;  %v50_v12 = vunpack.c.l.bf16 %v48_v7 }
   0x7   :  { %v41_v11 = vmax.f32 %v36_v8, %v40_v5  ;;  %v58_v13 = vld [vmem:[%s164_s6] sm:$0xf]  ;;  %v55_v15 = vunpack.c.l.bf16 %v53_v10 }
   0x8   :  { %v63_v16 = vld [vmem:[%s165_s7] sm:$0xf]  ;;  %v60_v18 = vunpack.c.l.bf16 %v58_v13 }
   0x9   :  { %v46_v14 = vmax.f32 %v41_v11, %v45_v9  ;;  %v68_v19 = vld [vmem:[%s166_s8] sm:$0xf]  ;;  %v65_v21 = vunpack.c.l.bf16 %v63_v16 }
   0xa   :  { %v70_v23 = vunpack.c.l.bf16 %v68_v19 }
   0xb   :  { %v51_v17 = vmax.f32 %v46_v14, %v50_v12 }
   0xd   :  { %v56_v20 = vmax.f32 %v51_v17, %v55_v15 }
   0xf   :  { %v61_v22 = vmax.f32 %v56_v20, %v60_v18 }
  0x11   :  { %v66_v24 = vmax.f32 %v61_v22, %v65_v21 }
  0x13   :  { %v71_v25 = vmax.f32 %v66_v24, %v70_v23 }
  0x15   :  { %v72_v26 = vpack.c.bf16 %v71_v25, %v71_v25 }
  0x17   :  { %73 = vst [vmem:[%s167_s9] sm:$0xf] %v72_v26 }

// kernel: alexnet_forward.21
= control target key start
LH: loop header
LB: loop body
LE: loop exit
PB: predicated region body
PF: predicated region fallthrough
CT: control target
= control target key end

     0   :  { %s5915_s0 = inlined_call_operand.vmem [shape: bf16[16,4096], index: 0, kind: input, shape index: {}]   ;;  %s5916_s1 = inlined_call_operand.vmem [shape: bf16[4096,4096], index: 1, kind: input, shape index: {}]   ;;  %s5917_s2 = inlined_call_operand.vmem [shape: f32[1,4096], index: 2, kind: input, shape index: {}]   ;;  %s5918_s3 = inlined_call_operand.vmem [shape: f32[16,4096], index: 3, kind: output, shape index: {}]  }
   0x1   :  { %5920 = sst [smem:[#allocation6_spill]] %s5915_s0 }
   0x2   :  { %5921 = sst [smem:[#allocation7_spill]] %s5916_s1 }
   0x3   :  { %s4605_s12 = smov 0   ;;  %s4607_s13 = smov 0  }
   0x4   :  { %s4609_s14 = smov 0   ;;  %s4611_s15 = smov 0  }
   0x5   :  { %s4613_s16 = smov 0   ;;  %s4615_s17 = smov 0  }
   0x6   :  { %s4617_s18 = smov 0   ;;  %s4619_s19 = smov 0  }
   0x7   :  { %s4621_s20 = smov 0   ;;  %s4623_s21 = smov 0  }
   0x8   :  { %s4625_s22 = smov 0  }
   0x9 LB: > { %s3062_s23 = sadd.s32 4294967295, %s4583_s22   ;;  %s25_s24 = sadd.s32 1, %s4575_s20  ;;  %s4583_s22 = sphi %s4625_s22, %s13_s22   ;;  %s4579_s21 = sphi %s4623_s21, %s5938_s21   ;;  %s4575_s20 = sphi %s4621_s20, %s5937_s20   ;;  %s4571_s19 = sphi %s4619_s19, %s5936_s19   ;;  %s4567_s18 = sphi %s4617_s18, %s5935_s18   ;;  %s4563_s17 = sphi %s4615_s17, %s5934_s17   ;;  %s4559_s16 = sphi %s4613_s16, %s5933_s16   ;;  %s4555_s15 = sphi %s4611_s15, %s5932_s15   ;;  %s4551_s14 = sphi %s4609_s14, %s5931_s14   ;;  %s4547_s13 = sphi %s4607_s13, %s5930_s13   ;;  %s4543_s12 = sphi %s4605_s12, %s5929_s12  }
   0xa   : > { %p26_p0 = scmp.ge.s32.totalorder %s25_s24, 4  ;;  %s28_s25 = sadd.s32 1, %s4579_s21 }
   0xb   : > { %s41_s26 = sadd.s32 1, %s4563_s17  ;;  %p48_p1 = scmp.ne.s32.totalorder %s4563_s17, %s4559_s16 }
   0xc   : > { %s5940_s24 = smov (%p26_p0, %s25_s24), 0  ;;  %s5942_s25 = smov (!%p26_p0, %s28_s25), %s4579_s21 }
   0xd   : > { %s37_s27 = ssub.s32 %s4575_s20, %s5940_s24  ;;  %p49_p2 = scmp.eq.s32.totalorder %s4583_s22, 0 }
   0xe   : > { %p30_p3 = scmp.ge.s32.totalorder %s5942_s25, 8  ;;  %p39_p4 = scmp.eq.s32.totalorder %s37_s27, 0 }
   0xf   : > { %p4672_p5 = por %p49_p2, %p48_p1  ;;  %s69_s29 = sadd.s32 1, %s4555_s15 }
  0x10   : > { %s5944_s25 = smov (%p30_p3, %s5942_s25), 0  ;;  %p76_p6 = scmp.ne.s32.totalorder %s4555_s15, %s4551_s14 }
  0x11   : > { %5923 = sst [smem:[#allocation5_spill]] %s5944_s25  ;;  %s65_s4 = ssub.s32 %s4579_s21, %s5944_s25 }
  0x12   : > { %s4680_s30 = scalar_select %p39_p4, %s4563_s17, %s41_s26  }
  0x13   : > { %s66_s5 = sor.u32 %s65_s4, %s37_s27  ;;  %p121_p7 = scmp.eq.s32.totalorder %s65_s4, 0 }
  0x14   : > { %p67_p8 = scmp.eq.s32.totalorder %s66_s5, 0  ;;  %p4686_p9 = por %p76_p6, %p49_p2 }
  0x15   : > { %s123_s7 = sadd.s32 1, %s4547_s13  ;;  %p133_p10 = scmp.ne.s32.totalorder %s4547_s13, %s4543_s12 }
  0x16   : > { %s4694_s8 = scalar_select %p67_p8, %s4555_s15, %s69_s29  }
  0x17   : > { %s4697_s9 = scalar_select %p121_p7, %s4547_s13, %s123_s7  }
  0x18   : > { %p134_p11 = scmp.eq.s32.totalorder %s3062_s23, 31  ;;  %p3065_p13 = scmp.ge.s32.totalorder %s4583_s22, 32 }
  0x1a   : > { %p4699_p12 = por %p134_p11, %p133_p10  ;;  %156 = sbr.rel (%p3065_p13) target bundleno = 315 (0x13b), region = 16 }
  0x1f   : > { %159 = sbr.rel (!%p4672_p5) target bundleno = 49 (0x31), region = 20  ;;  %s161_s11 = sand.u32 (%p4672_p5), 1, %s4563_s17  }
  0x20   : > { %s4142_s26 = sshll.u32 (%p4672_p5), %s4575_s20, 5  ;;  %s3066_s27 = sshll.u32 (%p4672_p5), %s161_s11, 6 }
  0x21   : > { %s5926_s0 = sld [smem:[#allocation6_spill]] (%p4672_p5)  ;;  %s163_s23 = scalar_lea.vmem (%p4672_p5), [#allocation2], %s3066_s27 }
  0x27   : > { %s169_s5 = scalar_lea.vmem %s5926_s0, %s4142_s26 }
  0x28   : > { %v182_v0 = vld [vmem:[%s169_s5] sm:$0xff]  ;;  %v184_v1 = vld [vmem:[%s169_s5 + $0x8] sm:$0xff]  ;;  %v186_v2 = vld [vmem:[%s169_s5 + $0x10] sm:$0xff] }
  0x29   : > { %183 = vst [vmem:[%s163_s23] sm:$0xff] %v182_v0  ;;  %v188_v3 = vld [vmem:[%s169_s5 + $0x18] sm:$0xff]  ;;  %v190_v4 = vld [vmem:[%s169_s5 + $0x80] sm:$0xff]  ;;  %v192_v5 = vld [vmem:[%s169_s5 + $0x88] sm:$0xff] }
  0x2a   : > { %185 = vst [vmem:[%s163_s23 + $0x8] sm:$0xff] %v184_v1  ;;  %v194_v6 = vld [vmem:[%s169_s5 + $0x90] sm:$0xff]  ;;  %v196_v7 = vld [vmem:[%s169_s5 + $0x98] sm:$0xff] }
  0x2b   : > { %187 = vst [vmem:[%s163_s23 + $0x10] sm:$0xff] %v186_v2 }
  0x2c   : > { %189 = vst [vmem:[%s163_s23 + $0x18] sm:$0xff] %v188_v3 }
  0x2d   : > { %191 = vst [vmem:[%s163_s23 + $0x20] sm:$0xff] %v190_v4 }
  0x2e   : > { %193 = vst [vmem:[%s163_s23 + $0x28] sm:$0xff] %v192_v5 }
  0x2f   : > { %195 = vst [vmem:[%s163_s23 + $0x30] sm:$0xff] %v194_v6 }
  0x30   : > { %197 = vst [vmem:[%s163_s23 + $0x38] sm:$0xff] %v196_v7 }
  0x31 PF: > { %203 = sbr.rel (!%p4686_p9) target bundleno = 315 (0x13b), region = 43  ;;  %s205_s28 = sand.u32 (%p4686_p9), 1, %s4555_s15  }
  0x32   : > { %s3071_s7 = sshll.u32 (%p4686_p9), %s4579_s21, 2  ;;  %s3069_s11 = sshll.u32 (%p4686_p9), %s205_s28, 11 }
  0x33   : > { %s4143_s26 = sshll.u32 (%p4686_p9), %s4575_s20, 12  ;;  %s5927_s1 = sld [smem:[#allocation7_spill]] (%p4686_p9) }
  0x34   : > { %s211_s27 = sadd.s32 (%p4686_p9), %s4143_s26, %s3071_s7  ;;  %s4724_s6 = scalar_lea.vmem (%p4686_p9), [#allocation3], %s3069_s11 }
  0x35   : > { %s3073_s29 = sshll.u32 (%p4686_p9), %s211_s27, 2 }
  0x39   : > { %s4719_s5 = scalar_lea.vmem %s5927_s1, %s3073_s29 }
  0x3a   : > { %v226_v8 = vld [vmem:[%s4719_s5] sm:$0xff]  ;;  %v228_v9 = vld [vmem:[%s4719_s5 + $0x8] sm:$0xff] }
  0x3b   : > { %v230_v10 = vld [vmem:[%s4719_s5 + $0x80] sm:$0xff]  ;;  %227 = vst [vmem:[%s4724_s6] sm:$0xff] %v226_v8  ;;  %v232_v11 = vld [vmem:[%s4719_s5 + $0x88] sm:$0xff] }
  0x3c   : > { %229 = vst [vmem:[%s4724_s6 + $0x8] sm:$0xff] %v228_v9  ;;  %v234_v12 = vld [vmem:[%s4719_s5 + $0x100] sm:$0xff]  ;;  %v236_v13 = vld [vmem:[%s4719_s5 + $0x108] sm:$0xff] }
  0x3d   : > { %231 = vst [vmem:[%s4724_s6 + $0x10] sm:$0xff] %v230_v10  ;;  %v238_v14 = vld [vmem:[%s4719_s5 + $0x180] sm:$0xff]  ;;  %v240_v15 = vld [vmem:[%s4719_s5 + $0x188] sm:$0xff] }
  0x3e   : > { %233 = vst [vmem:[%s4724_s6 + $0x18] sm:$0xff] %v232_v11  ;;  %v242_v16 = vld [vmem:[%s4719_s5 + $0x200] sm:$0xff]  ;;  %v244_v17 = vld [vmem:[%s4719_s5 + $0x208] sm:$0xff] }
  0x3f   : > { %235 = vst [vmem:[%s4724_s6 + $0x20] sm:$0xff] %v234_v12  ;;  %v246_v18 = vld [vmem:[%s4719_s5 + $0x280] sm:$0xff]  ;;  %v248_v19 = vld [vmem:[%s4719_s5 + $0x288] sm:$0xff] }
  0x40   : > { %237 = vst [vmem:[%s4724_s6 + $0x28] sm:$0xff] %v236_v13  ;;  %v250_v20 = vld [vmem:[%s4719_s5 + $0x300] sm:$0xff]  ;;  %v252_v21 = vld [vmem:[%s4719_s5 + $0x308] sm:$0xff] }
  0x41   : > { %239 = vst [vmem:[%s4724_s6 + $0x30] sm:$0xff] %v238_v14  ;;  %v254_v22 = vld [vmem:[%s4719_s5 + $0x380] sm:$0xff]  ;;  %v256_v23 = vld [vmem:[%s4719_s5 + $0x388] sm:$0xff] }
  0x42   : > { %241 = vst [vmem:[%s4724_s6 + $0x38] sm:$0xff] %v240_v15  ;;  %v258_v24 = vld [vmem:[%s4719_s5 + $0x400] sm:$0xff]  ;;  %v260_v25 = vld [vmem:[%s4719_s5 + $0x408] sm:$0xff] }
  0x43   : > { %243 = vst [vmem:[%s4724_s6 + $0x40] sm:$0xff] %v242_v16  ;;  %v262_v26 = vld [vmem:[%s4719_s5 + $0x480] sm:$0xff]  ;;  %v264_v27 = vld [vmem:[%s4719_s5 + $0x488] sm:$0xff] }
  0x44   : > { %245 = vst [vmem:[%s4724_s6 + $0x48] sm:$0xff] %v244_v17  ;;  %v266_v28 = vld [vmem:[%s4719_s5 + $0x500] sm:$0xff]  ;;  %v268_v29 = vld [vmem:[%s4719_s5 + $0x508] sm:$0xff] }
  0x45   : > { %247 = vst [vmem:[%s4724_s6 + $0x50] sm:$0xff] %v246_v18  ;;  %v270_v30 = vld [vmem:[%s4719_s5 + $0x580] sm:$0xff]  ;;  %v272_v31 = vld [vmem:[%s4719_s5 + $0x588] sm:$0xff] }
  0x46   : > { %249 = vst [vmem:[%s4724_s6 + $0x58] sm:$0xff] %v248_v19  ;;  %v274_v32 = vld [vmem:[%s4719_s5 + $0x600] sm:$0xff]  ;;  %v276_v33 = vld [vmem:[%s4719_s5 + $0x608] sm:$0xff] }
  0x47   : > { %251 = vst [vmem:[%s4724_s6 + $0x60] sm:$0xff] %v250_v20  ;;  %v278_v34 = vld [vmem:[%s4719_s5 + $0x680] sm:$0xff]  ;;  %v280_v35 = vld [vmem:[%s4719_s5 + $0x688] sm:$0xff] }
  0x48   : > { %253 = vst [vmem:[%s4724_s6 + $0x68] sm:$0xff] %v252_v21  ;;  %v282_v36 = vld [vmem:[%s4719_s5 + $0x700] sm:$0xff]  ;;  %v284_v37 = vld [vmem:[%s4719_s5 + $0x708] sm:$0xff] }
  0x49   : > { %255 = vst [vmem:[%s4724_s6 + $0x70] sm:$0xff] %v254_v22  ;;  %v286_v38 = vld [vmem:[%s4719_s5 + $0x780] sm:$0xff]  ;;  %v288_v39 = vld [vmem:[%s4719_s5 + $0x788] sm:$0xff] }
  0x4a   : > { %257 = vst [vmem:[%s4724_s6 + $0x78] sm:$0xff] %v256_v23  ;;  %v290_v40 = vld [vmem:[%s4719_s5 + $0x800] sm:$0xff]  ;;  %v292_v41 = vld [vmem:[%s4719_s5 + $0x808] sm:$0xff] }
  0x4b   : > { %259 = vst [vmem:[%s4724_s6 + $0x80] sm:$0xff] %v258_v24  ;;  %v294_v42 = vld [vmem:[%s4719_s5 + $0x880] sm:$0xff]  ;;  %v296_v43 = vld [vmem:[%s4719_s5 + $0x888] sm:$0xff] }
  0x4c   : > { %261 = vst [vmem:[%s4724_s6 + $0x88] sm:$0xff] %v260_v25  ;;  %v298_v44 = vld [vmem:[%s4719_s5 + $0x900] sm:$0xff]  ;;  %v300_v45 = vld [vmem:[%s4719_s5 + $0x908] sm:$0xff] }
  0x4d   : > { %263 = vst [vmem:[%s4724_s6 + $0x90] sm:$0xff] %v262_v26  ;;  %v302_v46 = vld [vmem:[%s4719_s5 + $0x980] sm:$0xff]  ;;  %v304_v47 = vld [vmem:[%s4719_s5 + $0x988] sm:$0xff] }
  0x4e   : > { %265 = vst [vmem:[%s4724_s6 + $0x98] sm:$0xff] %v264_v27  ;;  %v306_v48 = vld [vmem:[%s4719_s5 + $0xa00] sm:$0xff]  ;;  %v308_v49 = vld [vmem:[%s4719_s5 + $0xa08] sm:$0xff] }
  0x4f   : > { %267 = vst [vmem:[%s4724_s6 + $0xa0] sm:$0xff] %v266_v28  ;;  %v310_v50 = vld [vmem:[%s4719_s5 + $0xa80] sm:$0xff]  ;;  %v312_v51 = vld [vmem:[%s4719_s5 + $0xa88] sm:$0xff] }
  0x50   : > { %269 = vst [vmem:[%s4724_s6 + $0xa8] sm:$0xff] %v268_v29  ;;  %v314_v52 = vld [vmem:[%s4719_s5 + $0xb00] sm:$0xff]  ;;  %v316_v53 = vld [vmem:[%s4719_s5 + $0xb08] sm:$0xff] }
  0x51   : > { %271 = vst [vmem:[%s4724_s6 + $0xb0] sm:$0xff] %v270_v30  ;;  %v318_v54 = vld [vmem:[%s4719_s5 + $0xb80] sm:$0xff]  ;;  %v320_v55 = vld [vmem:[%s4719_s5 + $0xb88] sm:$0xff] }
  0x52   : > { %273 = vst [vmem:[%s4724_s6 + $0xb8] sm:$0xff] %v272_v31  ;;  %v322_v56 = vld [vmem:[%s4719_s5 + $0xc00] sm:$0xff]  ;;  %v324_v57 = vld [vmem:[%s4719_s5 + $0xc08] sm:$0xff] }
  0x53   : > { %275 = vst [vmem:[%s4724_s6 + $0xc0] sm:$0xff] %v274_v32  ;;  %v326_v58 = vld [vmem:[%s4719_s5 + $0xc80] sm:$0xff]  ;;  %v328_v59 = vld [vmem:[%s4719_s5 + $0xc88] sm:$0xff] }
  0x54   : > { %277 = vst [vmem:[%s4724_s6 + $0xc8] sm:$0xff] %v276_v33  ;;  %v330_v60 = vld [vmem:[%s4719_s5 + $0xd00] sm:$0xff]  ;;  %v332_v61 = vld [vmem:[%s4719_s5 + $0xd08] sm:$0xff] }
  0x55   : > { %279 = vst [vmem:[%s4724_s6 + $0xd0] sm:$0xff] %v278_v34  ;;  %v334_v62 = vld [vmem:[%s4719_s5 + $0xd80] sm:$0xff]  ;;  %v336_v63 = vld [vmem:[%s4719_s5 + $0xd88] sm:$0xff] }
  0x56   : > { %281 = vst [vmem:[%s4724_s6 + $0xd8] sm:$0xff] %v280_v35  ;;  %v338_v0 = vld [vmem:[%s4719_s5 + $0xe00] sm:$0xff]  ;;  %v340_v1 = vld [vmem:[%s4719_s5 + $0xe08] sm:$0xff] }
  0x57   : > { %283 = vst [vmem:[%s4724_s6 + $0xe0] sm:$0xff] %v282_v36  ;;  %v342_v2 = vld [vmem:[%s4719_s5 + $0xe80] sm:$0xff]  ;;  %v344_v3 = vld [vmem:[%s4719_s5 + $0xe88] sm:$0xff] }
  0x58   : > { %285 = vst [vmem:[%s4724_s6 + $0xe8] sm:$0xff] %v284_v37  ;;  %v346_v4 = vld [vmem:[%s4719_s5 + $0xf00] sm:$0xff]  ;;  %v348_v5 = vld [vmem:[%s4719_s5 + $0xf08] sm:$0xff] }
  0x59   : > { %287 = vst [vmem:[%s4724_s6 + $0xf0] sm:$0xff] %v286_v38  ;;  %v350_v6 = vld [vmem:[%s4719_s5 + $0xf80] sm:$0xff]  ;;  %v352_v7 = vld [vmem:[%s4719_s5 + $0xf88] sm:$0xff] }
  0x5a   : > { %289 = vst [vmem:[%s4724_s6 + $0xf8] sm:$0xff] %v288_v39  ;;  %v354_v8 = vld [vmem:[%s4719_s5 + $0x1000] sm:$0xff]  ;;  %v356_v9 = vld [vmem:[%s4719_s5 + $0x1008] sm:$0xff] }
  0x5b   : > { %291 = vst [vmem:[%s4724_s6 + $0x100] sm:$0xff] %v290_v40  ;;  %v358_v10 = vld [vmem:[%s4719_s5 + $0x1080] sm:$0xff]  ;;  %v360_v11 = vld [vmem:[%s4719_s5 + $0x1088] sm:$0xff] }
  0x5c   : > { %293 = vst [vmem:[%s4724_s6 + $0x108] sm:$0xff] %v292_v41  ;;  %v362_v12 = vld [vmem:[%s4719_s5 + $0x1100] sm:$0xff]  ;;  %v364_v13 = vld [vmem:[%s4719_s5 + $0x1108] sm:$0xff] }
  0x5d   : > { %295 = vst [vmem:[%s4724_s6 + $0x110] sm:$0xff] %v294_v42  ;;  %v366_v14 = vld [vmem:[%s4719_s5 + $0x1180] sm:$0xff]  ;;  %v368_v15 = vld [vmem:[%s4719_s5 + $0x1188] sm:$0xff] }
  0x5e   : > { %297 = vst [vmem:[%s4724_s6 + $0x118] sm:$0xff] %v296_v43  ;;  %v370_v16 = vld [vmem:[%s4719_s5 + $0x1200] sm:$0xff]  ;;  %v372_v17 = vld [vmem:[%s4719_s5 + $0x1208] sm:$0xff] }
  0x5f   : > { %299 = vst [vmem:[%s4724_s6 + $0x120] sm:$0xff] %v298_v44  ;;  %v374_v18 = vld [vmem:[%s4719_s5 + $0x1280] sm:$0xff]  ;;  %v376_v19 = vld [vmem:[%s4719_s5 + $0x1288] sm:$0xff] }
  0x60   : > { %301 = vst [vmem:[%s4724_s6 + $0x128] sm:$0xff] %v300_v45  ;;  %v378_v20 = vld [vmem:[%s4719_s5 + $0x1300] sm:$0xff]  ;;  %v380_v21 = vld [vmem:[%s4719_s5 + $0x1308] sm:$0xff] }
  0x61   : > { %303 = vst [vmem:[%s4724_s6 + $0x130] sm:$0xff] %v302_v46  ;;  %v382_v22 = vld [vmem:[%s4719_s5 + $0x1380] sm:$0xff]  ;;  %v384_v23 = vld [vmem:[%s4719_s5 + $0x1388] sm:$0xff] }
  0x62   : > { %305 = vst [vmem:[%s4724_s6 + $0x138] sm:$0xff] %v304_v47  ;;  %v386_v24 = vld [vmem:[%s4719_s5 + $0x1400] sm:$0xff]  ;;  %v388_v25 = vld [vmem:[%s4719_s5 + $0x1408] sm:$0xff] }
  0x63   : > { %307 = vst [vmem:[%s4724_s6 + $0x140] sm:$0xff] %v306_v48  ;;  %v390_v26 = vld [vmem:[%s4719_s5 + $0x1480] sm:$0xff]  ;;  %v392_v27 = vld [vmem:[%s4719_s5 + $0x1488] sm:$0xff] }
  0x64   : > { %309 = vst [vmem:[%s4724_s6 + $0x148] sm:$0xff] %v308_v49  ;;  %v394_v28 = vld [vmem:[%s4719_s5 + $0x1500] sm:$0xff]  ;;  %v396_v29 = vld [vmem:[%s4719_s5 + $0x1508] sm:$0xff] }
  0x65   : > { %311 = vst [vmem:[%s4724_s6 + $0x150] sm:$0xff] %v310_v50  ;;  %v398_v30 = vld [vmem:[%s4719_s5 + $0x1580] sm:$0xff]  ;;  %v400_v31 = vld [vmem:[%s4719_s5 + $0x1588] sm:$0xff] }
  0x66   : > { %313 = vst [vmem:[%s4724_s6 + $0x158] sm:$0xff] %v312_v51  ;;  %v402_v32 = vld [vmem:[%s4719_s5 + $0x1600] sm:$0xff]  ;;  %v404_v33 = vld [vmem:[%s4719_s5 + $0x1608] sm:$0xff] }
  0x67   : > { %315 = vst [vmem:[%s4724_s6 + $0x160] sm:$0xff] %v314_v52  ;;  %v406_v34 = vld [vmem:[%s4719_s5 + $0x1680] sm:$0xff]  ;;  %v408_v35 = vld [vmem:[%s4719_s5 + $0x1688] sm:$0xff] }
  0x68   : > { %317 = vst [vmem:[%s4724_s6 + $0x168] sm:$0xff] %v316_v53  ;;  %v410_v36 = vld [vmem:[%s4719_s5 + $0x1700] sm:$0xff]  ;;  %v412_v37 = vld [vmem:[%s4719_s5 + $0x1708] sm:$0xff] }
  0x69   : > { %319 = vst [vmem:[%s4724_s6 + $0x170] sm:$0xff] %v318_v54  ;;  %v414_v38 = vld [vmem:[%s4719_s5 + $0x1780] sm:$0xff]  ;;  %v416_v39 = vld [vmem:[%s4719_s5 + $0x1788] sm:$0xff] }
  0x6a   : > { %321 = vst [vmem:[%s4724_s6 + $0x178] sm:$0xff] %v320_v55  ;;  %v418_v40 = vld [vmem:[%s4719_s5 + $0x1800] sm:$0xff]  ;;  %v420_v41 = vld [vmem:[%s4719_s5 + $0x1808] sm:$0xff] }
  0x6b   : > { %323 = vst [vmem:[%s4724_s6 + $0x180] sm:$0xff] %v322_v56  ;;  %v422_v42 = vld [vmem:[%s4719_s5 + $0x1880] sm:$0xff]  ;;  %v424_v43 = vld [vmem:[%s4719_s5 + $0x1888] sm:$0xff] }
  0x6c   : > { %325 = vst [vmem:[%s4724_s6 + $0x188] sm:$0xff] %v324_v57  ;;  %v426_v44 = vld [vmem:[%s4719_s5 + $0x1900] sm:$0xff]  ;;  %v428_v45 = vld [vmem:[%s4719_s5 + $0x1908] sm:$0xff] }
  0x6d   : > { %327 = vst [vmem:[%s4724_s6 + $0x190] sm:$0xff] %v326_v58  ;;  %v430_v46 = vld [vmem:[%s4719_s5 + $0x1980] sm:$0xff]  ;;  %v432_v47 = vld [vmem:[%s4719_s5 + $0x1988] sm:$0xff] }
  0x6e   : > { %329 = vst [vmem:[%s4724_s6 + $0x198] sm:$0xff] %v328_v59  ;;  %v434_v48 = vld [vmem:[%s4719_s5 + $0x1a00] sm:$0xff]  ;;  %v436_v49 = vld [vmem:[%s4719_s5 + $0x1a08] sm:$0xff] }
  0x6f   : > { %331 = vst [vmem:[%s4724_s6 + $0x1a0] sm:$0xff] %v330_v60  ;;  %v438_v50 = vld [vmem:[%s4719_s5 + $0x1a80] sm:$0xff]  ;;  %v440_v51 = vld [vmem:[%s4719_s5 + $0x1a88] sm:$0xff] }
  0x70   : > { %333 = vst [vmem:[%s4724_s6 + $0x1a8] sm:$0xff] %v332_v61  ;;  %v442_v52 = vld [vmem:[%s4719_s5 + $0x1b00] sm:$0xff]  ;;  %v444_v53 = vld [vmem:[%s4719_s5 + $0x1b08] sm:$0xff] }
  0x71   : > { %335 = vst [vmem:[%s4724_s6 + $0x1b0] sm:$0xff] %v334_v62  ;;  %v446_v54 = vld [vmem:[%s4719_s5 + $0x1b80] sm:$0xff]  ;;  %v448_v55 = vld [vmem:[%s4719_s5 + $0x1b88] sm:$0xff] }
  0x72   : > { %337 = vst [vmem:[%s4724_s6 + $0x1b8] sm:$0xff] %v336_v63  ;;  %v450_v56 = vld [vmem:[%s4719_s5 + $0x1c00] sm:$0xff]  ;;  %v452_v57 = vld [vmem:[%s4719_s5 + $0x1c08] sm:$0xff] }
  0x73   : > { %339 = vst [vmem:[%s4724_s6 + $0x1c0] sm:$0xff] %v338_v0  ;;  %v454_v58 = vld [vmem:[%s4719_s5 + $0x1c80] sm:$0xff]  ;;  %v456_v59 = vld [vmem:[%s4719_s5 + $0x1c88] sm:$0xff] }
  0x74   : > { %341 = vst [vmem:[%s4724_s6 + $0x1c8] sm:$0xff] %v340_v1  ;;  %v458_v60 = vld [vmem:[%s4719_s5 + $0x1d00] sm:$0xff]  ;;  %v460_v61 = vld [vmem:[%s4719_s5 + $0x1d08] sm:$0xff] }
  0x75   : > { %343 = vst [vmem:[%s4724_s6 + $0x1d0] sm:$0xff] %v342_v2  ;;  %v462_v62 = vld [vmem:[%s4719_s5 + $0x1d80] sm:$0xff]  ;;  %v464_v63 = vld [vmem:[%s4719_s5 + $0x1d88] sm:$0xff] }
  0x76   : > { %345 = vst [vmem:[%s4724_s6 + $0x1d8] sm:$0xff] %v344_v3  ;;  %v466_v0 = vld [vmem:[%s4719_s5 + $0x1e00] sm:$0xff]  ;;  %v468_v1 = vld [vmem:[%s4719_s5 + $0x1e08] sm:$0xff] }
  0x77   : > { %347 = vst [vmem:[%s4724_s6 + $0x1e0] sm:$0xff] %v346_v4  ;;  %v470_v2 = vld [vmem:[%s4719_s5 + $0x1e80] sm:$0xff]  ;;  %v472_v3 = vld [vmem:[%s4719_s5 + $0x1e88] sm:$0xff] }
  0x78   : > { %349 = vst [vmem:[%s4724_s6 + $0x1e8] sm:$0xff] %v348_v5  ;;  %v474_v4 = vld [vmem:[%s4719_s5 + $0x1f00] sm:$0xff]  ;;  %v476_v5 = vld [vmem:[%s4719_s5 + $0x1f08] sm:$0xff] }
  0x79   : > { %351 = vst [vmem:[%s4724_s6 + $0x1f0] sm:$0xff] %v350_v6  ;;  %v478_v6 = vld [vmem:[%s4719_s5 + $0x1f80] sm:$0xff] }
  0x7a   : > { %353 = vst [vmem:[%s4724_s6 + $0x1f8] sm:$0xff] %v352_v7  ;;  %v480_v7 = vld [vmem:[%s4719_s5 + $0x1f88] sm:$0xff] }
  0x7b   : > { %355 = vst [vmem:[%s4724_s6 + $0x200] sm:$0xff] %v354_v8  ;;  %v482_v8 = vld [vmem:[%s4719_s5 + $0x2000] sm:$0xff] }
  0x7c   : > { %357 = vst [vmem:[%s4724_s6 + $0x208] sm:$0xff] %v356_v9  ;;  %v484_v9 = vld [vmem:[%s4719_s5 + $0x2008] sm:$0xff] }
  0x7d   : > { %359 = vst [vmem:[%s4724_s6 + $0x210] sm:$0xff] %v358_v10  ;;  %v486_v10 = vld [vmem:[%s4719_s5 + $0x2080] sm:$0xff] }
  0x7e   : > { %361 = vst [vmem:[%s4724_s6 + $0x218] sm:$0xff] %v360_v11  ;;  %v488_v11 = vld [vmem:[%s4719_s5 + $0x2088] sm:$0xff] }
  0x7f   : > { %363 = vst [vmem:[%s4724_s6 + $0x220] sm:$0xff] %v362_v12  ;;  %v490_v12 = vld [vmem:[%s4719_s5 + $0x2100] sm:$0xff] }
  0x80   : > { %365 = vst [vmem:[%s4724_s6 + $0x228] sm:$0xff] %v364_v13  ;;  %v492_v13 = vld [vmem:[%s4719_s5 + $0x2108] sm:$0xff] }
  0x81   : > { %367 = vst [vmem:[%s4724_s6 + $0x230] sm:$0xff] %v366_v14  ;;  %v494_v14 = vld [vmem:[%s4719_s5 + $0x2180] sm:$0xff] }
  0x82   : > { %369 = vst [vmem:[%s4724_s6 + $0x238] sm:$0xff] %v368_v15  ;;  %v496_v15 = vld [vmem:[%s4719_s5 + $0x2188] sm:$0xff] }
  0x83   : > { %371 = vst [vmem:[%s4724_s6 + $0x240] sm:$0xff] %v370_v16  ;;  %v498_v16 = vld [vmem:[%s4719_s5 + $0x2200] sm:$0xff] }
  0x84   : > { %373 = vst [vmem:[%s4724_s6 + $0x248] sm:$0xff] %v372_v17  ;;  %v500_v17 = vld [vmem:[%s4719_s5 + $0x2208] sm:$0xff] }
  0x85   : > { %375 = vst [vmem:[%s4724_s6 + $0x250] sm:$0xff] %v374_v18  ;;  %v502_v18 = vld [vmem:[%s4719_s5 + $0x2280] sm:$0xff] }
  0x86   : > { %377 = vst [vmem:[%s4724_s6 + $0x258] sm:$0xff] %v376_v19  ;;  %v504_v19 = vld [vmem:[%s4719_s5 + $0x2288] sm:$0xff] }
  0x87   : > { %379 = vst [vmem:[%s4724_s6 + $0x260] sm:$0xff] %v378_v20  ;;  %v506_v20 = vld [vmem:[%s4719_s5 + $0x2300] sm:$0xff] }
  0x88   : > { %381 = vst [vmem:[%s4724_s6 + $0x268] sm:$0xff] %v380_v21  ;;  %v508_v21 = vld [vmem:[%s4719_s5 + $0x2308] sm:$0xff] }
  0x89   : > { %383 = vst [vmem:[%s4724_s6 + $0x270] sm:$0xff] %v382_v22  ;;  %v510_v22 = vld [vmem:[%s4719_s5 + $0x2380] sm:$0xff] }
  0x8a   : > { %385 = vst [vmem:[%s4724_s6 + $0x278] sm:$0xff] %v384_v23  ;;  %v512_v23 = vld [vmem:[%s4719_s5 + $0x2388] sm:$0xff] }
  0x8b   : > { %387 = vst [vmem:[%s4724_s6 + $0x280] sm:$0xff] %v386_v24  ;;  %v514_v24 = vld [vmem:[%s4719_s5 + $0x2400] sm:$0xff] }
  0x8c   : > { %389 = vst [vmem:[%s4724_s6 + $0x288] sm:$0xff] %v388_v25  ;;  %v516_v25 = vld [vmem:[%s4719_s5 + $0x2408] sm:$0xff] }
  0x8d   : > { %391 = vst [vmem:[%s4724_s6 + $0x290] sm:$0xff] %v390_v26  ;;  %v518_v26 = vld [vmem:[%s4719_s5 + $0x2480] sm:$0xff] }
  0x8e   : > { %393 = vst [vmem:[%s4724_s6 + $0x298] sm:$0xff] %v392_v27  ;;  %v520_v27 = vld [vmem:[%s4719_s5 + $0x2488] sm:$0xff] }
  0x8f   : > { %395 = vst [vmem:[%s4724_s6 + $0x2a0] sm:$0xff] %v394_v28  ;;  %v522_v28 = vld [vmem:[%s4719_s5 + $0x2500] sm:$0xff] }
  0x90   : > { %397 = vst [vmem:[%s4724_s6 + $0x2a8] sm:$0xff] %v396_v29  ;;  %v524_v29 = vld [vmem:[%s4719_s5 + $0x2508] sm:$0xff] }
  0x91   : > { %399 = vst [vmem:[%s4724_s6 + $0x2b0] sm:$0xff] %v398_v30  ;;  %v526_v30 = vld [vmem:[%s4719_s5 + $0x2580] sm:$0xff] }
  0x92   : > { %401 = vst [vmem:[%s4724_s6 + $0x2b8] sm:$0xff] %v400_v31  ;;  %v528_v31 = vld [vmem:[%s4719_s5 + $0x2588] sm:$0xff] }
  0x93   : > { %403 = vst [vmem:[%s4724_s6 + $0x2c0] sm:$0xff] %v402_v32  ;;  %v530_v32 = vld [vmem:[%s4719_s5 + $0x2600] sm:$0xff] }
  0x94   : > { %405 = vst [vmem:[%s4724_s6 + $0x2c8] sm:$0xff] %v404_v33  ;;  %v532_v33 = vld [vmem:[%s4719_s5 + $0x2608] sm:$0xff] }
  0x95   : > { %407 = vst [vmem:[%s4724_s6 + $0x2d0] sm:$0xff] %v406_v34  ;;  %v534_v34 = vld [vmem:[%s4719_s5 + $0x2680] sm:$0xff] }
  0x96   : > { %409 = vst [vmem:[%s4724_s6 + $0x2d8] sm:$0xff] %v408_v35  ;;  %v536_v35 = vld [vmem:[%s4719_s5 + $0x2688] sm:$0xff] }
  0x97   : > { %411 = vst [vmem:[%s4724_s6 + $0x2e0] sm:$0xff] %v410_v36  ;;  %v538_v36 = vld [vmem:[%s4719_s5 + $0x2700] sm:$0xff] }
  0x98   : > { %413 = vst [vmem:[%s4724_s6 + $0x2e8] sm:$0xff] %v412_v37  ;;  %v540_v37 = vld [vmem:[%s4719_s5 + $0x2708] sm:$0xff] }
  0x99   : > { %415 = vst [vmem:[%s4724_s6 + $0x2f0] sm:$0xff] %v414_v38  ;;  %v542_v38 = vld [vmem:[%s4719_s5 + $0x2780] sm:$0xff] }
  0x9a   : > { %417 = vst [vmem:[%s4724_s6 + $0x2f8] sm:$0xff] %v416_v39  ;;  %v544_v39 = vld [vmem:[%s4719_s5 + $0x2788] sm:$0xff] }
  0x9b   : > { %419 = vst [vmem:[%s4724_s6 + $0x300] sm:$0xff] %v418_v40  ;;  %v546_v40 = vld [vmem:[%s4719_s5 + $0x2800] sm:$0xff] }
  0x9c   : > { %421 = vst [vmem:[%s4724_s6 + $0x308] sm:$0xff] %v420_v41  ;;  %v548_v41 = vld [vmem:[%s4719_s5 + $0x2808] sm:$0xff] }
  0x9d   : > { %423 = vst [vmem:[%s4724_s6 + $0x310] sm:$0xff] %v422_v42  ;;  %v550_v42 = vld [vmem:[%s4719_s5 + $0x2880] sm:$0xff] }
  0x9e   : > { %425 = vst [vmem:[%s4724_s6 + $0x318] sm:$0xff] %v424_v43  ;;  %v552_v43 = vld [vmem:[%s4719_s5 + $0x2888] sm:$0xff] }
  0x9f   : > { %427 = vst [vmem:[%s4724_s6 + $0x320] sm:$0xff] %v426_v44  ;;  %v554_v44 = vld [vmem:[%s4719_s5 + $0x2900] sm:$0xff] }
  0xa0   : > { %429 = vst [vmem:[%s4724_s6 + $0x328] sm:$0xff] %v428_v45  ;;  %v556_v45 = vld [vmem:[%s4719_s5 + $0x2908] sm:$0xff] }
  0xa1   : > { %431 = vst [vmem:[%s4724_s6 + $0x330] sm:$0xff] %v430_v46  ;;  %v558_v46 = vld [vmem:[%s4719_s5 + $0x2980] sm:$0xff] }
  0xa2   : > { %433 = vst [vmem:[%s4724_s6 + $0x338] sm:$0xff] %v432_v47  ;;  %v560_v47 = vld [vmem:[%s4719_s5 + $0x2988] sm:$0xff] }
  0xa3   : > { %435 = vst [vmem:[%s4724_s6 + $0x340] sm:$0xff] %v434_v48  ;;  %v562_v48 = vld [vmem:[%s4719_s5 + $0x2a00] sm:$0xff] }
  0xa4   : > { %437 = vst [vmem:[%s4724_s6 + $0x348] sm:$0xff] %v436_v49  ;;  %v564_v49 = vld [vmem:[%s4719_s5 + $0x2a08] sm:$0xff] }
  0xa5   : > { %439 = vst [vmem:[%s4724_s6 + $0x350] sm:$0xff] %v438_v50  ;;  %v566_v50 = vld [vmem:[%s4719_s5 + $0x2a80] sm:$0xff] }
  0xa6   : > { %441 = vst [vmem:[%s4724_s6 + $0x358] sm:$0xff] %v440_v51  ;;  %v568_v51 = vld [vmem:[%s4719_s5 + $0x2a88] sm:$0xff] }
  0xa7   : > { %443 = vst [vmem:[%s4724_s6 + $0x360] sm:$0xff] %v442_v52  ;;  %v570_v52 = vld [vmem:[%s4719_s5 + $0x2b00] sm:$0xff] }
  0xa8   : > { %445 = vst [vmem:[%s4724_s6 + $0x368] sm:$0xff] %v444_v53  ;;  %v572_v53 = vld [vmem:[%s4719_s5 + $0x2b08] sm:$0xff] }
  0xa9   : > { %447 = vst [vmem:[%s4724_s6 + $0x370] sm:$0xff] %v446_v54  ;;  %v574_v54 = vld [vmem:[%s4719_s5 + $0x2b80] sm:$0xff] }
  0xaa   : > { %449 = vst [vmem:[%s4724_s6 + $0x378] sm:$0xff] %v448_v55  ;;  %v576_v55 = vld [vmem:[%s4719_s5 + $0x2b88] sm:$0xff] }
  0xab   : > { %451 = vst [vmem:[%s4724_s6 + $0x380] sm:$0xff] %v450_v56  ;;  %v578_v56 = vld [vmem:[%s4719_s5 + $0x2c00] sm:$0xff] }
  0xac   : > { %453 = vst [vmem:[%s4724_s6 + $0x388] sm:$0xff] %v452_v57  ;;  %v580_v57 = vld [vmem:[%s4719_s5 + $0x2c08] sm:$0xff] }
  0xad   : > { %455 = vst [vmem:[%s4724_s6 + $0x390] sm:$0xff] %v454_v58  ;;  %v582_v58 = vld [vmem:[%s4719_s5 + $0x2c80] sm:$0xff] }
  0xae   : > { %457 = vst [vmem:[%s4724_s6 + $0x398] sm:$0xff] %v456_v59  ;;  %v584_v59 = vld [vmem:[%s4719_s5 + $0x2c88] sm:$0xff] }
  0xaf   : > { %459 = vst [vmem:[%s4724_s6 + $0x3a0] sm:$0xff] %v458_v60  ;;  %v586_v60 = vld [vmem:[%s4719_s5 + $0x2d00] sm:$0xff] }
  0xb0   : > { %461 = vst [vmem:[%s4724_s6 + $0x3a8] sm:$0xff] %v460_v61  ;;  %v588_v61 = vld [vmem:[%s4719_s5 + $0x2d08] sm:$0xff] }
  0xb1   : > { %463 = vst [vmem:[%s4724_s6 + $0x3b0] sm:$0xff] %v462_v62  ;;  %v590_v62 = vld [vmem:[%s4719_s5 + $0x2d80] sm:$0xff] }
  0xb2   : > { %465 = vst [vmem:[%s4724_s6 + $0x3b8] sm:$0xff] %v464_v63  ;;  %v592_v63 = vld [vmem:[%s4719_s5 + $0x2d88] sm:$0xff] }
  0xb3   : > { %467 = vst [vmem:[%s4724_s6 + $0x3c0] sm:$0xff] %v466_v0  ;;  %v594_v0 = vld [vmem:[%s4719_s5 + $0x2e00] sm:$0xff] }
  0xb4   : > { %469 = vst [vmem:[%s4724_s6 + $0x3c8] sm:$0xff] %v468_v1  ;;  %v596_v1 = vld [vmem:[%s4719_s5 + $0x2e08] sm:$0xff] }
  0xb5   : > { %471 = vst [vmem:[%s4724_s6 + $0x3d0] sm:$0xff] %v470_v2  ;;  %v598_v2 = vld [vmem:[%s4719_s5 + $0x2e80] sm:$0xff] }
  0xb6   : > { %473 = vst [vmem:[%s4724_s6 + $0x3d8] sm:$0xff] %v472_v3  ;;  %v600_v3 = vld [vmem:[%s4719_s5 + $0x2e88] sm:$0xff] }
  0xb7   : > { %475 = vst [vmem:[%s4724_s6 + $0x3e0] sm:$0xff] %v474_v4  ;;  %v602_v4 = vld [vmem:[%s4719_s5 + $0x2f00] sm:$0xff] }
  0xb8   : > { %477 = vst [vmem:[%s4724_s6 + $0x3e8] sm:$0xff] %v476_v5  ;;  %v604_v5 = vld [vmem:[%s4719_s5 + $0x2f08] sm:$0xff] }
  0xb9   : > { %479 = vst [vmem:[%s4724_s6 + $0x3f0] sm:$0xff] %v478_v6  ;;  %v606_v6 = vld [vmem:[%s4719_s5 + $0x2f80] sm:$0xff] }
  0xba   : > { %481 = vst [vmem:[%s4724_s6 + $0x3f8] sm:$0xff] %v480_v7  ;;  %v608_v7 = vld [vmem:[%s4719_s5 + $0x2f88] sm:$0xff] }
  0xbb   : > { %483 = vst [vmem:[%s4724_s6 + $0x400] sm:$0xff] %v482_v8  ;;  %v610_v8 = vld [vmem:[%s4719_s5 + $0x3000] sm:$0xff] }
  0xbc   : > { %485 = vst [vmem:[%s4724_s6 + $0x408] sm:$0xff] %v484_v9  ;;  %v612_v9 = vld [vmem:[%s4719_s5 + $0x3008] sm:$0xff] }
  0xbd   : > { %487 = vst [vmem:[%s4724_s6 + $0x410] sm:$0xff] %v486_v10  ;;  %v614_v10 = vld [vmem:[%s4719_s5 + $0x3080] sm:$0xff] }
  0xbe   : > { %489 = vst [vmem:[%s4724_s6 + $0x418] sm:$0xff] %v488_v11  ;;  %v616_v11 = vld [vmem:[%s4719_s5 + $0x3088] sm:$0xff] }
  0xbf   : > { %491 = vst [vmem:[%s4724_s6 + $0x420] sm:$0xff] %v490_v12  ;;  %v618_v12 = vld [vmem:[%s4719_s5 + $0x3100] sm:$0xff] }
  0xc0   : > { %493 = vst [vmem:[%s4724_s6 + $0x428] sm:$0xff] %v492_v13  ;;  %v620_v13 = vld [vmem:[%s4719_s5 + $0x3108] sm:$0xff] }
  0xc1   : > { %495 = vst [vmem:[%s4724_s6 + $0x430] sm:$0xff] %v494_v14  ;;  %v622_v14 = vld [vmem:[%s4719_s5 + $0x3180] sm:$0xff] }
  0xc2   : > { %497 = vst [vmem:[%s4724_s6 + $0x438] sm:$0xff] %v496_v15  ;;  %v624_v15 = vld [vmem:[%s4719_s5 + $0x3188] sm:$0xff] }
  0xc3   : > { %499 = vst [vmem:[%s4724_s6 + $0x440] sm:$0xff] %v498_v16  ;;  %v626_v16 = vld [vmem:[%s4719_s5 + $0x3200] sm:$0xff] }
  0xc4   : > { %501 = vst [vmem:[%s4724_s6 + $0x448] sm:$0xff] %v500_v17  ;;  %v628_v17 = vld [vmem:[%s4719_s5 + $0x3208] sm:$0xff] }
  0xc5   : > { %503 = vst [vmem:[%s4724_s6 + $0x450] sm:$0xff] %v502_v18  ;;  %v630_v18 = vld [vmem:[%s4719_s5 + $0x3280] sm:$0xff] }
  0xc6   : > { %505 = vst [vmem:[%s4724_s6 + $0x458] sm:$0xff] %v504_v19  ;;  %v632_v19 = vld [vmem:[%s4719_s5 + $0x3288] sm:$0xff] }
  0xc7   : > { %507 = vst [vmem:[%s4724_s6 + $0x460] sm:$0xff] %v506_v20  ;;  %v634_v20 = vld [vmem:[%s4719_s5 + $0x3300] sm:$0xff] }
  0xc8   : > { %509 = vst [vmem:[%s4724_s6 + $0x468] sm:$0xff] %v508_v21  ;;  %v636_v21 = vld [vmem:[%s4719_s5 + $0x3308] sm:$0xff] }
  0xc9   : > { %511 = vst [vmem:[%s4724_s6 + $0x470] sm:$0xff] %v510_v22  ;;  %v638_v22 = vld [vmem:[%s4719_s5 + $0x3380] sm:$0xff] }
  0xca   : > { %513 = vst [vmem:[%s4724_s6 + $0x478] sm:$0xff] %v512_v23  ;;  %v640_v23 = vld [vmem:[%s4719_s5 + $0x3388] sm:$0xff] }
  0xcb   : > { %515 = vst [vmem:[%s4724_s6 + $0x480] sm:$0xff] %v514_v24  ;;  %v642_v24 = vld [vmem:[%s4719_s5 + $0x3400] sm:$0xff] }
  0xcc   : > { %517 = vst [vmem:[%s4724_s6 + $0x488] sm:$0xff] %v516_v25  ;;  %v644_v25 = vld [vmem:[%s4719_s5 + $0x3408] sm:$0xff] }
  0xcd   : > { %519 = vst [vmem:[%s4724_s6 + $0x490] sm:$0xff] %v518_v26  ;;  %v646_v26 = vld [vmem:[%s4719_s5 + $0x3480] sm:$0xff] }
  0xce   : > { %521 = vst [vmem:[%s4724_s6 + $0x498] sm:$0xff] %v520_v27  ;;  %v648_v27 = vld [vmem:[%s4719_s5 + $0x3488] sm:$0xff] }
  0xcf   : > { %523 = vst [vmem:[%s4724_s6 + $0x4a0] sm:$0xff] %v522_v28  ;;  %v650_v28 = vld [vmem:[%s4719_s5 + $0x3500] sm:$0xff] }
  0xd0   : > { %525 = vst [vmem:[%s4724_s6 + $0x4a8] sm:$0xff] %v524_v29  ;;  %v652_v29 = vld [vmem:[%s4719_s5 + $0x3508] sm:$0xff] }
  0xd1   : > { %527 = vst [vmem:[%s4724_s6 + $0x4b0] sm:$0xff] %v526_v30  ;;  %v654_v30 = vld [vmem:[%s4719_s5 + $0x3580] sm:$0xff] }
  0xd2   : > { %529 = vst [vmem:[%s4724_s6 + $0x4b8] sm:$0xff] %v528_v31  ;;  %v656_v31 = vld [vmem:[%s4719_s5 + $0x3588] sm:$0xff] }
  0xd3   : > { %531 = vst [vmem:[%s4724_s6 + $0x4c0] sm:$0xff] %v530_v32  ;;  %v658_v32 = vld [vmem:[%s4719_s5 + $0x3600] sm:$0xff] }
  0xd4   : > { %533 = vst [vmem:[%s4724_s6 + $0x4c8] sm:$0xff] %v532_v33  ;;  %v660_v33 = vld [vmem:[%s4719_s5 + $0x3608] sm:$0xff] }
  0xd5   : > { %535 = vst [vmem:[%s4724_s6 + $0x4d0] sm:$0xff] %v534_v34  ;;  %v662_v34 = vld [vmem:[%s4719_s5 + $0x3680] sm:$0xff] }
  0xd6   : > { %537 = vst [vmem:[%s4724_s6 + $0x4d8] sm:$0xff] %v536_v35  ;;  %v664_v35 = vld [vmem:[%s4719_s5 + $0x3688] sm:$0xff] }
  0xd7   : > { %539 = vst [vmem:[%s4724_s6 + $0x4e0] sm:$0xff] %v538_v36  ;;  %v666_v36 = vld [vmem:[%s4719_s5 + $0x3700] sm:$0xff] }
  0xd8   : > { %541 = vst [vmem:[%s4724_s6 + $0x4e8] sm:$0xff] %v540_v37  ;;  %v668_v37 = vld [vmem:[%s4719_s5 + $0x3708] sm:$0xff] }
  0xd9   : > { %543 = vst [vmem:[%s4724_s6 + $0x4f0] sm:$0xff] %v542_v38  ;;  %v670_v38 = vld [vmem:[%s4719_s5 + $0x3780] sm:$0xff] }
  0xda   : > { %545 = vst [vmem:[%s4724_s6 + $0x4f8] sm:$0xff] %v544_v39  ;;  %v672_v39 = vld [vmem:[%s4719_s5 + $0x3788] sm:$0xff] }
  0xdb   : > { %547 = vst [vmem:[%s4724_s6 + $0x500] sm:$0xff] %v546_v40  ;;  %v674_v40 = vld [vmem:[%s4719_s5 + $0x3800] sm:$0xff] }
  0xdc   : > { %549 = vst [vmem:[%s4724_s6 + $0x508] sm:$0xff] %v548_v41  ;;  %v676_v41 = vld [vmem:[%s4719_s5 + $0x3808] sm:$0xff] }
  0xdd   : > { %551 = vst [vmem:[%s4724_s6 + $0x510] sm:$0xff] %v550_v42  ;;  %v678_v42 = vld [vmem:[%s4719_s5 + $0x3880] sm:$0xff] }
  0xde   : > { %553 = vst [vmem:[%s4724_s6 + $0x518] sm:$0xff] %v552_v43  ;;  %v680_v43 = vld [vmem:[%s4719_s5 + $0x3888] sm:$0xff] }
  0xdf   : > { %555 = vst [vmem:[%s4724_s6 + $0x520] sm:$0xff] %v554_v44  ;;  %v682_v44 = vld [vmem:[%s4719_s5 + $0x3900] sm:$0xff] }
  0xe0   : > { %557 = vst [vmem:[%s4724_s6 + $0x528] sm:$0xff] %v556_v45  ;;  %v684_v45 = vld [vmem:[%s4719_s5 + $0x3908] sm:$0xff] }
  0xe1   : > { %559 = vst [vmem:[%s4724_s6 + $0x530] sm:$0xff] %v558_v46  ;;  %v686_v46 = vld [vmem:[%s4719_s5 + $0x3980] sm:$0xff] }
  0xe2   : > { %561 = vst [vmem:[%s4724_s6 + $0x538] sm:$0xff] %v560_v47  ;;  %v688_v47 = vld [vmem:[%s4719_s5 + $0x3988] sm:$0xff] }
  0xe3   : > { %563 = vst [vmem:[%s4724_s6 + $0x540] sm:$0xff] %v562_v48  ;;  %v690_v48 = vld [vmem:[%s4719_s5 + $0x3a00] sm:$0xff] }
  0xe4   : > { %565 = vst [vmem:[%s4724_s6 + $0x548] sm:$0xff] %v564_v49  ;;  %v692_v49 = vld [vmem:[%s4719_s5 + $0x3a08] sm:$0xff] }
  0xe5   : > { %567 = vst [vmem:[%s4724_s6 + $0x550] sm:$0xff] %v566_v50  ;;  %v694_v50 = vld [vmem:[%s4719_s5 + $0x3a80] sm:$0xff] }
  0xe6   : > { %569 = vst [vmem:[%s4724_s6 + $0x558] sm:$0xff] %v568_v51  ;;  %v696_v51 = vld [vmem:[%s4719_s5 + $0x3a88] sm:$0xff] }
  0xe7   : > { %571 = vst [vmem:[%s4724_s6 + $0x560] sm:$0xff] %v570_v52  ;;  %v698_v52 = vld [vmem:[%s4719_s5 + $0x3b00] sm:$0xff] }
  0xe8   : > { %573 = vst [vmem:[%s4724_s6 + $0x568] sm:$0xff] %v572_v53  ;;  %v700_v53 = vld [vmem:[%s4719_s5 + $0x3b08] sm:$0xff] }
  0xe9   : > { %575 = vst [vmem:[%s4724_s6 + $0x570] sm:$0xff] %v574_v54  ;;  %v702_v54 = vld [vmem:[%s4719_s5 + $0x3b80] sm:$0xff] }
  0xea   : > { %577 = vst [vmem:[%s4724_s6 + $0x578] sm:$0xff] %v576_v55  ;;  %v704_v55 = vld [vmem:[%s4719_s5 + $0x3b88] sm:$0xff] }
  0xeb   : > { %579 = vst [vmem:[%s4724_s6 + $0x580] sm:$0xff] %v578_v56  ;;  %v706_v56 = vld [vmem:[%s4719_s5 + $0x3c00] sm:$0xff] }
  0xec   : > { %581 = vst [vmem:[%s4724_s6 + $0x588] sm:$0xff] %v580_v57  ;;  %v708_v57 = vld [vmem:[%s4719_s5 + $0x3c08] sm:$0xff] }
  0xed   : > { %583 = vst [vmem:[%s4724_s6 + $0x590] sm:$0xff] %v582_v58  ;;  %v710_v58 = vld [vmem:[%s4719_s5 + $0x3c80] sm:$0xff] }
  0xee   : > { %585 = vst [vmem:[%s4724_s6 + $0x598] sm:$0xff] %v584_v59  ;;  %v712_v59 = vld [vmem:[%s4719_s5 + $0x3c88] sm:$0xff] }
  0xef   : > { %587 = vst [vmem:[%s4724_s6 + $0x5a0] sm:$0xff] %v586_v60  ;;  %v714_v60 = vld [vmem:[%s4719_s5 + $0x3d00] sm:$0xff] }
  0xf0   : > { %589 = vst [vmem:[%s4724_s6 + $0x5a8] sm:$0xff] %v588_v61  ;;  %v716_v61 = vld [vmem:[%s4719_s5 + $0x3d08] sm:$0xff] }
  0xf1   : > { %591 = vst [vmem:[%s4724_s6 + $0x5b0] sm:$0xff] %v590_v62  ;;  %v718_v62 = vld [vmem:[%s4719_s5 + $0x3d80] sm:$0xff] }
  0xf2   : > { %593 = vst [vmem:[%s4724_s6 + $0x5b8] sm:$0xff] %v592_v63  ;;  %v720_v63 = vld [vmem:[%s4719_s5 + $0x3d88] sm:$0xff] }
  0xf3   : > { %595 = vst [vmem:[%s4724_s6 + $0x5c0] sm:$0xff] %v594_v0  ;;  %v722_v0 = vld [vmem:[%s4719_s5 + $0x3e00] sm:$0xff] }
  0xf4   : > { %597 = vst [vmem:[%s4724_s6 + $0x5c8] sm:$0xff] %v596_v1  ;;  %v724_v1 = vld [vmem:[%s4719_s5 + $0x3e08] sm:$0xff] }
  0xf5   : > { %599 = vst [vmem:[%s4724_s6 + $0x5d0] sm:$0xff] %v598_v2  ;;  %v726_v2 = vld [vmem:[%s4719_s5 + $0x3e80] sm:$0xff] }
  0xf6   : > { %601 = vst [vmem:[%s4724_s6 + $0x5d8] sm:$0xff] %v600_v3  ;;  %v728_v3 = vld [vmem:[%s4719_s5 + $0x3e88] sm:$0xff] }
  0xf7   : > { %603 = vst [vmem:[%s4724_s6 + $0x5e0] sm:$0xff] %v602_v4  ;;  %v730_v4 = vld [vmem:[%s4719_s5 + $0x3f00] sm:$0xff] }
  0xf8   : > { %605 = vst [vmem:[%s4724_s6 + $0x5e8] sm:$0xff] %v604_v5  ;;  %v732_v5 = vld [vmem:[%s4719_s5 + $0x3f08] sm:$0xff] }
  0xf9   : > { %607 = vst [vmem:[%s4724_s6 + $0x5f0] sm:$0xff] %v606_v6  ;;  %v734_v6 = vld [vmem:[%s4719_s5 + $0x3f80] sm:$0xff] }
  0xfa   : > { %609 = vst [vmem:[%s4724_s6 + $0x5f8] sm:$0xff] %v608_v7  ;;  %v736_v7 = vld [vmem:[%s4719_s5 + $0x3f88] sm:$0xff] }
  0xfb   : > { %611 = vst [vmem:[%s4724_s6 + $0x600] sm:$0xff] %v610_v8 }
  0xfc   : > { %613 = vst [vmem:[%s4724_s6 + $0x608] sm:$0xff] %v612_v9 }
  0xfd   : > { %615 = vst [vmem:[%s4724_s6 + $0x610] sm:$0xff] %v614_v10 }
  0xfe   : > { %617 = vst [vmem:[%s4724_s6 + $0x618] sm:$0xff] %v616_v11 }
  0xff   : > { %619 = vst [vmem:[%s4724_s6 + $0x620] sm:$0xff] %v618_v12 }
 0x100   : > { %621 = vst [vmem:[%s4724_s6 + $0x628] sm:$0xff] %v620_v13 }
 0x101   : > { %623 = vst [vmem:[%s4724_s6 + $0x630] sm:$0xff] %v622_v14 }
 0x102   : > { %625 = vst [vmem:[%s4724_s6 + $0x638] sm:$0xff] %v624_v15 }
 0x103   : > { %627 = vst [vmem:[%s4724_s6 + $0x640] sm:$0xff] %v626_v16 }
 0x104   : > { %629 = vst [vmem:[%s4724_s6 + $0x648] sm:$0xff] %v628_v17 }
 0x105   : > { %631 = vst [vmem:[%s4724_s6 + $0x650] sm:$0xff] %v630_v18 }
 0x106   : > { %633 = vst [vmem:[%s4724_s6 + $0x658] sm:$0xff] %v632_v19 }
 0x107   : > { %635 = vst [vmem:[%s4724_s6 + $0x660] sm:$0xff] %v634_v20 }
 0x108   : > { %637 = vst [vmem:[%s4724_s6 + $0x668] sm:$0xff] %v636_v21 }
 0x109   : > { %639 = vst [vmem:[%s4724_s6 + $0x670] sm:$0xff] %v638_v22 }
 0x10a   : > { %641 = vst [vmem:[%s4724_s6 + $0x678] sm:$0xff] %v640_v23 }
 0x10b   : > { %643 = vst [vmem:[%s4724_s6 + $0x680] sm:$0xff] %v642_v24 }
 0x10c   : > { %645 = vst [vmem:[%s4724_s6 + $0x688] sm:$0xff] %v644_v25 }
 0x10d   : > { %647 = vst [vmem:[%s4724_s6 + $0x690] sm:$0xff] %v646_v26 }
 0x10e   : > { %649 = vst [vmem:[%s4724_s6 + $0x698] sm:$0xff] %v648_v27 }
 0x10f   : > { %651 = vst [vmem:[%s4724_s6 + $0x6a0] sm:$0xff] %v650_v28 }
 0x110   : > { %653 = vst [vmem:[%s4724_s6 + $0x6a8] sm:$0xff] %v652_v29 }
 0x111   : > { %655 = vst [vmem:[%s4724_s6 + $0x6b0] sm:$0xff] %v654_v30 }
 0x112   : > { %657 = vst [vmem:[%s4724_s6 + $0x6b8] sm:$0xff] %v656_v31 }
 0x113   : > { %659 = vst [vmem:[%s4724_s6 + $0x6c0] sm:$0xff] %v658_v32 }
 0x114   : > { %661 = vst [vmem:[%s4724_s6 + $0x6c8] sm:$0xff] %v660_v33 }
 0x115   : > { %663 = vst [vmem:[%s4724_s6 + $0x6d0] sm:$0xff] %v662_v34 }
 0x116   : > { %665 = vst [vmem:[%s4724_s6 + $0x6d8] sm:$0xff] %v664_v35 }
 0x117   : > { %667 = vst [vmem:[%s4724_s6 + $0x6e0] sm:$0xff] %v666_v36 }
 0x118   : > { %669 = vst [vmem:[%s4724_s6 + $0x6e8] sm:$0xff] %v668_v37 }
 0x119   : > { %671 = vst [vmem:[%s4724_s6 + $0x6f0] sm:$0xff] %v670_v38 }
 0x11a   : > { %673 = vst [vmem:[%s4724_s6 + $0x6f8] sm:$0xff] %v672_v39 }
 0x11b   : > { %675 = vst [vmem:[%s4724_s6 + $0x700] sm:$0xff] %v674_v40 }
 0x11c   : > { %677 = vst [vmem:[%s4724_s6 + $0x708] sm:$0xff] %v676_v41 }
 0x11d   : > { %679 = vst [vmem:[%s4724_s6 + $0x710] sm:$0xff] %v678_v42 }
 0x11e   : > { %681 = vst [vmem:[%s4724_s6 + $0x718] sm:$0xff] %v680_v43 }
 0x11f   : > { %683 = vst [vmem:[%s4724_s6 + $0x720] sm:$0xff] %v682_v44 }
 0x120   : > { %685 = vst [vmem:[%s4724_s6 + $0x728] sm:$0xff] %v684_v45 }
 0x121   : > { %687 = vst [vmem:[%s4724_s6 + $0x730] sm:$0xff] %v686_v46 }
 0x122   : > { %689 = vst [vmem:[%s4724_s6 + $0x738] sm:$0xff] %v688_v47 }
 0x123   : > { %691 = vst [vmem:[%s4724_s6 + $0x740] sm:$0xff] %v690_v48 }
 0x124   : > { %693 = vst [vmem:[%s4724_s6 + $0x748] sm:$0xff] %v692_v49 }
 0x125   : > { %695 = vst [vmem:[%s4724_s6 + $0x750] sm:$0xff] %v694_v50 }
 0x126   : > { %697 = vst [vmem:[%s4724_s6 + $0x758] sm:$0xff] %v696_v51 }
 0x127   : > { %699 = vst [vmem:[%s4724_s6 + $0x760] sm:$0xff] %v698_v52 }
 0x128   : > { %701 = vst [vmem:[%s4724_s6 + $0x768] sm:$0xff] %v700_v53 }
 0x129   : > { %703 = vst [vmem:[%s4724_s6 + $0x770] sm:$0xff] %v702_v54 }
 0x12a   : > { %705 = vst [vmem:[%s4724_s6 + $0x778] sm:$0xff] %v704_v55 }
 0x12b   : > { %707 = vst [vmem:[%s4724_s6 + $0x780] sm:$0xff] %v706_v56 }
 0x12c   : > { %709 = vst [vmem:[%s4724_s6 + $0x788] sm:$0xff] %v708_v57 }
 0x12d   : > { %711 = vst [vmem:[%s4724_s6 + $0x790] sm:$0xff] %v710_v58 }
 0x12e   : > { %713 = vst [vmem:[%s4724_s6 + $0x798] sm:$0xff] %v712_v59 }
 0x12f   : > { %715 = vst [vmem:[%s4724_s6 + $0x7a0] sm:$0xff] %v714_v60 }
 0x130   : > { %717 = vst [vmem:[%s4724_s6 + $0x7a8] sm:$0xff] %v716_v61 }
 0x131   : > { %719 = vst [vmem:[%s4724_s6 + $0x7b0] sm:$0xff] %v718_v62 }
 0x132   : > { %721 = vst [vmem:[%s4724_s6 + $0x7b8] sm:$0xff] %v720_v63 }
 0x133   : > { %723 = vst [vmem:[%s4724_s6 + $0x7c0] sm:$0xff] %v722_v0 }
 0x134   : > { %725 = vst [vmem:[%s4724_s6 + $0x7c8] sm:$0xff] %v724_v1 }
 0x135   : > { %727 = vst [vmem:[%s4724_s6 + $0x7d0] sm:$0xff] %v726_v2 }
 0x136   : > { %729 = vst [vmem:[%s4724_s6 + $0x7d8] sm:$0xff] %v728_v3 }
 0x137   : > { %731 = vst [vmem:[%s4724_s6 + $0x7e0] sm:$0xff] %v730_v4 }
 0x138   : > { %733 = vst [vmem:[%s4724_s6 + $0x7e8] sm:$0xff] %v732_v5 }
 0x139   : > { %735 = vst [vmem:[%s4724_s6 + $0x7f0] sm:$0xff] %v734_v6 }
 0x13a   : > { %737 = vst [vmem:[%s4724_s6 + $0x7f8] sm:$0xff] %v736_v7 }
 0x13b PF: > { %p3074_p0 = scmp.ge.s32.totalorder %s4583_s22, 1  ;;  %p750_p1 = scmp.lt.s32.totalorder %s4583_s22, 33 }
 0x13d   : > { %p751_p2 = pnand %p3074_p0, %p750_p1 }
 0x13e   : > { %s757_s0 = sand.u32 (!%p751_p2), 1, %s4559_s16   ;;  %s764_s23 = sand.u32 (!%p751_p2), 1, %s4551_s14  }
 0x13f   : > { %754 = sbr.rel (%p751_p2) target bundleno = 772 (0x304), region = 70  ;;  %s3075_s28 = sshll.u32 (!%p751_p2), %s757_s0, 6 }
 0x140   : > { %s3076_s7 = sshll.u32 (!%p751_p2), %s764_s23, 11  ;;  %s791_s11 = sand.u32 (!%p751_p2), 1, %s4543_s12  }
 0x141   : > { %s3078_s26 = sshll.u32 (!%p751_p2), %s4571_s19, 2  ;;  %s3077_s27 = sshll.u32 (!%p751_p2), %s791_s11, 6 }
 0x142   : > { %p799_p3 = scmp.lt.s32.totalorder (!%p751_p2), %s3078_s26, 31  ;;  %s5244_s6 = scalar_lea.vmem (!%p751_p2), [#allocation2], %s3075_s28 }
 0x143   : > { %s5246_s1 = scalar_lea.vmem (!%p751_p2), [#allocation3], %s3076_s7  ;;  %s5248_s25 = scalar_lea.vmem (!%p751_p2), [#allocation4], %s3077_s27 }
 0x144   : > { %s5946_s26 = smov (!%p799_p3, %s3078_s26), 31  ;;  %p3079_p4 = scmp.ne.s32.totalorder %s4567_s18, 0 }
 0x145   : > { %s801_s5 = scalar_lea.vmem %s5917_s2, %s5946_s26 }
 0x146   : > { %808 = sbr.rel (%p3079_p4) target bundleno = 342 (0x156), region = 82 }
 0x14b   : > { %v809_v8 = vld [vmem:[%s801_s5] sm:$0xf] }
 0x14c   : > { %v811_v9 = vperm.slane %v809_v8, 0  ;;  %v812_v10 = vperm.slane %v809_v8, 1  ;;  %v813_v11 = vperm.slane %v809_v8, 2  ;;  %v814_v12 = vperm.slane %v809_v8, 3 }
 0x14e   : > { %819 = vst [vmem:[%s5248_s25] sm:$0xff] %v811_v9 }
 0x14f   : > { %823 = vst [vmem:[%s5248_s25 + $0x20] sm:$0xff] %v811_v9 }
 0x150   : > { %820 = vst [vmem:[%s5248_s25 + $0x8] sm:$0xff] %v812_v10 }
 0x151   : > { %824 = vst [vmem:[%s5248_s25 + $0x28] sm:$0xff] %v812_v10 }
 0x152   : > { %821 = vst [vmem:[%s5248_s25 + $0x10] sm:$0xff] %v813_v11 }
 0x153   : > { %825 = vst [vmem:[%s5248_s25 + $0x30] sm:$0xff] %v813_v11 }
 0x154   : > { %822 = vst [vmem:[%s5248_s25 + $0x18] sm:$0xff] %v814_v12 }
 0x155   : > { %826 = vst [vmem:[%s5248_s25 + $0x38] sm:$0xff] %v814_v12 }
 0x156 PF: > { %v3226_v13 = vld [vmem:[%s5246_s1 + $0xe0] sm:$0xf]  ;;  %v4182_v14 = vld [vmem:[%s5246_s1 + $0xec] sm:$0xf0]  ;;  %p4136_p5 = scmp.ne.s32.totalorder %s4567_s18, 3 }
 0x157   : > { %v3354_v15 = vld [vmem:[%s5246_s1 + $0x1e0] sm:$0xf]  ;;  %v3227_v16 = vor.u32 %v4182_v14, %v3226_v13  ;;  %v4214_v17 = vld [vmem:[%s5246_s1 + $0x1ec] sm:$0xf0] }
 0x158   : > { %v3482_v18 = vld [vmem:[%s5246_s1 + $0x2e0] sm:$0xf]  ;;  %v4246_v19 = vld [vmem:[%s5246_s1 + $0x2ec] sm:$0xf0]  ;;  %v3355_v20 = vor.u32 %v4214_v17, %v3354_v15 }
 0x159   : > { %v3483_v21 = vor.u32 %v4246_v19, %v3482_v18  ;;  %v3610_v22 = vld [vmem:[%s5246_s1 + $0x3e0] sm:$0xf]  ;;  %v4278_v23 = vld [vmem:[%s5246_s1 + $0x3ec] sm:$0xf0]  ;;  %2419 = vmatpush.bf16.msra.mxu0 %v3227_v16 }
 0x15a   : > { %v3210_v24 = vld [vmem:[%s5246_s1 + $0xc0] sm:$0xf]  ;;  %v3611_v25 = vor.u32 %v4278_v23, %v3610_v22  ;;  %v4178_v26 = vld [vmem:[%s5246_s1 + $0xcc] sm:$0xf0]  ;;  %2433 = vmatpush.bf16.msra.mxu1 %v3355_v20 }
 0x15b   : > { %v3338_v27 = vld [vmem:[%s5246_s1 + $0x1c0] sm:$0xf]  ;;  %v4210_v28 = vld [vmem:[%s5246_s1 + $0x1cc] sm:$0xf0]  ;;  %2447 = vmatpush.bf16.msra.mxu2 %v3483_v21  ;;  %v3211_v29 = vor.u32 %v4178_v26, %v3210_v24 }
 0x15c   : > { %v3339_v30 = vor.u32 %v4210_v28, %v3338_v27  ;;  %v3466_v31 = vld [vmem:[%s5246_s1 + $0x2c0] sm:$0xf]  ;;  %v4242_v32 = vld [vmem:[%s5246_s1 + $0x2cc] sm:$0xf0]  ;;  %2461 = vmatpush.bf16.msra.mxu3 %v3611_v25 }
 0x15d   : > { %v3594_v33 = vld [vmem:[%s5246_s1 + $0x3c0] sm:$0xf]  ;;  %v3467_v34 = vor.u32 %v4242_v32, %v3466_v31  ;;  %v4274_v35 = vld [vmem:[%s5246_s1 + $0x3cc] sm:$0xf0]  ;;  %2420 = vmatpush.bf16.msra.mxu0 %v3211_v29 }
 0x15e   : > { %v3194_v36 = vld [vmem:[%s5246_s1 + $0xa0] sm:$0xf]  ;;  %v4174_v37 = vld [vmem:[%s5246_s1 + $0xac] sm:$0xf0]  ;;  %v3595_v38 = vor.u32 %v4274_v35, %v3594_v33  ;;  %2434 = vmatpush.bf16.msra.mxu1 %v3339_v30 }
 0x15f   : > { %v3322_v39 = vld [vmem:[%s5246_s1 + $0x1a0] sm:$0xf]  ;;  %v4206_v40 = vld [vmem:[%s5246_s1 + $0x1ac] sm:$0xf0]  ;;  %v3195_v42 = vor.u32 %v4174_v37, %v3194_v36  ;;  %2448 = vmatpush.bf16.msra.mxu2 %v3467_v34 }
 0x160   : > { %v3450_v41 = vld [vmem:[%s5246_s1 + $0x2a0] sm:$0xf]  ;;  %v4238_v43 = vld [vmem:[%s5246_s1 + $0x2ac] sm:$0xf0]  ;;  %v3323_v46 = vor.u32 %v4206_v40, %v3322_v39  ;;  %2462 = vmatpush.bf16.msra.mxu3 %v3595_v38 }
 0x161   : > { %v3578_v44 = vld [vmem:[%s5246_s1 + $0x3a0] sm:$0xf]  ;;  %v4270_v45 = vld [vmem:[%s5246_s1 + $0x3ac] sm:$0xf0]  ;;  %v3451_v47 = vor.u32 %v4238_v43, %v3450_v41  ;;  %2421 = vmatpush.bf16.msra.mxu0 %v3195_v42 }
 0x162   : > { %v3178_v48 = vld [vmem:[%s5246_s1 + $0x80] sm:$0xf]  ;;  %v4170_v49 = vld [vmem:[%s5246_s1 + $0x8c] sm:$0xf0]  ;;  %v3579_v51 = vor.u32 %v4270_v45, %v3578_v44  ;;  %2435 = vmatpush.bf16.msra.mxu1 %v3323_v46 }
 0x163   : > { %v3306_v50 = vld [vmem:[%s5246_s1 + $0x180] sm:$0xf]  ;;  %v4202_v52 = vld [vmem:[%s5246_s1 + $0x18c] sm:$0xf0]  ;;  %v3179_v57 = vor.u32 %v4170_v49, %v3178_v48  ;;  %2449 = vmatpush.bf16.msra.mxu2 %v3451_v47 }
 0x164   : > { %v3434_v53 = vld [vmem:[%s5246_s1 + $0x280] sm:$0xf]  ;;  %v4234_v54 = vld [vmem:[%s5246_s1 + $0x28c] sm:$0xf0]  ;;  %v3307_v58 = vor.u32 %v4202_v52, %v3306_v50  ;;  %2463 = vmatpush.bf16.msra.mxu3 %v3579_v51 }
 0x165   : > { %v3562_v55 = vld [vmem:[%s5246_s1 + $0x380] sm:$0xf]  ;;  %v4266_v56 = vld [vmem:[%s5246_s1 + $0x38c] sm:$0xf0]  ;;  %v3435_v59 = vor.u32 %v4234_v54, %v3434_v53  ;;  %2422 = vmatpush.bf16.msra.mxu0 %v3179_v57 }
 0x166   : > { %v3162_v60 = vld [vmem:[%s5246_s1 + $0x60] sm:$0xf]  ;;  %v4166_v61 = vld [vmem:[%s5246_s1 + $0x6c] sm:$0xf0]  ;;  %v3563_v63 = vor.u32 %v4266_v56, %v3562_v55  ;;  %2436 = vmatpush.bf16.msra.mxu1 %v3307_v58 }
 0x167   : > { %v3290_v62 = vld [vmem:[%s5246_s1 + $0x160] sm:$0xf]  ;;  %v4198_v0 = vld [vmem:[%s5246_s1 + $0x16c] sm:$0xf0]  ;;  %v3163_v5 = vor.u32 %v4166_v61, %v3162_v60  ;;  %2450 = vmatpush.bf16.msra.mxu2 %v3435_v59 }
 0x168   : > { %v3418_v1 = vld [vmem:[%s5246_s1 + $0x260] sm:$0xf]  ;;  %v4230_v2 = vld [vmem:[%s5246_s1 + $0x26c] sm:$0xf0]  ;;  %v3291_v6 = vor.u32 %v4198_v0, %v3290_v62  ;;  %2464 = vmatpush.bf16.msra.mxu3 %v3563_v63 }
 0x169   : > { %v3546_v3 = vld [vmem:[%s5246_s1 + $0x360] sm:$0xf]  ;;  %v4262_v4 = vld [vmem:[%s5246_s1 + $0x36c] sm:$0xf0]  ;;  %v3419_v7 = vor.u32 %v4230_v2, %v3418_v1  ;;  %2423 = vmatpush.bf16.msra.mxu0 %v3163_v5 }
 0x16a   : > { %v3146_v8 = vld [vmem:[%s5246_s1 + $0x40] sm:$0xf]  ;;  %v4162_v9 = vld [vmem:[%s5246_s1 + $0x4c] sm:$0xf0]  ;;  %v3547_v11 = vor.u32 %v4262_v4, %v3546_v3  ;;  %2437 = vmatpush.bf16.msra.mxu1 %v3291_v6  ;;  %v3090_v3 = vld [vmem:[%s5244_s6 + $0x8] sm:$0xf] }
 0x16b   : > { %v3274_v10 = vld [vmem:[%s5246_s1 + $0x140] sm:$0xf]  ;;  %v4194_v12 = vld [vmem:[%s5246_s1 + $0x14c] sm:$0xf0]  ;;  %v3147_v17 = vor.u32 %v4162_v9, %v3146_v8  ;;  %2451 = vmatpush.bf16.msra.mxu2 %v3419_v7  ;;  %v4149_v8 = vld [vmem:[%s5244_s6 + $0x24] sm:$0xf0] }
 0x16c   : > { %v3402_v13 = vld [vmem:[%s5246_s1 + $0x240] sm:$0xf]  ;;  %v4226_v14 = vld [vmem:[%s5246_s1 + $0x24c] sm:$0xf0]  ;;  %v3275_v18 = vor.u32 %v4194_v12, %v3274_v10  ;;  %2465 = vmatpush.bf16.msra.mxu3 %v3547_v11 }
 0x16d   : > { %v3530_v15 = vld [vmem:[%s5246_s1 + $0x340] sm:$0xf]  ;;  %v4258_v16 = vld [vmem:[%s5246_s1 + $0x34c] sm:$0xf0]  ;;  %v3403_v19 = vor.u32 %v4226_v14, %v3402_v13  ;;  %2424 = vmatpush.bf16.msra.mxu0 %v3147_v17  ;;  %v5350_v14 = vor.u32 %v4149_v8, %v3090_v3 }
 0x16e   : > { %v3130_v20 = vld [vmem:[%s5246_s1 + $0x20] sm:$0xf]  ;;  %v4158_v21 = vld [vmem:[%s5246_s1 + $0x2c] sm:$0xf0]  ;;  %v3531_v23 = vor.u32 %v4258_v16, %v3530_v15  ;;  %2438 = vmatpush.bf16.msra.mxu1 %v3275_v18 }
 0x16f   : > { %v3258_v22 = vld [vmem:[%s5246_s1 + $0x120] sm:$0xf]  ;;  %v4190_v24 = vld [vmem:[%s5246_s1 + $0x12c] sm:$0xf0]  ;;  %v3131_v29 = vor.u32 %v4158_v21, %v3130_v20  ;;  %2452 = vmatpush.bf16.msra.mxu2 %v3403_v19  ;;  %v4144_v19 = vld [vmem:[%s5244_s6 + $0x4] sm:$0xf] }
 0x170   : > { %v3386_v25 = vld [vmem:[%s5246_s1 + $0x220] sm:$0xf]  ;;  %v4222_v26 = vld [vmem:[%s5246_s1 + $0x22c] sm:$0xf0]  ;;  %v3259_v32 = vor.u32 %v4190_v24, %v3258_v22  ;;  %2466 = vmatpush.bf16.msra.mxu3 %v3531_v23  ;;  %v3084_v20 = vld [vmem:[%s5244_s6 + $0x20] sm:$0xf0] }
 0x171   : > { %v3514_v27 = vld [vmem:[%s5246_s1 + $0x320] sm:$0xf]  ;;  %v4254_v28 = vld [vmem:[%s5246_s1 + $0x32c] sm:$0xf0]  ;;  %v3387_v33 = vor.u32 %v4222_v26, %v3386_v25  ;;  %2425 = vmatpush.bf16.msra.mxu0 %v3131_v29  ;;  %v4145_v21 = vld [vmem:[%s5244_s6 + $0xc] sm:$0xf]  ;;  %v5360_v23 = vor.u32 %v4144_v19, %v3084_v20 }
 0x172   : > { %v3114_v30 = vld [vmem:[%s5246_s1] sm:$0xf]  ;;  %v4154_v31 = vld [vmem:[%s5246_s1 + $0xc] sm:$0xf0]  ;;  %v3515_v37 = vor.u32 %v4254_v28, %v3514_v27  ;;  %2439 = vmatpush.bf16.msra.mxu1 %v3259_v32  ;;  %v3092_v24 = vld [vmem:[%s5244_s6 + $0x28] sm:$0xf0] }
 0x173   : > { %v3242_v34 = vld [vmem:[%s5246_s1 + $0x100] sm:$0xf]  ;;  %v4186_v35 = vld [vmem:[%s5246_s1 + $0x10c] sm:$0xf0]  ;;  %v3115_v44 = vor.u32 %v4154_v31, %v3114_v30  ;;  %2453 = vmatpush.bf16.msra.mxu2 %v3387_v33  ;;  %v5366_v30 = vor.u32 %v4145_v21, %v3092_v24 }
 0x174   : > { %v3370_v36 = vld [vmem:[%s5246_s1 + $0x200] sm:$0xf]  ;;  %v4218_v38 = vld [vmem:[%s5246_s1 + $0x20c] sm:$0xf0]  ;;  %v3243_v48 = vor.u32 %v4186_v35, %v3242_v34  ;;  %2467 = vmatpush.bf16.msra.mxu3 %v3515_v37 }
 0x175   : > { %v3498_v39 = vld [vmem:[%s5246_s1 + $0x300] sm:$0xf]  ;;  %v4250_v40 = vld [vmem:[%s5246_s1 + $0x30c] sm:$0xf0]  ;;  %v3371_v49 = vor.u32 %v4218_v38, %v3370_v36  ;;  %2426 = vmatpush.bf16.msra.mxu0 %v3115_v44 }
 0x176   : > { %v3738_v41 = vld [vmem:[%s5246_s1 + $0x4e0] sm:$0xf]  ;;  %v4310_v42 = vld [vmem:[%s5246_s1 + $0x4ec] sm:$0xf0]  ;;  %v3499_v52 = vor.u32 %v4250_v40, %v3498_v39  ;;  %2440 = vmatpush.bf16.msra.mxu1 %v3243_v48 }
 0x177   : > { %v3866_v43 = vld [vmem:[%s5246_s1 + $0x5e0] sm:$0xf]  ;;  %v4342_v45 = vld [vmem:[%s5246_s1 + $0x5ec] sm:$0xf0]  ;;  %v3739_v53 = vor.u32 %v4310_v42, %v3738_v41  ;;  %2454 = vmatpush.bf16.msra.mxu2 %v3371_v49 }
 0x178   : > { %v3994_v46 = vld [vmem:[%s5246_s1 + $0x6e0] sm:$0xf]  ;;  %v4374_v47 = vld [vmem:[%s5246_s1 + $0x6ec] sm:$0xf0]  ;;  %v3867_v56 = vor.u32 %v4342_v45, %v3866_v43  ;;  %2468 = vmatpush.bf16.msra.mxu3 %v3499_v52 }
 0x179   : > { %v4122_v50 = vld [vmem:[%s5246_s1 + $0x7e0] sm:$0xf]  ;;  %v4406_v51 = vld [vmem:[%s5246_s1 + $0x7ec] sm:$0xf0]  ;;  %v3995_v57 = vor.u32 %v4374_v47, %v3994_v46  ;;  %2475 = vmatpush.bf16.msrb.mxu0 %v3739_v53  ;;  %2441 = vmatmul.bf16.vlgmr.msra.gmra.mxu1 %v5360_v23 }
 0x17a   : > { %v3722_v54 = vld [vmem:[%s5246_s1 + $0x4c0] sm:$0xf]  ;;  %v4306_v55 = vld [vmem:[%s5246_s1 + $0x4cc] sm:$0xf0]  ;;  %v4123_v61 = vor.u32 %v4406_v51, %v4122_v50  ;;  %2489 = vmatpush.bf16.msrb.mxu1 %v3867_v56  ;;  %2455 = vmatmul.bf16.vlgmr.msra.gmra.mxu2 %v5350_v14 }
 0x17b   : > { %v3850_v58 = vld [vmem:[%s5246_s1 + $0x5c0] sm:$0xf]  ;;  %v4338_v59 = vld [vmem:[%s5246_s1 + $0x5cc] sm:$0xf0]  ;;  %v3723_v4 = vor.u32 %v4306_v55, %v3722_v54  ;;  %2503 = vmatpush.bf16.msrb.mxu2 %v3995_v57  ;;  %2469 = vmatmul.bf16.vlgmr.msra.gmra.mxu3 %v5366_v30 }
 0x17c   : > { %v3978_v60 = vld [vmem:[%s5246_s1 + $0x6c0] sm:$0xf]  ;;  %v4370_v62 = vld [vmem:[%s5246_s1 + $0x6cc] sm:$0xf0]  ;;  %v3851_v9 = vor.u32 %v4338_v59, %v3850_v58  ;;  %2517 = vmatpush.bf16.msrb.mxu3 %v4123_v61 }
 0x17d   : > { %v4106_v63 = vld [vmem:[%s5246_s1 + $0x7c0] sm:$0xf]  ;;  %v4402_v0 = vld [vmem:[%s5246_s1 + $0x7cc] sm:$0xf0]  ;;  %v3979_v10 = vor.u32 %v4370_v62, %v3978_v60  ;;  %2476 = vmatpush.bf16.msrb.mxu0 %v3723_v4 }
 0x17e   : > { %v3082_v1 = vld [vmem:[%s5244_s6] sm:$0xf]  ;;  %v4302_v6 = vld [vmem:[%s5246_s1 + $0x4ac] sm:$0xf0]  ;;  %v4107_v15 = vor.u32 %v4402_v0, %v4106_v63  ;;  %2490 = vmatpush.bf16.msrb.mxu1 %v3851_v9 }
 0x17f   : > { %v4148_v2 = vld [vmem:[%s5244_s6 + $0x1c] sm:$0xf0]  ;;  %v4334_v12 = vld [vmem:[%s5246_s1 + $0x5ac] sm:$0xf0]  ;;  %2504 = vmatpush.bf16.msrb.mxu2 %v3979_v10 }
 0x180   : > { %v3706_v5 = vld [vmem:[%s5246_s1 + $0x4a0] sm:$0xf]  ;;  %v5344_v7 = vor.u32 %v4148_v2, %v3082_v1  ;;  %v4366_v16 = vld [vmem:[%s5246_s1 + $0x6ac] sm:$0xf0]  ;;  %2518 = vmatpush.bf16.msrb.mxu3 %v4107_v15 }
 0x181   : > { %v3834_v11 = vld [vmem:[%s5246_s1 + $0x5a0] sm:$0xf]  ;;  %v4398_v18 = vld [vmem:[%s5246_s1 + $0x7ac] sm:$0xf0]  ;;  %v3707_v22 = vor.u32 %v4302_v6, %v3706_v5 }
 0x182   : > { %v3962_v13 = vld [vmem:[%s5246_s1 + $0x6a0] sm:$0xf]  ;;  %2427 = vmatmul.bf16.vlgmr.msra.gmra.mxu0 %v5344_v7  ;;  %v3835_v25 = vor.u32 %v4334_v12, %v3834_v11  ;;  %v4298_v28 = vld [vmem:[%s5246_s1 + $0x48c] sm:$0xf0] }
 0x183   : > { %v4090_v17 = vld [vmem:[%s5246_s1 + $0x7a0] sm:$0xf]  ;;  %v3963_v26 = vor.u32 %v4366_v16, %v3962_v13  ;;  %v4330_v32 = vld [vmem:[%s5246_s1 + $0x58c] sm:$0xf0]  ;;  %2477 = vmatpush.bf16.msrb.mxu0 %v3707_v22  ;;  %v4180_v22 = vld [vmem:[%s5246_s1 + $0xe4] sm:$0xf] }
 0x184   : > { %v3690_v27 = vld [vmem:[%s5246_s1 + $0x480] sm:$0xf]  ;;  %v4091_v31 = vor.u32 %v4398_v18, %v4090_v17  ;;  %v4362_v34 = vld [vmem:[%s5246_s1 + $0x68c] sm:$0xf0]  ;;  %2491 = vmatpush.bf16.msrb.mxu1 %v3835_v25  ;;  %v3228_v25 = vld [vmem:[%s5246_s1 + $0xf0] sm:$0xf0] }
 0x185   : > { %v3818_v29 = vld [vmem:[%s5246_s1 + $0x580] sm:$0xf]  ;;  %v4394_v36 = vld [vmem:[%s5246_s1 + $0x78c] sm:$0xf0]  ;;  %v3691_v37 = vor.u32 %v4298_v28, %v3690_v27  ;;  %2505 = vmatpush.bf16.msrb.mxu2 %v3963_v26  ;;  %v4212_v26 = vld [vmem:[%s5246_s1 + $0x1e4] sm:$0xf] }
 0x186   : > { %v3946_v33 = vld [vmem:[%s5246_s1 + $0x680] sm:$0xf]  ;;  %v3819_v38 = vor.u32 %v4330_v32, %v3818_v29  ;;  %v4294_v41 = vld [vmem:[%s5246_s1 + $0x46c] sm:$0xf0]  ;;  %2519 = vmatpush.bf16.msrb.mxu3 %v4091_v31  ;;  %v3356_v27 = vld [vmem:[%s5246_s1 + $0x1f0] sm:$0xf0] }
 0x187   : > { %v4074_v35 = vld [vmem:[%s5246_s1 + $0x780] sm:$0xf]  ;;  %v3947_v39 = vor.u32 %v4362_v34, %v3946_v33  ;;  %v4326_v44 = vld [vmem:[%s5246_s1 + $0x56c] sm:$0xf0]  ;;  %2478 = vmatpush.bf16.msrb.mxu0 %v3691_v37  ;;  %v4244_v28 = vld [vmem:[%s5246_s1 + $0x2e4] sm:$0xf] }
 0x188   : > { %v3674_v40 = vld [vmem:[%s5246_s1 + $0x460] sm:$0xf]  ;;  %v4075_v43 = vor.u32 %v4394_v36, %v4074_v35  ;;  %v4358_v46 = vld [vmem:[%s5246_s1 + $0x66c] sm:$0xf0]  ;;  %2492 = vmatpush.bf16.msrb.mxu1 %v3819_v38  ;;  %v3484_v29 = vld [vmem:[%s5246_s1 + $0x2f0] sm:$0xf0] }
 0x189   : > { %v3802_v42 = vld [vmem:[%s5246_s1 + $0x560] sm:$0xf]  ;;  %v4390_v48 = vld [vmem:[%s5246_s1 + $0x76c] sm:$0xf0]  ;;  %v3675_v49 = vor.u32 %v4294_v41, %v3674_v40  ;;  %2506 = vmatpush.bf16.msrb.mxu2 %v3947_v39  ;;  %v4276_v31 = vld [vmem:[%s5246_s1 + $0x3e4] sm:$0xf] }
 0x18a   : > { %v3930_v45 = vld [vmem:[%s5246_s1 + $0x660] sm:$0xf]  ;;  %v3803_v50 = vor.u32 %v4326_v44, %v3802_v42  ;;  %v4290_v53 = vld [vmem:[%s5246_s1 + $0x44c] sm:$0xf0]  ;;  %2520 = vmatpush.bf16.msrb.mxu3 %v4075_v43  ;;  %v3612_v33 = vld [vmem:[%s5246_s1 + $0x3f0] sm:$0xf0]  ;;  %v3231_v42 = vor.u32 %v4180_v22, %v3228_v25 }
 0x18b   : > { %v4058_v47 = vld [vmem:[%s5246_s1 + $0x760] sm:$0xf]  ;;  %v3931_v51 = vor.u32 %v4358_v46, %v3930_v45  ;;  %v4322_v56 = vld [vmem:[%s5246_s1 + $0x54c] sm:$0xf0]  ;;  %2479 = vmatpush.bf16.msrb.mxu0 %v3675_v49  ;;  %v3106_v38 = vld [vmem:[%s5244_s6 + $0x18] sm:$0xf]  ;;  %v3359_v46 = vor.u32 %v4212_v26, %v3356_v27 }
 0x18c   : > { %v3658_v52 = vld [vmem:[%s5246_s1 + $0x440] sm:$0xf]  ;;  %v4059_v55 = vor.u32 %v4390_v48, %v4058_v47  ;;  %v4354_v58 = vld [vmem:[%s5246_s1 + $0x64c] sm:$0xf0]  ;;  %2493 = vmatpush.bf16.msrb.mxu1 %v3803_v50  ;;  %v4151_v39 = vld [vmem:[%s5244_s6 + $0x34] sm:$0xf0]  ;;  %v3487_v47 = vor.u32 %v4244_v28, %v3484_v29 }
 0x18d   : > { %v3786_v54 = vld [vmem:[%s5246_s1 + $0x540] sm:$0xf]  ;;  %v4386_v60 = vld [vmem:[%s5246_s1 + $0x74c] sm:$0xf0]  ;;  %v3659_v61 = vor.u32 %v4290_v53, %v3658_v52  ;;  %2507 = vmatpush.bf16.msrb.mxu2 %v3931_v51  ;;  %v4146_v40 = vld [vmem:[%s5244_s6 + $0x14] sm:$0xf]  ;;  %v3615_v51 = vor.u32 %v4276_v31, %v3612_v33 }
 0x18e   : > { %v3914_v57 = vld [vmem:[%s5246_s1 + $0x640] sm:$0xf]  ;;  %v3787_v63 = vor.u32 %v4322_v56, %v3786_v54  ;;  %v4286_v1 = vld [vmem:[%s5246_s1 + $0x42c] sm:$0xf0]  ;;  %2521 = vmatpush.bf16.msrb.mxu3 %v4059_v55  ;;  %v3100_v43 = vld [vmem:[%s5244_s6 + $0x30] sm:$0xf0]  ;;  %v5431_v56 = vor.u32 %v4151_v39, %v3106_v38 }
 0x18f   : > { %v4042_v59 = vld [vmem:[%s5246_s1 + $0x740] sm:$0xf]  ;;  %v3915_v0 = vor.u32 %v4354_v58, %v3914_v57  ;;  %v4318_v3 = vld [vmem:[%s5246_s1 + $0x52c] sm:$0xf0]  ;;  %2480 = vmatpush.bf16.msrb.mxu0 %v3659_v61  ;;  %v4147_v44 = vld [vmem:[%s5244_s6 + $0x1c] sm:$0xf]  ;;  %v5433_v57 = vor.u32 %v4146_v40, %v3100_v43 }
 0x190   : > { %v3642_v62 = vld [vmem:[%s5246_s1 + $0x420] sm:$0xf]  ;;  %v4043_v4 = vor.u32 %v4386_v60, %v4042_v59  ;;  %v4350_v6 = vld [vmem:[%s5246_s1 + $0x62c] sm:$0xf0]  ;;  %2494 = vmatpush.bf16.msrb.mxu1 %v3787_v63  ;;  %v3108_v45 = vld [vmem:[%s5244_s6 + $0x38] sm:$0xf0] }
 0x191   : > { %v3770_v2 = vld [vmem:[%s5246_s1 + $0x520] sm:$0xf]  ;;  %v4382_v9 = vld [vmem:[%s5246_s1 + $0x72c] sm:$0xf0]  ;;  %v3643_v12 = vor.u32 %v4286_v1, %v3642_v62  ;;  %2508 = vmatpush.bf16.msrb.mxu2 %v3915_v0  ;;  %v4176_v48 = vld [vmem:[%s5246_s1 + $0xc4] sm:$0xf]  ;;  %v5437_v60 = vor.u32 %v4147_v44, %v3108_v45 }
 0x192   : > { %v3898_v5 = vld [vmem:[%s5246_s1 + $0x620] sm:$0xf]  ;;  %v4282_v11 = vld [vmem:[%s5246_s1 + $0x40c] sm:$0xf0]  ;;  %v3771_v18 = vor.u32 %v4318_v3, %v3770_v2  ;;  %2522 = vmatpush.bf16.msrb.mxu3 %v4043_v4  ;;  %v3212_v49 = vld [vmem:[%s5246_s1 + $0xd0] sm:$0xf0] }
 0x193   : > { %v4026_v8 = vld [vmem:[%s5246_s1 + $0x720] sm:$0xf]  ;;  %v4314_v15 = vld [vmem:[%s5246_s1 + $0x50c] sm:$0xf0]  ;;  %v3899_v19 = vor.u32 %v4350_v6, %v3898_v5  ;;  %2481 = vmatpush.bf16.msrb.mxu0 %v3643_v12  ;;  %v4208_v50 = vld [vmem:[%s5246_s1 + $0x1c4] sm:$0xf]  ;;  %v3215_v61 = vor.u32 %v4176_v48, %v3212_v49 }
 0x194   : > { %v3626_v10 = vld [vmem:[%s5246_s1 + $0x400] sm:$0xf]  ;;  %v4346_v17 = vld [vmem:[%s5246_s1 + $0x60c] sm:$0xf0]  ;;  %v4027_v24 = vor.u32 %v4382_v9, %v4026_v8  ;;  %2495 = vmatpush.bf16.msrb.mxu1 %v3771_v18  ;;  %v3340_v53 = vld [vmem:[%s5246_s1 + $0x1d0] sm:$0xf0] }
 0x195   : > { %v3754_v13 = vld [vmem:[%s5246_s1 + $0x500] sm:$0xf]  ;;  %v4378_v21 = vld [vmem:[%s5246_s1 + $0x70c] sm:$0xf0]  ;;  %v3627_v32 = vor.u32 %v4282_v11, %v3626_v10  ;;  %2509 = vmatpush.bf16.msrb.mxu2 %v3899_v19  ;;  %v4240_v54 = vld [vmem:[%s5246_s1 + $0x2c4] sm:$0xf]  ;;  %v3343_v62 = vor.u32 %v4208_v50, %v3340_v53 }
 0x196   : > { %v3882_v16 = vld [vmem:[%s5246_s1 + $0x600] sm:$0xf]  ;;  %v3098_v34 = vld [vmem:[%s5244_s6 + $0x10] sm:$0xf]  ;;  %v3755_v36 = vor.u32 %v4314_v15, %v3754_v13  ;;  %2523 = vmatpush.bf16.msrb.mxu3 %v4027_v24  ;;  %v3468_v55 = vld [vmem:[%s5246_s1 + $0x2d0] sm:$0xf0] }
 0x197   : > { %v4010_v20 = vld [vmem:[%s5246_s1 + $0x700] sm:$0xf]  ;;  %v4150_v35 = vld [vmem:[%s5244_s6 + $0x2c] sm:$0xf0]  ;;  %v3883_v37 = vor.u32 %v4346_v17, %v3882_v16  ;;  %2482 = vmatpush.bf16.msrb.mxu0 %v3627_v32  ;;  %v4272_v58 = vld [vmem:[%s5246_s1 + $0x3c4] sm:$0xf]  ;;  %v3471_v63 = vor.u32 %v4240_v54, %v3468_v55 }
 0x198   : > { %v4011_v41 = vor.u32 %v4378_v21, %v4010_v20  ;;  %v5426_v52 = vor.u32 %v4150_v35, %v3098_v34  ;;  %2496 = vmatpush.bf16.msrb.mxu1 %v3755_v36  ;;  %v3596_v59 = vld [vmem:[%s5246_s1 + $0x3d0] sm:$0xf0]  ;;  %v4172_v0 = vld [vmem:[%s5246_s1 + $0xa4] sm:$0xf] }
 0x199   : > { %2510 = vmatpush.bf16.msrb.mxu2 %v3883_v37  ;;  %v3196_v1 = vld [vmem:[%s5246_s1 + $0xb0] sm:$0xf0]  ;;  %v4204_v2 = vld [vmem:[%s5246_s1 + $0x1a4] sm:$0xf]  ;;  %v3599_v3 = vor.u32 %v4272_v58, %v3596_v59 }
 0x19a   : > { %2524 = vmatpush.bf16.msrb.mxu3 %v4011_v41  ;;  %2483 = vmatmul.bf16.vlgmr.msrb.gmra.mxu0 %v5426_v52  ;;  %v3324_v4 = vld [vmem:[%s5246_s1 + $0x1b0] sm:$0xf0]  ;;  %v4236_v5 = vld [vmem:[%s5246_s1 + $0x2a4] sm:$0xf]  ;;  %v3199_v10 = vor.u32 %v4172_v0, %v3196_v1 }
 0x19b   : > { %2531 = vmatpush.bf16.msra.mxu0 %v3231_v42  ;;  %v3452_v6 = vld [vmem:[%s5246_s1 + $0x2b0] sm:$0xf0]  ;;  %2497 = vmatmul.bf16.vlgmr.msrb.gmra.mxu1 %v5433_v57  ;;  %v4268_v8 = vld [vmem:[%s5246_s1 + $0x3a4] sm:$0xf]  ;;  %v3327_v11 = vor.u32 %v4204_v2, %v3324_v4 }
 0x19c   : > { %2545 = vmatpush.bf16.msra.mxu1 %v3359_v46  ;;  %2511 = vmatmul.bf16.vlgmr.msrb.gmra.mxu2 %v5431_v56  ;;  %v3580_v9 = vld [vmem:[%s5246_s1 + $0x3b0] sm:$0xf0]  ;;  %v3455_v12 = vor.u32 %v4236_v5, %v3452_v6  ;;  %v4168_v13 = vld [vmem:[%s5246_s1 + $0x84] sm:$0xf] }
 0x19d   : > { %2559 = vmatpush.bf16.msra.mxu2 %v3487_v47  ;;  %2525 = vmatmul.bf16.vlgmr.msrb.gmra.mxu3 %v5437_v60  ;;  %v3180_v15 = vld [vmem:[%s5246_s1 + $0x90] sm:$0xf0]  ;;  %v4200_v16 = vld [vmem:[%s5246_s1 + $0x184] sm:$0xf]  ;;  %v3583_v17 = vor.u32 %v4268_v8, %v3580_v9 }
 0x19e   : > { %2573 = vmatpush.bf16.msra.mxu3 %v3615_v51  ;;  %v3308_v18 = vld [vmem:[%s5246_s1 + $0x190] sm:$0xf0]  ;;  %v4232_v19 = vld [vmem:[%s5246_s1 + $0x284] sm:$0xf]  ;;  %v3183_v24 = vor.u32 %v4168_v13, %v3180_v15 }
 0x19f   : > { %2532 = vmatpush.bf16.msra.mxu0 %v3215_v61  ;;  %v3436_v20 = vld [vmem:[%s5246_s1 + $0x290] sm:$0xf0]  ;;  %v4264_v21 = vld [vmem:[%s5246_s1 + $0x384] sm:$0xf]  ;;  %v3311_v25 = vor.u32 %v4200_v16, %v3308_v18 }
 0x1a0   : > { %2546 = vmatpush.bf16.msra.mxu1 %v3343_v62  ;;  %v3564_v22 = vld [vmem:[%s5246_s1 + $0x390] sm:$0xf0]  ;;  %v3439_v26 = vor.u32 %v4232_v19, %v3436_v20  ;;  %v4164_v27 = vld [vmem:[%s5246_s1 + $0x64] sm:$0xf] }
 0x1a1   : > { %2560 = vmatpush.bf16.msra.mxu2 %v3471_v63  ;;  %v3164_v28 = vld [vmem:[%s5246_s1 + $0x70] sm:$0xf0]  ;;  %v4196_v29 = vld [vmem:[%s5246_s1 + $0x164] sm:$0xf]  ;;  %v3567_v31 = vor.u32 %v4264_v21, %v3564_v22 }
 0x1a2   : > { %2574 = vmatpush.bf16.msra.mxu3 %v3599_v3  ;;  %v3292_v32 = vld [vmem:[%s5246_s1 + $0x170] sm:$0xf0]  ;;  %v4228_v33 = vld [vmem:[%s5246_s1 + $0x264] sm:$0xf]  ;;  %v3167_v37 = vor.u32 %v4164_v27, %v3164_v28 }
 0x1a3   : > { %2533 = vmatpush.bf16.msra.mxu0 %v3199_v10  ;;  %v3420_v34 = vld [vmem:[%s5246_s1 + $0x270] sm:$0xf0]  ;;  %v4260_v35 = vld [vmem:[%s5246_s1 + $0x364] sm:$0xf]  ;;  %v3295_v38 = vor.u32 %v4196_v29, %v3292_v32 }
 0x1a4   : > { %2547 = vmatpush.bf16.msra.mxu1 %v3327_v11  ;;  %v3548_v36 = vld [vmem:[%s5246_s1 + $0x370] sm:$0xf0]  ;;  %v3423_v39 = vor.u32 %v4228_v33, %v3420_v34  ;;  %v4160_v40 = vld [vmem:[%s5246_s1 + $0x44] sm:$0xf] }
 0x1a5   : > { %2561 = vmatpush.bf16.msra.mxu2 %v3455_v12  ;;  %v3148_v41 = vld [vmem:[%s5246_s1 + $0x50] sm:$0xf0]  ;;  %v4192_v42 = vld [vmem:[%s5246_s1 + $0x144] sm:$0xf]  ;;  %v3551_v43 = vor.u32 %v4260_v35, %v3548_v36 }
 0x1a6   : > { %2575 = vmatpush.bf16.msra.mxu3 %v3583_v17  ;;  %v3276_v44 = vld [vmem:[%s5246_s1 + $0x150] sm:$0xf0]  ;;  %v4224_v45 = vld [vmem:[%s5246_s1 + $0x244] sm:$0xf]  ;;  %v3151_v49 = vor.u32 %v4160_v40, %v3148_v41 }
 0x1a7   : > { %2534 = vmatpush.bf16.msra.mxu0 %v3183_v24  ;;  %v3404_v46 = vld [vmem:[%s5246_s1 + $0x250] sm:$0xf0]  ;;  %v4256_v47 = vld [vmem:[%s5246_s1 + $0x344] sm:$0xf]  ;;  %v3279_v50 = vor.u32 %v4192_v42, %v3276_v44 }
 0x1a8   : > { %2548 = vmatpush.bf16.msra.mxu1 %v3311_v25  ;;  %v3532_v48 = vld [vmem:[%s5246_s1 + $0x350] sm:$0xf0]  ;;  %v3407_v51 = vor.u32 %v4224_v45, %v3404_v46  ;;  %v4156_v53 = vld [vmem:[%s5246_s1 + $0x24] sm:$0xf] }
 0x1a9   : > { %2562 = vmatpush.bf16.msra.mxu2 %v3439_v26  ;;  %v3132_v54 = vld [vmem:[%s5246_s1 + $0x30] sm:$0xf0]  ;;  %v4188_v55 = vld [vmem:[%s5246_s1 + $0x124] sm:$0xf]  ;;  %v3535_v58 = vor.u32 %v4256_v47, %v3532_v48 }
 0x1aa   : > { %2576 = vmatpush.bf16.msra.mxu3 %v3567_v31  ;;  %v3260_v59 = vld [vmem:[%s5246_s1 + $0x130] sm:$0xf0]  ;;  %v4220_v61 = vld [vmem:[%s5246_s1 + $0x224] sm:$0xf]  ;;  %v3135_v1 = vor.u32 %v4156_v53, %v3132_v54 }
 0x1ab   : > { %2535 = vmatpush.bf16.msra.mxu0 %v3167_v37  ;;  %v3388_v62 = vld [vmem:[%s5246_s1 + $0x230] sm:$0xf0]  ;;  %v4252_v63 = vld [vmem:[%s5246_s1 + $0x324] sm:$0xf]  ;;  %v3263_v4 = vor.u32 %v4188_v55, %v3260_v59 }
 0x1ac   : > { %2549 = vmatpush.bf16.msra.mxu1 %v3295_v38  ;;  %v3516_v0 = vld [vmem:[%s5246_s1 + $0x330] sm:$0xf0]  ;;  %v4152_v2 = vld [vmem:[%s5246_s1 + $0x4] sm:$0xf]  ;;  %v3391_v5 = vor.u32 %v4220_v61, %v3388_v62 }
 0x1ad   : > { %2563 = vmatpush.bf16.msra.mxu2 %v3423_v39  ;;  %v3116_v3 = vld [vmem:[%s5246_s1 + $0x10] sm:$0xf0]  ;;  %v4184_v6 = vld [vmem:[%s5246_s1 + $0x104] sm:$0xf]  ;;  %v3519_v10 = vor.u32 %v4252_v63, %v3516_v0 }
 0x1ae   : > { %2577 = vmatpush.bf16.msra.mxu3 %v3551_v43  ;;  %v3244_v8 = vld [vmem:[%s5246_s1 + $0x110] sm:$0xf0]  ;;  %v4216_v9 = vld [vmem:[%s5246_s1 + $0x204] sm:$0xf]  ;;  %v3119_v18 = vor.u32 %v4152_v2, %v3116_v3 }
 0x1af   : > { %2536 = vmatpush.bf16.msra.mxu0 %v3151_v49  ;;  %v3372_v11 = vld [vmem:[%s5246_s1 + $0x210] sm:$0xf0]  ;;  %v4248_v12 = vld [vmem:[%s5246_s1 + $0x304] sm:$0xf]  ;;  %v3247_v22 = vor.u32 %v4184_v6, %v3244_v8 }
 0x1b0   : > { %2550 = vmatpush.bf16.msra.mxu1 %v3279_v50  ;;  %v3500_v13 = vld [vmem:[%s5246_s1 + $0x310] sm:$0xf0]  ;;  %v4308_v15 = vld [vmem:[%s5246_s1 + $0x4e4] sm:$0xf]  ;;  %v3375_v24 = vor.u32 %v4216_v9, %v3372_v11 }
 0x1b1   : > { %2564 = vmatpush.bf16.msra.mxu2 %v3407_v51  ;;  %v3740_v16 = vld [vmem:[%s5246_s1 + $0x4f0] sm:$0xf0]  ;;  %v4340_v17 = vld [vmem:[%s5246_s1 + $0x5e4] sm:$0xf]  ;;  %v3503_v27 = vor.u32 %v4248_v12, %v3500_v13 }
 0x1b2   : > { %2578 = vmatpush.bf16.msra.mxu3 %v3535_v58  ;;  %v3868_v19 = vld [vmem:[%s5246_s1 + $0x5f0] sm:$0xf0]  ;;  %v4372_v20 = vld [vmem:[%s5246_s1 + $0x6e4] sm:$0xf]  ;;  %v3743_v28 = vor.u32 %v4308_v15, %v3740_v16 }
 0x1b3   : > { %2537 = vmatpush.bf16.msra.mxu0 %v3135_v1  ;;  %v3996_v21 = vld [vmem:[%s5246_s1 + $0x6f0] sm:$0xf0]  ;;  %v4404_v25 = vld [vmem:[%s5246_s1 + $0x7e4] sm:$0xf]  ;;  %v3871_v29 = vor.u32 %v4340_v17, %v3868_v19 }
 0x1b4   : > { %2551 = vmatpush.bf16.msra.mxu1 %v3263_v4  ;;  %v4124_v26 = vld [vmem:[%s5246_s1 + $0x7f0] sm:$0xf0]  ;;  %v3999_v31 = vor.u32 %v4372_v20, %v3996_v21  ;;  %v4304_v32 = vld [vmem:[%s5246_s1 + $0x4c4] sm:$0xf] }
 0x1b5   : > { %2565 = vmatpush.bf16.msra.mxu2 %v3391_v5  ;;  %v3724_v33 = vld [vmem:[%s5246_s1 + $0x4d0] sm:$0xf0]  ;;  %v4336_v34 = vld [vmem:[%s5246_s1 + $0x5c4] sm:$0xf]  ;;  %v4127_v35 = vor.u32 %v4404_v25, %v4124_v26 }
 0x1b6   : > { %2579 = vmatpush.bf16.msra.mxu3 %v3519_v10  ;;  %v3852_v36 = vld [vmem:[%s5246_s1 + $0x5d0] sm:$0xf0]  ;;  %v4368_v37 = vld [vmem:[%s5246_s1 + $0x6c4] sm:$0xf]  ;;  %v3727_v41 = vor.u32 %v4304_v32, %v3724_v33 }
 0x1b7   : > { %2538 = vmatpush.bf16.msra.mxu0 %v3119_v18  ;;  %v3980_v38 = vld [vmem:[%s5246_s1 + $0x6d0] sm:$0xf0]  ;;  %v4400_v39 = vld [vmem:[%s5246_s1 + $0x7c4] sm:$0xf]  ;;  %v3855_v42 = vor.u32 %v4336_v34, %v3852_v36 }
 0x1b8   : > { %2552 = vmatpush.bf16.msra.mxu1 %v3247_v22  ;;  %v4108_v40 = vld [vmem:[%s5246_s1 + $0x7d0] sm:$0xf0]  ;;  %v3983_v43 = vor.u32 %v4368_v37, %v3980_v38  ;;  %v4300_v44 = vld [vmem:[%s5246_s1 + $0x4a4] sm:$0xf] }
 0x1b9   : > { %2566 = vmatpush.bf16.msra.mxu2 %v3375_v24  ;;  %v3708_v45 = vld [vmem:[%s5246_s1 + $0x4b0] sm:$0xf0]  ;;  %v4332_v46 = vld [vmem:[%s5246_s1 + $0x5a4] sm:$0xf]  ;;  %v4111_v47 = vor.u32 %v4400_v39, %v4108_v40 }
 0x1ba   : > { %2580 = vmatpush.bf16.msra.mxu3 %v3503_v27  ;;  %v3836_v48 = vld [vmem:[%s5246_s1 + $0x5b0] sm:$0xf0]  ;;  %v4364_v49 = vld [vmem:[%s5246_s1 + $0x6a4] sm:$0xf]  ;;  %2539 = vmatmul.bf16.vlgmr.msra.gmra.mxu0 %v5344_v7  ;;  %v3711_v54 = vor.u32 %v4300_v44, %v3708_v45 }
 0x1bb   : > { %2587 = vmatpush.bf16.msrb.mxu0 %v3743_v28  ;;  %v3964_v50 = vld [vmem:[%s5246_s1 + $0x6b0] sm:$0xf0]  ;;  %v4396_v51 = vld [vmem:[%s5246_s1 + $0x7a4] sm:$0xf]  ;;  %2553 = vmatmul.bf16.vlgmr.msra.gmra.mxu1 %v5360_v23  ;;  %v3839_v55 = vor.u32 %v4332_v46, %v3836_v48 }
 0x1bc   : > { %2601 = vmatpush.bf16.msrb.mxu1 %v3871_v29  ;;  %v4092_v53 = vld [vmem:[%s5246_s1 + $0x7b0] sm:$0xf0]  ;;  %2567 = vmatmul.bf16.vlgmr.msra.gmra.mxu2 %v5350_v14  ;;  %v3967_v58 = vor.u32 %v4364_v49, %v3964_v50  ;;  %v4296_v59 = vld [vmem:[%s5246_s1 + $0x484] sm:$0xf] }
 0x1bd   : > { %2615 = vmatpush.bf16.msrb.mxu2 %v3999_v31  ;;  %2581 = vmatmul.bf16.vlgmr.msra.gmra.mxu3 %v5366_v30  ;;  %v3692_v61 = vld [vmem:[%s5246_s1 + $0x490] sm:$0xf0]  ;;  %v4328_v62 = vld [vmem:[%s5246_s1 + $0x584] sm:$0xf]  ;;  %v4095_v63 = vor.u32 %v4396_v51, %v4092_v53 }
 0x1be   : > { %2629 = vmatpush.bf16.msrb.mxu3 %v4127_v35  ;;  %v3820_v0 = vld [vmem:[%s5246_s1 + $0x590] sm:$0xf0]  ;;  %v4360_v1 = vld [vmem:[%s5246_s1 + $0x684] sm:$0xf]  ;;  %v3695_v5 = vor.u32 %v4296_v59, %v3692_v61  ;;  %v3234_v61 = vld [vmem:[%s5246_s1 + $0xe8] sm:$0xf] }
 0x1bf   : > { %2588 = vmatpush.bf16.msrb.mxu0 %v3727_v41  ;;  %v3948_v2 = vld [vmem:[%s5246_s1 + $0x690] sm:$0xf0]  ;;  %v4392_v3 = vld [vmem:[%s5246_s1 + $0x784] sm:$0xf]  ;;  %v3823_v6 = vor.u32 %v4328_v62, %v3820_v0  ;;  %v4183_v62 = vld [vmem:[%s5246_s1 + $0xf4] sm:$0xf0] }
 0x1c0   : > { %2602 = vmatpush.bf16.msrb.mxu1 %v3855_v42  ;;  %v4076_v4 = vld [vmem:[%s5246_s1 + $0x790] sm:$0xf0]  ;;  %v3951_v8 = vor.u32 %v4360_v1, %v3948_v2  ;;  %v4292_v9 = vld [vmem:[%s5246_s1 + $0x464] sm:$0xf]  ;;  %v4215_v1 = vld [vmem:[%s5246_s1 + $0x1f4] sm:$0xf0] }
 0x1c1   : > { %2616 = vmatpush.bf16.msrb.mxu2 %v3983_v43  ;;  %v3676_v10 = vld [vmem:[%s5246_s1 + $0x470] sm:$0xf0]  ;;  %v4324_v11 = vld [vmem:[%s5246_s1 + $0x564] sm:$0xf]  ;;  %v4079_v12 = vor.u32 %v4392_v3, %v4076_v4  ;;  %v3490_v2 = vld [vmem:[%s5246_s1 + $0x2e8] sm:$0xf] }
 0x1c2   : > { %2630 = vmatpush.bf16.msrb.mxu3 %v4111_v47  ;;  %v3804_v13 = vld [vmem:[%s5246_s1 + $0x570] sm:$0xf0]  ;;  %v4356_v15 = vld [vmem:[%s5246_s1 + $0x664] sm:$0xf]  ;;  %v3679_v19 = vor.u32 %v4292_v9, %v3676_v10  ;;  %v4247_v3 = vld [vmem:[%s5246_s1 + $0x2f4] sm:$0xf0]  ;;  %v3235_v10 = vor.u32 %v4183_v62, %v3234_v61 }
 0x1c3   : > { %2589 = vmatpush.bf16.msrb.mxu0 %v3711_v54  ;;  %v3932_v16 = vld [vmem:[%s5246_s1 + $0x670] sm:$0xf0]  ;;  %v4388_v17 = vld [vmem:[%s5246_s1 + $0x764] sm:$0xf]  ;;  %v3807_v20 = vor.u32 %v4324_v11, %v3804_v13  ;;  %v3218_v13 = vld [vmem:[%s5246_s1 + $0xc8] sm:$0xf] }
 0x1c4   : > { %2603 = vmatpush.bf16.msrb.mxu1 %v3839_v55  ;;  %v4060_v18 = vld [vmem:[%s5246_s1 + $0x770] sm:$0xf0]  ;;  %v3935_v21 = vor.u32 %v4356_v15, %v3932_v16  ;;  %v4288_v22 = vld [vmem:[%s5246_s1 + $0x444] sm:$0xf]  ;;  %v4179_v15 = vld [vmem:[%s5246_s1 + $0xd4] sm:$0xf0] }
 0x1c5   : > { %2617 = vmatpush.bf16.msrb.mxu2 %v3967_v58  ;;  %v3660_v24 = vld [vmem:[%s5246_s1 + $0x450] sm:$0xf0]  ;;  %v4320_v25 = vld [vmem:[%s5246_s1 + $0x544] sm:$0xf]  ;;  %v4063_v26 = vor.u32 %v4388_v17, %v4060_v18  ;;  %v3346_v16 = vld [vmem:[%s5246_s1 + $0x1c8] sm:$0xf] }
 0x1c6   : > { %2631 = vmatpush.bf16.msrb.mxu3 %v4095_v63  ;;  %v3788_v27 = vld [vmem:[%s5246_s1 + $0x550] sm:$0xf0]  ;;  %v4352_v28 = vld [vmem:[%s5246_s1 + $0x644] sm:$0xf]  ;;  %v3663_v33 = vor.u32 %v4288_v22, %v3660_v24  ;;  %v3362_v63 = vld [vmem:[%s5246_s1 + $0x1e8] sm:$0xf]  ;;  %v3219_v24 = vor.u32 %v4179_v15, %v3218_v13 }
 0x1c7   : > { %2590 = vmatpush.bf16.msrb.mxu0 %v3695_v5  ;;  %v3916_v29 = vld [vmem:[%s5246_s1 + $0x650] sm:$0xf0]  ;;  %v4384_v31 = vld [vmem:[%s5246_s1 + $0x744] sm:$0xf]  ;;  %v3791_v34 = vor.u32 %v4320_v25, %v3788_v27  ;;  %v3363_v11 = vor.u32 %v4215_v1, %v3362_v63  ;;  %v4211_v18 = vld [vmem:[%s5246_s1 + $0x1d4] sm:$0xf0] }
 0x1c8   : > { %2604 = vmatpush.bf16.msrb.mxu1 %v3823_v6  ;;  %v4044_v32 = vld [vmem:[%s5246_s1 + $0x750] sm:$0xf0]  ;;  %v3919_v35 = vor.u32 %v4352_v28, %v3916_v29  ;;  %v4284_v36 = vld [vmem:[%s5246_s1 + $0x424] sm:$0xf]  ;;  %v3618_v6 = vld [vmem:[%s5246_s1 + $0x3e8] sm:$0xf]  ;;  %v3347_v25 = vor.u32 %v4211_v18, %v3346_v16 }
 0x1c9   : > { %2618 = vmatpush.bf16.msrb.mxu2 %v3951_v8  ;;  %v3644_v37 = vld [vmem:[%s5246_s1 + $0x430] sm:$0xf0]  ;;  %v4316_v38 = vld [vmem:[%s5246_s1 + $0x524] sm:$0xf]  ;;  %v4047_v39 = vor.u32 %v4384_v31, %v4044_v32  ;;  %v4279_v8 = vld [vmem:[%s5246_s1 + $0x3f4] sm:$0xf0] }
 0x1ca   : > { %2632 = vmatpush.bf16.msrb.mxu3 %v4079_v12  ;;  %v3772_v40 = vld [vmem:[%s5246_s1 + $0x530] sm:$0xf0]  ;;  %v4348_v41 = vld [vmem:[%s5246_s1 + $0x624] sm:$0xf]  ;;  %v3647_v45 = vor.u32 %v4284_v36, %v3644_v37  ;;  %v3491_v12 = vor.u32 %v4247_v3, %v3490_v2  ;;  %v3619_v17 = vor.u32 %v4279_v8, %v3618_v6  ;;  %v4275_v22 = vld [vmem:[%s5246_s1 + $0x3d4] sm:$0xf0] }
 0x1cb   : > { %2591 = vmatpush.bf16.msrb.mxu0 %v3679_v19  ;;  %v3900_v42 = vld [vmem:[%s5246_s1 + $0x630] sm:$0xf0]  ;;  %v4380_v43 = vld [vmem:[%s5246_s1 + $0x724] sm:$0xf]  ;;  %v3775_v48 = vor.u32 %v4316_v38, %v3772_v40  ;;  %v3474_v19 = vld [vmem:[%s5246_s1 + $0x2c8] sm:$0xf] }
 0x1cc   : > { %2605 = vmatpush.bf16.msrb.mxu1 %v3807_v20  ;;  %v4028_v44 = vld [vmem:[%s5246_s1 + $0x730] sm:$0xf0]  ;;  %v4280_v46 = vld [vmem:[%s5246_s1 + $0x404] sm:$0xf]  ;;  %v3903_v49 = vor.u32 %v4348_v41, %v3900_v42  ;;  %v4243_v20 = vld [vmem:[%s5246_s1 + $0x2d4] sm:$0xf0] }
 0x1cd   : > { %2619 = vmatpush.bf16.msrb.mxu2 %v3935_v21  ;;  %v3628_v47 = vld [vmem:[%s5246_s1 + $0x410] sm:$0xf0]  ;;  %v4312_v50 = vld [vmem:[%s5246_s1 + $0x504] sm:$0xf]  ;;  %v4031_v54 = vor.u32 %v4380_v43, %v4028_v44  ;;  %v3602_v21 = vld [vmem:[%s5246_s1 + $0x3c8] sm:$0xf] }
 0x1ce   : > { %2633 = vmatpush.bf16.msrb.mxu3 %v4063_v26  ;;  %v3756_v51 = vld [vmem:[%s5246_s1 + $0x510] sm:$0xf0]  ;;  %v4344_v53 = vld [vmem:[%s5246_s1 + $0x604] sm:$0xf]  ;;  %v3631_v0 = vor.u32 %v4280_v46, %v3628_v47  ;;  %v3475_v26 = vor.u32 %v4243_v20, %v3474_v19  ;;  %v3202_v27 = vld [vmem:[%s5246_s1 + $0xa8] sm:$0xf]  ;;  %v3603_v31 = vor.u32 %v4275_v22, %v3602_v21 }
 0x1cf   : > { %2592 = vmatpush.bf16.msrb.mxu0 %v3663_v33  ;;  %v3884_v55 = vld [vmem:[%s5246_s1 + $0x610] sm:$0xf0]  ;;  %v4376_v58 = vld [vmem:[%s5246_s1 + $0x704] sm:$0xf]  ;;  %v3759_v4 = vor.u32 %v4312_v50, %v3756_v51  ;;  %v4175_v28 = vld [vmem:[%s5246_s1 + $0xb4] sm:$0xf0] }
 0x1d0   : > { %2606 = vmatpush.bf16.msrb.mxu1 %v3791_v34  ;;  %v4012_v59 = vld [vmem:[%s5246_s1 + $0x710] sm:$0xf0]  ;;  %v3887_v5 = vor.u32 %v4344_v53, %v3884_v55  ;;  %v3330_v29 = vld [vmem:[%s5246_s1 + $0x1a8] sm:$0xf]  ;;  %v4207_v32 = vld [vmem:[%s5246_s1 + $0x1b4] sm:$0xf0]  ;;  %v3203_v37 = vor.u32 %v4175_v28, %v3202_v27 }
 0x1d1   : > { %2620 = vmatpush.bf16.msrb.mxu2 %v3919_v35  ;;  %v4015_v9 = vor.u32 %v4376_v58, %v4012_v59  ;;  %v3458_v33 = vld [vmem:[%s5246_s1 + $0x2a8] sm:$0xf]  ;;  %v4239_v34 = vld [vmem:[%s5246_s1 + $0x2b4] sm:$0xf0]  ;;  %v3331_v38 = vor.u32 %v4207_v32, %v3330_v29 }
 0x1d2   : > { %2634 = vmatpush.bf16.msrb.mxu3 %v4047_v39  ;;  %v3586_v35 = vld [vmem:[%s5246_s1 + $0x3a8] sm:$0xf]  ;;  %v4271_v36 = vld [vmem:[%s5246_s1 + $0x3b4] sm:$0xf0]  ;;  %v3459_v39 = vor.u32 %v4239_v34, %v3458_v33 }
 0x1d3   : > { %2593 = vmatpush.bf16.msrb.mxu0 %v3647_v45  ;;  %v3186_v40 = vld [vmem:[%s5246_s1 + $0x88] sm:$0xf]  ;;  %v4171_v41 = vld [vmem:[%s5246_s1 + $0x94] sm:$0xf0]  ;;  %v3587_v43 = vor.u32 %v4271_v36, %v3586_v35 }
 0x1d4   : > { %2607 = vmatpush.bf16.msrb.mxu1 %v3775_v48  ;;  %v3314_v42 = vld [vmem:[%s5246_s1 + $0x188] sm:$0xf]  ;;  %v4203_v44 = vld [vmem:[%s5246_s1 + $0x194] sm:$0xf0] }
 0x1d5   : > { %2621 = vmatpush.bf16.msrb.mxu2 %v3903_v49  ;;  %v3442_v45 = vld [vmem:[%s5246_s1 + $0x288] sm:$0xf]  ;;  %v4235_v46 = vld [vmem:[%s5246_s1 + $0x294] sm:$0xf0]  ;;  %v3187_v49 = vor.u32 %v4171_v41, %v3186_v40  ;;  %v3315_v50 = vor.u32 %v4203_v44, %v3314_v42 }
 0x1d6   : > { %2635 = vmatpush.bf16.msrb.mxu3 %v4031_v54  ;;  %v3570_v47 = vld [vmem:[%s5246_s1 + $0x388] sm:$0xf]  ;;  %v4267_v48 = vld [vmem:[%s5246_s1 + $0x394] sm:$0xf0]  ;;  %v3443_v51 = vor.u32 %v4235_v46, %v3442_v45 }
 0x1d7   : > { %2594 = vmatpush.bf16.msrb.mxu0 %v3631_v0  ;;  %v3170_v53 = vld [vmem:[%s5246_s1 + $0x68] sm:$0xf]  ;;  %v4167_v54 = vld [vmem:[%s5246_s1 + $0x74] sm:$0xf0]  ;;  %v3571_v58 = vor.u32 %v4267_v48, %v3570_v47 }
 0x1d8   : > { %2608 = vmatpush.bf16.msrb.mxu1 %v3759_v4  ;;  %v3298_v55 = vld [vmem:[%s5246_s1 + $0x168] sm:$0xf]  ;;  %v4199_v59 = vld [vmem:[%s5246_s1 + $0x174] sm:$0xf0]  ;;  %v3171_v1 = vor.u32 %v4167_v54, %v3170_v53 }
 0x1d9   : > { %2622 = vmatpush.bf16.msrb.mxu2 %v3887_v5  ;;  %v3426_v61 = vld [vmem:[%s5246_s1 + $0x268] sm:$0xf]  ;;  %v4231_v62 = vld [vmem:[%s5246_s1 + $0x274] sm:$0xf0]  ;;  %v3299_v2 = vor.u32 %v4199_v59, %v3298_v55 }
 0x1da   : > { %2636 = vmatpush.bf16.msrb.mxu3 %v4015_v9  ;;  %2595 = vmatmul.bf16.vlgmr.msrb.gmra.mxu0 %v5426_v52  ;;  %v3554_v63 = vld [vmem:[%s5246_s1 + $0x368] sm:$0xf]  ;;  %v4263_v0 = vld [vmem:[%s5246_s1 + $0x374] sm:$0xf0]  ;;  %v3427_v3 = vor.u32 %v4231_v62, %v3426_v61 }
 0x1db   : > { %2643 = vmatpush.bf16.msra.mxu0 %v3235_v10  ;;  %2609 = vmatmul.bf16.vlgmr.msrb.gmra.mxu1 %v5433_v57  ;;  %v3154_v4 = vld [vmem:[%s5246_s1 + $0x48] sm:$0xf]  ;;  %v4163_v5 = vld [vmem:[%s5246_s1 + $0x54] sm:$0xf0]  ;;  %v3555_v8 = vor.u32 %v4263_v0, %v3554_v63 }
 0x1dc   : > { %2657 = vmatpush.bf16.msra.mxu1 %v3363_v11  ;;  %2623 = vmatmul.bf16.vlgmr.msrb.gmra.mxu2 %v5431_v56  ;;  %v3282_v6 = vld [vmem:[%s5246_s1 + $0x148] sm:$0xf]  ;;  %v4195_v9 = vld [vmem:[%s5246_s1 + $0x154] sm:$0xf0]  ;;  %v3155_v15 = vor.u32 %v4163_v5, %v3154_v4 }
 0x1dd   : > { %2671 = vmatpush.bf16.msra.mxu2 %v3491_v12  ;;  %2637 = vmatmul.bf16.vlgmr.msrb.gmra.mxu3 %v5437_v60  ;;  %v3410_v10 = vld [vmem:[%s5246_s1 + $0x248] sm:$0xf]  ;;  %v4227_v11 = vld [vmem:[%s5246_s1 + $0x254] sm:$0xf0]  ;;  %v3283_v16 = vor.u32 %v4195_v9, %v3282_v6 }
 0x1de   : > { %2685 = vmatpush.bf16.msra.mxu3 %v3619_v17  ;;  %v3538_v12 = vld [vmem:[%s5246_s1 + $0x348] sm:$0xf]  ;;  %v4259_v13 = vld [vmem:[%s5246_s1 + $0x354] sm:$0xf0]  ;;  %v3411_v17 = vor.u32 %v4227_v11, %v3410_v10 }
 0x1df   : > { %2644 = vmatpush.bf16.msra.mxu0 %v3219_v24  ;;  %v3138_v18 = vld [vmem:[%s5246_s1 + $0x28] sm:$0xf]  ;;  %v4159_v19 = vld [vmem:[%s5246_s1 + $0x34] sm:$0xf0]  ;;  %v3539_v21 = vor.u32 %v4259_v13, %v3538_v12 }
 0x1e0   : > { %2658 = vmatpush.bf16.msra.mxu1 %v3347_v25  ;;  %v3266_v20 = vld [vmem:[%s5246_s1 + $0x128] sm:$0xf]  ;;  %v4191_v22 = vld [vmem:[%s5246_s1 + $0x134] sm:$0xf0]  ;;  %v3139_v28 = vor.u32 %v4159_v19, %v3138_v18 }
 0x1e1   : > { %2672 = vmatpush.bf16.msra.mxu2 %v3475_v26  ;;  %v3394_v24 = vld [vmem:[%s5246_s1 + $0x228] sm:$0xf]  ;;  %v4223_v25 = vld [vmem:[%s5246_s1 + $0x234] sm:$0xf0]  ;;  %v3267_v32 = vor.u32 %v4191_v22, %v3266_v20 }
 0x1e2   : > { %2686 = vmatpush.bf16.msra.mxu3 %v3603_v31  ;;  %v3522_v26 = vld [vmem:[%s5246_s1 + $0x328] sm:$0xf]  ;;  %v4255_v27 = vld [vmem:[%s5246_s1 + $0x334] sm:$0xf0]  ;;  %v3395_v33 = vor.u32 %v4223_v25, %v3394_v24 }
 0x1e3   : > { %2645 = vmatpush.bf16.msra.mxu0 %v3203_v37  ;;  %v3122_v29 = vld [vmem:[%s5246_s1 + $0x8] sm:$0xf]  ;;  %v4155_v31 = vld [vmem:[%s5246_s1 + $0x14] sm:$0xf0]  ;;  %v3523_v37 = vor.u32 %v4255_v27, %v3522_v26 }
 0x1e4   : > { %2659 = vmatpush.bf16.msra.mxu1 %v3331_v38  ;;  %v3250_v34 = vld [vmem:[%s5246_s1 + $0x108] sm:$0xf]  ;;  %v4187_v35 = vld [vmem:[%s5246_s1 + $0x114] sm:$0xf0]  ;;  %v3123_v44 = vor.u32 %v4155_v31, %v3122_v29 }
 0x1e5   : > { %2673 = vmatpush.bf16.msra.mxu2 %v3459_v39  ;;  %v3378_v36 = vld [vmem:[%s5246_s1 + $0x208] sm:$0xf]  ;;  %v4219_v38 = vld [vmem:[%s5246_s1 + $0x214] sm:$0xf0]  ;;  %v3251_v48 = vor.u32 %v4187_v35, %v3250_v34 }
 0x1e6   : > { %2687 = vmatpush.bf16.msra.mxu3 %v3587_v43  ;;  %v3506_v39 = vld [vmem:[%s5246_s1 + $0x308] sm:$0xf]  ;;  %v4251_v40 = vld [vmem:[%s5246_s1 + $0x314] sm:$0xf0] }
 0x1e7   : > { %2646 = vmatpush.bf16.msra.mxu0 %v3187_v49  ;;  %v3746_v41 = vld [vmem:[%s5246_s1 + $0x4e8] sm:$0xf]  ;;  %v4311_v42 = vld [vmem:[%s5246_s1 + $0x4f4] sm:$0xf0]  ;;  %v3379_v49 = vor.u32 %v4219_v38, %v3378_v36  ;;  %v3507_v53 = vor.u32 %v4251_v40, %v3506_v39 }
 0x1e8   : > { %2660 = vmatpush.bf16.msra.mxu1 %v3315_v50  ;;  %v3874_v43 = vld [vmem:[%s5246_s1 + $0x5e8] sm:$0xf]  ;;  %v4343_v45 = vld [vmem:[%s5246_s1 + $0x5f4] sm:$0xf0]  ;;  %v3747_v54 = vor.u32 %v4311_v42, %v3746_v41 }
 0x1e9   : > { %2674 = vmatpush.bf16.msra.mxu2 %v3443_v51  ;;  %v4002_v46 = vld [vmem:[%s5246_s1 + $0x6e8] sm:$0xf]  ;;  %v4375_v47 = vld [vmem:[%s5246_s1 + $0x6f4] sm:$0xf0]  ;;  %v3875_v55 = vor.u32 %v4343_v45, %v3874_v43 }
 0x1ea   : > { %2688 = vmatpush.bf16.msra.mxu3 %v3571_v58  ;;  %v4130_v50 = vld [vmem:[%s5246_s1 + $0x7e8] sm:$0xf]  ;;  %v4407_v51 = vld [vmem:[%s5246_s1 + $0x7f4] sm:$0xf0]  ;;  %v4003_v58 = vor.u32 %v4375_v47, %v4002_v46 }
 0x1eb   : > { %2647 = vmatpush.bf16.msra.mxu0 %v3171_v1  ;;  %v3730_v59 = vld [vmem:[%s5246_s1 + $0x4c8] sm:$0xf]  ;;  %v4307_v61 = vld [vmem:[%s5246_s1 + $0x4d4] sm:$0xf0]  ;;  %v4131_v63 = vor.u32 %v4407_v51, %v4130_v50 }
 0x1ec   : > { %2661 = vmatpush.bf16.msra.mxu1 %v3299_v2  ;;  %v3858_v62 = vld [vmem:[%s5246_s1 + $0x5c8] sm:$0xf]  ;;  %v4339_v0 = vld [vmem:[%s5246_s1 + $0x5d4] sm:$0xf0]  ;;  %v3731_v5 = vor.u32 %v4307_v61, %v3730_v59 }
 0x1ed   : > { %2675 = vmatpush.bf16.msra.mxu2 %v3427_v3  ;;  %v3986_v1 = vld [vmem:[%s5246_s1 + $0x6c8] sm:$0xf]  ;;  %v4371_v2 = vld [vmem:[%s5246_s1 + $0x6d4] sm:$0xf0]  ;;  %v3859_v6 = vor.u32 %v4339_v0, %v3858_v62 }
 0x1ee   : > { %2689 = vmatpush.bf16.msra.mxu3 %v3555_v8  ;;  %v4114_v3 = vld [vmem:[%s5246_s1 + $0x7c8] sm:$0xf]  ;;  %v4403_v4 = vld [vmem:[%s5246_s1 + $0x7d4] sm:$0xf0]  ;;  %v3987_v8 = vor.u32 %v4371_v2, %v3986_v1 }
 0x1ef   : > { %2648 = vmatpush.bf16.msra.mxu0 %v3155_v15  ;;  %v3714_v9 = vld [vmem:[%s5246_s1 + $0x4a8] sm:$0xf]  ;;  %v4303_v10 = vld [vmem:[%s5246_s1 + $0x4b4] sm:$0xf0]  ;;  %v4115_v12 = vor.u32 %v4403_v4, %v4114_v3 }
 0x1f0   : > { %2662 = vmatpush.bf16.msra.mxu1 %v3283_v16  ;;  %v3842_v11 = vld [vmem:[%s5246_s1 + $0x5a8] sm:$0xf]  ;;  %v4335_v13 = vld [vmem:[%s5246_s1 + $0x5b4] sm:$0xf0]  ;;  %v3715_v19 = vor.u32 %v4303_v10, %v3714_v9 }
 0x1f1   : > { %2676 = vmatpush.bf16.msra.mxu2 %v3411_v17  ;;  %v3970_v15 = vld [vmem:[%s5246_s1 + $0x6a8] sm:$0xf]  ;;  %v4367_v16 = vld [vmem:[%s5246_s1 + $0x6b4] sm:$0xf0]  ;;  %v3843_v20 = vor.u32 %v4335_v13, %v3842_v11 }
 0x1f2   : > { %2690 = vmatpush.bf16.msra.mxu3 %v3539_v21  ;;  %v4098_v17 = vld [vmem:[%s5246_s1 + $0x7a8] sm:$0xf]  ;;  %v4399_v18 = vld [vmem:[%s5246_s1 + $0x7b4] sm:$0xf0]  ;;  %v3971_v21 = vor.u32 %v4367_v16, %v3970_v15 }
 0x1f3   : > { %2649 = vmatpush.bf16.msra.mxu0 %v3139_v28  ;;  %v3698_v22 = vld [vmem:[%s5246_s1 + $0x488] sm:$0xf]  ;;  %v4299_v24 = vld [vmem:[%s5246_s1 + $0x494] sm:$0xf0]  ;;  %v4099_v26 = vor.u32 %v4399_v18, %v4098_v17 }
 0x1f4   : > { %2663 = vmatpush.bf16.msra.mxu1 %v3267_v32  ;;  %v3826_v25 = vld [vmem:[%s5246_s1 + $0x588] sm:$0xf]  ;;  %v4331_v27 = vld [vmem:[%s5246_s1 + $0x594] sm:$0xf0] }
 0x1f5   : > { %2677 = vmatpush.bf16.msra.mxu2 %v3395_v33  ;;  %v3954_v28 = vld [vmem:[%s5246_s1 + $0x688] sm:$0xf]  ;;  %v4363_v29 = vld [vmem:[%s5246_s1 + $0x694] sm:$0xf0]  ;;  %v3699_v33 = vor.u32 %v4299_v24, %v3698_v22  ;;  %v3827_v34 = vor.u32 %v4331_v27, %v3826_v25  ;;  %v3236_v27 = vld [vmem:[%s5246_s1 + $0xf8] sm:$0xf0] }
 0x1f6   : > { %2691 = vmatpush.bf16.msra.mxu3 %v3523_v37  ;;  %v4082_v31 = vld [vmem:[%s5246_s1 + $0x788] sm:$0xf]  ;;  %v4395_v32 = vld [vmem:[%s5246_s1 + $0x794] sm:$0xf0]  ;;  %v3955_v35 = vor.u32 %v4363_v29, %v3954_v28  ;;  %v2442_v9 = vpop.f32.mrf.mxu1  ;;  %v4213_v28 = vld [vmem:[%s5246_s1 + $0x1ec] sm:$0xf] }
 0x1f7   : > { %2650 = vmatpush.bf16.msra.mxu0 %v3123_v44  ;;  %v3682_v36 = vld [vmem:[%s5246_s1 + $0x468] sm:$0xf]  ;;  %v4295_v37 = vld [vmem:[%s5246_s1 + $0x474] sm:$0xf0]  ;;  %v4083_v39 = vor.u32 %v4395_v32, %v4082_v31  ;;  %v3364_v31 = vld [vmem:[%s5246_s1 + $0x1f8] sm:$0xf0] }
 0x1f8   : > { %2664 = vmatpush.bf16.msra.mxu1 %v3251_v48  ;;  %v3810_v38 = vld [vmem:[%s5246_s1 + $0x568] sm:$0xf]  ;;  %v4327_v40 = vld [vmem:[%s5246_s1 + $0x574] sm:$0xf0]  ;;  %v3683_v45 = vor.u32 %v4295_v37, %v3682_v36  ;;  %v4245_v32 = vld [vmem:[%s5246_s1 + $0x2ec] sm:$0xf] }
 0x1f9   : > { %2678 = vmatpush.bf16.msra.mxu2 %v3379_v49  ;;  %v3938_v41 = vld [vmem:[%s5246_s1 + $0x668] sm:$0xf]  ;;  %v4359_v42 = vld [vmem:[%s5246_s1 + $0x674] sm:$0xf0]  ;;  %v3811_v46 = vor.u32 %v4327_v40, %v3810_v38  ;;  %v4277_v37 = vld [vmem:[%s5246_s1 + $0x3ec] sm:$0xf] }
 0x1fa   : > { %2692 = vmatpush.bf16.msra.mxu3 %v3507_v53  ;;  %2651 = vmatmul.bf16.vlgmr.msra.gmra.mxu0 %v5344_v7  ;;  %v4066_v43 = vld [vmem:[%s5246_s1 + $0x768] sm:$0xf]  ;;  %v4391_v44 = vld [vmem:[%s5246_s1 + $0x774] sm:$0xf0]  ;;  %v3939_v47 = vor.u32 %v4359_v42, %v3938_v41  ;;  %v3620_v38 = vld [vmem:[%s5246_s1 + $0x3f8] sm:$0xf0] }
 0x1fb   : > { %2699 = vmatpush.bf16.msrb.mxu0 %v3747_v54  ;;  %2665 = vmatmul.bf16.vlgmr.msra.gmra.mxu1 %v5360_v23  ;;  %v3666_v48 = vld [vmem:[%s5246_s1 + $0x448] sm:$0xf]  ;;  %v4291_v49 = vld [vmem:[%s5246_s1 + $0x454] sm:$0xf0]  ;;  %v4067_v51 = vor.u32 %v4391_v44, %v4066_v43  ;;  %v3367_v43 = vor.u32 %v4213_v28, %v3364_v31  ;;  %v3572_v28 = vld [vmem:[%s5246_s1 + $0x398] sm:$0xf0] }
 0x1fc   : > { %2713 = vmatpush.bf16.msrb.mxu1 %v3875_v55  ;;  %2679 = vmatmul.bf16.vlgmr.msra.gmra.mxu2 %v5350_v14  ;;  %v3794_v50 = vld [vmem:[%s5246_s1 + $0x548] sm:$0xf]  ;;  %v4323_v53 = vld [vmem:[%s5246_s1 + $0x554] sm:$0xf0]  ;;  %v3667_v61 = vor.u32 %v4291_v49, %v3666_v48  ;;  %v4209_v48 = vld [vmem:[%s5246_s1 + $0x1cc] sm:$0xf]  ;;  %v3623_v49 = vor.u32 %v4277_v37, %v3620_v38 }
 0x1fd   : > { %2727 = vmatpush.bf16.msrb.mxu2 %v4003_v58  ;;  %2693 = vmatmul.bf16.vlgmr.msra.gmra.mxu3 %v5366_v30  ;;  %v3922_v54 = vld [vmem:[%s5246_s1 + $0x648] sm:$0xf]  ;;  %v4355_v55 = vld [vmem:[%s5246_s1 + $0x654] sm:$0xf0]  ;;  %v3795_v62 = vor.u32 %v4323_v53, %v3794_v50  ;;  %v3348_v50 = vld [vmem:[%s5246_s1 + $0x1d8] sm:$0xf0] }
 0x1fe   : > { %2741 = vmatpush.bf16.msrb.mxu3 %v4131_v63  ;;  %v4050_v58 = vld [vmem:[%s5246_s1 + $0x748] sm:$0xf]  ;;  %v4387_v59 = vld [vmem:[%s5246_s1 + $0x754] sm:$0xf0]  ;;  %v3923_v63 = vor.u32 %v4355_v55, %v3922_v54  ;;  %v3476_v53 = vld [vmem:[%s5246_s1 + $0x2d8] sm:$0xf0]  ;;  %v2444_v54 = vpop.f32.mrf.mxu1 }
 0x1ff   : > { %2700 = vmatpush.bf16.msrb.mxu0 %v3731_v5  ;;  %v2428_v0 = vpop.f32.mrf.mxu0  ;;  %v3650_v1 = vld [vmem:[%s5246_s1 + $0x428] sm:$0xf]  ;;  %v4287_v2 = vld [vmem:[%s5246_s1 + $0x434] sm:$0xf0]  ;;  %v4051_v4 = vor.u32 %v4387_v59, %v4050_v58  ;;  %v4273_v55 = vld [vmem:[%s5246_s1 + $0x3cc] sm:$0xf] }
 0x200   : > { %2714 = vmatpush.bf16.msrb.mxu1 %v3859_v6  ;;  %v3778_v3 = vld [vmem:[%s5246_s1 + $0x528] sm:$0xf]  ;;  %v4319_v5 = vld [vmem:[%s5246_s1 + $0x534] sm:$0xf0]  ;;  %v2443_v40 = vadd.f32 %v2442_v9, %v2428_v0  ;;  %v3604_v58 = vld [vmem:[%s5246_s1 + $0x3d8] sm:$0xf0] }
 0x201   : > { %2728 = vmatpush.bf16.msrb.mxu2 %v3987_v8  ;;  %v3906_v6 = vld [vmem:[%s5246_s1 + $0x628] sm:$0xf]  ;;  %v4351_v8 = vld [vmem:[%s5246_s1 + $0x634] sm:$0xf0]  ;;  %v3779_v16 = vor.u32 %v4319_v5, %v3778_v3  ;;  %v4173_v0 = vld [vmem:[%s5246_s1 + $0xac] sm:$0xf]  ;;  %v3607_v3 = vor.u32 %v4273_v55, %v3604_v58 }
 0x202   : > { %2742 = vmatpush.bf16.msrb.mxu3 %v4115_v12  ;;  %v4034_v10 = vld [vmem:[%s5246_s1 + $0x728] sm:$0xf]  ;;  %v4383_v11 = vld [vmem:[%s5246_s1 + $0x734] sm:$0xf0]  ;;  %v3651_v12 = vor.u32 %v4287_v2, %v3650_v1  ;;  %v3907_v17 = vor.u32 %v4351_v8, %v3906_v6  ;;  %v3204_v1 = vld [vmem:[%s5246_s1 + $0xb8] sm:$0xf0] }
 0x203   : > { %2701 = vmatpush.bf16.msrb.mxu0 %v3715_v19  ;;  %v3634_v13 = vld [vmem:[%s5246_s1 + $0x408] sm:$0xf]  ;;  %v4283_v15 = vld [vmem:[%s5246_s1 + $0x414] sm:$0xf0]  ;;  %v4205_v2 = vld [vmem:[%s5246_s1 + $0x1ac] sm:$0xf] }
 0x204   : > { %2715 = vmatpush.bf16.msrb.mxu1 %v3843_v20  ;;  %v3762_v18 = vld [vmem:[%s5246_s1 + $0x508] sm:$0xf]  ;;  %v4315_v19 = vld [vmem:[%s5246_s1 + $0x514] sm:$0xf0]  ;;  %v3635_v29 = vor.u32 %v4283_v15, %v3634_v13  ;;  %v4237_v5 = vld [vmem:[%s5246_s1 + $0x2ac] sm:$0xf] }
 0x205   : > { %2729 = vmatpush.bf16.msrb.mxu2 %v3971_v21  ;;  %v3890_v20 = vld [vmem:[%s5246_s1 + $0x608] sm:$0xf]  ;;  %v4035_v21 = vor.u32 %v4383_v11, %v4034_v10  ;;  %v4347_v22 = vld [vmem:[%s5246_s1 + $0x614] sm:$0xf0]  ;;  %v3460_v6 = vld [vmem:[%s5246_s1 + $0x2b8] sm:$0xf0]  ;;  %v3207_v11 = vor.u32 %v4173_v0, %v3204_v1 }
 0x206   : > { %2743 = vmatpush.bf16.msrb.mxu3 %v4099_v26  ;;  %v4018_v24 = vld [vmem:[%s5246_s1 + $0x708] sm:$0xf]  ;;  %v4379_v25 = vld [vmem:[%s5246_s1 + $0x714] sm:$0xf0]  ;;  %v4181_v26 = vld [vmem:[%s5246_s1 + $0xec] sm:$0xf]  ;;  %v3891_v36 = vor.u32 %v4347_v22, %v3890_v20  ;;  %v3463_v15 = vor.u32 %v4237_v5, %v3460_v6 }
 0x207   : > { %2702 = vmatpush.bf16.msrb.mxu0 %v3699_v33  ;;  %v3492_v33 = vld [vmem:[%s5246_s1 + $0x2f8] sm:$0xf0]  ;;  %v4019_v41 = vor.u32 %v4379_v25, %v4018_v24  ;;  %v3239_v42 = vor.u32 %v4181_v26, %v3236_v27  ;;  %v4269_v8 = vld [vmem:[%s5246_s1 + $0x3ac] sm:$0xf] }
 0x208   : > { %2716 = vmatpush.bf16.msrb.mxu1 %v3827_v34  ;;  %v2456_v34 = vpop.f32.mrf.mxu2  ;;  %v3495_v44 = vor.u32 %v4245_v32, %v3492_v33  ;;  %v3588_v9 = vld [vmem:[%s5246_s1 + $0x3b8] sm:$0xf0]  ;;  %v4233_v22 = vld [vmem:[%s5246_s1 + $0x28c] sm:$0xf] }
 0x209   : > { %2730 = vmatpush.bf16.msrb.mxu2 %v3955_v35  ;;  %v3763_v35 = vor.u32 %v4315_v19, %v3762_v18  ;;  %v2457_v59 = vadd.f32 %v2456_v34, %v2443_v40  ;;  %v3188_v18 = vld [vmem:[%s5246_s1 + $0x98] sm:$0xf0]  ;;  %v4201_v19 = vld [vmem:[%s5246_s1 + $0x18c] sm:$0xf]  ;;  %v3591_v20 = vor.u32 %v4269_v8, %v3588_v9 }
 0x20a   : > { %2744 = vmatpush.bf16.msrb.mxu3 %v4083_v39  ;;  %v2470_v39 = vpop.f32.mrf.mxu3  ;;  %v3444_v24 = vld [vmem:[%s5246_s1 + $0x298] sm:$0xf0]  ;;  %v4265_v27 = vld [vmem:[%s5246_s1 + $0x38c] sm:$0xf] }
 0x20b   : > { %2703 = vmatpush.bf16.msrb.mxu0 %v3683_v45  ;;  %v2430_v45 = vpop.f32.mrf.mxu0  ;;  %v2471_v10 = vadd.f32 %v2470_v39, %v2457_v59  ;;  %v3447_v34 = vor.u32 %v4233_v22, %v3444_v24  ;;  %v4197_v37 = vld [vmem:[%s5246_s1 + $0x16c] sm:$0xf]  ;;  %v3575_v38 = vor.u32 %v4265_v27, %v3572_v28  ;;  %v3300_v39 = vld [vmem:[%s5246_s1 + $0x178] sm:$0xf0] }
 0x20c   : > { %2717 = vmatpush.bf16.msrb.mxu1 %v3811_v46  ;;  %v4177_v46 = vld [vmem:[%s5246_s1 + $0xcc] sm:$0xf]  ;;  %v2445_v25 = vadd.f32 %v2444_v54, %v2430_v45  ;;  %v3556_v45 = vld [vmem:[%s5246_s1 + $0x378] sm:$0xf0] }
 0x20d   : > { %2731 = vmatpush.bf16.msrb.mxu2 %v3939_v47  ;;  %v3220_v47 = vld [vmem:[%s5246_s1 + $0xd8] sm:$0xf0]  ;;  %v4229_v40 = vld [vmem:[%s5246_s1 + $0x26c] sm:$0xf] }
 0x20e   : > { %2745 = vmatpush.bf16.msrb.mxu3 %v4067_v51  ;;  %v4241_v51 = vld [vmem:[%s5246_s1 + $0x2cc] sm:$0xf]  ;;  %v3412_v59 = vld [vmem:[%s5246_s1 + $0x258] sm:$0xf0] }
 0x20f   : > { %2704 = vmatpush.bf16.msrb.mxu0 %v3667_v61  ;;  %v3223_v61 = vor.u32 %v4177_v46, %v3220_v47  ;;  %v4161_v47 = vld [vmem:[%s5246_s1 + $0x4c] sm:$0xf] }
 0x210   : > { %2718 = vmatpush.bf16.msrb.mxu1 %v3795_v62  ;;  %v3351_v62 = vor.u32 %v4209_v48, %v3348_v50  ;;  %v3303_v48 = vor.u32 %v4197_v37, %v3300_v39  ;;  %v3156_v50 = vld [vmem:[%s5246_s1 + $0x58] sm:$0xf0]  ;;  %v4225_v58 = vld [vmem:[%s5246_s1 + $0x24c] sm:$0xf] }
 0x211   : > { %2732 = vmatpush.bf16.msrb.mxu2 %v3923_v63  ;;  %v3479_v63 = vor.u32 %v4241_v51, %v3476_v53  ;;  %v4193_v51 = vld [vmem:[%s5246_s1 + $0x14c] sm:$0xf]  ;;  %v3284_v53 = vld [vmem:[%s5246_s1 + $0x158] sm:$0xf0]  ;;  %v3415_v9 = vor.u32 %v4225_v58, %v3412_v59 }
 0x212   : > { %2746 = vmatpush.bf16.msrb.mxu3 %v4051_v4  ;;  %v3332_v4 = vld [vmem:[%s5246_s1 + $0x1b8] sm:$0xf0]  ;;  %v4257_v1 = vld [vmem:[%s5246_s1 + $0x34c] sm:$0xf]  ;;  %v3287_v5 = vor.u32 %v4193_v51, %v3284_v53 }
 0x213   : > { %2705 = vmatpush.bf16.msrb.mxu0 %v3651_v12  ;;  %v2458_v12 = vpop.f32.mrf.mxu2  ;;  %v3335_v13 = vor.u32 %v4205_v2, %v3332_v4  ;;  %v3540_v2 = vld [vmem:[%s5246_s1 + $0x358] sm:$0xf0]  ;;  %v3159_v4 = vor.u32 %v4161_v47, %v3156_v50  ;;  %v4153_v24 = vld [vmem:[%s5246_s1 + $0xc] sm:$0xf] }
 0x214   : > { %2719 = vmatpush.bf16.msrb.mxu1 %v3779_v16  ;;  %v2472_v16 = vpop.f32.mrf.mxu3  ;;  %v4249_v37 = vld [vmem:[%s5246_s1 + $0x30c] sm:$0xf]  ;;  %v4004_v47 = vld [vmem:[%s5246_s1 + $0x6f8] sm:$0xf0] }
 0x215   : > { %2733 = vmatpush.bf16.msrb.mxu2 %v3907_v17  ;;  %v4169_v17 = vld [vmem:[%s5246_s1 + $0x8c] sm:$0xf]  ;;  %v4132_v53 = vld [vmem:[%s5246_s1 + $0x7f8] sm:$0xf0] }
 0x216   : > { %2747 = vmatpush.bf16.msrb.mxu3 %v4035_v21  ;;  %v3316_v21 = vld [vmem:[%s5246_s1 + $0x198] sm:$0xf0]  ;;  %v3191_v31 = vor.u32 %v4169_v17, %v3188_v18  ;;  %v4221_v17 = vld [vmem:[%s5246_s1 + $0x22c] sm:$0xf] }
 0x217   : > { %2706 = vmatpush.bf16.msrb.mxu0 %v3635_v29  ;;  %v2484_v26 = vpop.f32.mrf.mxu0  ;;  %v3319_v33 = vor.u32 %v4201_v19, %v3316_v21  ;;  %v3396_v18 = vld [vmem:[%s5246_s1 + $0x238] sm:$0xf0]  ;;  %v4405_v51 = vld [vmem:[%s5246_s1 + $0x7ec] sm:$0xf] }
 0x218   : > { %2720 = vmatpush.bf16.msrb.mxu1 %v3763_v35  ;;  %v2485_v29 = vadd.f32 %v2484_v26, %v2471_v10  ;;  %v2498_v32 = vpop.f32.mrf.mxu1  ;;  %v4165_v35 = vld [vmem:[%s5246_s1 + $0x6c] sm:$0xf]  ;;  %v3524_v21 = vld [vmem:[%s5246_s1 + $0x338] sm:$0xf0]  ;;  %v3399_v28 = vor.u32 %v4221_v17, %v3396_v18 }
 0x219   : > { %2734 = vmatpush.bf16.msrb.mxu2 %v3891_v36  ;;  %v3172_v36 = vld [vmem:[%s5246_s1 + $0x78] sm:$0xf0]  ;;  %v4157_v10 = vld [vmem:[%s5246_s1 + $0x2c] sm:$0xf] }
 0x21a   : > { %2748 = vmatpush.bf16.msrb.mxu3 %v4019_v41  ;;  %2707 = vmatmul.bf16.vlgmr.msrb.gmra.mxu0 %v5426_v52  ;;  %v3428_v41 = vld [vmem:[%s5246_s1 + $0x278] sm:$0xf0]  ;;  %v3175_v46 = vor.u32 %v4165_v35, %v3172_v36  ;;  %v831_v35 = vld [vmem:[%s5248_s25 + $0x20] sm:$0xff]  ;;  %v4365_v17 = vld [vmem:[%s5246_s1 + $0x6ac] sm:$0xf] }
 0x21b   : > { %2755 = vmatpush.bf16.msra.mxu0 %v3239_v42  ;;  %2721 = vmatmul.bf16.vlgmr.msrb.gmra.mxu1 %v5433_v57  ;;  %v2459_v42 = vadd.f32 %v2458_v12, %v2445_v25  ;;  %v4189_v12 = vld [vmem:[%s5246_s1 + $0x12c] sm:$0xf]  ;;  %v3124_v25 = vld [vmem:[%s5246_s1 + $0x18] sm:$0xf0] }
 0x21c   : > { %2769 = vmatpush.bf16.msra.mxu1 %v3367_v43  ;;  %2735 = vmatmul.bf16.vlgmr.msrb.gmra.mxu2 %v5431_v56  ;;  %v2499_v43 = vadd.f32 %v2498_v32, %v2485_v29  ;;  %v4185_v29 = vld [vmem:[%s5246_s1 + $0x10c] sm:$0xf]  ;;  %v3380_v36 = vld [vmem:[%s5246_s1 + $0x218] sm:$0xf0] }
 0x21d   : > { %2783 = vmatpush.bf16.msra.mxu2 %v3495_v44  ;;  %2749 = vmatmul.bf16.vlgmr.msrb.gmra.mxu3 %v5437_v60  ;;  %v4261_v44 = vld [vmem:[%s5246_s1 + $0x36c] sm:$0xf]  ;;  %v3972_v18 = vld [vmem:[%s5246_s1 + $0x6b8] sm:$0xf0] }
 0x21e   : > { %2797 = vmatpush.bf16.msra.mxu3 %v3623_v49  ;;  %v3431_v49 = vor.u32 %v4229_v40, %v3428_v41  ;;  %v3559_v54 = vor.u32 %v4261_v44, %v3556_v45  ;;  %v4217_v32 = vld [vmem:[%s5246_s1 + $0x20c] sm:$0xf]  ;;  %v3127_v44 = vor.u32 %v4153_v24, %v3124_v25  ;;  %v3876_v45 = vld [vmem:[%s5246_s1 + $0x5f8] sm:$0xf0] }
 0x21f   : > { %2756 = vmatpush.bf16.msra.mxu0 %v3223_v61  ;;  %v2512_v55 = vpop.f32.mrf.mxu2  ;;  %v2473_v61 = vadd.f32 %v2472_v16, %v2459_v42  ;;  %v3268_v16 = vld [vmem:[%s5246_s1 + $0x138] sm:$0xf0]  ;;  %v4309_v41 = vld [vmem:[%s5246_s1 + $0x4ec] sm:$0xf]  ;;  %v3383_v50 = vor.u32 %v4217_v32, %v3380_v36 }
 0x220   : > { %2770 = vmatpush.bf16.msra.mxu1 %v3351_v62  ;;  %v2513_v62 = vadd.f32 %v2512_v55, %v2499_v43  ;;  %v2526_v0 = vpop.f32.mrf.mxu3  ;;  %v3271_v27 = vor.u32 %v4189_v12, %v3268_v16  ;;  %v3748_v42 = vld [vmem:[%s5246_s1 + $0x4f8] sm:$0xf0]  ;;  %v4341_v43 = vld [vmem:[%s5246_s1 + $0x5ec] sm:$0xf] }
 0x221   : > { %2784 = vmatpush.bf16.msra.mxu2 %v3479_v63  ;;  %v2486_v63 = vpop.f32.mrf.mxu0  ;;  %v3751_v55 = vor.u32 %v4309_v41, %v3748_v42  ;;  %v3879_v59 = vor.u32 %v4341_v43, %v3876_v45  ;;  %v3716_v12 = vld [vmem:[%s5246_s1 + $0x4b8] sm:$0xf0]  ;;  %v4297_v24 = vld [vmem:[%s5246_s1 + $0x48c] sm:$0xf] }
 0x222   : > { %2798 = vmatpush.bf16.msra.mxu3 %v3607_v3  ;;  %v827_v3 = vld [vmem:[%s5248_s25] sm:$0xff]  ;;  %v2487_v6 = vadd.f32 %v2486_v63, %v2473_v61  ;;  %v2527_v8 = vadd.f32 %v2526_v0, %v2513_v62  ;;  %v4305_v62 = vld [vmem:[%s5246_s1 + $0x4cc] sm:$0xf]  ;;  %v3732_v63 = vld [vmem:[%s5246_s1 + $0x4d8] sm:$0xf0] }
 0x223   : > { %2757 = vmatpush.bf16.msra.mxu0 %v3207_v11  ;;  %v3140_v11 = vld [vmem:[%s5246_s1 + $0x38] sm:$0xf0]  ;;  %v4337_v0 = vld [vmem:[%s5246_s1 + $0x5cc] sm:$0xf] }
 0x224   : > { %2771 = vmatpush.bf16.msra.mxu1 %v3335_v13  ;;  %v3543_v13 = vor.u32 %v4257_v1, %v3540_v2  ;;  %v2867_v19 = vadd.f32 %v2527_v8, %v827_v3  ;;  %v3143_v22 = vor.u32 %v4157_v10, %v3140_v11  ;;  %v4135_v1 = vor.u32 %v4405_v51, %v4132_v53  ;;  %v3860_v2 = vld [vmem:[%s5246_s1 + $0x5d8] sm:$0xf0]  ;;  %v4369_v3 = vld [vmem:[%s5246_s1 + $0x6cc] sm:$0xf] }
 0x225   : > { %2785 = vmatpush.bf16.msra.mxu2 %v3463_v15  ;;  %v2500_v15 = vpop.f32.mrf.mxu1  ;;  %v3735_v8 = vor.u32 %v4305_v62, %v3732_v63  ;;  %v4301_v11 = vld [vmem:[%s5246_s1 + $0x4ac] sm:$0xf]  ;;  %v3844_v16 = vld [vmem:[%s5246_s1 + $0x5b8] sm:$0xf0] }
 0x226   : > { %2799 = vmatpush.bf16.msra.mxu3 %v3591_v20  ;;  %v4253_v20 = vld [vmem:[%s5246_s1 + $0x32c] sm:$0xf]  ;;  %2875 = vst [vmem:[%s5248_s25] sm:$0xff] %v2867_v19  ;;  %v2501_v26 = vadd.f32 %v2500_v15, %v2487_v6  ;;  %v4116_v6 = vld [vmem:[%s5246_s1 + $0x7d8] sm:$0xf0] }
 0x227   : > { %2758 = vmatpush.bf16.msra.mxu0 %v3191_v31  ;;  %v3252_v31 = vld [vmem:[%s5246_s1 + $0x118] sm:$0xf0]  ;;  %v4397_v19 = vld [vmem:[%s5246_s1 + $0x7ac] sm:$0xf] }
 0x228   : > { %2772 = vmatpush.bf16.msra.mxu1 %v3319_v33  ;;  %v3527_v33 = vor.u32 %v4253_v20, %v3524_v21  ;;  %v2528_v40 = vpop.f32.mrf.mxu3  ;;  %v4100_v20 = vld [vmem:[%s5246_s1 + $0x7b8] sm:$0xf0]  ;;  %v3719_v21 = vor.u32 %v4301_v11, %v3716_v12  ;;  %v4329_v25 = vld [vmem:[%s5246_s1 + $0x58c] sm:$0xf] }
 0x229   : > { %2786 = vmatpush.bf16.msra.mxu2 %v3447_v34  ;;  %v2514_v34 = vpop.f32.mrf.mxu2  ;;  %v4325_v36 = vld [vmem:[%s5246_s1 + $0x56c] sm:$0xf]  ;;  %v4068_v42 = vld [vmem:[%s5246_s1 + $0x778] sm:$0xf0] }
 0x22a   : > { %2800 = vmatpush.bf16.msra.mxu3 %v3575_v38  ;;  %v3508_v38 = vld [vmem:[%s5246_s1 + $0x318] sm:$0xf0]  ;;  %v2515_v39 = vadd.f32 %v2514_v34, %v2501_v26  ;;  %v4103_v26 = vor.u32 %v4397_v19, %v4100_v20  ;;  %v4293_v34 = vld [vmem:[%s5246_s1 + $0x46c] sm:$0xf] }
 0x22b   : > { %2759 = vmatpush.bf16.msra.mxu0 %v3175_v46  ;;  %v4373_v46 = vld [vmem:[%s5246_s1 + $0x6ec] sm:$0xf]  ;;  %v3924_v53 = vld [vmem:[%s5246_s1 + $0x658] sm:$0xf0] }
 0x22c   : > { %2773 = vmatpush.bf16.msra.mxu1 %v3303_v48  ;;  %v2529_v48 = vadd.f32 %v2528_v40, %v2515_v39  ;;  %v4007_v61 = vor.u32 %v4373_v46, %v4004_v47  ;;  %v4357_v39 = vld [vmem:[%s5246_s1 + $0x66c] sm:$0xf]  ;;  %v3940_v40 = vld [vmem:[%s5246_s1 + $0x678] sm:$0xf0] }
 0x22d   : > { %2787 = vmatpush.bf16.msra.mxu2 %v3431_v49  ;;  %v3255_v49 = vor.u32 %v4185_v29, %v3252_v31  ;;  %v4393_v29 = vld [vmem:[%s5246_s1 + $0x78c] sm:$0xf]  ;;  %v3943_v45 = vor.u32 %v4357_v39, %v3940_v40  ;;  %v3668_v47 = vld [vmem:[%s5246_s1 + $0x458] sm:$0xf0] }
 0x22e   : > { %2801 = vmatpush.bf16.msra.mxu3 %v3559_v54  ;;  %v3511_v54 = vor.u32 %v4249_v37, %v3508_v38  ;;  %v2871_v58 = vadd.f32 %v2529_v48, %v831_v35  ;;  %v3684_v35 = vld [vmem:[%s5246_s1 + $0x478] sm:$0xf0]  ;;  %v4389_v41 = vld [vmem:[%s5246_s1 + $0x76c] sm:$0xf] }
 0x22f   : > { %2760 = vmatpush.bf16.msra.mxu0 %v3159_v4  ;;  %v3988_v4 = vld [vmem:[%s5246_s1 + $0x6d8] sm:$0xf0]  ;;  %v3687_v43 = vor.u32 %v4293_v34, %v3684_v35  ;;  %v4289_v46 = vld [vmem:[%s5246_s1 + $0x44c] sm:$0xf] }
 0x230   : > { %2774 = vmatpush.bf16.msra.mxu1 %v3287_v5  ;;  %2879 = vst [vmem:[%s5248_s25 + $0x20] sm:$0xff] %v2871_v58  ;;  %v4401_v5 = vld [vmem:[%s5246_s1 + $0x7cc] sm:$0xf]  ;;  %v3991_v10 = vor.u32 %v4369_v3, %v3988_v4  ;;  %v3812_v38 = vld [vmem:[%s5246_s1 + $0x578] sm:$0xf0]  ;;  %v3671_v58 = vor.u32 %v4289_v46, %v3668_v47 }
 0x231   : > { %2788 = vmatpush.bf16.msra.mxu2 %v3415_v9  ;;  %v3863_v9 = vor.u32 %v4337_v0, %v3860_v2  ;;  %v4119_v15 = vor.u32 %v4401_v5, %v4116_v6  ;;  %v4321_v48 = vld [vmem:[%s5246_s1 + $0x54c] sm:$0xf]  ;;  %v3652_v0 = vld [vmem:[%s5246_s1 + $0x438] sm:$0xf0] }
 0x232   : > { %2802 = vmatpush.bf16.msra.mxu3 %v3543_v13  ;;  %v4333_v13 = vld [vmem:[%s5246_s1 + $0x5ac] sm:$0xf]  ;;  %v3780_v3 = vld [vmem:[%s5246_s1 + $0x538] sm:$0xf0] }
 0x233   : > { %2761 = vmatpush.bf16.msra.mxu0 %v3143_v22  ;;  %v3975_v22 = vor.u32 %v4365_v17, %v3972_v18  ;;  %v4353_v51 = vld [vmem:[%s5246_s1 + $0x64c] sm:$0xf]  ;;  %v3908_v5 = vld [vmem:[%s5246_s1 + $0x638] sm:$0xf0] }
 0x234   : > { %2775 = vmatpush.bf16.msra.mxu1 %v3271_v27  ;;  %v3828_v27 = vld [vmem:[%s5246_s1 + $0x598] sm:$0xf0]  ;;  %v4285_v63 = vld [vmem:[%s5246_s1 + $0x42c] sm:$0xf] }
 0x235   : > { %2789 = vmatpush.bf16.msra.mxu2 %v3399_v28  ;;  %v3956_v28 = vld [vmem:[%s5246_s1 + $0x698] sm:$0xf0]  ;;  %v3831_v32 = vor.u32 %v4329_v25, %v3828_v27  ;;  %v4349_v4 = vld [vmem:[%s5246_s1 + $0x62c] sm:$0xf] }
 0x236   : > { %2803 = vmatpush.bf16.msra.mxu3 %v3527_v33  ;;  %v3911_v12 = vor.u32 %v4349_v4, %v3908_v5  ;;  %v3764_v18 = vld [vmem:[%s5246_s1 + $0x518] sm:$0xf0]  ;;  %v4345_v19 = vld [vmem:[%s5246_s1 + $0x60c] sm:$0xf] }
 0x237   : > { %2762 = vmatpush.bf16.msra.mxu0 %v3127_v44  ;;  %v3815_v44 = vor.u32 %v4325_v36, %v3812_v38  ;;  %v2540_v62 = vpop.f32.mrf.mxu0  ;;  %v3892_v20 = vld [vmem:[%s5246_s1 + $0x618] sm:$0xf0] }
 0x238   : > { %2776 = vmatpush.bf16.msra.mxu1 %v3255_v49  ;;  %v4071_v49 = vor.u32 %v4389_v41, %v4068_v42  ;;  %v2554_v6 = vpop.f32.mrf.mxu1  ;;  %v3895_v25 = vor.u32 %v4345_v19, %v3892_v20  ;;  %v828_v42 = vld [vmem:[%s5248_s25 + $0x8] sm:$0xff] }
 0x239   : > { %2790 = vmatpush.bf16.msra.mxu2 %v3383_v50  ;;  %v3796_v50 = vld [vmem:[%s5246_s1 + $0x558] sm:$0xf0]  ;;  %v2555_v27 = vadd.f32 %v2554_v6, %v2540_v62 }
 0x23a   : > { %2804 = vmatpush.bf16.msra.mxu3 %v3511_v54  ;;  %2763 = vmatmul.bf16.vlgmr.msra.gmra.mxu0 %v5344_v7  ;;  %v4361_v7 = vld [vmem:[%s5246_s1 + $0x68c] sm:$0xf] }
 0x23b   : > { %2811 = vmatpush.bf16.msrb.mxu0 %v3751_v55  ;;  %2777 = vmatmul.bf16.vlgmr.msra.gmra.mxu1 %v5360_v23  ;;  %v4084_v23 = vld [vmem:[%s5246_s1 + $0x798] sm:$0xf0]  ;;  %v3959_v33 = vor.u32 %v4361_v7, %v3956_v28  ;;  %v4385_v54 = vld [vmem:[%s5246_s1 + $0x74c] sm:$0xf] }
 0x23c   : > { %2825 = vmatpush.bf16.msrb.mxu1 %v3879_v59  ;;  %2791 = vmatmul.bf16.vlgmr.msra.gmra.mxu2 %v5350_v14  ;;  %v3847_v14 = vor.u32 %v4333_v13, %v3844_v16  ;;  %v4087_v37 = vor.u32 %v4393_v29, %v4084_v23  ;;  %v4052_v55 = vld [vmem:[%s5246_s1 + $0x758] sm:$0xf0]  ;;  %v3799_v59 = vor.u32 %v4321_v48, %v3796_v50  ;;  %v4281_v13 = vld [vmem:[%s5246_s1 + $0x40c] sm:$0xf] }
 0x23d   : > { %2839 = vmatpush.bf16.msrb.mxu2 %v4007_v61  ;;  %2805 = vmatmul.bf16.vlgmr.msra.gmra.mxu3 %v5366_v30  ;;  %v3700_v30 = vld [vmem:[%s5246_s1 + $0x498] sm:$0xf0]  ;;  %v3927_v61 = vor.u32 %v4353_v51, %v3924_v53  ;;  %v4055_v2 = vor.u32 %v4385_v54, %v4052_v55  ;;  %v4313_v16 = vld [vmem:[%s5246_s1 + $0x50c] sm:$0xf] }
 0x23e   : > { %2853 = vmatpush.bf16.msrb.mxu3 %v4135_v1  ;;  %v3703_v31 = vor.u32 %v4297_v24, %v3700_v30  ;;  %v4317_v1 = vld [vmem:[%s5246_s1 + $0x52c] sm:$0xf]  ;;  %v3767_v30 = vor.u32 %v4313_v16, %v3764_v18 }
 0x23f   : > { %2812 = vmatpush.bf16.msrb.mxu0 %v3735_v8  ;;  %v4381_v8 = vld [vmem:[%s5246_s1 + $0x72c] sm:$0xf]  ;;  %v3783_v11 = vor.u32 %v4317_v1, %v3780_v3  ;;  %v2568_v24 = vpop.f32.mrf.mxu2  ;;  %v2542_v28 = vpop.f32.mrf.mxu0 }
 0x240   : > { %2826 = vmatpush.bf16.msrb.mxu1 %v3863_v9  ;;  %v4036_v9 = vld [vmem:[%s5246_s1 + $0x738] sm:$0xf0]  ;;  %v2556_v29 = vpop.f32.mrf.mxu1  ;;  %v2569_v23 = vadd.f32 %v2568_v24, %v2555_v27  ;;  %v832_v50 = vld [vmem:[%s5248_s25 + $0x28] sm:$0xff] }
 0x241   : > { %2840 = vmatpush.bf16.msrb.mxu2 %v3991_v10  ;;  %v3655_v10 = vor.u32 %v4285_v63, %v3652_v0  ;;  %v4039_v17 = vor.u32 %v4381_v8, %v4036_v9  ;;  %v2557_v34 = vadd.f32 %v2556_v29, %v2542_v28 }
 0x242   : > { %2854 = vmatpush.bf16.msrb.mxu3 %v4119_v15  ;;  %v3636_v15 = vld [vmem:[%s5246_s1 + $0x418] sm:$0xf0] }
 0x243   : > { %2813 = vmatpush.bf16.msrb.mxu0 %v3719_v21  ;;  %v4377_v21 = vld [vmem:[%s5246_s1 + $0x70c] sm:$0xf] }
 0x244   : > { %2827 = vmatpush.bf16.msrb.mxu1 %v3847_v14  ;;  %v4020_v14 = vld [vmem:[%s5246_s1 + $0x718] sm:$0xf0] }
 0x245   : > { %2841 = vmatpush.bf16.msrb.mxu2 %v3975_v22  ;;  %v3639_v22 = vor.u32 %v4281_v13, %v3636_v15  ;;  %v4023_v7 = vor.u32 %v4377_v21, %v4020_v14 }
 0x246   : > { %2855 = vmatpush.bf16.msrb.mxu3 %v4103_v26  ;;  %v2582_v26 = vpop.f32.mrf.mxu3 }
 0x247   : > { %2814 = vmatpush.bf16.msrb.mxu0 %v3703_v31  ;;  %v2583_v31 = vadd.f32 %v2582_v26, %v2569_v23 }
 0x248   : > { %2828 = vmatpush.bf16.msrb.mxu1 %v3831_v32  ;;  %v2570_v32 = vpop.f32.mrf.mxu2 }
 0x249   : > { %2842 = vmatpush.bf16.msrb.mxu2 %v3959_v33  ;;  %v2571_v38 = vadd.f32 %v2570_v32, %v2557_v34 }
 0x24a   : > { %2856 = vmatpush.bf16.msrb.mxu3 %v4087_v37 }
 0x24b   : > { %2815 = vmatpush.bf16.msrb.mxu0 %v3687_v43 }
 0x24c   : > { %2829 = vmatpush.bf16.msrb.mxu1 %v3815_v44 }
 0x24d   : > { %2843 = vmatpush.bf16.msrb.mxu2 %v3943_v45 }
 0x24e   : > { %2857 = vmatpush.bf16.msrb.mxu3 %v4071_v49  ;;  %v2584_v33 = vpop.f32.mrf.mxu3 }
 0x24f   : > { %2816 = vmatpush.bf16.msrb.mxu0 %v3671_v58 }
 0x250   : > { %2830 = vmatpush.bf16.msrb.mxu1 %v3799_v59 }
 0x251   : > { %2844 = vmatpush.bf16.msrb.mxu2 %v3927_v61 }
 0x252   : > { %2858 = vmatpush.bf16.msrb.mxu3 %v4055_v2 }
 0x253   : > { %2817 = vmatpush.bf16.msrb.mxu0 %v3655_v10 }
 0x254   : > { %2831 = vmatpush.bf16.msrb.mxu1 %v3783_v11 }
 0x255   : > { %2845 = vmatpush.bf16.msrb.mxu2 %v3911_v12 }
 0x256   : > { %2859 = vmatpush.bf16.msrb.mxu3 %v4039_v17  ;;  %v829_v17 = vld [vmem:[%s5248_s25 + $0x10] sm:$0xff] }
 0x257   : > { %2818 = vmatpush.bf16.msrb.mxu0 %v3639_v22  ;;  %v2596_v35 = vpop.f32.mrf.mxu0 }
 0x258   : > { %2832 = vmatpush.bf16.msrb.mxu1 %v3767_v30  ;;  %v2597_v36 = vadd.f32 %v2596_v35, %v2583_v31  ;;  %v2610_v37 = vpop.f32.mrf.mxu1 }
 0x259   : > { %2846 = vmatpush.bf16.msrb.mxu2 %v3895_v25  ;;  %v833_v25 = vld [vmem:[%s5248_s25 + $0x30] sm:$0xff] }
 0x25a   : > { %2860 = vmatpush.bf16.msrb.mxu3 %v4023_v7  ;;  %2819 = vmatmul.bf16.vlgmr.msrb.gmra.mxu0 %v5426_v52  ;;  %v2611_v39 = vadd.f32 %v2610_v37, %v2597_v36  ;;  %v2585_v52 = vadd.f32 %v2584_v33, %v2571_v38 }
 0x25b   : > { %2833 = vmatmul.bf16.vlgmr.msrb.gmra.mxu1 %v5433_v57 }
 0x25c   : > { %2847 = vmatmul.bf16.vlgmr.msrb.gmra.mxu2 %v5431_v56 }
 0x25d   : > { %2861 = vmatmul.bf16.vlgmr.msrb.gmra.mxu3 %v5437_v60 }
 0x25f   : > { %v2624_v40 = vpop.f32.mrf.mxu2  ;;  %v2598_v57 = vpop.f32.mrf.mxu0 }
 0x260   : > { %v2625_v41 = vadd.f32 %v2624_v40, %v2611_v39  ;;  %v2638_v56 = vpop.f32.mrf.mxu3  ;;  %v2599_v43 = vadd.f32 %v2598_v57, %v2585_v52  ;;  %v2612_v44 = vpop.f32.mrf.mxu1 }
 0x262   : > { %v2639_v60 = vadd.f32 %v2638_v56, %v2625_v41  ;;  %v2613_v46 = vadd.f32 %v2612_v44, %v2599_v43 }
 0x264   : > { %v2868_v45 = vadd.f32 %v2639_v60, %v828_v42 }
 0x266   : > { %2876 = vst [vmem:[%s5248_s25 + $0x8] sm:$0xff] %v2868_v45  ;;  %v830_v45 = vld [vmem:[%s5248_s25 + $0x18] sm:$0xff] }
 0x267   : > { %v2626_v47 = vpop.f32.mrf.mxu2 }
 0x268   : > { %v2627_v48 = vadd.f32 %v2626_v47, %v2613_v46  ;;  %v2640_v49 = vpop.f32.mrf.mxu3 }
 0x26a   : > { %v2641_v51 = vadd.f32 %v2640_v49, %v2627_v48 }
 0x26c   : > { %v2872_v53 = vadd.f32 %v2641_v51, %v832_v50 }
 0x26e   : > { %2880 = vst [vmem:[%s5248_s25 + $0x28] sm:$0xff] %v2872_v53 }
 0x277   : > { %v2652_v54 = vpop.f32.mrf.mxu0 }
 0x278   : > { %v2666_v55 = vpop.f32.mrf.mxu1 }
 0x279   : > { %v2667_v61 = vadd.f32 %v2666_v55, %v2652_v54  ;;  %v834_v54 = vld [vmem:[%s5248_s25 + $0x38] sm:$0xff] }
 0x27f   : > { %v2680_v58 = vpop.f32.mrf.mxu2  ;;  %v2654_v62 = vpop.f32.mrf.mxu0 }
 0x280   : > { %v2694_v59 = vpop.f32.mrf.mxu3  ;;  %v2668_v63 = vpop.f32.mrf.mxu1  ;;  %v2681_v0 = vadd.f32 %v2680_v58, %v2667_v61 }
 0x281   : > { %v2669_v4 = vadd.f32 %v2668_v63, %v2654_v62 }
 0x282   : > { %v2695_v1 = vadd.f32 %v2694_v59, %v2681_v0 }
 0x287   : > { %v2682_v2 = vpop.f32.mrf.mxu2 }
 0x288   : > { %v2696_v3 = vpop.f32.mrf.mxu3  ;;  %v2683_v9 = vadd.f32 %v2682_v2, %v2669_v4 }
 0x28a   : > { %v2697_v12 = vadd.f32 %v2696_v3, %v2683_v9 }
 0x297   : > { %v2708_v5 = vpop.f32.mrf.mxu0 }
 0x298   : > { %v2709_v6 = vadd.f32 %v2708_v5, %v2695_v1  ;;  %v2722_v8 = vpop.f32.mrf.mxu1 }
 0x29a   : > { %v2723_v10 = vadd.f32 %v2722_v8, %v2709_v6 }
 0x29f   : > { %v2736_v11 = vpop.f32.mrf.mxu2  ;;  %v2710_v15 = vpop.f32.mrf.mxu0 }
 0x2a0   : > { %v2737_v13 = vadd.f32 %v2736_v11, %v2723_v10  ;;  %v2750_v16 = vpop.f32.mrf.mxu3  ;;  %v2711_v18 = vadd.f32 %v2710_v15, %v2697_v12  ;;  %v2724_v20 = vpop.f32.mrf.mxu1 }
 0x2a2   : > { %v2751_v19 = vadd.f32 %v2750_v16, %v2737_v13  ;;  %v2725_v14 = vadd.f32 %v2724_v20, %v2711_v18 }
 0x2a4   : > { %v2869_v21 = vadd.f32 %v2751_v19, %v829_v17 }
 0x2a6   : > { %2877 = vst [vmem:[%s5248_s25 + $0x10] sm:$0xff] %v2869_v21 }
 0x2a7   : > { %v2738_v22 = vpop.f32.mrf.mxu2 }
 0x2a8   : > { %v2739_v24 = vadd.f32 %v2738_v22, %v2725_v14  ;;  %v2752_v30 = vpop.f32.mrf.mxu3 }
 0x2aa   : > { %v2753_v26 = vadd.f32 %v2752_v30, %v2739_v24 }
 0x2ac   : > { %v2873_v27 = vadd.f32 %v2753_v26, %v833_v25 }
 0x2ae   : > { %2881 = vst [vmem:[%s5248_s25 + $0x30] sm:$0xff] %v2873_v27 }
 0x2b7   : > { %v2764_v7 = vpop.f32.mrf.mxu0 }
 0x2b8   : > { %v2778_v28 = vpop.f32.mrf.mxu1 }
 0x2b9   : > { %v2779_v31 = vadd.f32 %v2778_v28, %v2764_v7 }
 0x2bf   : > { %v2792_v29 = vpop.f32.mrf.mxu2  ;;  %v2766_v32 = vpop.f32.mrf.mxu0 }
 0x2c0   : > { %v2806_v23 = vpop.f32.mrf.mxu3  ;;  %v2780_v33 = vpop.f32.mrf.mxu1  ;;  %v2793_v34 = vadd.f32 %v2792_v29, %v2779_v31 }
 0x2c1   : > { %v2781_v37 = vadd.f32 %v2780_v33, %v2766_v32 }
 0x2c2   : > { %v2807_v36 = vadd.f32 %v2806_v23, %v2793_v34 }
 0x2c7   : > { %v2794_v35 = vpop.f32.mrf.mxu2 }
 0x2c8   : > { %v2808_v38 = vpop.f32.mrf.mxu3  ;;  %v2795_v41 = vadd.f32 %v2794_v35, %v2781_v37 }
 0x2ca   : > { %v2809_v42 = vadd.f32 %v2808_v38, %v2795_v41 }
 0x2d7   : > { %v2820_v39 = vpop.f32.mrf.mxu0 }
 0x2d8   : > { %v2821_v40 = vadd.f32 %v2820_v39, %v2807_v36  ;;  %v2834_v52 = vpop.f32.mrf.mxu1 }
 0x2da   : > { %v2835_v57 = vadd.f32 %v2834_v52, %v2821_v40 }
 0x2df   : > { %v2848_v56 = vpop.f32.mrf.mxu2  ;;  %v2822_v44 = vpop.f32.mrf.mxu0 }
 0x2e0   : > { %v2849_v43 = vadd.f32 %v2848_v56, %v2835_v57  ;;  %v2862_v60 = vpop.f32.mrf.mxu3  ;;  %v2823_v47 = vadd.f32 %v2822_v44, %v2809_v42  ;;  %v2836_v49 = vpop.f32.mrf.mxu1 }
 0x2e2   : > { %v2863_v46 = vadd.f32 %v2862_v60, %v2849_v43  ;;  %v2837_v50 = vadd.f32 %v2836_v49, %v2823_v47 }
 0x2e4   : > { %v2870_v48 = vadd.f32 %v2863_v46, %v830_v45 }
 0x2e6   : > { %2878 = vst [vmem:[%s5248_s25 + $0x18] sm:$0xff] %v2870_v48 }
 0x2e7   : > { %v2850_v51 = vpop.f32.mrf.mxu2 }
 0x2e8   : > { %v2851_v53 = vadd.f32 %v2850_v51, %v2837_v50  ;;  %v2864_v55 = vpop.f32.mrf.mxu3 }
 0x2ea   : > { %v2865_v58 = vadd.f32 %v2864_v55, %v2851_v53  ;;  %2886 = sbr.rel (%p4136_p5) target bundleno = 762 (0x2fa), region = 86 }
 0x2ec   : > { %v2874_v59 = vadd.f32 %v2865_v58, %v834_v54 }
 0x2ee   : > { %2882 = vst [vmem:[%s5248_s25 + $0x38] sm:$0xff] %v2874_v59 }
 0x2ef   : > { %v2887_v61 = vld [vmem:[%s5248_s25] sm:$0xff]  ;;  %v2888_v62 = vld [vmem:[%s5248_s25 + $0x8] sm:$0xff]  ;;  %v2889_v63 = vld [vmem:[%s5248_s25 + $0x10] sm:$0xff] }
 0x2f0   : > { %v2895_v0 = vmax.f32 %v2887_v61, 0.0  ;;  %v2896_v1 = vmax.f32 %v2888_v62, 0.0  ;;  %v2897_v2 = vmax.f32 %v2889_v63, 0.0  ;;  %v2890_v3 = vld [vmem:[%s5248_s25 + $0x18] sm:$0xff]  ;;  %v2891_v4 = vld [vmem:[%s5248_s25 + $0x20] sm:$0xff]  ;;  %v2892_v5 = vld [vmem:[%s5248_s25 + $0x28] sm:$0xff] }
 0x2f1   : > { %v2898_v6 = vmax.f32 %v2890_v3, 0.0  ;;  %v2893_v8 = vld [vmem:[%s5248_s25 + $0x30] sm:$0xff]  ;;  %v2899_v9 = vmax.f32 %v2891_v4, 0.0  ;;  %v2900_v11 = vmax.f32 %v2892_v5, 0.0 }
 0x2f2   : > { %2903 = vst [vmem:[%s5248_s25] sm:$0xff] %v2895_v0  ;;  %v2901_v12 = vmax.f32 %v2893_v8, 0.0 }
 0x2f3   : > { %2904 = vst [vmem:[%s5248_s25 + $0x8] sm:$0xff] %v2896_v1 }
 0x2f4   : > { %2905 = vst [vmem:[%s5248_s25 + $0x10] sm:$0xff] %v2897_v2 }
 0x2f5   : > { %v2894_v10 = vld [vmem:[%s5248_s25 + $0x38] sm:$0xff]  ;;  %2906 = vst [vmem:[%s5248_s25 + $0x18] sm:$0xff] %v2898_v6 }
 0x2f6   : > { %v2902_v13 = vmax.f32 %v2894_v10, 0.0  ;;  %2907 = vst [vmem:[%s5248_s25 + $0x20] sm:$0xff] %v2899_v9 }
 0x2f7   : > { %2908 = vst [vmem:[%s5248_s25 + $0x28] sm:$0xff] %v2900_v11 }
 0x2f8   : > { %2909 = vst [vmem:[%s5248_s25 + $0x30] sm:$0xff] %v2901_v12 }
 0x2f9   : > { %2910 = vst [vmem:[%s5248_s25 + $0x38] sm:$0xff] %v2902_v13 }
 0x2fa PF: > { %2917 = sbr.rel (!%p4699_p12) target bundleno = 772 (0x304), region = 90  ;;  %s4408_s1 = sshll.u32 (%p4699_p12), %s4571_s19, 5  ;;  %v2936_v15 = vld [vmem:[%s5248_s25] sm:$0xff] (%p4699_p12)  ;;  %v2938_v16 = vld [vmem:[%s5248_s25 + $0x8] sm:$0xff] (%p4699_p12) }
 0x2fb   : > { %s2923_s16 = scalar_lea.vmem (%p4699_p12), %s5918_s3, %s4408_s1  ;;  %v2940_v17 = vld [vmem:[%s5248_s25 + $0x10] sm:$0xff] (%p4699_p12) }
 0x2fc   : > { %2937 = vst [vmem:[%s2923_s16] sm:$0xff] (%p4699_p12), %v2936_v15  ;;  %v2942_v18 = vld [vmem:[%s5248_s25 + $0x18] sm:$0xff] (%p4699_p12) }
 0x2fd   : > { %2939 = vst [vmem:[%s2923_s16 + $0x8] sm:$0xff] (%p4699_p12), %v2938_v16  ;;  %v2944_v19 = vld [vmem:[%s5248_s25 + $0x20] sm:$0xff] (%p4699_p12) }
 0x2fe   : > { %2941 = vst [vmem:[%s2923_s16 + $0x10] sm:$0xff] (%p4699_p12), %v2940_v17  ;;  %v2946_v20 = vld [vmem:[%s5248_s25 + $0x28] sm:$0xff] (%p4699_p12) }
 0x2ff   : > { %2943 = vst [vmem:[%s2923_s16 + $0x18] sm:$0xff] %v2942_v18  ;;  %v2948_v21 = vld [vmem:[%s5248_s25 + $0x30] sm:$0xff] }
 0x300   : > { %2945 = vst [vmem:[%s2923_s16 + $0x100] sm:$0xff] %v2944_v19  ;;  %v2950_v14 = vld [vmem:[%s5248_s25 + $0x38] sm:$0xff] }
 0x301   : > { %2947 = vst [vmem:[%s2923_s16 + $0x108] sm:$0xff] %v2946_v20 }
 0x302   : > { %2949 = vst [vmem:[%s2923_s16 + $0x110] sm:$0xff] %v2948_v21 }
 0x303   : > { %2951 = vst [vmem:[%s2923_s16 + $0x118] sm:$0xff] %v2950_v14 }
 0x304 PF: > { %s13_s22 = sadd.s32 1, %s4583_s22   ;;  %s5928_s10 = sld [smem:[#allocation5_spill]] }
 0x305   : > { %p10_p6 = scmp.ge.s32.totalorder %s13_s22, 34   ;;  %s5929_s12 = smov %s4547_s13 }
 0x306   : > { %s5930_s13 = smov %s4697_s9  ;;  %s5931_s14 = smov %s4555_s15 }
 0x307   : > { %s5932_s15 = smov %s4694_s8  ;;  %s5933_s16 = smov %s4563_s17 }
 0x308   : > { %s5934_s17 = smov %s4680_s30  ;;  %s5935_s18 = smov %s4575_s20 }
 0x309   : > { %s5936_s19 = smov %s4579_s21  ;;  %s5937_s20 = smov %s5940_s24 }
 0x30a   : > { %s5938_s21 = smov %s5928_s10  ;;  %12 = sbr.rel (!%p10_p6) target bundleno = 9 (0x9), region = 155 }

// kernel: alexnet_forward.20
= control target key start
LH: loop header
LB: loop body
LE: loop exit
PB: predicated region body
PF: predicated region fallthrough
CT: control target
= control target key end

     0   :  { %s4974_s0 = inlined_call_operand.vmem [shape: bf16[16,9216], index: 0, kind: input, shape index: {}]   ;;  %s4975_s1 = inlined_call_operand.hbm [shape: bf16[9216,4096], index: 1, kind: input, shape index: {}]   ;;  %s4976_s2 = inlined_call_operand.vmem [shape: f32[1,4096], index: 2, kind: input, shape index: {}]   ;;  %s4977_s3 = inlined_call_operand.vmem [shape: f32[16,4096], index: 3, kind: output, shape index: {}]  }
   0x1   :  { %4982 = sst [smem:[#allocation14_spill]] %s4974_s0 }
   0x2   :  { %8 = vsyncpa [#allocation4], 0 }
   0x3   :  { %10 = vsyncpa [#allocation4 + $0x1], 0  ;;  %s4158_s12 = smov 0   ;;  %s4160_s13 = smov 0  }
   0x4   :  { %s4162_s14 = smov 0   ;;  %s4164_s15 = smov 0  }
   0x5   :  { %s4166_s16 = smov 0   ;;  %s4168_s17 = smov 0  }
   0x6   :  { %s4170_s18 = smov 0   ;;  %s4172_s19 = smov 0  }
   0x7   :  { %s4174_s20 = smov 0   ;;  %s4176_s21 = smov 0  }
   0x8   :  { %s4178_s22 = smov 0   ;;  %s4180_s23 = smov 0  }
   0x9 LB: > { %4983 = sst [smem:[#allocation7_spill]] %s4093_s13  ;;  %s2559_s24 = sadd.s32 4294967295, %s4133_s23   ;;  %s4133_s23 = sphi %s4180_s23, %s16_s23   ;;  %s4129_s22 = sphi %s4178_s22, %s5008_s22   ;;  %s4125_s21 = sphi %s4176_s21, %s5007_s21   ;;  %s4121_s20 = sphi %s4174_s20, %s5006_s20   ;;  %s4117_s19 = sphi %s4172_s19, %s5005_s19   ;;  %s4113_s18 = sphi %s4170_s18, %s4999_s18   ;;  %s4109_s17 = sphi %s4168_s17, %s4998_s17   ;;  %s4105_s16 = sphi %s4166_s16, %s5004_s16   ;;  %s4101_s15 = sphi %s4164_s15, %s5003_s15   ;;  %s4097_s14 = sphi %s4162_s14, %s5002_s14   ;;  %s4093_s13 = sphi %s4160_s13, %s4996_s13   ;;  %s4089_s12 = sphi %s4158_s12, %s4995_s12  }
   0xa   : > { %4984 = sst [smem:[#allocation8_spill]] %s4113_s18  ;;  %s28_s25 = sadd.s32 1, %s4125_s21 }
   0xb   : > { %p29_p0 = scmp.ge.s32.totalorder %s28_s25, 9  ;;  %s31_s26 = sadd.s32 1, %s4129_s22 }
   0xc   : > { %s44_s27 = sadd.s32 1, %s4113_s18  ;;  %p51_p1 = scmp.ne.s32.totalorder %s4113_s18, %s4109_s17 }
   0xd   : > { %s5010_s25 = smov (%p29_p0, %s28_s25), 0  ;;  %s5012_s26 = smov (!%p29_p0, %s31_s26), %s4129_s22 }
   0xe   : > { %4985 = sst [smem:[#allocation9_spill]] %s5010_s25  ;;  %s40_s28 = ssub.s32 %s4125_s21, %s5010_s25 }
   0xf   : > { %p52_p2 = scmp.eq.s32.totalorder %s4133_s23, 0  ;;  %p33_p3 = scmp.ge.s32.totalorder %s5012_s26, 8 }
  0x10   : > { %p42_p4 = scmp.eq.s32.totalorder %s40_s28, 0  ;;  %s72_s30 = sadd.s32 1, %s4105_s16 }
  0x11   : > { %p4230_p5 = por %p52_p2, %p51_p1  ;;  %s5014_s26 = smov (%p33_p3, %s5012_s26), 0 }
  0x12   : > { %4987 = sst [smem:[#allocation10_spill]] %s5014_s26  ;;  %s68_s5 = ssub.s32 %s4129_s22, %s5014_s26 }
  0x13   : > { %s4238_s4 = scalar_select %p42_p4, %s4113_s18, %s44_s27  }
  0x14   : > { %p79_p6 = scmp.ne.s32.totalorder %s4105_s16, %s4101_s15  ;;  %s69_s6 = sor.u32 %s68_s5, %s40_s28 }
  0x15   : > { %4988 = sst [smem:[#allocation11_spill]] %s4238_s4  ;;  %p85_p7 = scmp.ne.s32.totalorder %s4101_s15, %s4097_s14 }
  0x16   : > { %p70_p8 = scmp.eq.s32.totalorder %s69_s6, 0  ;;  %p4246_p9 = por %p79_p6, %p52_p2 }
  0x17   : > { %p86_p10 = scmp.eq.s32.totalorder %s2559_s24, 0  ;;  %p124_p11 = scmp.eq.s32.totalorder %s68_s5, 0 }
  0x18   : > { %s4253_s8 = scalar_select %p70_p8, %s4105_s16, %s72_s30  }
  0x19   : > { %p4255_p12 = por %p86_p10, %p85_p7  ;;  %s126_s10 = sadd.s32 1, %s4093_s13 }
  0x1a   : > { %4990 = sst [smem:[#allocation12_spill]] %s4253_s8  ;;  %p136_p13 = scmp.ne.s32.totalorder %s4093_s13, %s4089_s12 }
  0x1b   : > { %s4261_s11 = scalar_select %p124_p11, %s4093_s13, %s126_s10  }
  0x1c   : > { %p137_p0 = scmp.eq.s32.totalorder %s2559_s24, 71  ;;  %p2562_p2 = scmp.ge.s32.totalorder %s4133_s23, 72 }
  0x1d   : > { %4992 = sst [smem:[#allocation13_spill]] %s4261_s11 }
  0x1e   : > { %p4267_p1 = por %p137_p0, %p136_p13  ;;  %159 = sbr.rel (%p2562_p2) target bundleno = 61 (0x3d), region = 16 }
  0x23   : > { %162 = sbr.rel (!%p4230_p5) target bundleno = 53 (0x35), region = 20  ;;  %s164_s27 = sand.u32 (%p4230_p5), 1, %s4113_s18  }
  0x24   : > { %s3639_s28 = sshll.u32 (%p4230_p5), %s4125_s21, 5  ;;  %s2563_s30 = sshll.u32 (%p4230_p5), %s164_s27, 6 }
  0x25   : > { %s4994_s0 = sld [smem:[#allocation14_spill]] (%p4230_p5)  ;;  %s166_s24 = scalar_lea.vmem (%p4230_p5), [#allocation2], %s2563_s30 }
  0x2b   : > { %s172_s10 = scalar_lea.vmem %s4994_s0, %s3639_s28 }
  0x2c   : > { %v185_v0 = vld [vmem:[%s172_s10] sm:$0xff]  ;;  %v187_v1 = vld [vmem:[%s172_s10 + $0x8] sm:$0xff]  ;;  %v189_v2 = vld [vmem:[%s172_s10 + $0x10] sm:$0xff] }
  0x2d   : > { %186 = vst [vmem:[%s166_s24] sm:$0xff] %v185_v0  ;;  %v191_v3 = vld [vmem:[%s172_s10 + $0x18] sm:$0xff]  ;;  %v193_v4 = vld [vmem:[%s172_s10 + $0x120] sm:$0xff]  ;;  %v195_v5 = vld [vmem:[%s172_s10 + $0x128] sm:$0xff] }
  0x2e   : > { %188 = vst [vmem:[%s166_s24 + $0x8] sm:$0xff] %v187_v1  ;;  %v197_v6 = vld [vmem:[%s172_s10 + $0x130] sm:$0xff]  ;;  %v199_v7 = vld [vmem:[%s172_s10 + $0x138] sm:$0xff] }
  0x2f   : > { %190 = vst [vmem:[%s166_s24 + $0x10] sm:$0xff] %v189_v2 }
  0x30   : > { %192 = vst [vmem:[%s166_s24 + $0x18] sm:$0xff] %v191_v3 }
  0x31   : > { %194 = vst [vmem:[%s166_s24 + $0x20] sm:$0xff] %v193_v4 }
  0x32   : > { %196 = vst [vmem:[%s166_s24 + $0x28] sm:$0xff] %v195_v5 }
  0x33   : > { %198 = vst [vmem:[%s166_s24 + $0x30] sm:$0xff] %v197_v6 }
  0x34   : > { %200 = vst [vmem:[%s166_s24 + $0x38] sm:$0xff] %v199_v7 }
  0x35 PF: > { %s207_s29 = sand.u32 1, %s4105_s16   ;;  %s2568_s27 = sshll.u32 %s4129_s22, 2 }
  0x36   : > { %s2566_s28 = sshll.u32 %s207_s29, 11  ;;  %s3640_s30 = sshll.u32 %s4125_s21, 12 }
  0x37   : > { %s217_s5 = sadd.s32 %s3640_s30, %s2568_s27  ;;  %s211_s6 = scalar_lea.vmem [#allocation3], %s2566_s28 }
  0x38   : > { %s222_s0 = sshll.u32 %s211_s6, 4  ;;  %s2570_s26 = sshll.u32 %s217_s5, 2  ;;  %s223_s0 = int_to_ptr.vmem [resolvable:$true] %s222_s0 }
  0x39   : > { %s219_s10 = scalar_lea.hbm %s4975_s1, %s2570_s26  ;;  %s208_s24 = scalar_lea.sflag [#allocation4], %s207_s29 }
  0x3a   : > { %s220_s18 = sshll.u32 %s219_s10, 4  ;;  %s4135_s8 = smov 2048   ;;  %s221_s18 = int_to_ptr.hbm [resolvable:$true] %s220_s18 }
  0x3b   : > { %s4136_s11 = smov 256   ;;  %s4137_s13 = smov 16  }
  0x3c   : > { %3906 = dma.hbm_to_vmem [thread:$0]  (%p4246_p9), %s221_s18, 32768, %s223_s0, %s208_s24, %s4135_s8, %s4136_s11, %s4137_s13  }
  0x3d PF: > { %p2571_p3 = scmp.ge.s32.totalorder %s4133_s23, 1  ;;  %p238_p4 = scmp.lt.s32.totalorder %s4133_s23, 73 }
  0x3f   : > { %p239_p5 = pnand %p2571_p3, %p238_p4 }
  0x40   : > { %s245_s25 = sand.u32 (!%p239_p5), 1, %s4109_s17   ;;  %s251_s26 = sand.u32 (!%p239_p5), 1, %s4101_s15  }
  0x41   : > { %242 = sbr.rel (%p239_p5) target bundleno = 521 (0x209), region = 51  ;;  %s2572_s4 = sshll.u32 (!%p239_p5), %s245_s25, 6 }
  0x42   : > { %s2573_s27 = sshll.u32 (!%p239_p5), %s251_s26, 11  ;;  %s4291_s29 = scalar_lea.vmem (!%p239_p5), [#allocation2], %s2572_s4 }
  0x43   : > { %s252_s28 = scalar_lea.sflag (!%p239_p5), [#allocation4], %s251_s26  ;;  %s4293_s30 = scalar_lea.vmem (!%p239_p5), [#allocation3], %s2573_s27 }
  0x46   : > { %4084 = dma.done.wait (%p4255_p12), %s252_s28, 32768  }
  0x47   : > { %4086 = vsyncadd (%p4255_p12), %s252_s28, 4294934528  ;;  %s283_s0 = sand.u32 1, %s4089_s12   ;;  %s2575_s13 = sshll.u32 %s4121_s20, 2 }
  0x48   : > { %s2574_s18 = sshll.u32 %s283_s0, 6  ;;  %p291_p6 = scmp.lt.s32.totalorder %s2575_s13, 31 }
  0x49   : > { %s4304_s11 = scalar_lea.vmem [#allocation5], %s2574_s18  ;;  %p2576_p7 = scmp.ne.s32.totalorder %s4117_s19, 0 }
  0x4a   : > { %s5016_s13 = smov (!%p291_p6, %s2575_s13), 31 }
  0x4b   : > { %s293_s8 = scalar_lea.vmem %s4976_s2, %s5016_s13  ;;  %300 = sbr.rel (%p2576_p7) target bundleno = 91 (0x5b), region = 63 }
  0x50   : > { %v301_v8 = vld [vmem:[%s293_s8] sm:$0xf] }
  0x51   : > { %v303_v9 = vperm.slane %v301_v8, 0  ;;  %v304_v10 = vperm.slane %v301_v8, 1  ;;  %v305_v11 = vperm.slane %v301_v8, 2  ;;  %v306_v12 = vperm.slane %v301_v8, 3 }
  0x53   : > { %311 = vst [vmem:[%s4304_s11] sm:$0xff] %v303_v9 }
  0x54   : > { %315 = vst [vmem:[%s4304_s11 + $0x20] sm:$0xff] %v303_v9 }
  0x55   : > { %312 = vst [vmem:[%s4304_s11 + $0x8] sm:$0xff] %v304_v10 }
  0x56   : > { %316 = vst [vmem:[%s4304_s11 + $0x28] sm:$0xff] %v304_v10 }
  0x57   : > { %313 = vst [vmem:[%s4304_s11 + $0x10] sm:$0xff] %v305_v11 }
  0x58   : > { %317 = vst [vmem:[%s4304_s11 + $0x30] sm:$0xff] %v305_v11 }
  0x59   : > { %314 = vst [vmem:[%s4304_s11 + $0x18] sm:$0xff] %v306_v12 }
  0x5a   : > { %318 = vst [vmem:[%s4304_s11 + $0x38] sm:$0xff] %v306_v12 }
  0x5b PF: > { %v2723_v13 = vld [vmem:[%s4293_s30 + $0xe0] sm:$0xf]  ;;  %v3679_v14 = vld [vmem:[%s4293_s30 + $0xec] sm:$0xf0]  ;;  %p3633_p8 = scmp.ne.s32.totalorder %s4117_s19, 8 }
  0x5c   : > { %v2851_v15 = vld [vmem:[%s4293_s30 + $0x1e0] sm:$0xf]  ;;  %v2724_v16 = vor.u32 %v3679_v14, %v2723_v13  ;;  %v3711_v17 = vld [vmem:[%s4293_s30 + $0x1ec] sm:$0xf0] }
  0x5d   : > { %v2979_v18 = vld [vmem:[%s4293_s30 + $0x2e0] sm:$0xf]  ;;  %v3743_v19 = vld [vmem:[%s4293_s30 + $0x2ec] sm:$0xf0]  ;;  %v2852_v20 = vor.u32 %v3711_v17, %v2851_v15 }
  0x5e   : > { %v2980_v21 = vor.u32 %v3743_v19, %v2979_v18  ;;  %v3107_v22 = vld [vmem:[%s4293_s30 + $0x3e0] sm:$0xf]  ;;  %v3775_v23 = vld [vmem:[%s4293_s30 + $0x3ec] sm:$0xf0]  ;;  %1911 = vmatpush.bf16.msra.mxu0 %v2724_v16 }
  0x5f   : > { %v2707_v24 = vld [vmem:[%s4293_s30 + $0xc0] sm:$0xf]  ;;  %v3108_v25 = vor.u32 %v3775_v23, %v3107_v22  ;;  %v3675_v26 = vld [vmem:[%s4293_s30 + $0xcc] sm:$0xf0]  ;;  %1925 = vmatpush.bf16.msra.mxu1 %v2852_v20 }
  0x60   : > { %v2835_v27 = vld [vmem:[%s4293_s30 + $0x1c0] sm:$0xf]  ;;  %v3707_v28 = vld [vmem:[%s4293_s30 + $0x1cc] sm:$0xf0]  ;;  %1939 = vmatpush.bf16.msra.mxu2 %v2980_v21  ;;  %v2708_v29 = vor.u32 %v3675_v26, %v2707_v24 }
  0x61   : > { %v2836_v30 = vor.u32 %v3707_v28, %v2835_v27  ;;  %v2963_v31 = vld [vmem:[%s4293_s30 + $0x2c0] sm:$0xf]  ;;  %v3739_v32 = vld [vmem:[%s4293_s30 + $0x2cc] sm:$0xf0]  ;;  %1953 = vmatpush.bf16.msra.mxu3 %v3108_v25 }
  0x62   : > { %v3091_v33 = vld [vmem:[%s4293_s30 + $0x3c0] sm:$0xf]  ;;  %v2964_v34 = vor.u32 %v3739_v32, %v2963_v31  ;;  %v3771_v35 = vld [vmem:[%s4293_s30 + $0x3cc] sm:$0xf0]  ;;  %1912 = vmatpush.bf16.msra.mxu0 %v2708_v29 }
  0x63   : > { %v2691_v36 = vld [vmem:[%s4293_s30 + $0xa0] sm:$0xf]  ;;  %v3671_v37 = vld [vmem:[%s4293_s30 + $0xac] sm:$0xf0]  ;;  %v3092_v38 = vor.u32 %v3771_v35, %v3091_v33  ;;  %1926 = vmatpush.bf16.msra.mxu1 %v2836_v30 }
  0x64   : > { %v2819_v39 = vld [vmem:[%s4293_s30 + $0x1a0] sm:$0xf]  ;;  %v3703_v40 = vld [vmem:[%s4293_s30 + $0x1ac] sm:$0xf0]  ;;  %v2692_v42 = vor.u32 %v3671_v37, %v2691_v36  ;;  %1940 = vmatpush.bf16.msra.mxu2 %v2964_v34 }
  0x65   : > { %v2947_v41 = vld [vmem:[%s4293_s30 + $0x2a0] sm:$0xf]  ;;  %v3735_v43 = vld [vmem:[%s4293_s30 + $0x2ac] sm:$0xf0]  ;;  %v2820_v46 = vor.u32 %v3703_v40, %v2819_v39  ;;  %1954 = vmatpush.bf16.msra.mxu3 %v3092_v38 }
  0x66   : > { %v3075_v44 = vld [vmem:[%s4293_s30 + $0x3a0] sm:$0xf]  ;;  %v3767_v45 = vld [vmem:[%s4293_s30 + $0x3ac] sm:$0xf0]  ;;  %v2948_v47 = vor.u32 %v3735_v43, %v2947_v41  ;;  %1913 = vmatpush.bf16.msra.mxu0 %v2692_v42 }
  0x67   : > { %v2675_v48 = vld [vmem:[%s4293_s30 + $0x80] sm:$0xf]  ;;  %v3667_v49 = vld [vmem:[%s4293_s30 + $0x8c] sm:$0xf0]  ;;  %v3076_v51 = vor.u32 %v3767_v45, %v3075_v44  ;;  %1927 = vmatpush.bf16.msra.mxu1 %v2820_v46 }
  0x68   : > { %v2803_v50 = vld [vmem:[%s4293_s30 + $0x180] sm:$0xf]  ;;  %v3699_v52 = vld [vmem:[%s4293_s30 + $0x18c] sm:$0xf0]  ;;  %v2676_v57 = vor.u32 %v3667_v49, %v2675_v48  ;;  %1941 = vmatpush.bf16.msra.mxu2 %v2948_v47 }
  0x69   : > { %v2931_v53 = vld [vmem:[%s4293_s30 + $0x280] sm:$0xf]  ;;  %v3731_v54 = vld [vmem:[%s4293_s30 + $0x28c] sm:$0xf0]  ;;  %v2804_v58 = vor.u32 %v3699_v52, %v2803_v50  ;;  %1955 = vmatpush.bf16.msra.mxu3 %v3076_v51 }
  0x6a   : > { %v3059_v55 = vld [vmem:[%s4293_s30 + $0x380] sm:$0xf]  ;;  %v3763_v56 = vld [vmem:[%s4293_s30 + $0x38c] sm:$0xf0]  ;;  %v2932_v59 = vor.u32 %v3731_v54, %v2931_v53  ;;  %1914 = vmatpush.bf16.msra.mxu0 %v2676_v57 }
  0x6b   : > { %v2659_v60 = vld [vmem:[%s4293_s30 + $0x60] sm:$0xf]  ;;  %v3663_v61 = vld [vmem:[%s4293_s30 + $0x6c] sm:$0xf0]  ;;  %v3060_v63 = vor.u32 %v3763_v56, %v3059_v55  ;;  %1928 = vmatpush.bf16.msra.mxu1 %v2804_v58 }
  0x6c   : > { %v2787_v62 = vld [vmem:[%s4293_s30 + $0x160] sm:$0xf]  ;;  %v3695_v0 = vld [vmem:[%s4293_s30 + $0x16c] sm:$0xf0]  ;;  %v2660_v5 = vor.u32 %v3663_v61, %v2659_v60  ;;  %1942 = vmatpush.bf16.msra.mxu2 %v2932_v59 }
  0x6d   : > { %v2915_v1 = vld [vmem:[%s4293_s30 + $0x260] sm:$0xf]  ;;  %v3727_v2 = vld [vmem:[%s4293_s30 + $0x26c] sm:$0xf0]  ;;  %v2788_v6 = vor.u32 %v3695_v0, %v2787_v62  ;;  %1956 = vmatpush.bf16.msra.mxu3 %v3060_v63 }
  0x6e   : > { %v3043_v3 = vld [vmem:[%s4293_s30 + $0x360] sm:$0xf]  ;;  %v3759_v4 = vld [vmem:[%s4293_s30 + $0x36c] sm:$0xf0]  ;;  %v2916_v7 = vor.u32 %v3727_v2, %v2915_v1  ;;  %1915 = vmatpush.bf16.msra.mxu0 %v2660_v5 }
  0x6f   : > { %v2643_v8 = vld [vmem:[%s4293_s30 + $0x40] sm:$0xf]  ;;  %v3659_v9 = vld [vmem:[%s4293_s30 + $0x4c] sm:$0xf0]  ;;  %v3044_v11 = vor.u32 %v3759_v4, %v3043_v3  ;;  %1929 = vmatpush.bf16.msra.mxu1 %v2788_v6  ;;  %v2587_v3 = vld [vmem:[%s4291_s29 + $0x8] sm:$0xf] }
  0x70   : > { %v2771_v10 = vld [vmem:[%s4293_s30 + $0x140] sm:$0xf]  ;;  %v3691_v12 = vld [vmem:[%s4293_s30 + $0x14c] sm:$0xf0]  ;;  %v2644_v17 = vor.u32 %v3659_v9, %v2643_v8  ;;  %1943 = vmatpush.bf16.msra.mxu2 %v2916_v7  ;;  %v3646_v8 = vld [vmem:[%s4291_s29 + $0x24] sm:$0xf0] }
  0x71   : > { %v2899_v13 = vld [vmem:[%s4293_s30 + $0x240] sm:$0xf]  ;;  %v3723_v14 = vld [vmem:[%s4293_s30 + $0x24c] sm:$0xf0]  ;;  %v2772_v18 = vor.u32 %v3691_v12, %v2771_v10  ;;  %1957 = vmatpush.bf16.msra.mxu3 %v3044_v11 }
  0x72   : > { %v3027_v15 = vld [vmem:[%s4293_s30 + $0x340] sm:$0xf]  ;;  %v3755_v16 = vld [vmem:[%s4293_s30 + $0x34c] sm:$0xf0]  ;;  %v2900_v19 = vor.u32 %v3723_v14, %v2899_v13  ;;  %1916 = vmatpush.bf16.msra.mxu0 %v2644_v17  ;;  %v4406_v14 = vor.u32 %v3646_v8, %v2587_v3 }
  0x73   : > { %v2627_v20 = vld [vmem:[%s4293_s30 + $0x20] sm:$0xf]  ;;  %v3655_v21 = vld [vmem:[%s4293_s30 + $0x2c] sm:$0xf0]  ;;  %v3028_v23 = vor.u32 %v3755_v16, %v3027_v15  ;;  %1930 = vmatpush.bf16.msra.mxu1 %v2772_v18 }
  0x74   : > { %v2755_v22 = vld [vmem:[%s4293_s30 + $0x120] sm:$0xf]  ;;  %v3687_v24 = vld [vmem:[%s4293_s30 + $0x12c] sm:$0xf0]  ;;  %v2628_v29 = vor.u32 %v3655_v21, %v2627_v20  ;;  %1944 = vmatpush.bf16.msra.mxu2 %v2900_v19  ;;  %v3641_v19 = vld [vmem:[%s4291_s29 + $0x4] sm:$0xf] }
  0x75   : > { %v2883_v25 = vld [vmem:[%s4293_s30 + $0x220] sm:$0xf]  ;;  %v3719_v26 = vld [vmem:[%s4293_s30 + $0x22c] sm:$0xf0]  ;;  %v2756_v32 = vor.u32 %v3687_v24, %v2755_v22  ;;  %1958 = vmatpush.bf16.msra.mxu3 %v3028_v23  ;;  %v2581_v20 = vld [vmem:[%s4291_s29 + $0x20] sm:$0xf0] }
  0x76   : > { %v3011_v27 = vld [vmem:[%s4293_s30 + $0x320] sm:$0xf]  ;;  %v3751_v28 = vld [vmem:[%s4293_s30 + $0x32c] sm:$0xf0]  ;;  %v2884_v33 = vor.u32 %v3719_v26, %v2883_v25  ;;  %1917 = vmatpush.bf16.msra.mxu0 %v2628_v29  ;;  %v3642_v21 = vld [vmem:[%s4291_s29 + $0xc] sm:$0xf]  ;;  %v4416_v23 = vor.u32 %v3641_v19, %v2581_v20 }
  0x77   : > { %v2611_v30 = vld [vmem:[%s4293_s30] sm:$0xf]  ;;  %v3651_v31 = vld [vmem:[%s4293_s30 + $0xc] sm:$0xf0]  ;;  %v3012_v37 = vor.u32 %v3751_v28, %v3011_v27  ;;  %1931 = vmatpush.bf16.msra.mxu1 %v2756_v32  ;;  %v2589_v24 = vld [vmem:[%s4291_s29 + $0x28] sm:$0xf0] }
  0x78   : > { %v2739_v34 = vld [vmem:[%s4293_s30 + $0x100] sm:$0xf]  ;;  %v3683_v35 = vld [vmem:[%s4293_s30 + $0x10c] sm:$0xf0]  ;;  %v2612_v44 = vor.u32 %v3651_v31, %v2611_v30  ;;  %1945 = vmatpush.bf16.msra.mxu2 %v2884_v33  ;;  %v4422_v30 = vor.u32 %v3642_v21, %v2589_v24 }
  0x79   : > { %v2867_v36 = vld [vmem:[%s4293_s30 + $0x200] sm:$0xf]  ;;  %v3715_v38 = vld [vmem:[%s4293_s30 + $0x20c] sm:$0xf0]  ;;  %v2740_v48 = vor.u32 %v3683_v35, %v2739_v34  ;;  %1959 = vmatpush.bf16.msra.mxu3 %v3012_v37 }
  0x7a   : > { %v2995_v39 = vld [vmem:[%s4293_s30 + $0x300] sm:$0xf]  ;;  %v3747_v40 = vld [vmem:[%s4293_s30 + $0x30c] sm:$0xf0]  ;;  %v2868_v49 = vor.u32 %v3715_v38, %v2867_v36  ;;  %1918 = vmatpush.bf16.msra.mxu0 %v2612_v44 }
  0x7b   : > { %v3235_v41 = vld [vmem:[%s4293_s30 + $0x4e0] sm:$0xf]  ;;  %v3807_v42 = vld [vmem:[%s4293_s30 + $0x4ec] sm:$0xf0]  ;;  %v2996_v52 = vor.u32 %v3747_v40, %v2995_v39  ;;  %1932 = vmatpush.bf16.msra.mxu1 %v2740_v48 }
  0x7c   : > { %v3363_v43 = vld [vmem:[%s4293_s30 + $0x5e0] sm:$0xf]  ;;  %v3839_v45 = vld [vmem:[%s4293_s30 + $0x5ec] sm:$0xf0]  ;;  %v3236_v53 = vor.u32 %v3807_v42, %v3235_v41  ;;  %1946 = vmatpush.bf16.msra.mxu2 %v2868_v49 }
  0x7d   : > { %v3491_v46 = vld [vmem:[%s4293_s30 + $0x6e0] sm:$0xf]  ;;  %v3871_v47 = vld [vmem:[%s4293_s30 + $0x6ec] sm:$0xf0]  ;;  %v3364_v56 = vor.u32 %v3839_v45, %v3363_v43  ;;  %1960 = vmatpush.bf16.msra.mxu3 %v2996_v52 }
  0x7e   : > { %v3619_v50 = vld [vmem:[%s4293_s30 + $0x7e0] sm:$0xf]  ;;  %v3903_v51 = vld [vmem:[%s4293_s30 + $0x7ec] sm:$0xf0]  ;;  %v3492_v57 = vor.u32 %v3871_v47, %v3491_v46  ;;  %1967 = vmatpush.bf16.msrb.mxu0 %v3236_v53  ;;  %1933 = vmatmul.bf16.vlgmr.msra.gmra.mxu1 %v4416_v23 }
  0x7f   : > { %v3219_v54 = vld [vmem:[%s4293_s30 + $0x4c0] sm:$0xf]  ;;  %v3803_v55 = vld [vmem:[%s4293_s30 + $0x4cc] sm:$0xf0]  ;;  %v3620_v61 = vor.u32 %v3903_v51, %v3619_v50  ;;  %1981 = vmatpush.bf16.msrb.mxu1 %v3364_v56  ;;  %1947 = vmatmul.bf16.vlgmr.msra.gmra.mxu2 %v4406_v14 }
  0x80   : > { %v3347_v58 = vld [vmem:[%s4293_s30 + $0x5c0] sm:$0xf]  ;;  %v3835_v59 = vld [vmem:[%s4293_s30 + $0x5cc] sm:$0xf0]  ;;  %v3220_v4 = vor.u32 %v3803_v55, %v3219_v54  ;;  %1995 = vmatpush.bf16.msrb.mxu2 %v3492_v57  ;;  %1961 = vmatmul.bf16.vlgmr.msra.gmra.mxu3 %v4422_v30 }
  0x81   : > { %v3475_v60 = vld [vmem:[%s4293_s30 + $0x6c0] sm:$0xf]  ;;  %v3867_v62 = vld [vmem:[%s4293_s30 + $0x6cc] sm:$0xf0]  ;;  %v3348_v9 = vor.u32 %v3835_v59, %v3347_v58  ;;  %2009 = vmatpush.bf16.msrb.mxu3 %v3620_v61 }
  0x82   : > { %v3603_v63 = vld [vmem:[%s4293_s30 + $0x7c0] sm:$0xf]  ;;  %v3899_v0 = vld [vmem:[%s4293_s30 + $0x7cc] sm:$0xf0]  ;;  %v3476_v10 = vor.u32 %v3867_v62, %v3475_v60  ;;  %1968 = vmatpush.bf16.msrb.mxu0 %v3220_v4 }
  0x83   : > { %v2579_v1 = vld [vmem:[%s4291_s29] sm:$0xf]  ;;  %v3799_v6 = vld [vmem:[%s4293_s30 + $0x4ac] sm:$0xf0]  ;;  %v3604_v15 = vor.u32 %v3899_v0, %v3603_v63  ;;  %1982 = vmatpush.bf16.msrb.mxu1 %v3348_v9 }
  0x84   : > { %v3645_v2 = vld [vmem:[%s4291_s29 + $0x1c] sm:$0xf0]  ;;  %v3831_v12 = vld [vmem:[%s4293_s30 + $0x5ac] sm:$0xf0]  ;;  %1996 = vmatpush.bf16.msrb.mxu2 %v3476_v10 }
  0x85   : > { %v3203_v5 = vld [vmem:[%s4293_s30 + $0x4a0] sm:$0xf]  ;;  %v4400_v7 = vor.u32 %v3645_v2, %v2579_v1  ;;  %v3863_v16 = vld [vmem:[%s4293_s30 + $0x6ac] sm:$0xf0]  ;;  %2010 = vmatpush.bf16.msrb.mxu3 %v3604_v15 }
  0x86   : > { %v3331_v11 = vld [vmem:[%s4293_s30 + $0x5a0] sm:$0xf]  ;;  %v3895_v18 = vld [vmem:[%s4293_s30 + $0x7ac] sm:$0xf0]  ;;  %v3204_v22 = vor.u32 %v3799_v6, %v3203_v5 }
  0x87   : > { %v3459_v13 = vld [vmem:[%s4293_s30 + $0x6a0] sm:$0xf]  ;;  %1919 = vmatmul.bf16.vlgmr.msra.gmra.mxu0 %v4400_v7  ;;  %v3332_v25 = vor.u32 %v3831_v12, %v3331_v11  ;;  %v3795_v28 = vld [vmem:[%s4293_s30 + $0x48c] sm:$0xf0] }
  0x88   : > { %v3587_v17 = vld [vmem:[%s4293_s30 + $0x7a0] sm:$0xf]  ;;  %v3460_v26 = vor.u32 %v3863_v16, %v3459_v13  ;;  %v3827_v32 = vld [vmem:[%s4293_s30 + $0x58c] sm:$0xf0]  ;;  %1969 = vmatpush.bf16.msrb.mxu0 %v3204_v22  ;;  %v3677_v22 = vld [vmem:[%s4293_s30 + $0xe4] sm:$0xf] }
  0x89   : > { %v3187_v27 = vld [vmem:[%s4293_s30 + $0x480] sm:$0xf]  ;;  %v3588_v31 = vor.u32 %v3895_v18, %v3587_v17  ;;  %v3859_v34 = vld [vmem:[%s4293_s30 + $0x68c] sm:$0xf0]  ;;  %1983 = vmatpush.bf16.msrb.mxu1 %v3332_v25  ;;  %v2725_v25 = vld [vmem:[%s4293_s30 + $0xf0] sm:$0xf0] }
  0x8a   : > { %v3315_v29 = vld [vmem:[%s4293_s30 + $0x580] sm:$0xf]  ;;  %v3891_v36 = vld [vmem:[%s4293_s30 + $0x78c] sm:$0xf0]  ;;  %v3188_v37 = vor.u32 %v3795_v28, %v3187_v27  ;;  %1997 = vmatpush.bf16.msrb.mxu2 %v3460_v26  ;;  %v3709_v26 = vld [vmem:[%s4293_s30 + $0x1e4] sm:$0xf] }
  0x8b   : > { %v3443_v33 = vld [vmem:[%s4293_s30 + $0x680] sm:$0xf]  ;;  %v3316_v38 = vor.u32 %v3827_v32, %v3315_v29  ;;  %v3791_v41 = vld [vmem:[%s4293_s30 + $0x46c] sm:$0xf0]  ;;  %2011 = vmatpush.bf16.msrb.mxu3 %v3588_v31  ;;  %v2853_v27 = vld [vmem:[%s4293_s30 + $0x1f0] sm:$0xf0] }
  0x8c   : > { %v3571_v35 = vld [vmem:[%s4293_s30 + $0x780] sm:$0xf]  ;;  %v3444_v39 = vor.u32 %v3859_v34, %v3443_v33  ;;  %v3823_v44 = vld [vmem:[%s4293_s30 + $0x56c] sm:$0xf0]  ;;  %1970 = vmatpush.bf16.msrb.mxu0 %v3188_v37  ;;  %v3741_v28 = vld [vmem:[%s4293_s30 + $0x2e4] sm:$0xf] }
  0x8d   : > { %v3171_v40 = vld [vmem:[%s4293_s30 + $0x460] sm:$0xf]  ;;  %v3572_v43 = vor.u32 %v3891_v36, %v3571_v35  ;;  %v3855_v46 = vld [vmem:[%s4293_s30 + $0x66c] sm:$0xf0]  ;;  %1984 = vmatpush.bf16.msrb.mxu1 %v3316_v38  ;;  %v2981_v29 = vld [vmem:[%s4293_s30 + $0x2f0] sm:$0xf0] }
  0x8e   : > { %v3299_v42 = vld [vmem:[%s4293_s30 + $0x560] sm:$0xf]  ;;  %v3887_v48 = vld [vmem:[%s4293_s30 + $0x76c] sm:$0xf0]  ;;  %v3172_v49 = vor.u32 %v3791_v41, %v3171_v40  ;;  %1998 = vmatpush.bf16.msrb.mxu2 %v3444_v39  ;;  %v3773_v31 = vld [vmem:[%s4293_s30 + $0x3e4] sm:$0xf] }
  0x8f   : > { %v3427_v45 = vld [vmem:[%s4293_s30 + $0x660] sm:$0xf]  ;;  %v3300_v50 = vor.u32 %v3823_v44, %v3299_v42  ;;  %v3787_v53 = vld [vmem:[%s4293_s30 + $0x44c] sm:$0xf0]  ;;  %2012 = vmatpush.bf16.msrb.mxu3 %v3572_v43  ;;  %v3109_v33 = vld [vmem:[%s4293_s30 + $0x3f0] sm:$0xf0]  ;;  %v2728_v42 = vor.u32 %v3677_v22, %v2725_v25 }
  0x90   : > { %v3555_v47 = vld [vmem:[%s4293_s30 + $0x760] sm:$0xf]  ;;  %v3428_v51 = vor.u32 %v3855_v46, %v3427_v45  ;;  %v3819_v56 = vld [vmem:[%s4293_s30 + $0x54c] sm:$0xf0]  ;;  %1971 = vmatpush.bf16.msrb.mxu0 %v3172_v49  ;;  %v2603_v38 = vld [vmem:[%s4291_s29 + $0x18] sm:$0xf]  ;;  %v2856_v46 = vor.u32 %v3709_v26, %v2853_v27 }
  0x91   : > { %v3155_v52 = vld [vmem:[%s4293_s30 + $0x440] sm:$0xf]  ;;  %v3556_v55 = vor.u32 %v3887_v48, %v3555_v47  ;;  %v3851_v58 = vld [vmem:[%s4293_s30 + $0x64c] sm:$0xf0]  ;;  %1985 = vmatpush.bf16.msrb.mxu1 %v3300_v50  ;;  %v3648_v39 = vld [vmem:[%s4291_s29 + $0x34] sm:$0xf0]  ;;  %v2984_v47 = vor.u32 %v3741_v28, %v2981_v29 }
  0x92   : > { %v3283_v54 = vld [vmem:[%s4293_s30 + $0x540] sm:$0xf]  ;;  %v3883_v60 = vld [vmem:[%s4293_s30 + $0x74c] sm:$0xf0]  ;;  %v3156_v61 = vor.u32 %v3787_v53, %v3155_v52  ;;  %1999 = vmatpush.bf16.msrb.mxu2 %v3428_v51  ;;  %v3643_v40 = vld [vmem:[%s4291_s29 + $0x14] sm:$0xf]  ;;  %v3112_v51 = vor.u32 %v3773_v31, %v3109_v33 }
  0x93   : > { %v3411_v57 = vld [vmem:[%s4293_s30 + $0x640] sm:$0xf]  ;;  %v3284_v63 = vor.u32 %v3819_v56, %v3283_v54  ;;  %v3783_v1 = vld [vmem:[%s4293_s30 + $0x42c] sm:$0xf0]  ;;  %2013 = vmatpush.bf16.msrb.mxu3 %v3556_v55  ;;  %v2597_v43 = vld [vmem:[%s4291_s29 + $0x30] sm:$0xf0]  ;;  %v4487_v56 = vor.u32 %v3648_v39, %v2603_v38 }
  0x94   : > { %v3539_v59 = vld [vmem:[%s4293_s30 + $0x740] sm:$0xf]  ;;  %v3412_v0 = vor.u32 %v3851_v58, %v3411_v57  ;;  %v3815_v3 = vld [vmem:[%s4293_s30 + $0x52c] sm:$0xf0]  ;;  %1972 = vmatpush.bf16.msrb.mxu0 %v3156_v61  ;;  %v3644_v44 = vld [vmem:[%s4291_s29 + $0x1c] sm:$0xf]  ;;  %v4489_v57 = vor.u32 %v3643_v40, %v2597_v43 }
  0x95   : > { %v3139_v62 = vld [vmem:[%s4293_s30 + $0x420] sm:$0xf]  ;;  %v3540_v4 = vor.u32 %v3883_v60, %v3539_v59  ;;  %v3847_v6 = vld [vmem:[%s4293_s30 + $0x62c] sm:$0xf0]  ;;  %1986 = vmatpush.bf16.msrb.mxu1 %v3284_v63  ;;  %v2605_v45 = vld [vmem:[%s4291_s29 + $0x38] sm:$0xf0] }
  0x96   : > { %v3267_v2 = vld [vmem:[%s4293_s30 + $0x520] sm:$0xf]  ;;  %v3879_v9 = vld [vmem:[%s4293_s30 + $0x72c] sm:$0xf0]  ;;  %v3140_v12 = vor.u32 %v3783_v1, %v3139_v62  ;;  %2000 = vmatpush.bf16.msrb.mxu2 %v3412_v0  ;;  %v3673_v48 = vld [vmem:[%s4293_s30 + $0xc4] sm:$0xf]  ;;  %v4493_v60 = vor.u32 %v3644_v44, %v2605_v45 }
  0x97   : > { %v3395_v5 = vld [vmem:[%s4293_s30 + $0x620] sm:$0xf]  ;;  %v3779_v11 = vld [vmem:[%s4293_s30 + $0x40c] sm:$0xf0]  ;;  %v3268_v18 = vor.u32 %v3815_v3, %v3267_v2  ;;  %2014 = vmatpush.bf16.msrb.mxu3 %v3540_v4  ;;  %v2709_v49 = vld [vmem:[%s4293_s30 + $0xd0] sm:$0xf0] }
  0x98   : > { %v3523_v8 = vld [vmem:[%s4293_s30 + $0x720] sm:$0xf]  ;;  %v3811_v15 = vld [vmem:[%s4293_s30 + $0x50c] sm:$0xf0]  ;;  %v3396_v19 = vor.u32 %v3847_v6, %v3395_v5  ;;  %1973 = vmatpush.bf16.msrb.mxu0 %v3140_v12  ;;  %v3705_v50 = vld [vmem:[%s4293_s30 + $0x1c4] sm:$0xf]  ;;  %v2712_v61 = vor.u32 %v3673_v48, %v2709_v49 }
  0x99   : > { %v3123_v10 = vld [vmem:[%s4293_s30 + $0x400] sm:$0xf]  ;;  %v3843_v17 = vld [vmem:[%s4293_s30 + $0x60c] sm:$0xf0]  ;;  %v3524_v24 = vor.u32 %v3879_v9, %v3523_v8  ;;  %1987 = vmatpush.bf16.msrb.mxu1 %v3268_v18  ;;  %v2837_v53 = vld [vmem:[%s4293_s30 + $0x1d0] sm:$0xf0] }
  0x9a   : > { %v3251_v13 = vld [vmem:[%s4293_s30 + $0x500] sm:$0xf]  ;;  %v3875_v21 = vld [vmem:[%s4293_s30 + $0x70c] sm:$0xf0]  ;;  %v3124_v32 = vor.u32 %v3779_v11, %v3123_v10  ;;  %2001 = vmatpush.bf16.msrb.mxu2 %v3396_v19  ;;  %v3737_v54 = vld [vmem:[%s4293_s30 + $0x2c4] sm:$0xf]  ;;  %v2840_v62 = vor.u32 %v3705_v50, %v2837_v53 }
  0x9b   : > { %v3379_v16 = vld [vmem:[%s4293_s30 + $0x600] sm:$0xf]  ;;  %v2595_v34 = vld [vmem:[%s4291_s29 + $0x10] sm:$0xf]  ;;  %v3252_v36 = vor.u32 %v3811_v15, %v3251_v13  ;;  %2015 = vmatpush.bf16.msrb.mxu3 %v3524_v24  ;;  %v2965_v55 = vld [vmem:[%s4293_s30 + $0x2d0] sm:$0xf0] }
  0x9c   : > { %v3507_v20 = vld [vmem:[%s4293_s30 + $0x700] sm:$0xf]  ;;  %v3647_v35 = vld [vmem:[%s4291_s29 + $0x2c] sm:$0xf0]  ;;  %v3380_v37 = vor.u32 %v3843_v17, %v3379_v16  ;;  %1974 = vmatpush.bf16.msrb.mxu0 %v3124_v32  ;;  %v3769_v58 = vld [vmem:[%s4293_s30 + $0x3c4] sm:$0xf]  ;;  %v2968_v63 = vor.u32 %v3737_v54, %v2965_v55 }
  0x9d   : > { %v3508_v41 = vor.u32 %v3875_v21, %v3507_v20  ;;  %v4482_v52 = vor.u32 %v3647_v35, %v2595_v34  ;;  %1988 = vmatpush.bf16.msrb.mxu1 %v3252_v36  ;;  %v3093_v59 = vld [vmem:[%s4293_s30 + $0x3d0] sm:$0xf0]  ;;  %v3669_v0 = vld [vmem:[%s4293_s30 + $0xa4] sm:$0xf] }
  0x9e   : > { %2002 = vmatpush.bf16.msrb.mxu2 %v3380_v37  ;;  %v2693_v1 = vld [vmem:[%s4293_s30 + $0xb0] sm:$0xf0]  ;;  %v3701_v2 = vld [vmem:[%s4293_s30 + $0x1a4] sm:$0xf]  ;;  %v3096_v3 = vor.u32 %v3769_v58, %v3093_v59 }
  0x9f   : > { %2016 = vmatpush.bf16.msrb.mxu3 %v3508_v41  ;;  %1975 = vmatmul.bf16.vlgmr.msrb.gmra.mxu0 %v4482_v52  ;;  %v2821_v4 = vld [vmem:[%s4293_s30 + $0x1b0] sm:$0xf0]  ;;  %v3733_v5 = vld [vmem:[%s4293_s30 + $0x2a4] sm:$0xf]  ;;  %v2696_v10 = vor.u32 %v3669_v0, %v2693_v1 }
  0xa0   : > { %2023 = vmatpush.bf16.msra.mxu0 %v2728_v42  ;;  %v2949_v6 = vld [vmem:[%s4293_s30 + $0x2b0] sm:$0xf0]  ;;  %1989 = vmatmul.bf16.vlgmr.msrb.gmra.mxu1 %v4489_v57  ;;  %v3765_v8 = vld [vmem:[%s4293_s30 + $0x3a4] sm:$0xf]  ;;  %v2824_v11 = vor.u32 %v3701_v2, %v2821_v4 }
  0xa1   : > { %2037 = vmatpush.bf16.msra.mxu1 %v2856_v46  ;;  %2003 = vmatmul.bf16.vlgmr.msrb.gmra.mxu2 %v4487_v56  ;;  %v3077_v9 = vld [vmem:[%s4293_s30 + $0x3b0] sm:$0xf0]  ;;  %v2952_v12 = vor.u32 %v3733_v5, %v2949_v6  ;;  %v3665_v13 = vld [vmem:[%s4293_s30 + $0x84] sm:$0xf] }
  0xa2   : > { %2051 = vmatpush.bf16.msra.mxu2 %v2984_v47  ;;  %2017 = vmatmul.bf16.vlgmr.msrb.gmra.mxu3 %v4493_v60  ;;  %v2677_v15 = vld [vmem:[%s4293_s30 + $0x90] sm:$0xf0]  ;;  %v3697_v16 = vld [vmem:[%s4293_s30 + $0x184] sm:$0xf]  ;;  %v3080_v17 = vor.u32 %v3765_v8, %v3077_v9 }
  0xa3   : > { %2065 = vmatpush.bf16.msra.mxu3 %v3112_v51  ;;  %v2805_v18 = vld [vmem:[%s4293_s30 + $0x190] sm:$0xf0]  ;;  %v3729_v19 = vld [vmem:[%s4293_s30 + $0x284] sm:$0xf]  ;;  %v2680_v24 = vor.u32 %v3665_v13, %v2677_v15 }
  0xa4   : > { %2024 = vmatpush.bf16.msra.mxu0 %v2712_v61  ;;  %v2933_v20 = vld [vmem:[%s4293_s30 + $0x290] sm:$0xf0]  ;;  %v3761_v21 = vld [vmem:[%s4293_s30 + $0x384] sm:$0xf]  ;;  %v2808_v25 = vor.u32 %v3697_v16, %v2805_v18 }
  0xa5   : > { %2038 = vmatpush.bf16.msra.mxu1 %v2840_v62  ;;  %v3061_v22 = vld [vmem:[%s4293_s30 + $0x390] sm:$0xf0]  ;;  %v2936_v26 = vor.u32 %v3729_v19, %v2933_v20  ;;  %v3661_v27 = vld [vmem:[%s4293_s30 + $0x64] sm:$0xf] }
  0xa6   : > { %2052 = vmatpush.bf16.msra.mxu2 %v2968_v63  ;;  %v2661_v28 = vld [vmem:[%s4293_s30 + $0x70] sm:$0xf0]  ;;  %v3693_v29 = vld [vmem:[%s4293_s30 + $0x164] sm:$0xf]  ;;  %v3064_v31 = vor.u32 %v3761_v21, %v3061_v22 }
  0xa7   : > { %2066 = vmatpush.bf16.msra.mxu3 %v3096_v3  ;;  %v2789_v32 = vld [vmem:[%s4293_s30 + $0x170] sm:$0xf0]  ;;  %v3725_v33 = vld [vmem:[%s4293_s30 + $0x264] sm:$0xf]  ;;  %v2664_v37 = vor.u32 %v3661_v27, %v2661_v28 }
  0xa8   : > { %2025 = vmatpush.bf16.msra.mxu0 %v2696_v10  ;;  %v2917_v34 = vld [vmem:[%s4293_s30 + $0x270] sm:$0xf0]  ;;  %v3757_v35 = vld [vmem:[%s4293_s30 + $0x364] sm:$0xf]  ;;  %v2792_v38 = vor.u32 %v3693_v29, %v2789_v32 }
  0xa9   : > { %2039 = vmatpush.bf16.msra.mxu1 %v2824_v11  ;;  %v3045_v36 = vld [vmem:[%s4293_s30 + $0x370] sm:$0xf0]  ;;  %v2920_v39 = vor.u32 %v3725_v33, %v2917_v34  ;;  %v3657_v40 = vld [vmem:[%s4293_s30 + $0x44] sm:$0xf] }
  0xaa   : > { %2053 = vmatpush.bf16.msra.mxu2 %v2952_v12  ;;  %v2645_v41 = vld [vmem:[%s4293_s30 + $0x50] sm:$0xf0]  ;;  %v3689_v42 = vld [vmem:[%s4293_s30 + $0x144] sm:$0xf]  ;;  %v3048_v43 = vor.u32 %v3757_v35, %v3045_v36 }
  0xab   : > { %2067 = vmatpush.bf16.msra.mxu3 %v3080_v17  ;;  %v2773_v44 = vld [vmem:[%s4293_s30 + $0x150] sm:$0xf0]  ;;  %v3721_v45 = vld [vmem:[%s4293_s30 + $0x244] sm:$0xf]  ;;  %v2648_v49 = vor.u32 %v3657_v40, %v2645_v41 }
  0xac   : > { %2026 = vmatpush.bf16.msra.mxu0 %v2680_v24  ;;  %v2901_v46 = vld [vmem:[%s4293_s30 + $0x250] sm:$0xf0]  ;;  %v3753_v47 = vld [vmem:[%s4293_s30 + $0x344] sm:$0xf]  ;;  %v2776_v50 = vor.u32 %v3689_v42, %v2773_v44 }
  0xad   : > { %2040 = vmatpush.bf16.msra.mxu1 %v2808_v25  ;;  %v3029_v48 = vld [vmem:[%s4293_s30 + $0x350] sm:$0xf0]  ;;  %v2904_v51 = vor.u32 %v3721_v45, %v2901_v46  ;;  %v3653_v53 = vld [vmem:[%s4293_s30 + $0x24] sm:$0xf] }
  0xae   : > { %2054 = vmatpush.bf16.msra.mxu2 %v2936_v26  ;;  %v2629_v54 = vld [vmem:[%s4293_s30 + $0x30] sm:$0xf0]  ;;  %v3685_v55 = vld [vmem:[%s4293_s30 + $0x124] sm:$0xf]  ;;  %v3032_v58 = vor.u32 %v3753_v47, %v3029_v48 }
  0xaf   : > { %2068 = vmatpush.bf16.msra.mxu3 %v3064_v31  ;;  %v2757_v59 = vld [vmem:[%s4293_s30 + $0x130] sm:$0xf0]  ;;  %v3717_v61 = vld [vmem:[%s4293_s30 + $0x224] sm:$0xf]  ;;  %v2632_v1 = vor.u32 %v3653_v53, %v2629_v54 }
  0xb0   : > { %2027 = vmatpush.bf16.msra.mxu0 %v2664_v37  ;;  %v2885_v62 = vld [vmem:[%s4293_s30 + $0x230] sm:$0xf0]  ;;  %v3749_v63 = vld [vmem:[%s4293_s30 + $0x324] sm:$0xf]  ;;  %v2760_v4 = vor.u32 %v3685_v55, %v2757_v59 }
  0xb1   : > { %2041 = vmatpush.bf16.msra.mxu1 %v2792_v38  ;;  %v3013_v0 = vld [vmem:[%s4293_s30 + $0x330] sm:$0xf0]  ;;  %v3649_v2 = vld [vmem:[%s4293_s30 + $0x4] sm:$0xf]  ;;  %v2888_v5 = vor.u32 %v3717_v61, %v2885_v62 }
  0xb2   : > { %2055 = vmatpush.bf16.msra.mxu2 %v2920_v39  ;;  %v2613_v3 = vld [vmem:[%s4293_s30 + $0x10] sm:$0xf0]  ;;  %v3681_v6 = vld [vmem:[%s4293_s30 + $0x104] sm:$0xf]  ;;  %v3016_v10 = vor.u32 %v3749_v63, %v3013_v0 }
  0xb3   : > { %2069 = vmatpush.bf16.msra.mxu3 %v3048_v43  ;;  %v2741_v8 = vld [vmem:[%s4293_s30 + $0x110] sm:$0xf0]  ;;  %v3713_v9 = vld [vmem:[%s4293_s30 + $0x204] sm:$0xf]  ;;  %v2616_v18 = vor.u32 %v3649_v2, %v2613_v3 }
  0xb4   : > { %2028 = vmatpush.bf16.msra.mxu0 %v2648_v49  ;;  %v2869_v11 = vld [vmem:[%s4293_s30 + $0x210] sm:$0xf0]  ;;  %v3745_v12 = vld [vmem:[%s4293_s30 + $0x304] sm:$0xf]  ;;  %v2744_v22 = vor.u32 %v3681_v6, %v2741_v8 }
  0xb5   : > { %2042 = vmatpush.bf16.msra.mxu1 %v2776_v50  ;;  %v2997_v13 = vld [vmem:[%s4293_s30 + $0x310] sm:$0xf0]  ;;  %v3805_v15 = vld [vmem:[%s4293_s30 + $0x4e4] sm:$0xf]  ;;  %v2872_v24 = vor.u32 %v3713_v9, %v2869_v11 }
  0xb6   : > { %2056 = vmatpush.bf16.msra.mxu2 %v2904_v51  ;;  %v3237_v16 = vld [vmem:[%s4293_s30 + $0x4f0] sm:$0xf0]  ;;  %v3837_v17 = vld [vmem:[%s4293_s30 + $0x5e4] sm:$0xf]  ;;  %v3000_v27 = vor.u32 %v3745_v12, %v2997_v13 }
  0xb7   : > { %2070 = vmatpush.bf16.msra.mxu3 %v3032_v58  ;;  %v3365_v19 = vld [vmem:[%s4293_s30 + $0x5f0] sm:$0xf0]  ;;  %v3869_v20 = vld [vmem:[%s4293_s30 + $0x6e4] sm:$0xf]  ;;  %v3240_v28 = vor.u32 %v3805_v15, %v3237_v16 }
  0xb8   : > { %2029 = vmatpush.bf16.msra.mxu0 %v2632_v1  ;;  %v3493_v21 = vld [vmem:[%s4293_s30 + $0x6f0] sm:$0xf0]  ;;  %v3901_v25 = vld [vmem:[%s4293_s30 + $0x7e4] sm:$0xf]  ;;  %v3368_v29 = vor.u32 %v3837_v17, %v3365_v19 }
  0xb9   : > { %2043 = vmatpush.bf16.msra.mxu1 %v2760_v4  ;;  %v3621_v26 = vld [vmem:[%s4293_s30 + $0x7f0] sm:$0xf0]  ;;  %v3496_v31 = vor.u32 %v3869_v20, %v3493_v21  ;;  %v3801_v32 = vld [vmem:[%s4293_s30 + $0x4c4] sm:$0xf] }
  0xba   : > { %2057 = vmatpush.bf16.msra.mxu2 %v2888_v5  ;;  %v3221_v33 = vld [vmem:[%s4293_s30 + $0x4d0] sm:$0xf0]  ;;  %v3833_v34 = vld [vmem:[%s4293_s30 + $0x5c4] sm:$0xf]  ;;  %v3624_v35 = vor.u32 %v3901_v25, %v3621_v26 }
  0xbb   : > { %2071 = vmatpush.bf16.msra.mxu3 %v3016_v10  ;;  %v3349_v36 = vld [vmem:[%s4293_s30 + $0x5d0] sm:$0xf0]  ;;  %v3865_v37 = vld [vmem:[%s4293_s30 + $0x6c4] sm:$0xf]  ;;  %v3224_v41 = vor.u32 %v3801_v32, %v3221_v33 }
  0xbc   : > { %2030 = vmatpush.bf16.msra.mxu0 %v2616_v18  ;;  %v3477_v38 = vld [vmem:[%s4293_s30 + $0x6d0] sm:$0xf0]  ;;  %v3897_v39 = vld [vmem:[%s4293_s30 + $0x7c4] sm:$0xf]  ;;  %v3352_v42 = vor.u32 %v3833_v34, %v3349_v36 }
  0xbd   : > { %2044 = vmatpush.bf16.msra.mxu1 %v2744_v22  ;;  %v3605_v40 = vld [vmem:[%s4293_s30 + $0x7d0] sm:$0xf0]  ;;  %v3480_v43 = vor.u32 %v3865_v37, %v3477_v38  ;;  %v3797_v44 = vld [vmem:[%s4293_s30 + $0x4a4] sm:$0xf] }
  0xbe   : > { %2058 = vmatpush.bf16.msra.mxu2 %v2872_v24  ;;  %v3205_v45 = vld [vmem:[%s4293_s30 + $0x4b0] sm:$0xf0]  ;;  %v3829_v46 = vld [vmem:[%s4293_s30 + $0x5a4] sm:$0xf]  ;;  %v3608_v47 = vor.u32 %v3897_v39, %v3605_v40 }
  0xbf   : > { %2072 = vmatpush.bf16.msra.mxu3 %v3000_v27  ;;  %v3333_v48 = vld [vmem:[%s4293_s30 + $0x5b0] sm:$0xf0]  ;;  %v3861_v49 = vld [vmem:[%s4293_s30 + $0x6a4] sm:$0xf]  ;;  %2031 = vmatmul.bf16.vlgmr.msra.gmra.mxu0 %v4400_v7  ;;  %v3208_v54 = vor.u32 %v3797_v44, %v3205_v45 }
  0xc0   : > { %2079 = vmatpush.bf16.msrb.mxu0 %v3240_v28  ;;  %v3461_v50 = vld [vmem:[%s4293_s30 + $0x6b0] sm:$0xf0]  ;;  %v3893_v51 = vld [vmem:[%s4293_s30 + $0x7a4] sm:$0xf]  ;;  %2045 = vmatmul.bf16.vlgmr.msra.gmra.mxu1 %v4416_v23  ;;  %v3336_v55 = vor.u32 %v3829_v46, %v3333_v48 }
  0xc1   : > { %2093 = vmatpush.bf16.msrb.mxu1 %v3368_v29  ;;  %v3589_v53 = vld [vmem:[%s4293_s30 + $0x7b0] sm:$0xf0]  ;;  %2059 = vmatmul.bf16.vlgmr.msra.gmra.mxu2 %v4406_v14  ;;  %v3464_v58 = vor.u32 %v3861_v49, %v3461_v50  ;;  %v3793_v59 = vld [vmem:[%s4293_s30 + $0x484] sm:$0xf] }
  0xc2   : > { %2107 = vmatpush.bf16.msrb.mxu2 %v3496_v31  ;;  %2073 = vmatmul.bf16.vlgmr.msra.gmra.mxu3 %v4422_v30  ;;  %v3189_v61 = vld [vmem:[%s4293_s30 + $0x490] sm:$0xf0]  ;;  %v3825_v62 = vld [vmem:[%s4293_s30 + $0x584] sm:$0xf]  ;;  %v3592_v63 = vor.u32 %v3893_v51, %v3589_v53 }
  0xc3   : > { %2121 = vmatpush.bf16.msrb.mxu3 %v3624_v35  ;;  %v3317_v0 = vld [vmem:[%s4293_s30 + $0x590] sm:$0xf0]  ;;  %v3857_v1 = vld [vmem:[%s4293_s30 + $0x684] sm:$0xf]  ;;  %v3192_v5 = vor.u32 %v3793_v59, %v3189_v61  ;;  %v2731_v61 = vld [vmem:[%s4293_s30 + $0xe8] sm:$0xf] }
  0xc4   : > { %2080 = vmatpush.bf16.msrb.mxu0 %v3224_v41  ;;  %v3445_v2 = vld [vmem:[%s4293_s30 + $0x690] sm:$0xf0]  ;;  %v3889_v3 = vld [vmem:[%s4293_s30 + $0x784] sm:$0xf]  ;;  %v3320_v6 = vor.u32 %v3825_v62, %v3317_v0  ;;  %v3680_v62 = vld [vmem:[%s4293_s30 + $0xf4] sm:$0xf0] }
  0xc5   : > { %2094 = vmatpush.bf16.msrb.mxu1 %v3352_v42  ;;  %v3573_v4 = vld [vmem:[%s4293_s30 + $0x790] sm:$0xf0]  ;;  %v3448_v8 = vor.u32 %v3857_v1, %v3445_v2  ;;  %v3789_v9 = vld [vmem:[%s4293_s30 + $0x464] sm:$0xf]  ;;  %v3712_v1 = vld [vmem:[%s4293_s30 + $0x1f4] sm:$0xf0] }
  0xc6   : > { %2108 = vmatpush.bf16.msrb.mxu2 %v3480_v43  ;;  %v3173_v10 = vld [vmem:[%s4293_s30 + $0x470] sm:$0xf0]  ;;  %v3821_v11 = vld [vmem:[%s4293_s30 + $0x564] sm:$0xf]  ;;  %v3576_v12 = vor.u32 %v3889_v3, %v3573_v4  ;;  %v2987_v2 = vld [vmem:[%s4293_s30 + $0x2e8] sm:$0xf] }
  0xc7   : > { %2122 = vmatpush.bf16.msrb.mxu3 %v3608_v47  ;;  %v3301_v13 = vld [vmem:[%s4293_s30 + $0x570] sm:$0xf0]  ;;  %v3853_v15 = vld [vmem:[%s4293_s30 + $0x664] sm:$0xf]  ;;  %v3176_v19 = vor.u32 %v3789_v9, %v3173_v10  ;;  %v3744_v3 = vld [vmem:[%s4293_s30 + $0x2f4] sm:$0xf0]  ;;  %v2732_v10 = vor.u32 %v3680_v62, %v2731_v61 }
  0xc8   : > { %2081 = vmatpush.bf16.msrb.mxu0 %v3208_v54  ;;  %v3429_v16 = vld [vmem:[%s4293_s30 + $0x670] sm:$0xf0]  ;;  %v3885_v17 = vld [vmem:[%s4293_s30 + $0x764] sm:$0xf]  ;;  %v3304_v20 = vor.u32 %v3821_v11, %v3301_v13  ;;  %v2715_v13 = vld [vmem:[%s4293_s30 + $0xc8] sm:$0xf] }
  0xc9   : > { %2095 = vmatpush.bf16.msrb.mxu1 %v3336_v55  ;;  %v3557_v18 = vld [vmem:[%s4293_s30 + $0x770] sm:$0xf0]  ;;  %v3432_v21 = vor.u32 %v3853_v15, %v3429_v16  ;;  %v3785_v22 = vld [vmem:[%s4293_s30 + $0x444] sm:$0xf]  ;;  %v3676_v15 = vld [vmem:[%s4293_s30 + $0xd4] sm:$0xf0] }
  0xca   : > { %2109 = vmatpush.bf16.msrb.mxu2 %v3464_v58  ;;  %v3157_v24 = vld [vmem:[%s4293_s30 + $0x450] sm:$0xf0]  ;;  %v3817_v25 = vld [vmem:[%s4293_s30 + $0x544] sm:$0xf]  ;;  %v3560_v26 = vor.u32 %v3885_v17, %v3557_v18  ;;  %v2843_v16 = vld [vmem:[%s4293_s30 + $0x1c8] sm:$0xf] }
  0xcb   : > { %2123 = vmatpush.bf16.msrb.mxu3 %v3592_v63  ;;  %v3285_v27 = vld [vmem:[%s4293_s30 + $0x550] sm:$0xf0]  ;;  %v3849_v28 = vld [vmem:[%s4293_s30 + $0x644] sm:$0xf]  ;;  %v3160_v33 = vor.u32 %v3785_v22, %v3157_v24  ;;  %v2859_v63 = vld [vmem:[%s4293_s30 + $0x1e8] sm:$0xf]  ;;  %v2716_v24 = vor.u32 %v3676_v15, %v2715_v13 }
  0xcc   : > { %2082 = vmatpush.bf16.msrb.mxu0 %v3192_v5  ;;  %v3413_v29 = vld [vmem:[%s4293_s30 + $0x650] sm:$0xf0]  ;;  %v3881_v31 = vld [vmem:[%s4293_s30 + $0x744] sm:$0xf]  ;;  %v3288_v34 = vor.u32 %v3817_v25, %v3285_v27  ;;  %v2860_v11 = vor.u32 %v3712_v1, %v2859_v63  ;;  %v3708_v18 = vld [vmem:[%s4293_s30 + $0x1d4] sm:$0xf0] }
  0xcd   : > { %2096 = vmatpush.bf16.msrb.mxu1 %v3320_v6  ;;  %v3541_v32 = vld [vmem:[%s4293_s30 + $0x750] sm:$0xf0]  ;;  %v3416_v35 = vor.u32 %v3849_v28, %v3413_v29  ;;  %v3781_v36 = vld [vmem:[%s4293_s30 + $0x424] sm:$0xf]  ;;  %v3115_v6 = vld [vmem:[%s4293_s30 + $0x3e8] sm:$0xf]  ;;  %v2844_v25 = vor.u32 %v3708_v18, %v2843_v16 }
  0xce   : > { %2110 = vmatpush.bf16.msrb.mxu2 %v3448_v8  ;;  %v3141_v37 = vld [vmem:[%s4293_s30 + $0x430] sm:$0xf0]  ;;  %v3813_v38 = vld [vmem:[%s4293_s30 + $0x524] sm:$0xf]  ;;  %v3544_v39 = vor.u32 %v3881_v31, %v3541_v32  ;;  %v3776_v8 = vld [vmem:[%s4293_s30 + $0x3f4] sm:$0xf0] }
  0xcf   : > { %2124 = vmatpush.bf16.msrb.mxu3 %v3576_v12  ;;  %v3269_v40 = vld [vmem:[%s4293_s30 + $0x530] sm:$0xf0]  ;;  %v3845_v41 = vld [vmem:[%s4293_s30 + $0x624] sm:$0xf]  ;;  %v3144_v45 = vor.u32 %v3781_v36, %v3141_v37  ;;  %v2988_v12 = vor.u32 %v3744_v3, %v2987_v2  ;;  %v3116_v17 = vor.u32 %v3776_v8, %v3115_v6  ;;  %v3772_v22 = vld [vmem:[%s4293_s30 + $0x3d4] sm:$0xf0] }
  0xd0   : > { %2083 = vmatpush.bf16.msrb.mxu0 %v3176_v19  ;;  %v3397_v42 = vld [vmem:[%s4293_s30 + $0x630] sm:$0xf0]  ;;  %v3877_v43 = vld [vmem:[%s4293_s30 + $0x724] sm:$0xf]  ;;  %v3272_v48 = vor.u32 %v3813_v38, %v3269_v40  ;;  %v2971_v19 = vld [vmem:[%s4293_s30 + $0x2c8] sm:$0xf] }
  0xd1   : > { %2097 = vmatpush.bf16.msrb.mxu1 %v3304_v20  ;;  %v3525_v44 = vld [vmem:[%s4293_s30 + $0x730] sm:$0xf0]  ;;  %v3777_v46 = vld [vmem:[%s4293_s30 + $0x404] sm:$0xf]  ;;  %v3400_v49 = vor.u32 %v3845_v41, %v3397_v42  ;;  %v3740_v20 = vld [vmem:[%s4293_s30 + $0x2d4] sm:$0xf0] }
  0xd2   : > { %2111 = vmatpush.bf16.msrb.mxu2 %v3432_v21  ;;  %v3125_v47 = vld [vmem:[%s4293_s30 + $0x410] sm:$0xf0]  ;;  %v3809_v50 = vld [vmem:[%s4293_s30 + $0x504] sm:$0xf]  ;;  %v3528_v54 = vor.u32 %v3877_v43, %v3525_v44  ;;  %v3099_v21 = vld [vmem:[%s4293_s30 + $0x3c8] sm:$0xf] }
  0xd3   : > { %2125 = vmatpush.bf16.msrb.mxu3 %v3560_v26  ;;  %v3253_v51 = vld [vmem:[%s4293_s30 + $0x510] sm:$0xf0]  ;;  %v3841_v53 = vld [vmem:[%s4293_s30 + $0x604] sm:$0xf]  ;;  %v3128_v0 = vor.u32 %v3777_v46, %v3125_v47  ;;  %v2972_v26 = vor.u32 %v3740_v20, %v2971_v19  ;;  %v2699_v27 = vld [vmem:[%s4293_s30 + $0xa8] sm:$0xf]  ;;  %v3100_v31 = vor.u32 %v3772_v22, %v3099_v21 }
  0xd4   : > { %2084 = vmatpush.bf16.msrb.mxu0 %v3160_v33  ;;  %v3381_v55 = vld [vmem:[%s4293_s30 + $0x610] sm:$0xf0]  ;;  %v3873_v58 = vld [vmem:[%s4293_s30 + $0x704] sm:$0xf]  ;;  %v3256_v4 = vor.u32 %v3809_v50, %v3253_v51  ;;  %v3672_v28 = vld [vmem:[%s4293_s30 + $0xb4] sm:$0xf0] }
  0xd5   : > { %2098 = vmatpush.bf16.msrb.mxu1 %v3288_v34  ;;  %v3509_v59 = vld [vmem:[%s4293_s30 + $0x710] sm:$0xf0]  ;;  %v3384_v5 = vor.u32 %v3841_v53, %v3381_v55  ;;  %v2827_v29 = vld [vmem:[%s4293_s30 + $0x1a8] sm:$0xf]  ;;  %v3704_v32 = vld [vmem:[%s4293_s30 + $0x1b4] sm:$0xf0]  ;;  %v2700_v37 = vor.u32 %v3672_v28, %v2699_v27 }
  0xd6   : > { %2112 = vmatpush.bf16.msrb.mxu2 %v3416_v35  ;;  %v3512_v9 = vor.u32 %v3873_v58, %v3509_v59  ;;  %v2955_v33 = vld [vmem:[%s4293_s30 + $0x2a8] sm:$0xf]  ;;  %v3736_v34 = vld [vmem:[%s4293_s30 + $0x2b4] sm:$0xf0]  ;;  %v2828_v38 = vor.u32 %v3704_v32, %v2827_v29 }
  0xd7   : > { %2126 = vmatpush.bf16.msrb.mxu3 %v3544_v39  ;;  %v3083_v35 = vld [vmem:[%s4293_s30 + $0x3a8] sm:$0xf]  ;;  %v3768_v36 = vld [vmem:[%s4293_s30 + $0x3b4] sm:$0xf0]  ;;  %v2956_v39 = vor.u32 %v3736_v34, %v2955_v33 }
  0xd8   : > { %2085 = vmatpush.bf16.msrb.mxu0 %v3144_v45  ;;  %v2683_v40 = vld [vmem:[%s4293_s30 + $0x88] sm:$0xf]  ;;  %v3668_v41 = vld [vmem:[%s4293_s30 + $0x94] sm:$0xf0]  ;;  %v3084_v43 = vor.u32 %v3768_v36, %v3083_v35 }
  0xd9   : > { %2099 = vmatpush.bf16.msrb.mxu1 %v3272_v48  ;;  %v2811_v42 = vld [vmem:[%s4293_s30 + $0x188] sm:$0xf]  ;;  %v3700_v44 = vld [vmem:[%s4293_s30 + $0x194] sm:$0xf0] }
  0xda   : > { %2113 = vmatpush.bf16.msrb.mxu2 %v3400_v49  ;;  %v2939_v45 = vld [vmem:[%s4293_s30 + $0x288] sm:$0xf]  ;;  %v3732_v46 = vld [vmem:[%s4293_s30 + $0x294] sm:$0xf0]  ;;  %v2684_v49 = vor.u32 %v3668_v41, %v2683_v40  ;;  %v2812_v50 = vor.u32 %v3700_v44, %v2811_v42 }
  0xdb   : > { %2127 = vmatpush.bf16.msrb.mxu3 %v3528_v54  ;;  %v3067_v47 = vld [vmem:[%s4293_s30 + $0x388] sm:$0xf]  ;;  %v3764_v48 = vld [vmem:[%s4293_s30 + $0x394] sm:$0xf0]  ;;  %v2940_v51 = vor.u32 %v3732_v46, %v2939_v45 }
  0xdc   : > { %2086 = vmatpush.bf16.msrb.mxu0 %v3128_v0  ;;  %v2667_v53 = vld [vmem:[%s4293_s30 + $0x68] sm:$0xf]  ;;  %v3664_v54 = vld [vmem:[%s4293_s30 + $0x74] sm:$0xf0]  ;;  %v3068_v58 = vor.u32 %v3764_v48, %v3067_v47 }
  0xdd   : > { %2100 = vmatpush.bf16.msrb.mxu1 %v3256_v4  ;;  %v2795_v55 = vld [vmem:[%s4293_s30 + $0x168] sm:$0xf]  ;;  %v3696_v59 = vld [vmem:[%s4293_s30 + $0x174] sm:$0xf0]  ;;  %v2668_v1 = vor.u32 %v3664_v54, %v2667_v53 }
  0xde   : > { %2114 = vmatpush.bf16.msrb.mxu2 %v3384_v5  ;;  %v2923_v61 = vld [vmem:[%s4293_s30 + $0x268] sm:$0xf]  ;;  %v3728_v62 = vld [vmem:[%s4293_s30 + $0x274] sm:$0xf0]  ;;  %v2796_v2 = vor.u32 %v3696_v59, %v2795_v55 }
  0xdf   : > { %2128 = vmatpush.bf16.msrb.mxu3 %v3512_v9  ;;  %2087 = vmatmul.bf16.vlgmr.msrb.gmra.mxu0 %v4482_v52  ;;  %v3051_v63 = vld [vmem:[%s4293_s30 + $0x368] sm:$0xf]  ;;  %v3760_v0 = vld [vmem:[%s4293_s30 + $0x374] sm:$0xf0]  ;;  %v2924_v3 = vor.u32 %v3728_v62, %v2923_v61 }
  0xe0   : > { %2135 = vmatpush.bf16.msra.mxu0 %v2732_v10  ;;  %2101 = vmatmul.bf16.vlgmr.msrb.gmra.mxu1 %v4489_v57  ;;  %v2651_v4 = vld [vmem:[%s4293_s30 + $0x48] sm:$0xf]  ;;  %v3660_v5 = vld [vmem:[%s4293_s30 + $0x54] sm:$0xf0]  ;;  %v3052_v8 = vor.u32 %v3760_v0, %v3051_v63 }
  0xe1   : > { %2149 = vmatpush.bf16.msra.mxu1 %v2860_v11  ;;  %2115 = vmatmul.bf16.vlgmr.msrb.gmra.mxu2 %v4487_v56  ;;  %v2779_v6 = vld [vmem:[%s4293_s30 + $0x148] sm:$0xf]  ;;  %v3692_v9 = vld [vmem:[%s4293_s30 + $0x154] sm:$0xf0]  ;;  %v2652_v15 = vor.u32 %v3660_v5, %v2651_v4 }
  0xe2   : > { %2163 = vmatpush.bf16.msra.mxu2 %v2988_v12  ;;  %2129 = vmatmul.bf16.vlgmr.msrb.gmra.mxu3 %v4493_v60  ;;  %v2907_v10 = vld [vmem:[%s4293_s30 + $0x248] sm:$0xf]  ;;  %v3724_v11 = vld [vmem:[%s4293_s30 + $0x254] sm:$0xf0]  ;;  %v2780_v16 = vor.u32 %v3692_v9, %v2779_v6 }
  0xe3   : > { %2177 = vmatpush.bf16.msra.mxu3 %v3116_v17  ;;  %v3035_v12 = vld [vmem:[%s4293_s30 + $0x348] sm:$0xf]  ;;  %v3756_v13 = vld [vmem:[%s4293_s30 + $0x354] sm:$0xf0]  ;;  %v2908_v17 = vor.u32 %v3724_v11, %v2907_v10 }
  0xe4   : > { %2136 = vmatpush.bf16.msra.mxu0 %v2716_v24  ;;  %v2635_v18 = vld [vmem:[%s4293_s30 + $0x28] sm:$0xf]  ;;  %v3656_v19 = vld [vmem:[%s4293_s30 + $0x34] sm:$0xf0]  ;;  %v3036_v21 = vor.u32 %v3756_v13, %v3035_v12 }
  0xe5   : > { %2150 = vmatpush.bf16.msra.mxu1 %v2844_v25  ;;  %v2763_v20 = vld [vmem:[%s4293_s30 + $0x128] sm:$0xf]  ;;  %v3688_v22 = vld [vmem:[%s4293_s30 + $0x134] sm:$0xf0]  ;;  %v2636_v28 = vor.u32 %v3656_v19, %v2635_v18 }
  0xe6   : > { %2164 = vmatpush.bf16.msra.mxu2 %v2972_v26  ;;  %v2891_v24 = vld [vmem:[%s4293_s30 + $0x228] sm:$0xf]  ;;  %v3720_v25 = vld [vmem:[%s4293_s30 + $0x234] sm:$0xf0]  ;;  %v2764_v32 = vor.u32 %v3688_v22, %v2763_v20 }
  0xe7   : > { %2178 = vmatpush.bf16.msra.mxu3 %v3100_v31  ;;  %v3019_v26 = vld [vmem:[%s4293_s30 + $0x328] sm:$0xf]  ;;  %v3752_v27 = vld [vmem:[%s4293_s30 + $0x334] sm:$0xf0]  ;;  %v2892_v33 = vor.u32 %v3720_v25, %v2891_v24 }
  0xe8   : > { %2137 = vmatpush.bf16.msra.mxu0 %v2700_v37  ;;  %v2619_v29 = vld [vmem:[%s4293_s30 + $0x8] sm:$0xf]  ;;  %v3652_v31 = vld [vmem:[%s4293_s30 + $0x14] sm:$0xf0]  ;;  %v3020_v37 = vor.u32 %v3752_v27, %v3019_v26 }
  0xe9   : > { %2151 = vmatpush.bf16.msra.mxu1 %v2828_v38  ;;  %v2747_v34 = vld [vmem:[%s4293_s30 + $0x108] sm:$0xf]  ;;  %v3684_v35 = vld [vmem:[%s4293_s30 + $0x114] sm:$0xf0]  ;;  %v2620_v44 = vor.u32 %v3652_v31, %v2619_v29 }
  0xea   : > { %2165 = vmatpush.bf16.msra.mxu2 %v2956_v39  ;;  %v2875_v36 = vld [vmem:[%s4293_s30 + $0x208] sm:$0xf]  ;;  %v3716_v38 = vld [vmem:[%s4293_s30 + $0x214] sm:$0xf0]  ;;  %v2748_v48 = vor.u32 %v3684_v35, %v2747_v34 }
  0xeb   : > { %2179 = vmatpush.bf16.msra.mxu3 %v3084_v43  ;;  %v3003_v39 = vld [vmem:[%s4293_s30 + $0x308] sm:$0xf]  ;;  %v3748_v40 = vld [vmem:[%s4293_s30 + $0x314] sm:$0xf0] }
  0xec   : > { %2138 = vmatpush.bf16.msra.mxu0 %v2684_v49  ;;  %v3243_v41 = vld [vmem:[%s4293_s30 + $0x4e8] sm:$0xf]  ;;  %v3808_v42 = vld [vmem:[%s4293_s30 + $0x4f4] sm:$0xf0]  ;;  %v2876_v49 = vor.u32 %v3716_v38, %v2875_v36  ;;  %v3004_v53 = vor.u32 %v3748_v40, %v3003_v39 }
  0xed   : > { %2152 = vmatpush.bf16.msra.mxu1 %v2812_v50  ;;  %v3371_v43 = vld [vmem:[%s4293_s30 + $0x5e8] sm:$0xf]  ;;  %v3840_v45 = vld [vmem:[%s4293_s30 + $0x5f4] sm:$0xf0]  ;;  %v3244_v54 = vor.u32 %v3808_v42, %v3243_v41 }
  0xee   : > { %2166 = vmatpush.bf16.msra.mxu2 %v2940_v51  ;;  %v3499_v46 = vld [vmem:[%s4293_s30 + $0x6e8] sm:$0xf]  ;;  %v3872_v47 = vld [vmem:[%s4293_s30 + $0x6f4] sm:$0xf0]  ;;  %v3372_v55 = vor.u32 %v3840_v45, %v3371_v43 }
  0xef   : > { %2180 = vmatpush.bf16.msra.mxu3 %v3068_v58  ;;  %v3627_v50 = vld [vmem:[%s4293_s30 + $0x7e8] sm:$0xf]  ;;  %v3904_v51 = vld [vmem:[%s4293_s30 + $0x7f4] sm:$0xf0]  ;;  %v3500_v58 = vor.u32 %v3872_v47, %v3499_v46 }
  0xf0   : > { %2139 = vmatpush.bf16.msra.mxu0 %v2668_v1  ;;  %v3227_v59 = vld [vmem:[%s4293_s30 + $0x4c8] sm:$0xf]  ;;  %v3804_v61 = vld [vmem:[%s4293_s30 + $0x4d4] sm:$0xf0]  ;;  %v3628_v63 = vor.u32 %v3904_v51, %v3627_v50 }
  0xf1   : > { %2153 = vmatpush.bf16.msra.mxu1 %v2796_v2  ;;  %v3355_v62 = vld [vmem:[%s4293_s30 + $0x5c8] sm:$0xf]  ;;  %v3836_v0 = vld [vmem:[%s4293_s30 + $0x5d4] sm:$0xf0]  ;;  %v3228_v5 = vor.u32 %v3804_v61, %v3227_v59 }
  0xf2   : > { %2167 = vmatpush.bf16.msra.mxu2 %v2924_v3  ;;  %v3483_v1 = vld [vmem:[%s4293_s30 + $0x6c8] sm:$0xf]  ;;  %v3868_v2 = vld [vmem:[%s4293_s30 + $0x6d4] sm:$0xf0]  ;;  %v3356_v6 = vor.u32 %v3836_v0, %v3355_v62 }
  0xf3   : > { %2181 = vmatpush.bf16.msra.mxu3 %v3052_v8  ;;  %v3611_v3 = vld [vmem:[%s4293_s30 + $0x7c8] sm:$0xf]  ;;  %v3900_v4 = vld [vmem:[%s4293_s30 + $0x7d4] sm:$0xf0]  ;;  %v3484_v8 = vor.u32 %v3868_v2, %v3483_v1 }
  0xf4   : > { %2140 = vmatpush.bf16.msra.mxu0 %v2652_v15  ;;  %v3211_v9 = vld [vmem:[%s4293_s30 + $0x4a8] sm:$0xf]  ;;  %v3800_v10 = vld [vmem:[%s4293_s30 + $0x4b4] sm:$0xf0]  ;;  %v3612_v12 = vor.u32 %v3900_v4, %v3611_v3 }
  0xf5   : > { %2154 = vmatpush.bf16.msra.mxu1 %v2780_v16  ;;  %v3339_v11 = vld [vmem:[%s4293_s30 + $0x5a8] sm:$0xf]  ;;  %v3832_v13 = vld [vmem:[%s4293_s30 + $0x5b4] sm:$0xf0]  ;;  %v3212_v19 = vor.u32 %v3800_v10, %v3211_v9 }
  0xf6   : > { %2168 = vmatpush.bf16.msra.mxu2 %v2908_v17  ;;  %v3467_v15 = vld [vmem:[%s4293_s30 + $0x6a8] sm:$0xf]  ;;  %v3864_v16 = vld [vmem:[%s4293_s30 + $0x6b4] sm:$0xf0]  ;;  %v3340_v20 = vor.u32 %v3832_v13, %v3339_v11 }
  0xf7   : > { %2182 = vmatpush.bf16.msra.mxu3 %v3036_v21  ;;  %v3595_v17 = vld [vmem:[%s4293_s30 + $0x7a8] sm:$0xf]  ;;  %v3896_v18 = vld [vmem:[%s4293_s30 + $0x7b4] sm:$0xf0]  ;;  %v3468_v21 = vor.u32 %v3864_v16, %v3467_v15 }
  0xf8   : > { %2141 = vmatpush.bf16.msra.mxu0 %v2636_v28  ;;  %v3195_v22 = vld [vmem:[%s4293_s30 + $0x488] sm:$0xf]  ;;  %v3796_v24 = vld [vmem:[%s4293_s30 + $0x494] sm:$0xf0]  ;;  %v3596_v26 = vor.u32 %v3896_v18, %v3595_v17 }
  0xf9   : > { %2155 = vmatpush.bf16.msra.mxu1 %v2764_v32  ;;  %v3323_v25 = vld [vmem:[%s4293_s30 + $0x588] sm:$0xf]  ;;  %v3828_v27 = vld [vmem:[%s4293_s30 + $0x594] sm:$0xf0] }
  0xfa   : > { %2169 = vmatpush.bf16.msra.mxu2 %v2892_v33  ;;  %v3451_v28 = vld [vmem:[%s4293_s30 + $0x688] sm:$0xf]  ;;  %v3860_v29 = vld [vmem:[%s4293_s30 + $0x694] sm:$0xf0]  ;;  %v3196_v33 = vor.u32 %v3796_v24, %v3195_v22  ;;  %v3324_v34 = vor.u32 %v3828_v27, %v3323_v25  ;;  %v2733_v27 = vld [vmem:[%s4293_s30 + $0xf8] sm:$0xf0] }
  0xfb   : > { %2183 = vmatpush.bf16.msra.mxu3 %v3020_v37  ;;  %v3579_v31 = vld [vmem:[%s4293_s30 + $0x788] sm:$0xf]  ;;  %v3892_v32 = vld [vmem:[%s4293_s30 + $0x794] sm:$0xf0]  ;;  %v3452_v35 = vor.u32 %v3860_v29, %v3451_v28  ;;  %v1934_v9 = vpop.f32.mrf.mxu1  ;;  %v3710_v28 = vld [vmem:[%s4293_s30 + $0x1ec] sm:$0xf] }
  0xfc   : > { %2142 = vmatpush.bf16.msra.mxu0 %v2620_v44  ;;  %v3179_v36 = vld [vmem:[%s4293_s30 + $0x468] sm:$0xf]  ;;  %v3792_v37 = vld [vmem:[%s4293_s30 + $0x474] sm:$0xf0]  ;;  %v3580_v39 = vor.u32 %v3892_v32, %v3579_v31  ;;  %v2861_v31 = vld [vmem:[%s4293_s30 + $0x1f8] sm:$0xf0] }
  0xfd   : > { %2156 = vmatpush.bf16.msra.mxu1 %v2748_v48  ;;  %v3307_v38 = vld [vmem:[%s4293_s30 + $0x568] sm:$0xf]  ;;  %v3824_v40 = vld [vmem:[%s4293_s30 + $0x574] sm:$0xf0]  ;;  %v3180_v45 = vor.u32 %v3792_v37, %v3179_v36  ;;  %v3742_v32 = vld [vmem:[%s4293_s30 + $0x2ec] sm:$0xf] }
  0xfe   : > { %2170 = vmatpush.bf16.msra.mxu2 %v2876_v49  ;;  %v3435_v41 = vld [vmem:[%s4293_s30 + $0x668] sm:$0xf]  ;;  %v3856_v42 = vld [vmem:[%s4293_s30 + $0x674] sm:$0xf0]  ;;  %v3308_v46 = vor.u32 %v3824_v40, %v3307_v38  ;;  %v3774_v37 = vld [vmem:[%s4293_s30 + $0x3ec] sm:$0xf] }
  0xff   : > { %2184 = vmatpush.bf16.msra.mxu3 %v3004_v53  ;;  %2143 = vmatmul.bf16.vlgmr.msra.gmra.mxu0 %v4400_v7  ;;  %v3563_v43 = vld [vmem:[%s4293_s30 + $0x768] sm:$0xf]  ;;  %v3888_v44 = vld [vmem:[%s4293_s30 + $0x774] sm:$0xf0]  ;;  %v3436_v47 = vor.u32 %v3856_v42, %v3435_v41  ;;  %v3117_v38 = vld [vmem:[%s4293_s30 + $0x3f8] sm:$0xf0] }
 0x100   : > { %2191 = vmatpush.bf16.msrb.mxu0 %v3244_v54  ;;  %2157 = vmatmul.bf16.vlgmr.msra.gmra.mxu1 %v4416_v23  ;;  %v3163_v48 = vld [vmem:[%s4293_s30 + $0x448] sm:$0xf]  ;;  %v3788_v49 = vld [vmem:[%s4293_s30 + $0x454] sm:$0xf0]  ;;  %v3564_v51 = vor.u32 %v3888_v44, %v3563_v43  ;;  %v2864_v43 = vor.u32 %v3710_v28, %v2861_v31  ;;  %v3069_v28 = vld [vmem:[%s4293_s30 + $0x398] sm:$0xf0] }
 0x101   : > { %2205 = vmatpush.bf16.msrb.mxu1 %v3372_v55  ;;  %2171 = vmatmul.bf16.vlgmr.msra.gmra.mxu2 %v4406_v14  ;;  %v3291_v50 = vld [vmem:[%s4293_s30 + $0x548] sm:$0xf]  ;;  %v3820_v53 = vld [vmem:[%s4293_s30 + $0x554] sm:$0xf0]  ;;  %v3164_v61 = vor.u32 %v3788_v49, %v3163_v48  ;;  %v3706_v48 = vld [vmem:[%s4293_s30 + $0x1cc] sm:$0xf]  ;;  %v3120_v49 = vor.u32 %v3774_v37, %v3117_v38 }
 0x102   : > { %2219 = vmatpush.bf16.msrb.mxu2 %v3500_v58  ;;  %2185 = vmatmul.bf16.vlgmr.msra.gmra.mxu3 %v4422_v30  ;;  %v3419_v54 = vld [vmem:[%s4293_s30 + $0x648] sm:$0xf]  ;;  %v3852_v55 = vld [vmem:[%s4293_s30 + $0x654] sm:$0xf0]  ;;  %v3292_v62 = vor.u32 %v3820_v53, %v3291_v50  ;;  %v2845_v50 = vld [vmem:[%s4293_s30 + $0x1d8] sm:$0xf0] }
 0x103   : > { %2233 = vmatpush.bf16.msrb.mxu3 %v3628_v63  ;;  %v3547_v58 = vld [vmem:[%s4293_s30 + $0x748] sm:$0xf]  ;;  %v3884_v59 = vld [vmem:[%s4293_s30 + $0x754] sm:$0xf0]  ;;  %v3420_v63 = vor.u32 %v3852_v55, %v3419_v54  ;;  %v2973_v53 = vld [vmem:[%s4293_s30 + $0x2d8] sm:$0xf0]  ;;  %v1936_v54 = vpop.f32.mrf.mxu1 }
 0x104   : > { %2192 = vmatpush.bf16.msrb.mxu0 %v3228_v5  ;;  %v1920_v0 = vpop.f32.mrf.mxu0  ;;  %v3147_v1 = vld [vmem:[%s4293_s30 + $0x428] sm:$0xf]  ;;  %v3784_v2 = vld [vmem:[%s4293_s30 + $0x434] sm:$0xf0]  ;;  %v3548_v4 = vor.u32 %v3884_v59, %v3547_v58  ;;  %v3770_v55 = vld [vmem:[%s4293_s30 + $0x3cc] sm:$0xf] }
 0x105   : > { %2206 = vmatpush.bf16.msrb.mxu1 %v3356_v6  ;;  %v3275_v3 = vld [vmem:[%s4293_s30 + $0x528] sm:$0xf]  ;;  %v3816_v5 = vld [vmem:[%s4293_s30 + $0x534] sm:$0xf0]  ;;  %v1935_v40 = vadd.f32 %v1934_v9, %v1920_v0  ;;  %v3101_v58 = vld [vmem:[%s4293_s30 + $0x3d8] sm:$0xf0] }
 0x106   : > { %2220 = vmatpush.bf16.msrb.mxu2 %v3484_v8  ;;  %v3403_v6 = vld [vmem:[%s4293_s30 + $0x628] sm:$0xf]  ;;  %v3848_v8 = vld [vmem:[%s4293_s30 + $0x634] sm:$0xf0]  ;;  %v3276_v16 = vor.u32 %v3816_v5, %v3275_v3  ;;  %v3670_v0 = vld [vmem:[%s4293_s30 + $0xac] sm:$0xf]  ;;  %v3104_v3 = vor.u32 %v3770_v55, %v3101_v58 }
 0x107   : > { %2234 = vmatpush.bf16.msrb.mxu3 %v3612_v12  ;;  %v3531_v10 = vld [vmem:[%s4293_s30 + $0x728] sm:$0xf]  ;;  %v3880_v11 = vld [vmem:[%s4293_s30 + $0x734] sm:$0xf0]  ;;  %v3148_v12 = vor.u32 %v3784_v2, %v3147_v1  ;;  %v3404_v17 = vor.u32 %v3848_v8, %v3403_v6  ;;  %v2701_v1 = vld [vmem:[%s4293_s30 + $0xb8] sm:$0xf0] }
 0x108   : > { %2193 = vmatpush.bf16.msrb.mxu0 %v3212_v19  ;;  %v3131_v13 = vld [vmem:[%s4293_s30 + $0x408] sm:$0xf]  ;;  %v3780_v15 = vld [vmem:[%s4293_s30 + $0x414] sm:$0xf0]  ;;  %v3702_v2 = vld [vmem:[%s4293_s30 + $0x1ac] sm:$0xf] }
 0x109   : > { %2207 = vmatpush.bf16.msrb.mxu1 %v3340_v20  ;;  %v3259_v18 = vld [vmem:[%s4293_s30 + $0x508] sm:$0xf]  ;;  %v3812_v19 = vld [vmem:[%s4293_s30 + $0x514] sm:$0xf0]  ;;  %v3132_v29 = vor.u32 %v3780_v15, %v3131_v13  ;;  %v3734_v5 = vld [vmem:[%s4293_s30 + $0x2ac] sm:$0xf] }
 0x10a   : > { %2221 = vmatpush.bf16.msrb.mxu2 %v3468_v21  ;;  %v3387_v20 = vld [vmem:[%s4293_s30 + $0x608] sm:$0xf]  ;;  %v3532_v21 = vor.u32 %v3880_v11, %v3531_v10  ;;  %v3844_v22 = vld [vmem:[%s4293_s30 + $0x614] sm:$0xf0]  ;;  %v2957_v6 = vld [vmem:[%s4293_s30 + $0x2b8] sm:$0xf0]  ;;  %v2704_v11 = vor.u32 %v3670_v0, %v2701_v1 }
 0x10b   : > { %2235 = vmatpush.bf16.msrb.mxu3 %v3596_v26  ;;  %v3515_v24 = vld [vmem:[%s4293_s30 + $0x708] sm:$0xf]  ;;  %v3876_v25 = vld [vmem:[%s4293_s30 + $0x714] sm:$0xf0]  ;;  %v3678_v26 = vld [vmem:[%s4293_s30 + $0xec] sm:$0xf]  ;;  %v3388_v36 = vor.u32 %v3844_v22, %v3387_v20  ;;  %v2960_v15 = vor.u32 %v3734_v5, %v2957_v6 }
 0x10c   : > { %2194 = vmatpush.bf16.msrb.mxu0 %v3196_v33  ;;  %v2989_v33 = vld [vmem:[%s4293_s30 + $0x2f8] sm:$0xf0]  ;;  %v3516_v41 = vor.u32 %v3876_v25, %v3515_v24  ;;  %v2736_v42 = vor.u32 %v3678_v26, %v2733_v27  ;;  %v3766_v8 = vld [vmem:[%s4293_s30 + $0x3ac] sm:$0xf] }
 0x10d   : > { %2208 = vmatpush.bf16.msrb.mxu1 %v3324_v34  ;;  %v1948_v34 = vpop.f32.mrf.mxu2  ;;  %v2992_v44 = vor.u32 %v3742_v32, %v2989_v33  ;;  %v3085_v9 = vld [vmem:[%s4293_s30 + $0x3b8] sm:$0xf0]  ;;  %v3730_v22 = vld [vmem:[%s4293_s30 + $0x28c] sm:$0xf] }
 0x10e   : > { %2222 = vmatpush.bf16.msrb.mxu2 %v3452_v35  ;;  %v3260_v35 = vor.u32 %v3812_v19, %v3259_v18  ;;  %v1949_v59 = vadd.f32 %v1948_v34, %v1935_v40  ;;  %v2685_v18 = vld [vmem:[%s4293_s30 + $0x98] sm:$0xf0]  ;;  %v3698_v19 = vld [vmem:[%s4293_s30 + $0x18c] sm:$0xf]  ;;  %v3088_v20 = vor.u32 %v3766_v8, %v3085_v9 }
 0x10f   : > { %2236 = vmatpush.bf16.msrb.mxu3 %v3580_v39  ;;  %v1962_v39 = vpop.f32.mrf.mxu3  ;;  %v2941_v24 = vld [vmem:[%s4293_s30 + $0x298] sm:$0xf0]  ;;  %v3762_v27 = vld [vmem:[%s4293_s30 + $0x38c] sm:$0xf] }
 0x110   : > { %2195 = vmatpush.bf16.msrb.mxu0 %v3180_v45  ;;  %v1922_v45 = vpop.f32.mrf.mxu0  ;;  %v1963_v10 = vadd.f32 %v1962_v39, %v1949_v59  ;;  %v2944_v34 = vor.u32 %v3730_v22, %v2941_v24  ;;  %v3694_v37 = vld [vmem:[%s4293_s30 + $0x16c] sm:$0xf]  ;;  %v3072_v38 = vor.u32 %v3762_v27, %v3069_v28  ;;  %v2797_v39 = vld [vmem:[%s4293_s30 + $0x178] sm:$0xf0] }
 0x111   : > { %2209 = vmatpush.bf16.msrb.mxu1 %v3308_v46  ;;  %v3674_v46 = vld [vmem:[%s4293_s30 + $0xcc] sm:$0xf]  ;;  %v1937_v25 = vadd.f32 %v1936_v54, %v1922_v45  ;;  %v3053_v45 = vld [vmem:[%s4293_s30 + $0x378] sm:$0xf0] }
 0x112   : > { %2223 = vmatpush.bf16.msrb.mxu2 %v3436_v47  ;;  %v2717_v47 = vld [vmem:[%s4293_s30 + $0xd8] sm:$0xf0]  ;;  %v3726_v40 = vld [vmem:[%s4293_s30 + $0x26c] sm:$0xf] }
 0x113   : > { %2237 = vmatpush.bf16.msrb.mxu3 %v3564_v51  ;;  %v3738_v51 = vld [vmem:[%s4293_s30 + $0x2cc] sm:$0xf]  ;;  %v2909_v59 = vld [vmem:[%s4293_s30 + $0x258] sm:$0xf0] }
 0x114   : > { %2196 = vmatpush.bf16.msrb.mxu0 %v3164_v61  ;;  %v2720_v61 = vor.u32 %v3674_v46, %v2717_v47  ;;  %v3658_v47 = vld [vmem:[%s4293_s30 + $0x4c] sm:$0xf] }
 0x115   : > { %2210 = vmatpush.bf16.msrb.mxu1 %v3292_v62  ;;  %v2848_v62 = vor.u32 %v3706_v48, %v2845_v50  ;;  %v2800_v48 = vor.u32 %v3694_v37, %v2797_v39  ;;  %v2653_v50 = vld [vmem:[%s4293_s30 + $0x58] sm:$0xf0]  ;;  %v3722_v58 = vld [vmem:[%s4293_s30 + $0x24c] sm:$0xf] }
 0x116   : > { %2224 = vmatpush.bf16.msrb.mxu2 %v3420_v63  ;;  %v2976_v63 = vor.u32 %v3738_v51, %v2973_v53  ;;  %v3690_v51 = vld [vmem:[%s4293_s30 + $0x14c] sm:$0xf]  ;;  %v2781_v53 = vld [vmem:[%s4293_s30 + $0x158] sm:$0xf0]  ;;  %v2912_v9 = vor.u32 %v3722_v58, %v2909_v59 }
 0x117   : > { %2238 = vmatpush.bf16.msrb.mxu3 %v3548_v4  ;;  %v2829_v4 = vld [vmem:[%s4293_s30 + $0x1b8] sm:$0xf0]  ;;  %v3754_v1 = vld [vmem:[%s4293_s30 + $0x34c] sm:$0xf]  ;;  %v2784_v5 = vor.u32 %v3690_v51, %v2781_v53 }
 0x118   : > { %2197 = vmatpush.bf16.msrb.mxu0 %v3148_v12  ;;  %v1950_v12 = vpop.f32.mrf.mxu2  ;;  %v2832_v13 = vor.u32 %v3702_v2, %v2829_v4  ;;  %v3037_v2 = vld [vmem:[%s4293_s30 + $0x358] sm:$0xf0]  ;;  %v2656_v4 = vor.u32 %v3658_v47, %v2653_v50  ;;  %v3650_v24 = vld [vmem:[%s4293_s30 + $0xc] sm:$0xf] }
 0x119   : > { %2211 = vmatpush.bf16.msrb.mxu1 %v3276_v16  ;;  %v1964_v16 = vpop.f32.mrf.mxu3  ;;  %v3746_v37 = vld [vmem:[%s4293_s30 + $0x30c] sm:$0xf]  ;;  %v3501_v47 = vld [vmem:[%s4293_s30 + $0x6f8] sm:$0xf0] }
 0x11a   : > { %2225 = vmatpush.bf16.msrb.mxu2 %v3404_v17  ;;  %v3666_v17 = vld [vmem:[%s4293_s30 + $0x8c] sm:$0xf]  ;;  %v3629_v53 = vld [vmem:[%s4293_s30 + $0x7f8] sm:$0xf0] }
 0x11b   : > { %2239 = vmatpush.bf16.msrb.mxu3 %v3532_v21  ;;  %v2813_v21 = vld [vmem:[%s4293_s30 + $0x198] sm:$0xf0]  ;;  %v2688_v31 = vor.u32 %v3666_v17, %v2685_v18  ;;  %v3718_v17 = vld [vmem:[%s4293_s30 + $0x22c] sm:$0xf] }
 0x11c   : > { %2198 = vmatpush.bf16.msrb.mxu0 %v3132_v29  ;;  %v1976_v26 = vpop.f32.mrf.mxu0  ;;  %v2816_v33 = vor.u32 %v3698_v19, %v2813_v21  ;;  %v2893_v18 = vld [vmem:[%s4293_s30 + $0x238] sm:$0xf0]  ;;  %v3902_v51 = vld [vmem:[%s4293_s30 + $0x7ec] sm:$0xf] }
 0x11d   : > { %2212 = vmatpush.bf16.msrb.mxu1 %v3260_v35  ;;  %v1977_v29 = vadd.f32 %v1976_v26, %v1963_v10  ;;  %v1990_v32 = vpop.f32.mrf.mxu1  ;;  %v3662_v35 = vld [vmem:[%s4293_s30 + $0x6c] sm:$0xf]  ;;  %v3021_v21 = vld [vmem:[%s4293_s30 + $0x338] sm:$0xf0]  ;;  %v2896_v28 = vor.u32 %v3718_v17, %v2893_v18 }
 0x11e   : > { %2226 = vmatpush.bf16.msrb.mxu2 %v3388_v36  ;;  %v2669_v36 = vld [vmem:[%s4293_s30 + $0x78] sm:$0xf0]  ;;  %v3654_v10 = vld [vmem:[%s4293_s30 + $0x2c] sm:$0xf] }
 0x11f   : > { %2240 = vmatpush.bf16.msrb.mxu3 %v3516_v41  ;;  %2199 = vmatmul.bf16.vlgmr.msrb.gmra.mxu0 %v4482_v52  ;;  %v2925_v41 = vld [vmem:[%s4293_s30 + $0x278] sm:$0xf0]  ;;  %v2672_v46 = vor.u32 %v3662_v35, %v2669_v36  ;;  %v323_v35 = vld [vmem:[%s4304_s11 + $0x20] sm:$0xff]  ;;  %v3862_v17 = vld [vmem:[%s4293_s30 + $0x6ac] sm:$0xf] }
 0x120   : > { %2247 = vmatpush.bf16.msra.mxu0 %v2736_v42  ;;  %2213 = vmatmul.bf16.vlgmr.msrb.gmra.mxu1 %v4489_v57  ;;  %v1951_v42 = vadd.f32 %v1950_v12, %v1937_v25  ;;  %v3686_v12 = vld [vmem:[%s4293_s30 + $0x12c] sm:$0xf]  ;;  %v2621_v25 = vld [vmem:[%s4293_s30 + $0x18] sm:$0xf0] }
 0x121   : > { %2261 = vmatpush.bf16.msra.mxu1 %v2864_v43  ;;  %2227 = vmatmul.bf16.vlgmr.msrb.gmra.mxu2 %v4487_v56  ;;  %v1991_v43 = vadd.f32 %v1990_v32, %v1977_v29  ;;  %v3682_v29 = vld [vmem:[%s4293_s30 + $0x10c] sm:$0xf]  ;;  %v2877_v36 = vld [vmem:[%s4293_s30 + $0x218] sm:$0xf0] }
 0x122   : > { %2275 = vmatpush.bf16.msra.mxu2 %v2992_v44  ;;  %2241 = vmatmul.bf16.vlgmr.msrb.gmra.mxu3 %v4493_v60  ;;  %v3758_v44 = vld [vmem:[%s4293_s30 + $0x36c] sm:$0xf]  ;;  %v3469_v18 = vld [vmem:[%s4293_s30 + $0x6b8] sm:$0xf0] }
 0x123   : > { %2289 = vmatpush.bf16.msra.mxu3 %v3120_v49  ;;  %v2928_v49 = vor.u32 %v3726_v40, %v2925_v41  ;;  %v3056_v54 = vor.u32 %v3758_v44, %v3053_v45  ;;  %v3714_v32 = vld [vmem:[%s4293_s30 + $0x20c] sm:$0xf]  ;;  %v2624_v44 = vor.u32 %v3650_v24, %v2621_v25  ;;  %v3373_v45 = vld [vmem:[%s4293_s30 + $0x5f8] sm:$0xf0] }
 0x124   : > { %2248 = vmatpush.bf16.msra.mxu0 %v2720_v61  ;;  %v2004_v55 = vpop.f32.mrf.mxu2  ;;  %v1965_v61 = vadd.f32 %v1964_v16, %v1951_v42  ;;  %v2765_v16 = vld [vmem:[%s4293_s30 + $0x138] sm:$0xf0]  ;;  %v3806_v41 = vld [vmem:[%s4293_s30 + $0x4ec] sm:$0xf]  ;;  %v2880_v50 = vor.u32 %v3714_v32, %v2877_v36 }
 0x125   : > { %2262 = vmatpush.bf16.msra.mxu1 %v2848_v62  ;;  %v2005_v62 = vadd.f32 %v2004_v55, %v1991_v43  ;;  %v2018_v0 = vpop.f32.mrf.mxu3  ;;  %v2768_v27 = vor.u32 %v3686_v12, %v2765_v16  ;;  %v3245_v42 = vld [vmem:[%s4293_s30 + $0x4f8] sm:$0xf0]  ;;  %v3838_v43 = vld [vmem:[%s4293_s30 + $0x5ec] sm:$0xf] }
 0x126   : > { %2276 = vmatpush.bf16.msra.mxu2 %v2976_v63  ;;  %v1978_v63 = vpop.f32.mrf.mxu0  ;;  %v3248_v55 = vor.u32 %v3806_v41, %v3245_v42  ;;  %v3376_v59 = vor.u32 %v3838_v43, %v3373_v45  ;;  %v3213_v12 = vld [vmem:[%s4293_s30 + $0x4b8] sm:$0xf0]  ;;  %v3794_v24 = vld [vmem:[%s4293_s30 + $0x48c] sm:$0xf] }
 0x127   : > { %2290 = vmatpush.bf16.msra.mxu3 %v3104_v3  ;;  %v319_v3 = vld [vmem:[%s4304_s11] sm:$0xff]  ;;  %v1979_v6 = vadd.f32 %v1978_v63, %v1965_v61  ;;  %v2019_v8 = vadd.f32 %v2018_v0, %v2005_v62  ;;  %v3802_v62 = vld [vmem:[%s4293_s30 + $0x4cc] sm:$0xf]  ;;  %v3229_v63 = vld [vmem:[%s4293_s30 + $0x4d8] sm:$0xf0] }
 0x128   : > { %2249 = vmatpush.bf16.msra.mxu0 %v2704_v11  ;;  %v2637_v11 = vld [vmem:[%s4293_s30 + $0x38] sm:$0xf0]  ;;  %v3834_v0 = vld [vmem:[%s4293_s30 + $0x5cc] sm:$0xf] }
 0x129   : > { %2263 = vmatpush.bf16.msra.mxu1 %v2832_v13  ;;  %v3040_v13 = vor.u32 %v3754_v1, %v3037_v2  ;;  %v2359_v19 = vadd.f32 %v2019_v8, %v319_v3  ;;  %v2640_v22 = vor.u32 %v3654_v10, %v2637_v11  ;;  %v3632_v1 = vor.u32 %v3902_v51, %v3629_v53  ;;  %v3357_v2 = vld [vmem:[%s4293_s30 + $0x5d8] sm:$0xf0]  ;;  %v3866_v3 = vld [vmem:[%s4293_s30 + $0x6cc] sm:$0xf] }
 0x12a   : > { %2277 = vmatpush.bf16.msra.mxu2 %v2960_v15  ;;  %v1992_v15 = vpop.f32.mrf.mxu1  ;;  %v3232_v8 = vor.u32 %v3802_v62, %v3229_v63  ;;  %v3798_v11 = vld [vmem:[%s4293_s30 + $0x4ac] sm:$0xf]  ;;  %v3341_v16 = vld [vmem:[%s4293_s30 + $0x5b8] sm:$0xf0] }
 0x12b   : > { %2291 = vmatpush.bf16.msra.mxu3 %v3088_v20  ;;  %v3750_v20 = vld [vmem:[%s4293_s30 + $0x32c] sm:$0xf]  ;;  %2367 = vst [vmem:[%s4304_s11] sm:$0xff] %v2359_v19  ;;  %v1993_v26 = vadd.f32 %v1992_v15, %v1979_v6  ;;  %v3613_v6 = vld [vmem:[%s4293_s30 + $0x7d8] sm:$0xf0] }
 0x12c   : > { %2250 = vmatpush.bf16.msra.mxu0 %v2688_v31  ;;  %v2749_v31 = vld [vmem:[%s4293_s30 + $0x118] sm:$0xf0]  ;;  %v3894_v19 = vld [vmem:[%s4293_s30 + $0x7ac] sm:$0xf] }
 0x12d   : > { %2264 = vmatpush.bf16.msra.mxu1 %v2816_v33  ;;  %v3024_v33 = vor.u32 %v3750_v20, %v3021_v21  ;;  %v2020_v40 = vpop.f32.mrf.mxu3  ;;  %v3597_v20 = vld [vmem:[%s4293_s30 + $0x7b8] sm:$0xf0]  ;;  %v3216_v21 = vor.u32 %v3798_v11, %v3213_v12  ;;  %v3826_v25 = vld [vmem:[%s4293_s30 + $0x58c] sm:$0xf] }
 0x12e   : > { %2278 = vmatpush.bf16.msra.mxu2 %v2944_v34  ;;  %v2006_v34 = vpop.f32.mrf.mxu2  ;;  %v3822_v36 = vld [vmem:[%s4293_s30 + $0x56c] sm:$0xf]  ;;  %v3565_v42 = vld [vmem:[%s4293_s30 + $0x778] sm:$0xf0] }
 0x12f   : > { %2292 = vmatpush.bf16.msra.mxu3 %v3072_v38  ;;  %v3005_v38 = vld [vmem:[%s4293_s30 + $0x318] sm:$0xf0]  ;;  %v2007_v39 = vadd.f32 %v2006_v34, %v1993_v26  ;;  %v3600_v26 = vor.u32 %v3894_v19, %v3597_v20  ;;  %v3790_v34 = vld [vmem:[%s4293_s30 + $0x46c] sm:$0xf] }
 0x130   : > { %2251 = vmatpush.bf16.msra.mxu0 %v2672_v46  ;;  %v3870_v46 = vld [vmem:[%s4293_s30 + $0x6ec] sm:$0xf]  ;;  %v3421_v53 = vld [vmem:[%s4293_s30 + $0x658] sm:$0xf0] }
 0x131   : > { %2265 = vmatpush.bf16.msra.mxu1 %v2800_v48  ;;  %v2021_v48 = vadd.f32 %v2020_v40, %v2007_v39  ;;  %v3504_v61 = vor.u32 %v3870_v46, %v3501_v47  ;;  %v3854_v39 = vld [vmem:[%s4293_s30 + $0x66c] sm:$0xf]  ;;  %v3437_v40 = vld [vmem:[%s4293_s30 + $0x678] sm:$0xf0] }
 0x132   : > { %2279 = vmatpush.bf16.msra.mxu2 %v2928_v49  ;;  %v2752_v49 = vor.u32 %v3682_v29, %v2749_v31  ;;  %v3890_v29 = vld [vmem:[%s4293_s30 + $0x78c] sm:$0xf]  ;;  %v3440_v45 = vor.u32 %v3854_v39, %v3437_v40  ;;  %v3165_v47 = vld [vmem:[%s4293_s30 + $0x458] sm:$0xf0] }
 0x133   : > { %2293 = vmatpush.bf16.msra.mxu3 %v3056_v54  ;;  %v3008_v54 = vor.u32 %v3746_v37, %v3005_v38  ;;  %v2363_v58 = vadd.f32 %v2021_v48, %v323_v35  ;;  %v3181_v35 = vld [vmem:[%s4293_s30 + $0x478] sm:$0xf0]  ;;  %v3886_v41 = vld [vmem:[%s4293_s30 + $0x76c] sm:$0xf] }
 0x134   : > { %2252 = vmatpush.bf16.msra.mxu0 %v2656_v4  ;;  %v3485_v4 = vld [vmem:[%s4293_s30 + $0x6d8] sm:$0xf0]  ;;  %v3184_v43 = vor.u32 %v3790_v34, %v3181_v35  ;;  %v3786_v46 = vld [vmem:[%s4293_s30 + $0x44c] sm:$0xf] }
 0x135   : > { %2266 = vmatpush.bf16.msra.mxu1 %v2784_v5  ;;  %2371 = vst [vmem:[%s4304_s11 + $0x20] sm:$0xff] %v2363_v58  ;;  %v3898_v5 = vld [vmem:[%s4293_s30 + $0x7cc] sm:$0xf]  ;;  %v3488_v10 = vor.u32 %v3866_v3, %v3485_v4  ;;  %v3309_v38 = vld [vmem:[%s4293_s30 + $0x578] sm:$0xf0]  ;;  %v3168_v58 = vor.u32 %v3786_v46, %v3165_v47 }
 0x136   : > { %2280 = vmatpush.bf16.msra.mxu2 %v2912_v9  ;;  %v3360_v9 = vor.u32 %v3834_v0, %v3357_v2  ;;  %v3616_v15 = vor.u32 %v3898_v5, %v3613_v6  ;;  %v3818_v48 = vld [vmem:[%s4293_s30 + $0x54c] sm:$0xf]  ;;  %v3149_v0 = vld [vmem:[%s4293_s30 + $0x438] sm:$0xf0] }
 0x137   : > { %2294 = vmatpush.bf16.msra.mxu3 %v3040_v13  ;;  %v3830_v13 = vld [vmem:[%s4293_s30 + $0x5ac] sm:$0xf]  ;;  %v3277_v3 = vld [vmem:[%s4293_s30 + $0x538] sm:$0xf0] }
 0x138   : > { %2253 = vmatpush.bf16.msra.mxu0 %v2640_v22  ;;  %v3472_v22 = vor.u32 %v3862_v17, %v3469_v18  ;;  %v3850_v51 = vld [vmem:[%s4293_s30 + $0x64c] sm:$0xf]  ;;  %v3405_v5 = vld [vmem:[%s4293_s30 + $0x638] sm:$0xf0] }
 0x139   : > { %2267 = vmatpush.bf16.msra.mxu1 %v2768_v27  ;;  %v3325_v27 = vld [vmem:[%s4293_s30 + $0x598] sm:$0xf0]  ;;  %v3782_v63 = vld [vmem:[%s4293_s30 + $0x42c] sm:$0xf] }
 0x13a   : > { %2281 = vmatpush.bf16.msra.mxu2 %v2896_v28  ;;  %v3453_v28 = vld [vmem:[%s4293_s30 + $0x698] sm:$0xf0]  ;;  %v3328_v32 = vor.u32 %v3826_v25, %v3325_v27  ;;  %v3846_v4 = vld [vmem:[%s4293_s30 + $0x62c] sm:$0xf] }
 0x13b   : > { %2295 = vmatpush.bf16.msra.mxu3 %v3024_v33  ;;  %v3408_v12 = vor.u32 %v3846_v4, %v3405_v5  ;;  %v3261_v18 = vld [vmem:[%s4293_s30 + $0x518] sm:$0xf0]  ;;  %v3842_v19 = vld [vmem:[%s4293_s30 + $0x60c] sm:$0xf] }
 0x13c   : > { %2254 = vmatpush.bf16.msra.mxu0 %v2624_v44  ;;  %v3312_v44 = vor.u32 %v3822_v36, %v3309_v38  ;;  %v2032_v62 = vpop.f32.mrf.mxu0  ;;  %v3389_v20 = vld [vmem:[%s4293_s30 + $0x618] sm:$0xf0] }
 0x13d   : > { %2268 = vmatpush.bf16.msra.mxu1 %v2752_v49  ;;  %v3568_v49 = vor.u32 %v3886_v41, %v3565_v42  ;;  %v2046_v6 = vpop.f32.mrf.mxu1  ;;  %v3392_v25 = vor.u32 %v3842_v19, %v3389_v20  ;;  %v320_v42 = vld [vmem:[%s4304_s11 + $0x8] sm:$0xff] }
 0x13e   : > { %2282 = vmatpush.bf16.msra.mxu2 %v2880_v50  ;;  %v3293_v50 = vld [vmem:[%s4293_s30 + $0x558] sm:$0xf0]  ;;  %v2047_v27 = vadd.f32 %v2046_v6, %v2032_v62 }
 0x13f   : > { %2296 = vmatpush.bf16.msra.mxu3 %v3008_v54  ;;  %2255 = vmatmul.bf16.vlgmr.msra.gmra.mxu0 %v4400_v7  ;;  %v3858_v7 = vld [vmem:[%s4293_s30 + $0x68c] sm:$0xf] }
 0x140   : > { %2303 = vmatpush.bf16.msrb.mxu0 %v3248_v55  ;;  %2269 = vmatmul.bf16.vlgmr.msra.gmra.mxu1 %v4416_v23  ;;  %v3581_v23 = vld [vmem:[%s4293_s30 + $0x798] sm:$0xf0]  ;;  %v3456_v33 = vor.u32 %v3858_v7, %v3453_v28  ;;  %v3882_v54 = vld [vmem:[%s4293_s30 + $0x74c] sm:$0xf] }
 0x141   : > { %2317 = vmatpush.bf16.msrb.mxu1 %v3376_v59  ;;  %2283 = vmatmul.bf16.vlgmr.msra.gmra.mxu2 %v4406_v14  ;;  %v3344_v14 = vor.u32 %v3830_v13, %v3341_v16  ;;  %v3584_v37 = vor.u32 %v3890_v29, %v3581_v23  ;;  %v3549_v55 = vld [vmem:[%s4293_s30 + $0x758] sm:$0xf0]  ;;  %v3296_v59 = vor.u32 %v3818_v48, %v3293_v50  ;;  %v3778_v13 = vld [vmem:[%s4293_s30 + $0x40c] sm:$0xf] }
 0x142   : > { %2331 = vmatpush.bf16.msrb.mxu2 %v3504_v61  ;;  %2297 = vmatmul.bf16.vlgmr.msra.gmra.mxu3 %v4422_v30  ;;  %v3197_v30 = vld [vmem:[%s4293_s30 + $0x498] sm:$0xf0]  ;;  %v3424_v61 = vor.u32 %v3850_v51, %v3421_v53  ;;  %v3552_v2 = vor.u32 %v3882_v54, %v3549_v55  ;;  %v3810_v16 = vld [vmem:[%s4293_s30 + $0x50c] sm:$0xf] }
 0x143   : > { %2345 = vmatpush.bf16.msrb.mxu3 %v3632_v1  ;;  %v3200_v31 = vor.u32 %v3794_v24, %v3197_v30  ;;  %v3814_v1 = vld [vmem:[%s4293_s30 + $0x52c] sm:$0xf]  ;;  %v3264_v30 = vor.u32 %v3810_v16, %v3261_v18 }
 0x144   : > { %2304 = vmatpush.bf16.msrb.mxu0 %v3232_v8  ;;  %v3878_v8 = vld [vmem:[%s4293_s30 + $0x72c] sm:$0xf]  ;;  %v3280_v11 = vor.u32 %v3814_v1, %v3277_v3  ;;  %v2060_v24 = vpop.f32.mrf.mxu2  ;;  %v2034_v28 = vpop.f32.mrf.mxu0 }
 0x145   : > { %2318 = vmatpush.bf16.msrb.mxu1 %v3360_v9  ;;  %v3533_v9 = vld [vmem:[%s4293_s30 + $0x738] sm:$0xf0]  ;;  %v2048_v29 = vpop.f32.mrf.mxu1  ;;  %v2061_v23 = vadd.f32 %v2060_v24, %v2047_v27  ;;  %v324_v50 = vld [vmem:[%s4304_s11 + $0x28] sm:$0xff] }
 0x146   : > { %2332 = vmatpush.bf16.msrb.mxu2 %v3488_v10  ;;  %v3152_v10 = vor.u32 %v3782_v63, %v3149_v0  ;;  %v3536_v17 = vor.u32 %v3878_v8, %v3533_v9  ;;  %v2049_v34 = vadd.f32 %v2048_v29, %v2034_v28 }
 0x147   : > { %2346 = vmatpush.bf16.msrb.mxu3 %v3616_v15  ;;  %v3133_v15 = vld [vmem:[%s4293_s30 + $0x418] sm:$0xf0] }
 0x148   : > { %2305 = vmatpush.bf16.msrb.mxu0 %v3216_v21  ;;  %v3874_v21 = vld [vmem:[%s4293_s30 + $0x70c] sm:$0xf] }
 0x149   : > { %2319 = vmatpush.bf16.msrb.mxu1 %v3344_v14  ;;  %v3517_v14 = vld [vmem:[%s4293_s30 + $0x718] sm:$0xf0] }
 0x14a   : > { %2333 = vmatpush.bf16.msrb.mxu2 %v3472_v22  ;;  %v3136_v22 = vor.u32 %v3778_v13, %v3133_v15  ;;  %v3520_v7 = vor.u32 %v3874_v21, %v3517_v14 }
 0x14b   : > { %2347 = vmatpush.bf16.msrb.mxu3 %v3600_v26  ;;  %v2074_v26 = vpop.f32.mrf.mxu3 }
 0x14c   : > { %2306 = vmatpush.bf16.msrb.mxu0 %v3200_v31  ;;  %v2075_v31 = vadd.f32 %v2074_v26, %v2061_v23 }
 0x14d   : > { %2320 = vmatpush.bf16.msrb.mxu1 %v3328_v32  ;;  %v2062_v32 = vpop.f32.mrf.mxu2 }
 0x14e   : > { %2334 = vmatpush.bf16.msrb.mxu2 %v3456_v33  ;;  %v2063_v38 = vadd.f32 %v2062_v32, %v2049_v34 }
 0x14f   : > { %2348 = vmatpush.bf16.msrb.mxu3 %v3584_v37 }
 0x150   : > { %2307 = vmatpush.bf16.msrb.mxu0 %v3184_v43 }
 0x151   : > { %2321 = vmatpush.bf16.msrb.mxu1 %v3312_v44 }
 0x152   : > { %2335 = vmatpush.bf16.msrb.mxu2 %v3440_v45 }
 0x153   : > { %2349 = vmatpush.bf16.msrb.mxu3 %v3568_v49  ;;  %v2076_v33 = vpop.f32.mrf.mxu3 }
 0x154   : > { %2308 = vmatpush.bf16.msrb.mxu0 %v3168_v58 }
 0x155   : > { %2322 = vmatpush.bf16.msrb.mxu1 %v3296_v59 }
 0x156   : > { %2336 = vmatpush.bf16.msrb.mxu2 %v3424_v61 }
 0x157   : > { %2350 = vmatpush.bf16.msrb.mxu3 %v3552_v2 }
 0x158   : > { %2309 = vmatpush.bf16.msrb.mxu0 %v3152_v10 }
 0x159   : > { %2323 = vmatpush.bf16.msrb.mxu1 %v3280_v11 }
 0x15a   : > { %2337 = vmatpush.bf16.msrb.mxu2 %v3408_v12 }
 0x15b   : > { %2351 = vmatpush.bf16.msrb.mxu3 %v3536_v17  ;;  %v321_v17 = vld [vmem:[%s4304_s11 + $0x10] sm:$0xff] }
 0x15c   : > { %2310 = vmatpush.bf16.msrb.mxu0 %v3136_v22  ;;  %v2088_v35 = vpop.f32.mrf.mxu0 }
 0x15d   : > { %2324 = vmatpush.bf16.msrb.mxu1 %v3264_v30  ;;  %v2089_v36 = vadd.f32 %v2088_v35, %v2075_v31  ;;  %v2102_v37 = vpop.f32.mrf.mxu1 }
 0x15e   : > { %2338 = vmatpush.bf16.msrb.mxu2 %v3392_v25  ;;  %v325_v25 = vld [vmem:[%s4304_s11 + $0x30] sm:$0xff] }
 0x15f   : > { %2352 = vmatpush.bf16.msrb.mxu3 %v3520_v7  ;;  %2311 = vmatmul.bf16.vlgmr.msrb.gmra.mxu0 %v4482_v52  ;;  %v2103_v39 = vadd.f32 %v2102_v37, %v2089_v36  ;;  %v2077_v52 = vadd.f32 %v2076_v33, %v2063_v38 }
 0x160   : > { %2325 = vmatmul.bf16.vlgmr.msrb.gmra.mxu1 %v4489_v57 }
 0x161   : > { %2339 = vmatmul.bf16.vlgmr.msrb.gmra.mxu2 %v4487_v56 }
 0x162   : > { %2353 = vmatmul.bf16.vlgmr.msrb.gmra.mxu3 %v4493_v60 }
 0x164   : > { %v2116_v40 = vpop.f32.mrf.mxu2  ;;  %v2090_v57 = vpop.f32.mrf.mxu0 }
 0x165   : > { %v2117_v41 = vadd.f32 %v2116_v40, %v2103_v39  ;;  %v2130_v56 = vpop.f32.mrf.mxu3  ;;  %v2091_v43 = vadd.f32 %v2090_v57, %v2077_v52  ;;  %v2104_v44 = vpop.f32.mrf.mxu1 }
 0x167   : > { %v2131_v60 = vadd.f32 %v2130_v56, %v2117_v41  ;;  %v2105_v46 = vadd.f32 %v2104_v44, %v2091_v43 }
 0x169   : > { %v2360_v45 = vadd.f32 %v2131_v60, %v320_v42 }
 0x16b   : > { %2368 = vst [vmem:[%s4304_s11 + $0x8] sm:$0xff] %v2360_v45  ;;  %v322_v45 = vld [vmem:[%s4304_s11 + $0x18] sm:$0xff] }
 0x16c   : > { %v2118_v47 = vpop.f32.mrf.mxu2 }
 0x16d   : > { %v2119_v48 = vadd.f32 %v2118_v47, %v2105_v46  ;;  %v2132_v49 = vpop.f32.mrf.mxu3 }
 0x16f   : > { %v2133_v51 = vadd.f32 %v2132_v49, %v2119_v48 }
 0x171   : > { %v2364_v53 = vadd.f32 %v2133_v51, %v324_v50 }
 0x173   : > { %2372 = vst [vmem:[%s4304_s11 + $0x28] sm:$0xff] %v2364_v53 }
 0x17c   : > { %v2144_v54 = vpop.f32.mrf.mxu0 }
 0x17d   : > { %v2158_v55 = vpop.f32.mrf.mxu1 }
 0x17e   : > { %v2159_v61 = vadd.f32 %v2158_v55, %v2144_v54  ;;  %v326_v54 = vld [vmem:[%s4304_s11 + $0x38] sm:$0xff] }
 0x184   : > { %v2172_v58 = vpop.f32.mrf.mxu2  ;;  %v2146_v62 = vpop.f32.mrf.mxu0 }
 0x185   : > { %v2186_v59 = vpop.f32.mrf.mxu3  ;;  %v2160_v63 = vpop.f32.mrf.mxu1  ;;  %v2173_v0 = vadd.f32 %v2172_v58, %v2159_v61 }
 0x186   : > { %v2161_v4 = vadd.f32 %v2160_v63, %v2146_v62 }
 0x187   : > { %v2187_v1 = vadd.f32 %v2186_v59, %v2173_v0 }
 0x18c   : > { %v2174_v2 = vpop.f32.mrf.mxu2 }
 0x18d   : > { %v2188_v3 = vpop.f32.mrf.mxu3  ;;  %v2175_v9 = vadd.f32 %v2174_v2, %v2161_v4 }
 0x18f   : > { %v2189_v12 = vadd.f32 %v2188_v3, %v2175_v9 }
 0x19c   : > { %v2200_v5 = vpop.f32.mrf.mxu0 }
 0x19d   : > { %v2201_v6 = vadd.f32 %v2200_v5, %v2187_v1  ;;  %v2214_v8 = vpop.f32.mrf.mxu1 }
 0x19f   : > { %v2215_v10 = vadd.f32 %v2214_v8, %v2201_v6 }
 0x1a4   : > { %v2228_v11 = vpop.f32.mrf.mxu2  ;;  %v2202_v15 = vpop.f32.mrf.mxu0 }
 0x1a5   : > { %v2229_v13 = vadd.f32 %v2228_v11, %v2215_v10  ;;  %v2242_v16 = vpop.f32.mrf.mxu3  ;;  %v2203_v18 = vadd.f32 %v2202_v15, %v2189_v12  ;;  %v2216_v20 = vpop.f32.mrf.mxu1 }
 0x1a7   : > { %v2243_v19 = vadd.f32 %v2242_v16, %v2229_v13  ;;  %v2217_v14 = vadd.f32 %v2216_v20, %v2203_v18 }
 0x1a9   : > { %v2361_v21 = vadd.f32 %v2243_v19, %v321_v17 }
 0x1ab   : > { %2369 = vst [vmem:[%s4304_s11 + $0x10] sm:$0xff] %v2361_v21 }
 0x1ac   : > { %v2230_v22 = vpop.f32.mrf.mxu2 }
 0x1ad   : > { %v2231_v24 = vadd.f32 %v2230_v22, %v2217_v14  ;;  %v2244_v30 = vpop.f32.mrf.mxu3 }
 0x1af   : > { %v2245_v26 = vadd.f32 %v2244_v30, %v2231_v24 }
 0x1b1   : > { %v2365_v27 = vadd.f32 %v2245_v26, %v325_v25 }
 0x1b3   : > { %2373 = vst [vmem:[%s4304_s11 + $0x30] sm:$0xff] %v2365_v27 }
 0x1bc   : > { %v2256_v7 = vpop.f32.mrf.mxu0 }
 0x1bd   : > { %v2270_v28 = vpop.f32.mrf.mxu1 }
 0x1be   : > { %v2271_v31 = vadd.f32 %v2270_v28, %v2256_v7 }
 0x1c4   : > { %v2284_v29 = vpop.f32.mrf.mxu2  ;;  %v2258_v32 = vpop.f32.mrf.mxu0 }
 0x1c5   : > { %v2298_v23 = vpop.f32.mrf.mxu3  ;;  %v2272_v33 = vpop.f32.mrf.mxu1  ;;  %v2285_v34 = vadd.f32 %v2284_v29, %v2271_v31 }
 0x1c6   : > { %v2273_v37 = vadd.f32 %v2272_v33, %v2258_v32 }
 0x1c7   : > { %v2299_v36 = vadd.f32 %v2298_v23, %v2285_v34 }
 0x1cc   : > { %v2286_v35 = vpop.f32.mrf.mxu2 }
 0x1cd   : > { %v2300_v38 = vpop.f32.mrf.mxu3  ;;  %v2287_v41 = vadd.f32 %v2286_v35, %v2273_v37 }
 0x1cf   : > { %v2301_v42 = vadd.f32 %v2300_v38, %v2287_v41 }
 0x1dc   : > { %v2312_v39 = vpop.f32.mrf.mxu0 }
 0x1dd   : > { %v2313_v40 = vadd.f32 %v2312_v39, %v2299_v36  ;;  %v2326_v52 = vpop.f32.mrf.mxu1 }
 0x1df   : > { %v2327_v57 = vadd.f32 %v2326_v52, %v2313_v40 }
 0x1e4   : > { %v2340_v56 = vpop.f32.mrf.mxu2  ;;  %v2314_v44 = vpop.f32.mrf.mxu0 }
 0x1e5   : > { %v2341_v43 = vadd.f32 %v2340_v56, %v2327_v57  ;;  %v2354_v60 = vpop.f32.mrf.mxu3  ;;  %v2315_v47 = vadd.f32 %v2314_v44, %v2301_v42  ;;  %v2328_v49 = vpop.f32.mrf.mxu1 }
 0x1e7   : > { %v2355_v46 = vadd.f32 %v2354_v60, %v2341_v43  ;;  %v2329_v50 = vadd.f32 %v2328_v49, %v2315_v47 }
 0x1e9   : > { %v2362_v48 = vadd.f32 %v2355_v46, %v322_v45 }
 0x1eb   : > { %2370 = vst [vmem:[%s4304_s11 + $0x18] sm:$0xff] %v2362_v48 }
 0x1ec   : > { %v2342_v51 = vpop.f32.mrf.mxu2 }
 0x1ed   : > { %v2343_v53 = vadd.f32 %v2342_v51, %v2329_v50  ;;  %v2356_v55 = vpop.f32.mrf.mxu3 }
 0x1ef   : > { %v2357_v58 = vadd.f32 %v2356_v55, %v2343_v53  ;;  %2378 = sbr.rel (%p3633_p8) target bundleno = 511 (0x1ff), region = 67 }
 0x1f1   : > { %v2366_v59 = vadd.f32 %v2357_v58, %v326_v54 }
 0x1f3   : > { %2374 = vst [vmem:[%s4304_s11 + $0x38] sm:$0xff] %v2366_v59 }
 0x1f4   : > { %v2379_v61 = vld [vmem:[%s4304_s11] sm:$0xff]  ;;  %v2380_v62 = vld [vmem:[%s4304_s11 + $0x8] sm:$0xff]  ;;  %v2381_v63 = vld [vmem:[%s4304_s11 + $0x10] sm:$0xff] }
 0x1f5   : > { %v2387_v0 = vmax.f32 %v2379_v61, 0.0  ;;  %v2388_v1 = vmax.f32 %v2380_v62, 0.0  ;;  %v2389_v2 = vmax.f32 %v2381_v63, 0.0  ;;  %v2382_v3 = vld [vmem:[%s4304_s11 + $0x18] sm:$0xff]  ;;  %v2383_v4 = vld [vmem:[%s4304_s11 + $0x20] sm:$0xff]  ;;  %v2384_v5 = vld [vmem:[%s4304_s11 + $0x28] sm:$0xff] }
 0x1f6   : > { %v2390_v6 = vmax.f32 %v2382_v3, 0.0  ;;  %v2385_v8 = vld [vmem:[%s4304_s11 + $0x30] sm:$0xff]  ;;  %v2391_v9 = vmax.f32 %v2383_v4, 0.0  ;;  %v2392_v11 = vmax.f32 %v2384_v5, 0.0 }
 0x1f7   : > { %2395 = vst [vmem:[%s4304_s11] sm:$0xff] %v2387_v0  ;;  %v2393_v12 = vmax.f32 %v2385_v8, 0.0 }
 0x1f8   : > { %2396 = vst [vmem:[%s4304_s11 + $0x8] sm:$0xff] %v2388_v1 }
 0x1f9   : > { %2397 = vst [vmem:[%s4304_s11 + $0x10] sm:$0xff] %v2389_v2 }
 0x1fa   : > { %v2386_v10 = vld [vmem:[%s4304_s11 + $0x38] sm:$0xff]  ;;  %2398 = vst [vmem:[%s4304_s11 + $0x18] sm:$0xff] %v2390_v6 }
 0x1fb   : > { %v2394_v13 = vmax.f32 %v2386_v10, 0.0  ;;  %2399 = vst [vmem:[%s4304_s11 + $0x20] sm:$0xff] %v2391_v9 }
 0x1fc   : > { %2400 = vst [vmem:[%s4304_s11 + $0x28] sm:$0xff] %v2392_v11 }
 0x1fd   : > { %2401 = vst [vmem:[%s4304_s11 + $0x30] sm:$0xff] %v2393_v12 }
 0x1fe   : > { %2402 = vst [vmem:[%s4304_s11 + $0x38] sm:$0xff] %v2394_v13 }
 0x1ff PF: > { %2409 = sbr.rel (!%p4267_p1) target bundleno = 521 (0x209), region = 71  ;;  %s3905_s12 = sshll.u32 (%p4267_p1), %s4121_s20, 5  ;;  %v2428_v15 = vld [vmem:[%s4304_s11] sm:$0xff] (%p4267_p1)  ;;  %v2430_v16 = vld [vmem:[%s4304_s11 + $0x8] sm:$0xff] (%p4267_p1) }
 0x200   : > { %s2415_s5 = scalar_lea.vmem (%p4267_p1), %s4977_s3, %s3905_s12  ;;  %v2432_v17 = vld [vmem:[%s4304_s11 + $0x10] sm:$0xff] (%p4267_p1) }
 0x201   : > { %2429 = vst [vmem:[%s2415_s5] sm:$0xff] (%p4267_p1), %v2428_v15  ;;  %v2434_v18 = vld [vmem:[%s4304_s11 + $0x18] sm:$0xff] (%p4267_p1) }
 0x202   : > { %2431 = vst [vmem:[%s2415_s5 + $0x8] sm:$0xff] (%p4267_p1), %v2430_v16  ;;  %v2436_v19 = vld [vmem:[%s4304_s11 + $0x20] sm:$0xff] (%p4267_p1) }
 0x203   : > { %2433 = vst [vmem:[%s2415_s5 + $0x10] sm:$0xff] (%p4267_p1), %v2432_v17  ;;  %v2438_v20 = vld [vmem:[%s4304_s11 + $0x28] sm:$0xff] (%p4267_p1) }
 0x204   : > { %2435 = vst [vmem:[%s2415_s5 + $0x18] sm:$0xff] %v2434_v18  ;;  %v2440_v21 = vld [vmem:[%s4304_s11 + $0x30] sm:$0xff] }
 0x205   : > { %2437 = vst [vmem:[%s2415_s5 + $0x100] sm:$0xff] %v2436_v19  ;;  %v2442_v14 = vld [vmem:[%s4304_s11 + $0x38] sm:$0xff] }
 0x206   : > { %2439 = vst [vmem:[%s2415_s5 + $0x108] sm:$0xff] %v2438_v20 }
 0x207   : > { %2441 = vst [vmem:[%s2415_s5 + $0x110] sm:$0xff] %v2440_v21 }
 0x208   : > { %2443 = vst [vmem:[%s2415_s5 + $0x118] sm:$0xff] %v2442_v14 }
 0x209 PF: > { %s16_s23 = sadd.s32 1, %s4133_s23   ;;  %s4995_s12 = sld [smem:[#allocation7_spill]] }
 0x20a   : > { %p13_p9 = scmp.ge.s32.totalorder %s16_s23, 74   ;;  %s4996_s13 = sld [smem:[#allocation13_spill]] }
 0x20b   : > { %s4997_s20 = sld [smem:[#allocation12_spill]]  ;;  %s5002_s14 = smov %s4101_s15 }
 0x20c   : > { %s4998_s17 = sld [smem:[#allocation8_spill]]  ;;  %s5003_s15 = smov %s4105_s16 }
 0x20d   : > { %s4999_s18 = sld [smem:[#allocation11_spill]]  ;;  %s5005_s19 = smov %s4125_s21 }
 0x20e   : > { %s5000_s6 = sld [smem:[#allocation9_spill]] }
 0x20f   : > { %s5001_s10 = sld [smem:[#allocation10_spill]] }
 0x211   : > { %s5004_s16 = smov %s4997_s20  ;;  %s5006_s20 = smov %s4129_s22 }
 0x212   :  { %15 = sbr.rel (!%p13_p9) target bundleno = 9 (0x9), region = 137 }
 0x214   : > { %s5007_s21 = smov %s5000_s6 }
 0x215   : > { %s5008_s22 = smov %s5001_s10 }
 0x217   :  { %2459 = vsyncpa [#allocation4], 1 }
 0x218   :  { %2461 = vsyncpa [#allocation4 + $0x1], 1 }

// kernel: alexnet_forward.22
= control target key start
LH: loop header
LB: loop body
LE: loop exit
PB: predicated region body
PF: predicated region fallthrough
CT: control target
= control target key end

     0   :  { %8 = vsyncpa [#allocation4], 0  ;;  %s1840_s0 = inlined_call_operand.vmem [shape: bf16[16,4096], index: 0, kind: input, shape index: {}]   ;;  %s1841_s1 = inlined_call_operand.hbm [shape: bf16[4096,128], index: 1, kind: input, shape index: {}]   ;;  %s1842_s2 = inlined_call_operand.vmem [shape: f32[1,128], index: 2, kind: input, shape index: {}]   ;;  %s1843_s3 = inlined_call_operand.vmem [shape: f32[16,128], index: 3, kind: output, shape index: {}]  }
   0x1   :  { %10 = vsyncpa [#allocation4 + $0x1], 0  ;;  %s1644_s12 = smov 0   ;;  %s1646_s13 = smov 0  }
   0x2   :  { %s1648_s14 = smov 0   ;;  %s1650_s15 = smov 0  }
   0x3   :  { %s1652_s16 = smov 0   ;;  %s1654_s17 = smov 0  }
   0x4 LB: > { %s1109_s18 = sadd.s32 4294967295, %s1620_s17   ;;  %s28_s19 = sadd.s32 1, %s1616_s16  ;;  %s1620_s17 = sphi %s1654_s17, %s16_s17   ;;  %s1616_s16 = sphi %s1652_s16, %s1850_s16   ;;  %s1612_s15 = sphi %s1650_s15, %s1849_s15   ;;  %s1608_s14 = sphi %s1648_s14, %s1848_s14   ;;  %s1604_s13 = sphi %s1646_s13, %s1847_s13   ;;  %s1600_s12 = sphi %s1644_s12, %s1846_s12  }
   0x5   : > { %p29_p0 = scmp.ge.s32.totalorder %s28_s19, 4  ;;  %s44_s20 = sadd.s32 1, %s1608_s14 }
   0x6   : > { %p51_p1 = scmp.ne.s32.totalorder %s1608_s14, %s1604_s13  ;;  %p52_p2 = scmp.eq.s32.totalorder %s1620_s17, 0 }
   0x7   : > { %s1852_s19 = smov (%p29_p0, %s28_s19), 0  ;;  %p85_p4 = scmp.ne.s32.totalorder %s1604_s13, %s1600_s12 }
   0x8   : > { %p1680_p3 = por %p52_p2, %p51_p1  ;;  %s40_s22 = ssub.s32 %s1616_s16, %s1852_s19 }
   0x9   : > { %p86_p5 = scmp.eq.s32.totalorder %s1109_s18, 0  ;;  %p42_p6 = scmp.eq.s32.totalorder %s40_s22, 0 }
   0xa   : > { %p1112_p8 = scmp.ge.s32.totalorder %s1620_s17, 4 }
   0xb   : > { %p1687_p7 = por %p86_p5, %p85_p4 }
   0xc   : > { %s1692_s24 = scalar_select %p42_p6, %s1608_s14, %s44_s20  }
   0xd   : > { %165 = sbr.rel (%p1112_p8) target bundleno = 36 (0x24), region = 20 }
  0x12   : > { %168 = sbr.rel (!%p1680_p3) target bundleno = 30 (0x1e), region = 24  ;;  %s170_s25 = sand.u32 (%p1680_p3), 1, %s1608_s14  }
  0x13   : > { %s1415_s26 = sshll.u32 (%p1680_p3), %s1616_s16, 5  ;;  %s1113_s27 = sshll.u32 (%p1680_p3), %s170_s25, 6 }
  0x14   : > { %s178_s30 = scalar_lea.vmem (%p1680_p3), %s1840_s0, %s1415_s26  ;;  %s172_s4 = scalar_lea.vmem (%p1680_p3), [#allocation2], %s1113_s27 }
  0x15   : > { %v191_v0 = vld [vmem:[%s178_s30] sm:$0xff] (%p1680_p3)  ;;  %v193_v1 = vld [vmem:[%s178_s30 + $0x8] sm:$0xff] (%p1680_p3)  ;;  %v195_v2 = vld [vmem:[%s178_s30 + $0x10] sm:$0xff] (%p1680_p3) }
  0x16   : > { %192 = vst [vmem:[%s172_s4] sm:$0xff] (%p1680_p3), %v191_v0  ;;  %v197_v3 = vld [vmem:[%s178_s30 + $0x18] sm:$0xff] (%p1680_p3)  ;;  %v199_v4 = vld [vmem:[%s178_s30 + $0x80] sm:$0xff] (%p1680_p3)  ;;  %v201_v5 = vld [vmem:[%s178_s30 + $0x88] sm:$0xff] (%p1680_p3) }
  0x17   : > { %194 = vst [vmem:[%s172_s4 + $0x8] sm:$0xff] %v193_v1  ;;  %v203_v6 = vld [vmem:[%s178_s30 + $0x90] sm:$0xff]  ;;  %v205_v7 = vld [vmem:[%s178_s30 + $0x98] sm:$0xff] }
  0x18   : > { %196 = vst [vmem:[%s172_s4 + $0x10] sm:$0xff] %v195_v2 }
  0x19   : > { %198 = vst [vmem:[%s172_s4 + $0x18] sm:$0xff] %v197_v3 }
  0x1a   : > { %200 = vst [vmem:[%s172_s4 + $0x20] sm:$0xff] %v199_v4 }
  0x1b   : > { %202 = vst [vmem:[%s172_s4 + $0x28] sm:$0xff] %v201_v5 }
  0x1c   : > { %204 = vst [vmem:[%s172_s4 + $0x30] sm:$0xff] %v203_v6 }
  0x1d   : > { %206 = vst [vmem:[%s172_s4 + $0x38] sm:$0xff] %v205_v7 }
  0x1e PF: > { %s213_s5 = sand.u32 1, %s1608_s14   ;;  %s1416_s6 = sshll.u32 %s1616_s16, 9 }
  0x1f   : > { %s1116_s7 = sshll.u32 %s213_s5, 9  ;;  %s223_s10 = scalar_lea.hbm %s1841_s1, %s1416_s6 }
  0x20   : > { %s224_s11 = sshll.u32 %s223_s10, 4  ;;  %s217_s12 = scalar_lea.vmem [#allocation3], %s1116_s7  ;;  %s225_s11 = int_to_ptr.hbm [resolvable:$true] %s224_s11 }
  0x21   : > { %s226_s18 = sshll.u32 %s217_s12, 4  ;;  %s214_s20 = scalar_lea.sflag [#allocation4], %s213_s5  ;;  %s227_s18 = int_to_ptr.vmem [resolvable:$true] %s226_s18 }
  0x22   : > { %s1622_s22 = smov 64   ;;  %s1623_s25 = smov 4  }
  0x23   : > { %1489 = dma.hbm_to_vmem [thread:$0]  (%p1680_p3), %s225_s11, 8192, %s227_s18, %s214_s20, %s1622_s22, %s1622_s22, %s1623_s25  }
  0x24 PF: > { %p1119_p9 = scmp.ge.s32.totalorder %s1620_s17, 1  ;;  %p234_p10 = scmp.lt.s32.totalorder %s1620_s17, 5 }
  0x26   : > { %p235_p11 = pnand %p1119_p9, %p234_p10 }
  0x27   : > { %s241_s26 = sand.u32 (!%p235_p11), 1, %s1604_s13  }
  0x28   : > { %238 = sbr.rel (%p235_p11) target bundleno = 269 (0x10d), region = 51  ;;  %s1120_s27 = sshll.u32 (!%p235_p11), %s241_s26, 6 }
  0x29   : > { %s1121_s28 = sshll.u32 (!%p235_p11), %s241_s26, 9  ;;  %s1712_s29 = scalar_lea.vmem (!%p235_p11), [#allocation2], %s1120_s27 }
  0x2a   : > { %s248_s30 = scalar_lea.sflag (!%p235_p11), [#allocation4], %s241_s26  ;;  %s1714_s4 = scalar_lea.vmem (!%p235_p11), [#allocation3], %s1121_s28 }
  0x2d   : > { %1595 = dma.done.wait (%p1687_p7), %s248_s30, 8192  }
  0x2e   : > { %1597 = vsyncadd (%p1687_p7), %s248_s30, 4294959104  ;;  %p1122_p12 = scmp.ne.s32.totalorder %s1612_s15, 0 }
  0x30   : > { %303 = sbr.rel (%p1122_p12) target bundleno = 56 (0x38), region = 63 }
  0x35   : > { %v1541_v8 = vld [vmem:[%s1842_s2] ss:$0 sm:$0xff] }
  0x36   : > { %308 = vst [vmem:[%s1843_s3] sm:$0xff] %v1541_v8 }
  0x37   : > { %309 = vst [vmem:[%s1843_s3 + $0x8] sm:$0xff] %v1541_v8 }
  0x38 PF: > { %v1432_v9 = vld [vmem:[%s1714_s4 + $0x38] sm:$0xff]  ;;  %v1431_v13 = vld [vmem:[%s1714_s4 + $0x30] sm:$0xff]  ;;  %v1430_v17 = vld [vmem:[%s1714_s4 + $0x28] sm:$0xff] }
  0x39   : > { %v1440_v10 = vld [vmem:[%s1714_s4 + $0x78] sm:$0xff]  ;;  %872 = vmatpush.bf16.msra.mxu0 %v1432_v9  ;;  %v1439_v14 = vld [vmem:[%s1714_s4 + $0x70] sm:$0xff]  ;;  %v1438_v18 = vld [vmem:[%s1714_s4 + $0x68] sm:$0xff] }
  0x3a   : > { %v1448_v11 = vld [vmem:[%s1714_s4 + $0xb8] sm:$0xff]  ;;  %886 = vmatpush.bf16.msra.mxu1 %v1440_v10  ;;  %v1447_v15 = vld [vmem:[%s1714_s4 + $0xb0] sm:$0xff]  ;;  %v1446_v19 = vld [vmem:[%s1714_s4 + $0xa8] sm:$0xff] }
  0x3b   : > { %v1456_v12 = vld [vmem:[%s1714_s4 + $0xf8] sm:$0xff]  ;;  %900 = vmatpush.bf16.msra.mxu2 %v1448_v11  ;;  %v1455_v16 = vld [vmem:[%s1714_s4 + $0xf0] sm:$0xff]  ;;  %v1454_v20 = vld [vmem:[%s1714_s4 + $0xe8] sm:$0xff] }
  0x3c   : > { %914 = vmatpush.bf16.msra.mxu3 %v1456_v12  ;;  %v1429_v21 = vld [vmem:[%s1714_s4 + $0x20] sm:$0xff]  ;;  %v1428_v25 = vld [vmem:[%s1714_s4 + $0x18] sm:$0xff]  ;;  %v1427_v29 = vld [vmem:[%s1714_s4 + $0x10] sm:$0xff] }
  0x3d   : > { %873 = vmatpush.bf16.msra.mxu0 %v1431_v13  ;;  %v1437_v22 = vld [vmem:[%s1714_s4 + $0x60] sm:$0xff]  ;;  %v1436_v26 = vld [vmem:[%s1714_s4 + $0x58] sm:$0xff]  ;;  %v1435_v30 = vld [vmem:[%s1714_s4 + $0x50] sm:$0xff] }
  0x3e   : > { %887 = vmatpush.bf16.msra.mxu1 %v1439_v14  ;;  %v1445_v23 = vld [vmem:[%s1714_s4 + $0xa0] sm:$0xff]  ;;  %v1444_v27 = vld [vmem:[%s1714_s4 + $0x98] sm:$0xff]  ;;  %v1443_v31 = vld [vmem:[%s1714_s4 + $0x90] sm:$0xff] }
  0x3f   : > { %901 = vmatpush.bf16.msra.mxu2 %v1447_v15  ;;  %v1453_v24 = vld [vmem:[%s1714_s4 + $0xe0] sm:$0xff]  ;;  %v1452_v28 = vld [vmem:[%s1714_s4 + $0xd8] sm:$0xff]  ;;  %v1451_v32 = vld [vmem:[%s1714_s4 + $0xd0] sm:$0xff] }
  0x40   : > { %915 = vmatpush.bf16.msra.mxu3 %v1455_v16  ;;  %v1426_v33 = vld [vmem:[%s1714_s4 + $0x8] sm:$0xff]  ;;  %v1425_v37 = vld [vmem:[%s1714_s4] sm:$0xff]  ;;  %v1464_v41 = vld [vmem:[%s1714_s4 + $0x138] sm:$0xff] }
  0x41   : > { %874 = vmatpush.bf16.msra.mxu0 %v1430_v17  ;;  %v1434_v34 = vld [vmem:[%s1714_s4 + $0x48] sm:$0xff]  ;;  %v1433_v38 = vld [vmem:[%s1714_s4 + $0x40] sm:$0xff]  ;;  %v1472_v42 = vld [vmem:[%s1714_s4 + $0x178] sm:$0xff] }
  0x42   : > { %888 = vmatpush.bf16.msra.mxu1 %v1438_v18  ;;  %v1442_v35 = vld [vmem:[%s1714_s4 + $0x88] sm:$0xff]  ;;  %v1441_v39 = vld [vmem:[%s1714_s4 + $0x80] sm:$0xff]  ;;  %v1480_v51 = vld [vmem:[%s1714_s4 + $0x1b8] sm:$0xff] }
  0x43   : > { %902 = vmatpush.bf16.msra.mxu2 %v1446_v19  ;;  %v1450_v36 = vld [vmem:[%s1714_s4 + $0xc8] sm:$0xff]  ;;  %v1449_v40 = vld [vmem:[%s1714_s4 + $0xc0] sm:$0xff]  ;;  %v1488_v52 = vld [vmem:[%s1714_s4 + $0x1f8] sm:$0xff] }
  0x44   : > { %916 = vmatpush.bf16.msra.mxu3 %v1454_v20  ;;  %v1133_v43 = vld [vmem:[%s1712_s29 + $0x8] sm:$0xf]  ;;  %v1418_v45 = vld [vmem:[%s1712_s29 + $0xc] sm:$0xf]  ;;  %v1125_v47 = vld [vmem:[%s1712_s29] sm:$0xf] }
  0x45   : > { %875 = vmatpush.bf16.msra.mxu0 %v1429_v21  ;;  %v1422_v44 = vld [vmem:[%s1712_s29 + $0x24] sm:$0xf0]  ;;  %v1135_v46 = vld [vmem:[%s1712_s29 + $0x28] sm:$0xf0]  ;;  %v1421_v48 = vld [vmem:[%s1712_s29 + $0x1c] sm:$0xf0] }
  0x46   : > { %889 = vmatpush.bf16.msra.mxu1 %v1437_v22  ;;  %v1417_v49 = vld [vmem:[%s1712_s29 + $0x4] sm:$0xf]  ;;  %v1134_v53 = vor.u32 %v1422_v44, %v1133_v43  ;;  %v1138_v54 = vor.u32 %v1418_v45, %v1135_v46  ;;  %v1126_v55 = vor.u32 %v1421_v48, %v1125_v47  ;;  %v1463_v57 = vld [vmem:[%s1714_s4 + $0x130] sm:$0xff]  ;;  %v1462_v61 = vld [vmem:[%s1714_s4 + $0x128] sm:$0xff] }
  0x47   : > { %903 = vmatpush.bf16.msra.mxu2 %v1445_v23  ;;  %v1127_v50 = vld [vmem:[%s1712_s29 + $0x20] sm:$0xf0]  ;;  %v1471_v58 = vld [vmem:[%s1714_s4 + $0x170] sm:$0xff]  ;;  %v1470_v62 = vld [vmem:[%s1714_s4 + $0x168] sm:$0xff] }
  0x48   : > { %917 = vmatpush.bf16.msra.mxu3 %v1453_v24  ;;  %v1130_v56 = vor.u32 %v1417_v49, %v1127_v50  ;;  %v1479_v59 = vld [vmem:[%s1714_s4 + $0x1b0] sm:$0xff]  ;;  %v1478_v63 = vld [vmem:[%s1714_s4 + $0x1a8] sm:$0xff]  ;;  %v1461_v1 = vld [vmem:[%s1714_s4 + $0x120] sm:$0xff] }
  0x49   : > { %876 = vmatpush.bf16.msra.mxu0 %v1428_v25  ;;  %v1487_v60 = vld [vmem:[%s1714_s4 + $0x1f0] sm:$0xff]  ;;  %v1486_v0 = vld [vmem:[%s1714_s4 + $0x1e8] sm:$0xff]  ;;  %v1469_v2 = vld [vmem:[%s1714_s4 + $0x160] sm:$0xff] }
  0x4a   : > { %890 = vmatpush.bf16.msra.mxu1 %v1436_v26  ;;  %v1477_v3 = vld [vmem:[%s1714_s4 + $0x1a0] sm:$0xff]  ;;  %v1460_v5 = vld [vmem:[%s1714_s4 + $0x118] sm:$0xff]  ;;  %v1459_v9 = vld [vmem:[%s1714_s4 + $0x110] sm:$0xff] }
  0x4b   : > { %904 = vmatpush.bf16.msra.mxu2 %v1444_v27  ;;  %v1485_v4 = vld [vmem:[%s1714_s4 + $0x1e0] sm:$0xff]  ;;  %v1468_v6 = vld [vmem:[%s1714_s4 + $0x158] sm:$0xff]  ;;  %v1467_v10 = vld [vmem:[%s1714_s4 + $0x150] sm:$0xff] }
  0x4c   : > { %918 = vmatpush.bf16.msra.mxu3 %v1452_v28  ;;  %v1476_v7 = vld [vmem:[%s1714_s4 + $0x198] sm:$0xff]  ;;  %v1475_v11 = vld [vmem:[%s1714_s4 + $0x190] sm:$0xff]  ;;  %v1458_v13 = vld [vmem:[%s1714_s4 + $0x108] sm:$0xff] }
  0x4d   : > { %877 = vmatpush.bf16.msra.mxu0 %v1427_v29  ;;  %v1484_v8 = vld [vmem:[%s1714_s4 + $0x1d8] sm:$0xff]  ;;  %v1483_v12 = vld [vmem:[%s1714_s4 + $0x1d0] sm:$0xff]  ;;  %v1466_v14 = vld [vmem:[%s1714_s4 + $0x148] sm:$0xff] }
  0x4e   : > { %891 = vmatpush.bf16.msra.mxu1 %v1435_v30  ;;  %v1474_v15 = vld [vmem:[%s1714_s4 + $0x188] sm:$0xff]  ;;  %v1457_v17 = vld [vmem:[%s1714_s4 + $0x100] sm:$0xff]  ;;  %v1141_v21 = vld [vmem:[%s1712_s29 + $0x10] sm:$0xf] }
  0x4f   : > { %905 = vmatpush.bf16.msra.mxu2 %v1443_v31  ;;  %v1482_v16 = vld [vmem:[%s1714_s4 + $0x1c8] sm:$0xff]  ;;  %v1465_v18 = vld [vmem:[%s1714_s4 + $0x140] sm:$0xff]  ;;  %v1423_v22 = vld [vmem:[%s1712_s29 + $0x2c] sm:$0xf0] }
  0x50   : > { %919 = vmatpush.bf16.msra.mxu3 %v1451_v32  ;;  %v1473_v19 = vld [vmem:[%s1714_s4 + $0x180] sm:$0xff]  ;;  %v1419_v23 = vld [vmem:[%s1712_s29 + $0x14] sm:$0xf]  ;;  %v1149_v25 = vld [vmem:[%s1712_s29 + $0x18] sm:$0xf]  ;;  %v1142_v29 = vor.u32 %v1423_v22, %v1141_v21 }
  0x51   : > { %878 = vmatpush.bf16.msra.mxu0 %v1426_v33  ;;  %v1481_v20 = vld [vmem:[%s1714_s4 + $0x1c0] sm:$0xff]  ;;  %v1143_v24 = vld [vmem:[%s1712_s29 + $0x30] sm:$0xf0]  ;;  %v1424_v26 = vld [vmem:[%s1712_s29 + $0x34] sm:$0xf0] }
  0x52   : > { %892 = vmatpush.bf16.msra.mxu1 %v1434_v34  ;;  %v1420_v27 = vld [vmem:[%s1712_s29 + $0x1c] sm:$0xf]  ;;  %v1146_v30 = vor.u32 %v1419_v23, %v1143_v24  ;;  %v1150_v31 = vor.u32 %v1424_v26, %v1149_v25 }
  0x53   : > { %906 = vmatpush.bf16.msra.mxu2 %v1442_v35  ;;  %v1151_v28 = vld [vmem:[%s1712_s29 + $0x38] sm:$0xf0] }
  0x54   : > { %920 = vmatpush.bf16.msra.mxu3 %v1450_v36  ;;  %v1154_v32 = vor.u32 %v1420_v27, %v1151_v28 }
  0x55   : > { %879 = vmatpush.bf16.msra.mxu0 %v1425_v37 }
  0x56   : > { %893 = vmatpush.bf16.msra.mxu1 %v1433_v38 }
  0x57   : > { %907 = vmatpush.bf16.msra.mxu2 %v1441_v39 }
  0x58   : > { %921 = vmatpush.bf16.msra.mxu3 %v1449_v40  ;;  %880 = vmatmul.bf16.vlgmr.msra.gmra.mxu0 %v1126_v55  ;;  %v310_v55 = vld [vmem:[%s1843_s3] sm:$0xff] }
  0x59   : > { %928 = vmatpush.bf16.msrb.mxu0 %v1464_v41  ;;  %894 = vmatmul.bf16.vlgmr.msra.gmra.mxu1 %v1130_v56 }
  0x5a   : > { %942 = vmatpush.bf16.msrb.mxu1 %v1472_v42  ;;  %908 = vmatmul.bf16.vlgmr.msra.gmra.mxu2 %v1134_v53 }
  0x5b   : > { %956 = vmatpush.bf16.msrb.mxu2 %v1480_v51  ;;  %922 = vmatmul.bf16.vlgmr.msra.gmra.mxu3 %v1138_v54 }
  0x5c   : > { %970 = vmatpush.bf16.msrb.mxu3 %v1488_v52 }
  0x5d   : > { %929 = vmatpush.bf16.msrb.mxu0 %v1463_v57 }
  0x5e   : > { %943 = vmatpush.bf16.msrb.mxu1 %v1471_v58 }
  0x5f   : > { %957 = vmatpush.bf16.msrb.mxu2 %v1479_v59 }
  0x60   : > { %971 = vmatpush.bf16.msrb.mxu3 %v1487_v60 }
  0x61   : > { %930 = vmatpush.bf16.msrb.mxu0 %v1462_v61 }
  0x62   : > { %944 = vmatpush.bf16.msrb.mxu1 %v1470_v62 }
  0x63   : > { %958 = vmatpush.bf16.msrb.mxu2 %v1478_v63  ;;  %v311_v63 = vld [vmem:[%s1843_s3 + $0x8] sm:$0xff] }
  0x64   : > { %972 = vmatpush.bf16.msrb.mxu3 %v1486_v0 }
  0x65   : > { %931 = vmatpush.bf16.msrb.mxu0 %v1461_v1 }
  0x66   : > { %945 = vmatpush.bf16.msrb.mxu1 %v1469_v2 }
  0x67   : > { %959 = vmatpush.bf16.msrb.mxu2 %v1477_v3 }
  0x68   : > { %973 = vmatpush.bf16.msrb.mxu3 %v1485_v4 }
  0x69   : > { %932 = vmatpush.bf16.msrb.mxu0 %v1460_v5 }
  0x6a   : > { %946 = vmatpush.bf16.msrb.mxu1 %v1468_v6 }
  0x6b   : > { %960 = vmatpush.bf16.msrb.mxu2 %v1476_v7 }
  0x6c   : > { %974 = vmatpush.bf16.msrb.mxu3 %v1484_v8 }
  0x6d   : > { %933 = vmatpush.bf16.msrb.mxu0 %v1459_v9 }
  0x6e   : > { %947 = vmatpush.bf16.msrb.mxu1 %v1467_v10 }
  0x6f   : > { %961 = vmatpush.bf16.msrb.mxu2 %v1475_v11 }
  0x70   : > { %975 = vmatpush.bf16.msrb.mxu3 %v1483_v12 }
  0x71   : > { %934 = vmatpush.bf16.msrb.mxu0 %v1458_v13 }
  0x72   : > { %948 = vmatpush.bf16.msrb.mxu1 %v1466_v14 }
  0x73   : > { %962 = vmatpush.bf16.msrb.mxu2 %v1474_v15 }
  0x74   : > { %976 = vmatpush.bf16.msrb.mxu3 %v1482_v16 }
  0x75   : > { %935 = vmatpush.bf16.msrb.mxu0 %v1457_v17 }
  0x76   : > { %949 = vmatpush.bf16.msrb.mxu1 %v1465_v18 }
  0x77   : > { %963 = vmatpush.bf16.msrb.mxu2 %v1473_v19 }
  0x78   : > { %977 = vmatpush.bf16.msrb.mxu3 %v1481_v20  ;;  %936 = vmatmul.bf16.vlgmr.msrb.gmra.mxu0 %v1142_v29 }
  0x79   : > { %950 = vmatmul.bf16.vlgmr.msrb.gmra.mxu1 %v1146_v30 }
  0x7a   : > { %964 = vmatmul.bf16.vlgmr.msrb.gmra.mxu2 %v1150_v31 }
  0x7b   : > { %978 = vmatmul.bf16.vlgmr.msrb.gmra.mxu3 %v1154_v32 }
  0xd5   : > { %v881_v33 = vpop.f32.mrf.mxu0 }
  0xd6   : > { %v895_v34 = vpop.f32.mrf.mxu1 }
  0xd7   : > { %v896_v37 = vadd.f32 %v895_v34, %v881_v33 }
  0xdd   : > { %v909_v35 = vpop.f32.mrf.mxu2  ;;  %v883_v38 = vpop.f32.mrf.mxu0 }
  0xde   : > { %v923_v36 = vpop.f32.mrf.mxu3  ;;  %v897_v39 = vpop.f32.mrf.mxu1  ;;  %v910_v40 = vadd.f32 %v909_v35, %v896_v37 }
  0xdf   : > { %v898_v44 = vadd.f32 %v897_v39, %v883_v38 }
  0xe0   : > { %v924_v43 = vadd.f32 %v923_v36, %v910_v40 }
  0xe5   : > { %v911_v41 = vpop.f32.mrf.mxu2 }
  0xe6   : > { %v925_v42 = vpop.f32.mrf.mxu3  ;;  %v912_v48 = vadd.f32 %v911_v41, %v898_v44 }
  0xe8   : > { %v926_v52 = vadd.f32 %v925_v42, %v912_v48 }
  0xf5   : > { %v937_v45 = vpop.f32.mrf.mxu0 }
  0xf6   : > { %v938_v46 = vadd.f32 %v937_v45, %v924_v43  ;;  %v951_v47 = vpop.f32.mrf.mxu1 }
  0xf8   : > { %v952_v49 = vadd.f32 %v951_v47, %v938_v46 }
  0xfd   : > { %v965_v50 = vpop.f32.mrf.mxu2  ;;  %v939_v54 = vpop.f32.mrf.mxu0 }
  0xfe   : > { %v979_v51 = vpop.f32.mrf.mxu3  ;;  %v966_v53 = vadd.f32 %v965_v50, %v952_v49  ;;  %v940_v57 = vadd.f32 %v939_v54, %v926_v52  ;;  %v953_v59 = vpop.f32.mrf.mxu1 }
 0x100   : > { %v980_v56 = vadd.f32 %v979_v51, %v966_v53  ;;  %v954_v60 = vadd.f32 %v953_v59, %v940_v57 }
 0x102   : > { %v984_v58 = vadd.f32 %v980_v56, %v310_v55 }
 0x104   : > { %986 = vst [vmem:[%s1843_s3] sm:$0xff] %v984_v58 }
 0x105   : > { %v967_v61 = vpop.f32.mrf.mxu2 }
 0x106   : > { %v968_v62 = vadd.f32 %v967_v61, %v954_v60  ;;  %v981_v0 = vpop.f32.mrf.mxu3 }
 0x108   : > { %v982_v1 = vadd.f32 %v981_v0, %v968_v62 }
 0x10a   : > { %v985_v2 = vadd.f32 %v982_v1, %v311_v63 }
 0x10c   : > { %987 = vst [vmem:[%s1843_s3 + $0x8] sm:$0xff] %v985_v2 }
 0x10d PF: > { %s16_s17 = sadd.s32 1, %s1620_s17   ;;  %s1846_s12 = smov %s1604_s13 }
 0x10e   : > { %p13_p13 = scmp.ge.s32.totalorder %s16_s17, 6   ;;  %s1847_s13 = smov %s1608_s14 }
 0x10f   : > { %s1848_s14 = smov %s1692_s24  ;;  %s1849_s15 = smov %s1616_s16 }
 0x110   : > { %s1850_s16 = smov %s1852_s19  ;;  %15 = sbr.rel (!%p13_p13) target bundleno = 4 (0x4), region = 110 }
 0x115   :  { %1016 = vsyncpa [#allocation4], 1 }
 0x116   :  { %1018 = vsyncpa [#allocation4 + $0x1], 1 }

// kernel: alexnet_forward.23
= control target key start
LH: loop header
LB: loop body
LE: loop exit
PB: predicated region body
PF: predicated region fallthrough
CT: control target
= control target key end

     0   :  { %vm10_vm0 = vcmask 74752   ;;  %s103_s0 = inlined_call_operand.vmem [shape: f32[2,10], index: 0, kind: input, shape index: {}]   ;;  %s104_s1 = inlined_call_operand.hbm [shape: f32[2,10], index: 1, kind: output, shape index: {}]  }
   0x1   :  { %v9_v0 = vld [vmem:[%s103_s0] sm:$0x3] }
   0x2   :  { %6 = vsyncpa [#allocation3], 0  ;;  %v11_v1 = vsel %vm10_vm0, %v9_v0, -inf  ;;  %s83_s0 = smov [#allocation2]   ;;  %s43_s11 = sshll.u32 %s104_s1, 4  ;;  %s44_s11 = int_to_ptr.hbm [resolvable:$true] %s43_s11 }
   0x3   :  { %12 = vmax.xlane.f32.xlu0 %v11_v1  ;;  %s41_s8 = sshll.u32 %s83_s0, 4  ;;  %s42_s8 = int_to_ptr.vmem [resolvable:$true] %s41_s8 }
  0x76   :  { %v13_v2 = vpop.xlane.xlu0 %12 }
  0x77   :  { %v14_v3 = vsub.f32 %v9_v0, %v13_v2 }
  0x79   :  { %v15_v4 = vmul.f32 1.442695, %v14_v3 }
  0x7b   :  { %53 = vpow2.f32 %v15_v4 }
  0x81   :  { %v54_v5 = vpop.eup %53 }
  0x82   :  { %v17_v6 = vsel %vm10_vm0, %v54_v5, 0.0 }
  0x83   :  { %18 = vadd.xlane.f32.xlu0 %v17_v6 }
  0xf6   :  { %v19_v7 = vpop.xlane.xlu0 %18 }
  0xf7   :  { %55 = vrcp.f32 %v19_v7  ;;  %v31_v11 = vand.u32 2147483648, %v19_v7  ;;  %v29_v13 = vand.u32 2147483647, %v19_v7  ;;  %vm25_vm2 = vweird.f32 %v19_v7 }
  0xf9   :  { %v32_v15 = vor.u32 1.1754944e-38, %v31_v11  ;;  %vm30_vm4 = vcmp.eq.f32.partialorder %v29_v13, 8.507059e+37 }
  0xfd   :  { %v56_v8 = vpop.eup %55 }
  0xfe   :  { %v21_v9 = vmul.f32 %v56_v8, %v19_v7  ;;  %vm26_vm1 = vweird.f32 %v56_v8 }
  0xff   :  { %vm27_vm3 = vmor %vm25_vm2, %vm26_vm1 }
 0x100   :  { %v22_v10 = vsub.f32 1.0, %v21_v9 }
 0x102   :  { %v23_v12 = vmul.f32 %v56_v8, %v22_v10 }
 0x104   :  { %v24_v14 = vadd.f32 %v56_v8, %v23_v12 }
 0x106   :  { %v28_v16 = vsel %vm27_vm3, %v56_v8, %v24_v14 }
 0x107   :  { %v33_v17 = vsel %vm30_vm4, %v32_v15, %v28_v16 }
 0x108   :  { %v34_v18 = vmul.f32 %v54_v5, %v33_v17 }
 0x10a   :  { %35 = vst.msk [vmem:[#allocation2] sm:$0x3] %vm10_vm0, %v34_v18 }
 0x10b   :  { %46 = dma.vmem_to_hbm [thread:$0]  %s42_s8, 32, %s44_s11, [#allocation3]  }
 0x10c   :  { %81 = dma.done.wait [#allocation3], 32  }
 0x10d   :  { %82 = vsyncadd [#allocation3], 4294967264 }
 0x10e   :  { %51 = vsyncpa [#allocation3], 1 }

</bundles_post_ra>
